<compile_context>
chip_gen: v7x
topology: tpu7x:2x2x1
jax: 0.10.0
libtpu: 0.0.40
codegen_flags: <defaults>
</compile_context>

<pallas_src>
import functools
import math

import numpy as np
import jax
import jax.numpy as jnp
from jax import lax
from jax.experimental import pallas as pl
from jax.experimental.pallas import tpu as pltpu


# ----------------------------------------------------------------------------
# small in-kernel helpers (pure value math; traced inside kernels)
# ----------------------------------------------------------------------------
def _ln(x, g, b, eps=1e-5):
    mu = jnp.mean(x, axis=-1, keepdims=True)
    xc = x - mu
    var = jnp.mean(xc * xc, axis=-1, keepdims=True)
    return xc * lax.rsqrt(var + eps) * g + b


def _gelu(h):
    # exact (erf-based) GELU, matching torch.nn.functional.gelu default
    return 0.5 * h * (1.0 + lax.erf(h * (1.0 / math.sqrt(2.0))))


def _softmax_rows(s):
    m = jnp.max(s, axis=-1, keepdims=True)
    p = jnp.exp(s - m)
    return p * pl.reciprocal(jnp.sum(p, axis=-1, keepdims=True), approx=True)


def _mha(q, k, v, n_heads, scale):
    """q:[Lq,D], k/v:[Lk,D] -> list of per-head outputs, each [Lq, Dh]."""
    D = q.shape[-1]
    Dh = D // n_heads
    qs = q * scale                      # fold scale into Q (cheaper than on scores)
    outs = []
    for h in range(n_heads):
        lo, hi = h * Dh, (h + 1) * Dh
        qh, kh, vh = qs[:, lo:hi], k[:, lo:hi], v[:, lo:hi]
        s = lax.dot_general(qh, kh, (((1,), (1,)), ((), ())),
                            preferred_element_type=jnp.float32)        # [Lq, Lk]
        a = _softmax_rows(s)
        outs.append(jnp.dot(a, vh, preferred_element_type=jnp.float32))  # [Lq, Dh]
    return outs


def _merge_heads(outs, mix):
    """Reassemble per-head outputs into [L, H*Dh].

    mix=False: torch's [L, H, Dh].view(L, H*Dh)  -> concat heads along lanes.
    mix=True : torch's contiguous [H, L, Dh].view(L, H*Dh) (Informer 'mix') ->
               built row-by-row with static slices (avoids unsupported reshapes).
    """
    n_heads = len(outs)
    L = outs[0].shape[0]
    if not mix:
        return jnp.concatenate(outs, axis=-1)
    rows = []
    for i in range(L):
        pieces = []
        for c in range(n_heads):
            r = n_heads * i + c           # flat row index into stacked [H*L, Dh]
            h, l = divmod(r, L)
            pieces.append(outs[h][l:l + 1, :])
        rows.append(jnp.concatenate(pieces, axis=-1))
    return jnp.concatenate(rows, axis=0)


# ----------------------------------------------------------------------------
# packed-vector row layouts
# ----------------------------------------------------------------------------
_ENC_BO, _ENC_B2, _ENC_N1G, _ENC_N1B, _ENC_N2G, _ENC_N2B = range(6)
(_DEC_BO_S, _DEC_BQ_C, _DEC_BO_C, _DEC_B2,
 _DEC_N1G, _DEC_N1B, _DEC_N2G, _DEC_N2B, _DEC_N3G, _DEC_N3B) = range(10)


def _row(vec, i):
    return vec[i:i + 1, :]


# ----------------------------------------------------------------------------
# Pallas kernels (one per fused stage); all use grid=(batch,), parallel.
# ----------------------------------------------------------------------------
def _embed_kernel(x_ref, w_ref, pe_ref, o_ref):
    """TokenEmbedding (Conv1d k=3, circular pad, no bias) + PositionalEmbedding."""
    x = x_ref[0]                           # [L, C]
    L, C = x.shape
    w = w_ref[...]                         # [3C, D]; rows: k=0 -> x[l-1], k=1 -> x[l], k=2 -> x[l+1]
    x_prev = jnp.concatenate([x[L - 1:, :], x[:L - 1, :]], axis=0)   # x[(l-1) mod L]
    x_next = jnp.concatenate([x[1:, :], x[:1, :]], axis=0)           # x[(l+1) mod L]
    tok = (jnp.dot(x_prev, w[0:C, :], preferred_element_type=jnp.float32)
           + jnp.dot(x, w[C:2 * C, :], preferred_element_type=jnp.float32)
           + jnp.dot(x_next, w[2 * C:3 * C, :], preferred_element_type=jnp.float32))
    pe = pe_ref[...]                       # [max_len, D]
    o_ref[0] = tok + pe[:L, :]


def _enc_layer_kernel(x_ref, wqkv_ref, bqkv_ref, wo_ref, w1_ref, b1_ref,
                      w2_ref, vec_ref, o_ref, *, n_heads, scale):
    x = x_ref[0]                           # [L, D]
    D = x.shape[-1]
    vec = vec_ref[...]                     # [6, D]
    # --- self-attention (ProbAttention == full attention at these lengths), mix=False
    qkv = jnp.dot(x, wqkv_ref[...], preferred_element_type=jnp.float32) + bqkv_ref[...]
    outs = _mha(qkv[:, :D], qkv[:, D:2 * D], qkv[:, 2 * D:], n_heads, scale)
    attn = _merge_heads(outs, mix=False)
    attn = jnp.dot(attn, wo_ref[...], preferred_element_type=jnp.float32) + _row(vec, _ENC_BO)
    x = _ln(x + attn, _row(vec, _ENC_N1G), _row(vec, _ENC_N1B))
    # --- FFN (conv1 k=1 -> gelu -> conv2 k=1)
    h = jnp.dot(x, w1_ref[...], preferred_element_type=jnp.float32) + b1_ref[...]
    h = _gelu(h)
    y = jnp.dot(h, w2_ref[...], preferred_element_type=jnp.float32) + _row(vec, _ENC_B2)
    o_ref[0] = _ln(x + y, _row(vec, _ENC_N2G), _row(vec, _ENC_N2B))


def _cross_kv_kernel(enc_ref, nvec_ref, wkv_ref, bkv_ref, o_ref):
    """encoder final LayerNorm + this decoder layer's cross K/V projection."""
    e = enc_ref[0]                         # [Lk, D]
    nvec = nvec_ref[...]                   # [2, D]
    e = _ln(e, _row(nvec, 0), _row(nvec, 1))
    o_ref[0] = jnp.dot(e, wkv_ref[...], preferred_element_type=jnp.float32) + bkv_ref[...]


def _dec_layer_kernel(x_ref, kv_ref, wqkv_ref, bqkv_ref, wo_s_ref, wq_c_ref,
                      wo_c_ref, w1_ref, b1_ref, w2_ref, vec_ref, o_ref,
                      *, n_heads, scale):
    x = x_ref[0]                           # [Lq, D]
    D = x.shape[-1]
    vec = vec_ref[...]                     # [10, D]
    kv = kv_ref[0]                         # [Lk, 2D] (pre-projected cross K|V)
    kc, vc = kv[:, :D], kv[:, D:]
    # --- self-attention (ProbAttention == full attention at these lengths), mix=True
    qkv = jnp.dot(x, wqkv_ref[...], preferred_element_type=jnp.float32) + bqkv_ref[...]
    outs = _mha(qkv[:, :D], qkv[:, D:2 * D], qkv[:, 2 * D:], n_heads, scale)
    attn = _merge_heads(outs, mix=True)
    attn = jnp.dot(attn, wo_s_ref[...], preferred_element_type=jnp.float32) + _row(vec, _DEC_BO_S)
    x = _ln(x + attn, _row(vec, _DEC_N1G), _row(vec, _DEC_N1B))
    # --- cross-attention (FullAttention) against precomputed encoder K/V, mix=False
    qc = jnp.dot(x, wq_c_ref[...], preferred_element_type=jnp.float32) + _row(vec, _DEC_BQ_C)
    outs = _mha(qc, kc, vc, n_heads, scale)
    attn = _merge_heads(outs, mix=False)
    attn = jnp.dot(attn, wo_c_ref[...], preferred_element_type=jnp.float32) + _row(vec, _DEC_BO_C)
    x = _ln(x + attn, _row(vec, _DEC_N2G), _row(vec, _DEC_N2B))
    # --- FFN
    h = jnp.dot(x, w1_ref[...], preferred_element_type=jnp.float32) + b1_ref[...]
    h = _gelu(h)
    y = jnp.dot(h, w2_ref[...], preferred_element_type=jnp.float32) + _row(vec, _DEC_B2)
    o_ref[0] = _ln(x + y, _row(vec, _DEC_N3G), _row(vec, _DEC_N3B))


def _final_proj_kernel(x_ref, nvec_ref, pw_ref, pb_ref, o_ref):
    """decoder final LayerNorm + Linear(d_model -> 1) on the LAST token only."""
    x = x_ref[0]                           # [Lq, D]
    last = x[x.shape[0] - 1:, :]           # [1, D]
    nvec = nvec_ref[...]                   # [2, D]
    last = _ln(last, _row(nvec, 0), _row(nvec, 1))
    y = jnp.sum(last * pw_ref[...], axis=-1, keepdims=True) + pb_ref[...]   # [1, 1]
    o_ref[0] = y


# ----------------------------------------------------------------------------
# wrappers (pallas_call plumbing)
# ----------------------------------------------------------------------------
_PARALLEL = pltpu.CompilerParams(dimension_semantics=("parallel",))


def _prob_attention_is_full(L, factor=5):
    return factor * int(np.ceil(np.log(L))) >= L


def data_embedding(x, w_cat, pe):
    B, L, C = x.shape
    D = w_cat.shape[1]
    return pl.pallas_call(
        _embed_kernel,
        grid=(B,),
        in_specs=[
            pl.BlockSpec((1, L, C), lambda b: (b, 0, 0)),
            pl.BlockSpec((3 * C, D), lambda b: (0, 0)),
            pl.BlockSpec(pe.shape, lambda b: (0, 0)),
        ],
        out_specs=pl.BlockSpec((1, L, D), lambda b: (b, 0, 0)),
        out_shape=jax.ShapeDtypeStruct((B, L, D), jnp.float32),
        compiler_params=_PARALLEL,
    )(x, w_cat, pe)


def encoder_layer_call(p, x, n_heads, scale):
    B, L, D = x.shape
    assert _prob_attention_is_full(L), "ProbAttention != full attention here"
    F = p["w1"].shape[1]
    return pl.pallas_call(
        functools.partial(_enc_layer_kernel, n_heads=n_heads, scale=scale),
        grid=(B,),
        in_specs=[
            pl.BlockSpec((1, L, D), lambda b: (b, 0, 0)),
            pl.BlockSpec((D, 3 * D), lambda b: (0, 0)),
            pl.BlockSpec((1, 3 * D), lambda b: (0, 0)),
            pl.BlockSpec((D, D), lambda b: (0, 0)),
            pl.BlockSpec((D, F), lambda b: (0, 0)),
            pl.BlockSpec((1, F), lambda b: (0, 0)),
            pl.BlockSpec((F, D), lambda b: (0, 0)),
            pl.BlockSpec((6, D), lambda b: (0, 0)),
        ],
        out_specs=pl.BlockSpec((1, L, D), lambda b: (b, 0, 0)),
        out_shape=jax.ShapeDtypeStruct((B, L, D), jnp.float32),
        compiler_params=_PARALLEL,
    )(x, p["wqkv"], p["bqkv"], p["wo"], p["w1"], p["b1"], p["w2"], p["vec"])


def cross_kv_call(enc_norm_vec, p, enc_out):
    B, Lk, D = enc_out.shape
    return pl.pallas_call(
        _cross_kv_kernel,
        grid=(B,),
        in_specs=[
            pl.BlockSpec((1, Lk, D), lambda b: (b, 0, 0)),
            pl.BlockSpec((2, D), lambda b: (0, 0)),
            pl.BlockSpec((D, 2 * D), lambda b: (0, 0)),
            pl.BlockSpec((1, 2 * D), lambda b: (0, 0)),
        ],
        out_specs=pl.BlockSpec((1, Lk, 2 * D), lambda b: (b, 0, 0)),
        out_shape=jax.ShapeDtypeStruct((B, Lk, 2 * D), jnp.float32),
        compiler_params=_PARALLEL,
    )(enc_out, enc_norm_vec, p["wkv_c"], p["bkv_c"])


def decoder_layer_call(p, x, kv_cross, n_heads, scale):
    B, Lq, D = x.shape
    Lk = kv_cross.shape[1]
    assert _prob_attention_is_full(Lq), "ProbAttention != full attention here"
    F = p["w1"].shape[1]
    return pl.pallas_call(
        functools.partial(_dec_layer_kernel, n_heads=n_heads, scale=scale),
        grid=(B,),
        in_specs=[
            pl.BlockSpec((1, Lq, D), lambda b: (b, 0, 0)),
            pl.BlockSpec((1, Lk, 2 * D), lambda b: (b, 0, 0)),
            pl.BlockSpec((D, 3 * D), lambda b: (0, 0)),
            pl.BlockSpec((1, 3 * D), lambda b: (0, 0)),
            pl.BlockSpec((D, D), lambda b: (0, 0)),   # wo_self
            pl.BlockSpec((D, D), lambda b: (0, 0)),   # wq_cross
            pl.BlockSpec((D, D), lambda b: (0, 0)),   # wo_cross
            pl.BlockSpec((D, F), lambda b: (0, 0)),
            pl.BlockSpec((1, F), lambda b: (0, 0)),
            pl.BlockSpec((F, D), lambda b: (0, 0)),
            pl.BlockSpec((10, D), lambda b: (0, 0)),
        ],
        out_specs=pl.BlockSpec((1, Lq, D), lambda b: (b, 0, 0)),
        out_shape=jax.ShapeDtypeStruct((B, Lq, D), jnp.float32),
        compiler_params=_PARALLEL,
    )(x, kv_cross, p["wqkv"], p["bqkv"], p["wo_s"], p["wq_c"], p["wo_c"],
      p["w1"], p["b1"], p["w2"], p["vec"])


def final_proj_call(dec_norm_vec, proj_w_row, proj_b, dec_out):
    B, Lq, D = dec_out.shape
    return pl.pallas_call(
        _final_proj_kernel,
        grid=(B,),
        in_specs=[
            pl.BlockSpec((1, Lq, D), lambda b: (b, 0, 0)),
            pl.BlockSpec((2, D), lambda b: (0, 0)),
            pl.BlockSpec((1, D), lambda b: (0, 0)),
            pl.BlockSpec((1, 1), lambda b: (0, 0)),
        ],
        out_specs=pl.BlockSpec((1, 1, 1), lambda b: (b, 0, 0)),
        out_shape=jax.ShapeDtypeStruct((B, 1, 1), jnp.float32),
        compiler_params=_PARALLEL,
    )(dec_out, dec_norm_vec, proj_w_row, proj_b)


# ----------------------------------------------------------------------------
# model wiring
# ----------------------------------------------------------------------------
def positional_encoding(max_len, d_model):
    position = np.arange(max_len, dtype=np.float32)[:, None]
    div_term = np.exp(np.arange(0, d_model, 2, dtype=np.float32)
                      * -(math.log(10000.0) / d_model))
    pe = np.zeros((max_len, d_model), dtype=np.float32)
    pe[:, 0::2] = np.sin(position * div_term)
    pe[:, 1::2] = np.cos(position * div_term)
    return jnp.asarray(pe)


def informer_forward(params, input_x, ex_in, *, label_len, pred_len, n_heads):
    """Informer_Net.forward: enc() once, then (pred_len-1) autoregressive dec() steps.

    input_x: [B, steps, input_dim]; ex_in: [B, >=pred_len-1, input_dim-1] or None.
    Returns: [B, pred_len, 1]
    """
    d_model = params["enc_emb_w"].shape[1]
    scale = 1.0 / math.sqrt(d_model // n_heads)

    # ---- enc(): encoder stack; enc_out is constant over the autoregressive
    # steps, so fold its final LayerNorm + cross K/V projection into one kernel
    # per decoder layer, computed once.
    enc_out = data_embedding(input_x, params["enc_emb_w"], params["pe"])
    for lp in params["enc_layers"]:
        enc_out = encoder_layer_call(lp, enc_out, n_heads, scale)
    cross_kvs = [cross_kv_call(params["enc_norm_vec"], lp, enc_out)
                 for lp in params["dec_layers"]]

    history = input_x[:, -label_len:, :]
    preds = []
    for step in range(pred_len):
        dec_out = data_embedding(history, params["dec_emb_w"], params["pe"])
        for lp, kv in zip(params["dec_layers"], cross_kvs):
            dec_out = decoder_layer_call(lp, dec_out, kv, n_heads, scale)
        y_pred = final_proj_call(params["dec_norm_vec"], params["proj_w_row"],
                                 params["proj_b"], dec_out)
        preds.append(y_pred)
        if step < pred_len - 1:
            if ex_in is not None:
                inp = jnp.concatenate([ex_in[:, step:step + 1, :], y_pred], axis=2)
            else:
                inp = y_pred
            history = jnp.concatenate([history, inp], axis=1)
    # TODO(synk): history is kept at its true (growing) length: Informer's
    # mix=True head-view in decoder self-attention depends on the real sequence
    # length, so padding to a fixed length + key-masking would change semantics.
    return jnp.concatenate(preds, axis=1)


# ----------------------------------------------------------------------------
# Deterministic parameter init (synthetic; shapes/packing follow the Torch module)
# ----------------------------------------------------------------------------
def init_params(key, *, input_dim, d_model, n_heads, e_layers, d_layers, d_ff,
                max_len):
    keys = iter(jax.random.split(key, 256))

    def nrm(shape, scale=0.05):
        return scale * jax.random.normal(next(keys), shape, dtype=jnp.float32)

    def ones():
        return jnp.ones((d_model,), jnp.float32)

    def zeros():
        return jnp.zeros((d_model,), jnp.float32)

    def packed_qkv():
        wq, wk, wv = nrm((d_model, d_model)), nrm((d_model, d_model)), nrm((d_model, d_model))
        bq, bk, bv = nrm((d_model,)), nrm((d_model,)), nrm((d_model,))
        return (jnp.concatenate([wq, wk, wv], axis=1),
                jnp.concatenate([bq, bk, bv]).reshape(1, 3 * d_model))

    def enc_layer_params():
        wqkv, bqkv = packed_qkv()
        wo, bo = nrm((d_model, d_model)), nrm((d_model,))
        w1, b1 = nrm((d_model, d_ff)), nrm((d_ff,))
        w2, b2 = nrm((d_ff, d_model)), nrm((d_model,))
        vec = jnp.stack([bo, b2, ones(), zeros(), ones(), zeros()])   # _ENC_* layout
        return dict(wqkv=wqkv, bqkv=bqkv, wo=wo, w1=w1,
                    b1=b1.reshape(1, d_ff), w2=w2, vec=vec)

    def dec_layer_params():
        wqkv, bqkv = packed_qkv()
        wo_s, bo_s = nrm((d_model, d_model)), nrm((d_model,))
        wq_c, bq_c = nrm((d_model, d_model)), nrm((d_model,))
        wk_c, bk_c = nrm((d_model, d_model)), nrm((d_model,))
        wv_c, bv_c = nrm((d_model, d_model)), nrm((d_model,))
        wo_c, bo_c = nrm((d_model, d_model)), nrm((d_model,))
        w1, b1 = nrm((d_model, d_ff)), nrm((d_ff,))
        w2, b2 = nrm((d_ff, d_model)), nrm((d_model,))
        vec = jnp.stack([bo_s, bq_c, bo_c, b2,
                         ones(), zeros(), ones(), zeros(), ones(), zeros()])  # _DEC_* layout
        return dict(wqkv=wqkv, bqkv=bqkv, wo_s=wo_s, wq_c=wq_c,
                    wkv_c=jnp.concatenate([wk_c, wv_c], axis=1),
                    bkv_c=jnp.concatenate([bk_c, bv_c]).reshape(1, 2 * d_model),
                    wo_c=wo_c, w1=w1, b1=b1.reshape(1, d_ff), w2=w2, vec=vec)

    # TokenEmbedding conv weights: torch shape [d_model, c_in, 3] -> [3*c_in, d_model]
    # (row blocks k=0/1/2 applied to x[l-1] / x[l] / x[l+1], circular).
    enc_conv = nrm((d_model, input_dim, 3))
    dec_conv = nrm((d_model, input_dim, 3))
    enc_emb_w = jnp.transpose(enc_conv, (2, 1, 0)).reshape(3 * input_dim, d_model)
    dec_emb_w = jnp.transpose(dec_conv, (2, 1, 0)).reshape(3 * input_dim, d_model)

    return dict(
        pe=positional_encoding(max_len, d_model),
        enc_emb_w=enc_emb_w, dec_emb_w=dec_emb_w,
        enc_layers=[enc_layer_params() for _ in range(e_layers)],
        enc_norm_vec=jnp.stack([ones(), zeros()]),
        dec_layers=[dec_layer_params() for _ in range(d_layers)],
        dec_norm_vec=jnp.stack([ones(), zeros()]),
        # projection nn.Linear(d_model, 1): weight stored as a [1, d_model] row
        proj_w_row=nrm((1, d_model)),
        proj_b=nrm((1, 1)),
    )


# ----------------------------------------------------------------------------
if __name__ == "__main__":
    B, steps, input_dim = 2, 8, 3
    label_len, pred_len = 4, 4
    d_model, n_heads, e_layers, d_layers, d_ff, factor = 32, 4, 2, 1, 64, 5

    # sanity: at these sizes ProbAttention == full attention (see module notes)
    assert _prob_attention_is_full(steps, factor)
    for L in range(label_len, label_len + pred_len):
        assert _prob_attention_is_full(L, factor)

    key = jax.random.PRNGKey(0)
    kp, kx, ke = jax.random.split(key, 3)
    params = init_params(kp, input_dim=input_dim, d_model=d_model,
                         n_heads=n_heads, e_layers=e_layers, d_layers=d_layers,
                         d_ff=d_ff, max_len=64)
    x = jax.random.normal(kx, (B, steps, input_dim), dtype=jnp.float32)
    ex_in = jax.random.normal(ke, (B, pred_len, input_dim - 1), dtype=jnp.float32)

    fwd = jax.jit(functools.partial(informer_forward, label_len=label_len,
                                    pred_len=pred_len, n_heads=n_heads))
    pred = jax.block_until_ready(fwd(params, x, ex_in))
    assert pred.shape == (B, pred_len, 1)
    assert bool(jnp.all(jnp.isfinite(pred)))
    print("KERNEL_OK")
</pallas_src>

<mosaic_0001>
module attributes {stable_mosaic.version = 11 : i64} {
  func.func @_enc_layer_kernel(%arg0: i32, %arg1: memref<1x8x32xf32, #tpu.memory_space<vmem>>, %arg2: memref<32x96xf32, #tpu.memory_space<vmem>>, %arg3: memref<1x96xf32, #tpu.memory_space<vmem>>, %arg4: memref<32x32xf32, #tpu.memory_space<vmem>>, %arg5: memref<32x64xf32, #tpu.memory_space<vmem>>, %arg6: memref<1x64xf32, #tpu.memory_space<vmem>>, %arg7: memref<64x32xf32, #tpu.memory_space<vmem>>, %arg8: memref<6x32xf32, #tpu.memory_space<vmem>>, %arg9: memref<1x8x32xf32, #tpu.memory_space<vmem>>) attributes {dimension_semantics = [#tpu.dimension_semantics<parallel>], iteration_bounds = array<i64: 2>, scalar_prefetch = 0 : i64, scratch_operands = 0 : i64, tpu.core_type = #tpu.core_type<tc>, window_params = [{transform_indices = @transform_0, window_bounds = array<i64: 1, 8, 32>}, {pipeline_mode = #tpu.pipeline_mode<synchronous>, transform_indices = @transform_1, window_bounds = array<i64: 32, 96>}, {pipeline_mode = #tpu.pipeline_mode<synchronous>, transform_indices = @transform_2, window_bounds = array<i64: 1, 96>}, {pipeline_mode = #tpu.pipeline_mode<synchronous>, transform_indices = @transform_3, window_bounds = array<i64: 32, 32>}, {pipeline_mode = #tpu.pipeline_mode<synchronous>, transform_indices = @transform_4, window_bounds = array<i64: 32, 64>}, {pipeline_mode = #tpu.pipeline_mode<synchronous>, transform_indices = @transform_5, window_bounds = array<i64: 1, 64>}, {pipeline_mode = #tpu.pipeline_mode<synchronous>, transform_indices = @transform_6, window_bounds = array<i64: 64, 32>}, {pipeline_mode = #tpu.pipeline_mode<synchronous>, transform_indices = @transform_7, window_bounds = array<i64: 6, 32>}, {transform_indices = @transform_8, window_bounds = array<i64: 1, 8, 32>}]} {
    %c0 = arith.constant 0 : index
    %c0_0 = arith.constant 0 : index
    %c0_1 = arith.constant 0 : index
    %0 = vector.load %arg1[%c0, %c0_0, %c0_1] : memref<1x8x32xf32, #tpu.memory_space<vmem>>, vector<1x8x32xf32>
    %1 = vector.shape_cast %0 : vector<1x8x32xf32> to vector<8x32xf32>
    %c0_2 = arith.constant 0 : index
    %c0_3 = arith.constant 0 : index
    %2 = vector.load %arg8[%c0_2, %c0_3] : memref<6x32xf32, #tpu.memory_space<vmem>>, vector<6x32xf32>
    %c0_4 = arith.constant 0 : index
    %c0_5 = arith.constant 0 : index
    %3 = vector.load %arg2[%c0_4, %c0_5] : memref<32x96xf32, #tpu.memory_space<vmem>>, vector<32x96xf32>
    %cst = arith.constant dense<0.000000e+00> : vector<8x96xf32>
    %4 = tpu.matmul %1, %3, %cst {dimension_numbers = #tpu.dot_dimension_numbers<[1], [0], [0], [1], [0, 0, 1, 1], [], []>} : vector<8x32xf32>, vector<32x96xf32>, vector<8x96xf32> -> vector<8x96xf32>
    %c0_6 = arith.constant 0 : index
    %c0_7 = arith.constant 0 : index
    %5 = vector.load %arg3[%c0_6, %c0_7] : memref<1x96xf32, #tpu.memory_space<vmem>>, vector<1x96xf32>
    %6 = vector.broadcast %5 : vector<1x96xf32> to vector<8x96xf32>
    %7 = arith.addf %4, %6 : vector<8x96xf32>
    %8 = vector.extract_strided_slice %7 {offsets = [0, 0], sizes = [8, 32], strides = [1, 1]} : vector<8x96xf32> to vector<8x32xf32>
    %9 = vector.extract_strided_slice %7 {offsets = [0, 32], sizes = [8, 32], strides = [1, 1]} : vector<8x96xf32> to vector<8x32xf32>
    %10 = vector.extract_strided_slice %7 {offsets = [0, 64], sizes = [8, 32], strides = [1, 1]} : vector<8x96xf32> to vector<8x32xf32>
    %cst_8 = arith.constant 0.353553385 : f32
    %11 = vector.broadcast %cst_8 : f32 to vector<8x32xf32>
    %12 = arith.mulf %8, %11 : vector<8x32xf32>
    %13 = vector.extract_strided_slice %12 {offsets = [0, 0], sizes = [8, 8], strides = [1, 1]} : vector<8x32xf32> to vector<8x8xf32>
    %14 = vector.extract_strided_slice %9 {offsets = [0, 0], sizes = [8, 8], strides = [1, 1]} : vector<8x32xf32> to vector<8x8xf32>
    %15 = vector.extract_strided_slice %10 {offsets = [0, 0], sizes = [8, 8], strides = [1, 1]} : vector<8x32xf32> to vector<8x8xf32>
    %cst_9 = arith.constant dense<0.000000e+00> : vector<8x8xf32>
    %16 = tpu.matmul %13, %14, %cst_9 {dimension_numbers = #tpu.dot_dimension_numbers<[1], [1], [0], [0], [0, 0, 1, 0], [], []>} : vector<8x8xf32>, vector<8x8xf32>, vector<8x8xf32> -> vector<8x8xf32>
    %cst_10 = arith.constant dense<0xFF800000> : vector<8xf32>
    %17 = vector.multi_reduction <maximumf>, %16, %cst_10 [1] : vector<8x8xf32> to vector<8xf32>
    %18 = vector.shape_cast %17 : vector<8xf32> to vector<8x1xf32>
    %19 = vector.broadcast %18 : vector<8x1xf32> to vector<8x8xf32>
    %20 = arith.subf %16, %19 : vector<8x8xf32>
    %21 = math.exp %20 : vector<8x8xf32>
    %cst_11 = arith.constant dense<0.000000e+00> : vector<8xf32>
    %22 = vector.multi_reduction <add>, %21, %cst_11 [1] : vector<8x8xf32> to vector<8xf32>
    %23 = vector.shape_cast %22 : vector<8xf32> to vector<8x1xf32>
    %24 = tpu.reciprocal %23 {approx = true} : vector<8x1xf32> -> vector<8x1xf32>
    %25 = vector.broadcast %24 : vector<8x1xf32> to vector<8x8xf32>
    %26 = arith.mulf %21, %25 : vector<8x8xf32>
    %cst_12 = arith.constant dense<0.000000e+00> : vector<8x8xf32>
    %27 = tpu.matmul %26, %15, %cst_12 {dimension_numbers = #tpu.dot_dimension_numbers<[1], [0], [0], [1], [0, 0, 1, 1], [], []>} : vector<8x8xf32>, vector<8x8xf32>, vector<8x8xf32> -> vector<8x8xf32>
    %28 = vector.extract_strided_slice %12 {offsets = [0, 8], sizes = [8, 8], strides = [1, 1]} : vector<8x32xf32> to vector<8x8xf32>
    %29 = vector.extract_strided_slice %9 {offsets = [0, 8], sizes = [8, 8], strides = [1, 1]} : vector<8x32xf32> to vector<8x8xf32>
    %30 = vector.extract_strided_slice %10 {offsets = [0, 8], sizes = [8, 8], strides = [1, 1]} : vector<8x32xf32> to vector<8x8xf32>
    %cst_13 = arith.constant dense<0.000000e+00> : vector<8x8xf32>
    %31 = tpu.matmul %28, %29, %cst_13 {dimension_numbers = #tpu.dot_dimension_numbers<[1], [1], [0], [0], [0, 0, 1, 0], [], []>} : vector<8x8xf32>, vector<8x8xf32>, vector<8x8xf32> -> vector<8x8xf32>
    %cst_14 = arith.constant dense<0xFF800000> : vector<8xf32>
    %32 = vector.multi_reduction <maximumf>, %31, %cst_14 [1] : vector<8x8xf32> to vector<8xf32>
    %33 = vector.shape_cast %32 : vector<8xf32> to vector<8x1xf32>
    %34 = vector.broadcast %33 : vector<8x1xf32> to vector<8x8xf32>
    %35 = arith.subf %31, %34 : vector<8x8xf32>
    %36 = math.exp %35 : vector<8x8xf32>
    %cst_15 = arith.constant dense<0.000000e+00> : vector<8xf32>
    %37 = vector.multi_reduction <add>, %36, %cst_15 [1] : vector<8x8xf32> to vector<8xf32>
    %38 = vector.shape_cast %37 : vector<8xf32> to vector<8x1xf32>
    %39 = tpu.reciprocal %38 {approx = true} : vector<8x1xf32> -> vector<8x1xf32>
    %40 = vector.broadcast %39 : vector<8x1xf32> to vector<8x8xf32>
    %41 = arith.mulf %36, %40 : vector<8x8xf32>
    %cst_16 = arith.constant dense<0.000000e+00> : vector<8x8xf32>
    %42 = tpu.matmul %41, %30, %cst_16 {dimension_numbers = #tpu.dot_dimension_numbers<[1], [0], [0], [1], [0, 0, 1, 1], [], []>} : vector<8x8xf32>, vector<8x8xf32>, vector<8x8xf32> -> vector<8x8xf32>
    %43 = vector.extract_strided_slice %12 {offsets = [0, 16], sizes = [8, 8], strides = [1, 1]} : vector<8x32xf32> to vector<8x8xf32>
    %44 = vector.extract_strided_slice %9 {offsets = [0, 16], sizes = [8, 8], strides = [1, 1]} : vector<8x32xf32> to vector<8x8xf32>
    %45 = vector.extract_strided_slice %10 {offsets = [0, 16], sizes = [8, 8], strides = [1, 1]} : vector<8x32xf32> to vector<8x8xf32>
    %cst_17 = arith.constant dense<0.000000e+00> : vector<8x8xf32>
    %46 = tpu.matmul %43, %44, %cst_17 {dimension_numbers = #tpu.dot_dimension_numbers<[1], [1], [0], [0], [0, 0, 1, 0], [], []>} : vector<8x8xf32>, vector<8x8xf32>, vector<8x8xf32> -> vector<8x8xf32>
    %cst_18 = arith.constant dense<0xFF800000> : vector<8xf32>
    %47 = vector.multi_reduction <maximumf>, %46, %cst_18 [1] : vector<8x8xf32> to vector<8xf32>
    %48 = vector.shape_cast %47 : vector<8xf32> to vector<8x1xf32>
    %49 = vector.broadcast %48 : vector<8x1xf32> to vector<8x8xf32>
    %50 = arith.subf %46, %49 : vector<8x8xf32>
    %51 = math.exp %50 : vector<8x8xf32>
    %cst_19 = arith.constant dense<0.000000e+00> : vector<8xf32>
    %52 = vector.multi_reduction <add>, %51, %cst_19 [1] : vector<8x8xf32> to vector<8xf32>
    %53 = vector.shape_cast %52 : vector<8xf32> to vector<8x1xf32>
    %54 = tpu.reciprocal %53 {approx = true} : vector<8x1xf32> -> vector<8x1xf32>
    %55 = vector.broadcast %54 : vector<8x1xf32> to vector<8x8xf32>
    %56 = arith.mulf %51, %55 : vector<8x8xf32>
    %cst_20 = arith.constant dense<0.000000e+00> : vector<8x8xf32>
    %57 = tpu.matmul %56, %45, %cst_20 {dimension_numbers = #tpu.dot_dimension_numbers<[1], [0], [0], [1], [0, 0, 1, 1], [], []>} : vector<8x8xf32>, vector<8x8xf32>, vector<8x8xf32> -> vector<8x8xf32>
    %58 = vector.extract_strided_slice %12 {offsets = [0, 24], sizes = [8, 8], strides = [1, 1]} : vector<8x32xf32> to vector<8x8xf32>
    %59 = vector.extract_strided_slice %9 {offsets = [0, 24], sizes = [8, 8], strides = [1, 1]} : vector<8x32xf32> to vector<8x8xf32>
    %60 = vector.extract_strided_slice %10 {offsets = [0, 24], sizes = [8, 8], strides = [1, 1]} : vector<8x32xf32> to vector<8x8xf32>
    %cst_21 = arith.constant dense<0.000000e+00> : vector<8x8xf32>
    %61 = tpu.matmul %58, %59, %cst_21 {dimension_numbers = #tpu.dot_dimension_numbers<[1], [1], [0], [0], [0, 0, 1, 0], [], []>} : vector<8x8xf32>, vector<8x8xf32>, vector<8x8xf32> -> vector<8x8xf32>
    %cst_22 = arith.constant dense<0xFF800000> : vector<8xf32>
    %62 = vector.multi_reduction <maximumf>, %61, %cst_22 [1] : vector<8x8xf32> to vector<8xf32>
    %63 = vector.shape_cast %62 : vector<8xf32> to vector<8x1xf32>
    %64 = vector.broadcast %63 : vector<8x1xf32> to vector<8x8xf32>
    %65 = arith.subf %61, %64 : vector<8x8xf32>
    %66 = math.exp %65 : vector<8x8xf32>
    %cst_23 = arith.constant dense<0.000000e+00> : vector<8xf32>
    %67 = vector.multi_reduction <add>, %66, %cst_23 [1] : vector<8x8xf32> to vector<8xf32>
    %68 = vector.shape_cast %67 : vector<8xf32> to vector<8x1xf32>
    %69 = tpu.reciprocal %68 {approx = true} : vector<8x1xf32> -> vector<8x1xf32>
    %70 = vector.broadcast %69 : vector<8x1xf32> to vector<8x8xf32>
    %71 = arith.mulf %66, %70 : vector<8x8xf32>
    %cst_24 = arith.constant dense<0.000000e+00> : vector<8x8xf32>
    %72 = tpu.matmul %71, %60, %cst_24 {dimension_numbers = #tpu.dot_dimension_numbers<[1], [0], [0], [1], [0, 0, 1, 1], [], []>} : vector<8x8xf32>, vector<8x8xf32>, vector<8x8xf32> -> vector<8x8xf32>
    %73 = tpu.concatenate %27, %42, %57, %72 in 1 : vector<8x8xf32>, vector<8x8xf32>, vector<8x8xf32>, vector<8x8xf32> -> vector<8x32xf32>
    %c0_25 = arith.constant 0 : index
    %c0_26 = arith.constant 0 : index
    %74 = vector.load %arg4[%c0_25, %c0_26] : memref<32x32xf32, #tpu.memory_space<vmem>>, vector<32x32xf32>
    %cst_27 = arith.constant dense<0.000000e+00> : vector<8x32xf32>
    %75 = tpu.matmul %73, %74, %cst_27 {dimension_numbers = #tpu.dot_dimension_numbers<[1], [0], [0], [1], [0, 0, 1, 1], [], []>} : vector<8x32xf32>, vector<32x32xf32>, vector<8x32xf32> -> vector<8x32xf32>
    %76 = vector.extract_strided_slice %2 {offsets = [0, 0], sizes = [1, 32], strides = [1, 1]} : vector<6x32xf32> to vector<1x32xf32>
    %77 = vector.broadcast %76 : vector<1x32xf32> to vector<8x32xf32>
    %78 = arith.addf %75, %77 : vector<8x32xf32>
    %79 = arith.addf %1, %78 : vector<8x32xf32>
    %80 = vector.extract_strided_slice %2 {offsets = [2, 0], sizes = [1, 32], strides = [1, 1]} : vector<6x32xf32> to vector<1x32xf32>
    %81 = vector.extract_strided_slice %2 {offsets = [3, 0], sizes = [1, 32], strides = [1, 1]} : vector<6x32xf32> to vector<1x32xf32>
    %cst_28 = arith.constant dense<0.000000e+00> : vector<8xf32>
    %82 = vector.multi_reduction <add>, %79, %cst_28 [1] : vector<8x32xf32> to vector<8xf32>
    %83 = vector.shape_cast %82 : vector<8xf32> to vector<8x1xf32>
    %cst_29 = arith.constant 3.200000e+01 : f32
    %84 = vector.broadcast %cst_29 : f32 to vector<8x1xf32>
    %85 = arith.divf %83, %84 : vector<8x1xf32>
    %86 = vector.broadcast %85 : vector<8x1xf32> to vector<8x32xf32>
    %87 = arith.subf %79, %86 : vector<8x32xf32>
    %88 = arith.mulf %87, %87 : vector<8x32xf32>
    %cst_30 = arith.constant dense<0.000000e+00> : vector<8xf32>
    %89 = vector.multi_reduction <add>, %88, %cst_30 [1] : vector<8x32xf32> to vector<8xf32>
    %90 = vector.shape_cast %89 : vector<8xf32> to vector<8x1xf32>
    %cst_31 = arith.constant 3.200000e+01 : f32
    %91 = vector.broadcast %cst_31 : f32 to vector<8x1xf32>
    %92 = arith.divf %90, %91 : vector<8x1xf32>
    %cst_32 = arith.constant 9.99999974E-6 : f32
    %93 = vector.broadcast %cst_32 : f32 to vector<8x1xf32>
    %94 = arith.addf %92, %93 : vector<8x1xf32>
    %95 = math.rsqrt %94 : vector<8x1xf32>
    %96 = vector.broadcast %95 : vector<8x1xf32> to vector<8x32xf32>
    %97 = arith.mulf %87, %96 : vector<8x32xf32>
    %98 = vector.broadcast %80 : vector<1x32xf32> to vector<8x32xf32>
    %99 = arith.mulf %97, %98 : vector<8x32xf32>
    %100 = vector.broadcast %81 : vector<1x32xf32> to vector<8x32xf32>
    %101 = arith.addf %99, %100 : vector<8x32xf32>
    %c0_33 = arith.constant 0 : index
    %c0_34 = arith.constant 0 : index
    %102 = vector.load %arg5[%c0_33, %c0_34] : memref<32x64xf32, #tpu.memory_space<vmem>>, vector<32x64xf32>
    %cst_35 = arith.constant dense<0.000000e+00> : vector<8x64xf32>
    %103 = tpu.matmul %101, %102, %cst_35 {dimension_numbers = #tpu.dot_dimension_numbers<[1], [0], [0], [1], [0, 0, 1, 1], [], []>} : vector<8x32xf32>, vector<32x64xf32>, vector<8x64xf32> -> vector<8x64xf32>
    %c0_36 = arith.constant 0 : index
    %c0_37 = arith.constant 0 : index
    %104 = vector.load %arg6[%c0_36, %c0_37] : memref<1x64xf32, #tpu.memory_space<vmem>>, vector<1x64xf32>
    %105 = vector.broadcast %104 : vector<1x64xf32> to vector<8x64xf32>
    %106 = arith.addf %103, %105 : vector<8x64xf32>
    %cst_38 = arith.constant 5.000000e-01 : f32
    %107 = vector.broadcast %cst_38 : f32 to vector<8x64xf32>
    %108 = arith.mulf %107, %106 : vector<8x64xf32>
    %cst_39 = arith.constant 0.707106769 : f32
    %109 = vector.broadcast %cst_39 : f32 to vector<8x64xf32>
    %110 = arith.mulf %106, %109 : vector<8x64xf32>
    %111 = math.erf %110 : vector<8x64xf32>
    %cst_40 = arith.constant 1.000000e+00 : f32
    %112 = vector.broadcast %cst_40 : f32 to vector<8x64xf32>
    %113 = arith.addf %112, %111 : vector<8x64xf32>
    %114 = arith.mulf %108, %113 : vector<8x64xf32>
    %c0_41 = arith.constant 0 : index
    %c0_42 = arith.constant 0 : index
    %115 = vector.load %arg7[%c0_41, %c0_42] : memref<64x32xf32, #tpu.memory_space<vmem>>, vector<64x32xf32>
    %cst_43 = arith.constant dense<0.000000e+00> : vector<8x32xf32>
    %116 = tpu.matmul %114, %115, %cst_43 {dimension_numbers = #tpu.dot_dimension_numbers<[1], [0], [0], [1], [0, 0, 1, 1], [], []>} : vector<8x64xf32>, vector<64x32xf32>, vector<8x32xf32> -> vector<8x32xf32>
    %117 = vector.extract_strided_slice %2 {offsets = [1, 0], sizes = [1, 32], strides = [1, 1]} : vector<6x32xf32> to vector<1x32xf32>
    %118 = vector.broadcast %117 : vector<1x32xf32> to vector<8x32xf32>
    %119 = arith.addf %116, %118 : vector<8x32xf32>
    %120 = arith.addf %101, %119 : vector<8x32xf32>
    %121 = vector.extract_strided_slice %2 {offsets = [4, 0], sizes = [1, 32], strides = [1, 1]} : vector<6x32xf32> to vector<1x32xf32>
    %122 = vector.extract_strided_slice %2 {offsets = [5, 0], sizes = [1, 32], strides = [1, 1]} : vector<6x32xf32> to vector<1x32xf32>
    %cst_44 = arith.constant dense<0.000000e+00> : vector<8xf32>
    %123 = vector.multi_reduction <add>, %120, %cst_44 [1] : vector<8x32xf32> to vector<8xf32>
    %124 = vector.shape_cast %123 : vector<8xf32> to vector<8x1xf32>
    %cst_45 = arith.constant 3.200000e+01 : f32
    %125 = vector.broadcast %cst_45 : f32 to vector<8x1xf32>
    %126 = arith.divf %124, %125 : vector<8x1xf32>
    %127 = vector.broadcast %126 : vector<8x1xf32> to vector<8x32xf32>
    %128 = arith.subf %120, %127 : vector<8x32xf32>
    %129 = arith.mulf %128, %128 : vector<8x32xf32>
    %cst_46 = arith.constant dense<0.000000e+00> : vector<8xf32>
    %130 = vector.multi_reduction <add>, %129, %cst_46 [1] : vector<8x32xf32> to vector<8xf32>
    %131 = vector.shape_cast %130 : vector<8xf32> to vector<8x1xf32>
    %cst_47 = arith.constant 3.200000e+01 : f32
    %132 = vector.broadcast %cst_47 : f32 to vector<8x1xf32>
    %133 = arith.divf %131, %132 : vector<8x1xf32>
    %cst_48 = arith.constant 9.99999974E-6 : f32
    %134 = vector.broadcast %cst_48 : f32 to vector<8x1xf32>
    %135 = arith.addf %133, %134 : vector<8x1xf32>
    %136 = math.rsqrt %135 : vector<8x1xf32>
    %137 = vector.broadcast %136 : vector<8x1xf32> to vector<8x32xf32>
    %138 = arith.mulf %128, %137 : vector<8x32xf32>
    %139 = vector.broadcast %121 : vector<1x32xf32> to vector<8x32xf32>
    %140 = arith.mulf %138, %139 : vector<8x32xf32>
    %141 = vector.broadcast %122 : vector<1x32xf32> to vector<8x32xf32>
    %142 = arith.addf %140, %141 : vector<8x32xf32>
    %c0_49 = arith.constant 0 : index
    %c0_50 = arith.constant 0 : index
    %c0_51 = arith.constant 0 : index
    %143 = vector.load %arg9[%c0_49, %c0_50, %c0_51] : memref<1x8x32xf32, #tpu.memory_space<vmem>>, vector<1x8x32xf32>
    %144 = vector.shape_cast %143 : vector<1x8x32xf32> to vector<8x32xf32>
    %145 = vector.shape_cast %142 : vector<8x32xf32> to vector<1x8x32xf32>
    tpu.vector_store %arg9[%c0_49, %c0_50, %c0_51], %145 {strides = array<i32>} : memref<1x8x32xf32, #tpu.memory_space<vmem>>, vector<1x8x32xf32>,
    return
  }
  func.func @transform_0(%arg0: i32) -> (i32, i32, i32) {
    %c0_i32 = arith.constant 0 : i32
    %c0_i32_0 = arith.constant 0 : i32
    %c0_i32_1 = arith.constant 0 : i32
    return %arg0, %c0_i32, %c0_i32_0 : i32, i32, i32
  }
  func.func @transform_1(%arg0: i32) -> (i32, i32) {
    %c0_i32 = arith.constant 0 : i32
    %c0_i32_0 = arith.constant 0 : i32
    %c0_i32_1 = arith.constant 0 : i32
    return %c0_i32, %c0_i32_0 : i32, i32
  }
  func.func @transform_2(%arg0: i32) -> (i32, i32) {
    %c0_i32 = arith.constant 0 : i32
    %c0_i32_0 = arith.constant 0 : i32
    %c0_i32_1 = arith.constant 0 : i32
    return %c0_i32, %c0_i32_0 : i32, i32
  }
  func.func @transform_3(%arg0: i32) -> (i32, i32) {
    %c0_i32 = arith.constant 0 : i32
    %c0_i32_0 = arith.constant 0 : i32
    %c0_i32_1 = arith.constant 0 : i32
    return %c0_i32, %c0_i32_0 : i32, i32
  }
  func.func @transform_4(%arg0: i32) -> (i32, i32) {
    %c0_i32 = arith.constant 0 : i32
    %c0_i32_0 = arith.constant 0 : i32
    %c0_i32_1 = arith.constant 0 : i32
    return %c0_i32, %c0_i32_0 : i32, i32
  }
  func.func @transform_5(%arg0: i32) -> (i32, i32) {
    %c0_i32 = arith.constant 0 : i32
    %c0_i32_0 = arith.constant 0 : i32
    %c0_i32_1 = arith.constant 0 : i32
    return %c0_i32, %c0_i32_0 : i32, i32
  }
  func.func @transform_6(%arg0: i32) -> (i32, i32) {
    %c0_i32 = arith.constant 0 : i32
    %c0_i32_0 = arith.constant 0 : i32
    %c0_i32_1 = arith.constant 0 : i32
    return %c0_i32, %c0_i32_0 : i32, i32
  }
  func.func @transform_7(%arg0: i32) -> (i32, i32) {
    %c0_i32 = arith.constant 0 : i32
    %c0_i32_0 = arith.constant 0 : i32
    %c0_i32_1 = arith.constant 0 : i32
    return %c0_i32, %c0_i32_0 : i32, i32
  }
  func.func @transform_8(%arg0: i32) -> (i32, i32, i32) {
    %c0_i32 = arith.constant 0 : i32
    %c0_i32_0 = arith.constant 0 : i32
    %c0_i32_1 = arith.constant 0 : i32
    return %arg0, %c0_i32, %c0_i32_0 : i32, i32, i32
  }
}

module attributes {stable_mosaic.version = 11 : i64} {
  func.func @_embed_kernel(%arg0: i32, %arg1: memref<1x8x3xf32, #tpu.memory_space<vmem>>, %arg2: memref<9x32xf32, #tpu.memory_space<vmem>>, %arg3: memref<64x32xf32, #tpu.memory_space<vmem>>, %arg4: memref<1x8x32xf32, #tpu.memory_space<vmem>>) attributes {dimension_semantics = [#tpu.dimension_semantics<parallel>], iteration_bounds = array<i64: 2>, scalar_prefetch = 0 : i64, scratch_operands = 0 : i64, tpu.core_type = #tpu.core_type<tc>, window_params = [{transform_indices = @transform_0, window_bounds = array<i64: 1, 8, 3>}, {pipeline_mode = #tpu.pipeline_mode<synchronous>, transform_indices = @transform_1, window_bounds = array<i64: 9, 32>}, {pipeline_mode = #tpu.pipeline_mode<synchronous>, transform_indices = @transform_2, window_bounds = array<i64: 64, 32>}, {transform_indices = @transform_3, window_bounds = array<i64: 1, 8, 32>}]} {
    %c0 = arith.constant 0 : index
    %c0_0 = arith.constant 0 : index
    %c0_1 = arith.constant 0 : index
    %0 = vector.load %arg1[%c0, %c0_0, %c0_1] : memref<1x8x3xf32, #tpu.memory_space<vmem>>, vector<1x8x3xf32>
    %1 = vector.shape_cast %0 : vector<1x8x3xf32> to vector<8x3xf32>
    %c0_2 = arith.constant 0 : index
    %c0_3 = arith.constant 0 : index
    %2 = vector.load %arg2[%c0_2, %c0_3] : memref<9x32xf32, #tpu.memory_space<vmem>>, vector<9x32xf32>
    %3 = vector.extract_strided_slice %1 {offsets = [7, 0], sizes = [1, 3], strides = [1, 1]} : vector<8x3xf32> to vector<1x3xf32>
    %4 = vector.extract_strided_slice %1 {offsets = [0, 0], sizes = [7, 3], strides = [1, 1]} : vector<8x3xf32> to vector<7x3xf32>
    %5 = tpu.concatenate %3, %4 in 0 : vector<1x3xf32>, vector<7x3xf32> -> vector<8x3xf32>
    %6 = vector.extract_strided_slice %1 {offsets = [1, 0], sizes = [7, 3], strides = [1, 1]} : vector<8x3xf32> to vector<7x3xf32>
    %7 = vector.extract_strided_slice %1 {offsets = [0, 0], sizes = [1, 3], strides = [1, 1]} : vector<8x3xf32> to vector<1x3xf32>
    %8 = tpu.concatenate %6, %7 in 0 : vector<7x3xf32>, vector<1x3xf32> -> vector<8x3xf32>
    %9 = vector.extract_strided_slice %2 {offsets = [0, 0], sizes = [3, 32], strides = [1, 1]} : vector<9x32xf32> to vector<3x32xf32>
    %cst = arith.constant dense<0.000000e+00> : vector<8x32xf32>
    %10 = tpu.matmul %5, %9, %cst {dimension_numbers = #tpu.dot_dimension_numbers<[1], [0], [0], [1], [0, 0, 1, 1], [], []>} : vector<8x3xf32>, vector<3x32xf32>, vector<8x32xf32> -> vector<8x32xf32>
    %11 = vector.extract_strided_slice %2 {offsets = [3, 0], sizes = [3, 32], strides = [1, 1]} : vector<9x32xf32> to vector<3x32xf32>
    %cst_4 = arith.constant dense<0.000000e+00> : vector<8x32xf32>
    %12 = tpu.matmul %1, %11, %cst_4 {dimension_numbers = #tpu.dot_dimension_numbers<[1], [0], [0], [1], [0, 0, 1, 1], [], []>} : vector<8x3xf32>, vector<3x32xf32>, vector<8x32xf32> -> vector<8x32xf32>
    %13 = arith.addf %10, %12 : vector<8x32xf32>
    %14 = vector.extract_strided_slice %2 {offsets = [6, 0], sizes = [3, 32], strides = [1, 1]} : vector<9x32xf32> to vector<3x32xf32>
    %cst_5 = arith.constant dense<0.000000e+00> : vector<8x32xf32>
    %15 = tpu.matmul %8, %14, %cst_5 {dimension_numbers = #tpu.dot_dimension_numbers<[1], [0], [0], [1], [0, 0, 1, 1], [], []>} : vector<8x3xf32>, vector<3x32xf32>, vector<8x32xf32> -> vector<8x32xf32>
    %16 = arith.addf %13, %15 : vector<8x32xf32>
    %c0_6 = arith.constant 0 : index
    %c0_7 = arith.constant 0 : index
    %17 = vector.load %arg3[%c0_6, %c0_7] : memref<64x32xf32, #tpu.memory_space<vmem>>, vector<64x32xf32>
    %18 = vector.extract_strided_slice %17 {offsets = [0, 0], sizes = [8, 32], strides = [1, 1]} : vector<64x32xf32> to vector<8x32xf32>
    %19 = arith.addf %16, %18 : vector<8x32xf32>
    %c0_8 = arith.constant 0 : index
    %c0_9 = arith.constant 0 : index
    %c0_10 = arith.constant 0 : index
    %20 = vector.load %arg4[%c0_8, %c0_9, %c0_10] : memref<1x8x32xf32, #tpu.memory_space<vmem>>, vector<1x8x32xf32>
    %21 = vector.shape_cast %20 : vector<1x8x32xf32> to vector<8x32xf32>
    %22 = vector.shape_cast %19 : vector<8x32xf32> to vector<1x8x32xf32>
    tpu.vector_store %arg4[%c0_8, %c0_9, %c0_10], %22 {strides = array<i32>} : memref<1x8x32xf32, #tpu.memory_space<vmem>>, vector<1x8x32xf32>,
    return
  }
  func.func @transform_0(%arg0: i32) -> (i32, i32, i32) {
    %c0_i32 = arith.constant 0 : i32
    %c0_i32_0 = arith.constant 0 : i32
    %c0_i32_1 = arith.constant 0 : i32
    return %arg0, %c0_i32, %c0_i32_0 : i32, i32, i32
  }
  func.func @transform_1(%arg0: i32) -> (i32, i32) {
    %c0_i32 = arith.constant 0 : i32
    %c0_i32_0 = arith.constant 0 : i32
    %c0_i32_1 = arith.constant 0 : i32
    return %c0_i32, %c0_i32_0 : i32, i32
  }
  func.func @transform_2(%arg0: i32) -> (i32, i32) {
    %c0_i32 = arith.constant 0 : i32
    %c0_i32_0 = arith.constant 0 : i32
    %c0_i32_1 = arith.constant 0 : i32
    return %c0_i32, %c0_i32_0 : i32, i32
  }
  func.func @transform_3(%arg0: i32) -> (i32, i32, i32) {
    %c0_i32 = arith.constant 0 : i32
    %c0_i32_0 = arith.constant 0 : i32
    %c0_i32_1 = arith.constant 0 : i32
    return %arg0, %c0_i32, %c0_i32_0 : i32, i32, i32
  }
}

module attributes {stable_mosaic.version = 11 : i64} {
  func.func @_cross_kv_kernel(%arg0: i32, %arg1: memref<1x8x32xf32, #tpu.memory_space<vmem>>, %arg2: memref<2x32xf32, #tpu.memory_space<vmem>>, %arg3: memref<32x64xf32, #tpu.memory_space<vmem>>, %arg4: memref<1x64xf32, #tpu.memory_space<vmem>>, %arg5: memref<1x8x64xf32, #tpu.memory_space<vmem>>) attributes {dimension_semantics = [#tpu.dimension_semantics<parallel>], iteration_bounds = array<i64: 2>, scalar_prefetch = 0 : i64, scratch_operands = 0 : i64, tpu.core_type = #tpu.core_type<tc>, window_params = [{transform_indices = @transform_0, window_bounds = array<i64: 1, 8, 32>}, {pipeline_mode = #tpu.pipeline_mode<synchronous>, transform_indices = @transform_1, window_bounds = array<i64: 2, 32>}, {pipeline_mode = #tpu.pipeline_mode<synchronous>, transform_indices = @transform_2, window_bounds = array<i64: 32, 64>}, {pipeline_mode = #tpu.pipeline_mode<synchronous>, transform_indices = @transform_3, window_bounds = array<i64: 1, 64>}, {transform_indices = @transform_4, window_bounds = array<i64: 1, 8, 64>}]} {
    %c0 = arith.constant 0 : index
    %c0_0 = arith.constant 0 : index
    %c0_1 = arith.constant 0 : index
    %0 = vector.load %arg1[%c0, %c0_0, %c0_1] : memref<1x8x32xf32, #tpu.memory_space<vmem>>, vector<1x8x32xf32>
    %1 = vector.shape_cast %0 : vector<1x8x32xf32> to vector<8x32xf32>
    %c0_2 = arith.constant 0 : index
    %c0_3 = arith.constant 0 : index
    %2 = vector.load %arg2[%c0_2, %c0_3] : memref<2x32xf32, #tpu.memory_space<vmem>>, vector<2x32xf32>
    %3 = vector.extract_strided_slice %2 {offsets = [0, 0], sizes = [1, 32], strides = [1, 1]} : vector<2x32xf32> to vector<1x32xf32>
    %4 = vector.extract_strided_slice %2 {offsets = [1, 0], sizes = [1, 32], strides = [1, 1]} : vector<2x32xf32> to vector<1x32xf32>
    %cst = arith.constant dense<0.000000e+00> : vector<8xf32>
    %5 = vector.multi_reduction <add>, %1, %cst [1] : vector<8x32xf32> to vector<8xf32>
    %6 = vector.shape_cast %5 : vector<8xf32> to vector<8x1xf32>
    %cst_4 = arith.constant 3.200000e+01 : f32
    %7 = vector.broadcast %cst_4 : f32 to vector<8x1xf32>
    %8 = arith.divf %6, %7 : vector<8x1xf32>
    %9 = vector.broadcast %8 : vector<8x1xf32> to vector<8x32xf32>
    %10 = arith.subf %1, %9 : vector<8x32xf32>
    %11 = arith.mulf %10, %10 : vector<8x32xf32>
    %cst_5 = arith.constant dense<0.000000e+00> : vector<8xf32>
    %12 = vector.multi_reduction <add>, %11, %cst_5 [1] : vector<8x32xf32> to vector<8xf32>
    %13 = vector.shape_cast %12 : vector<8xf32> to vector<8x1xf32>
    %cst_6 = arith.constant 3.200000e+01 : f32
    %14 = vector.broadcast %cst_6 : f32 to vector<8x1xf32>
    %15 = arith.divf %13, %14 : vector<8x1xf32>
    %cst_7 = arith.constant 9.99999974E-6 : f32
    %16 = vector.broadcast %cst_7 : f32 to vector<8x1xf32>
    %17 = arith.addf %15, %16 : vector<8x1xf32>
    %18 = math.rsqrt %17 : vector<8x1xf32>
    %19 = vector.broadcast %18 : vector<8x1xf32> to vector<8x32xf32>
    %20 = arith.mulf %10, %19 : vector<8x32xf32>
    %21 = vector.broadcast %3 : vector<1x32xf32> to vector<8x32xf32>
    %22 = arith.mulf %20, %21 : vector<8x32xf32>
    %23 = vector.broadcast %4 : vector<1x32xf32> to vector<8x32xf32>
    %24 = arith.addf %22, %23 : vector<8x32xf32>
    %c0_8 = arith.constant 0 : index
    %c0_9 = arith.constant 0 : index
    %25 = vector.load %arg3[%c0_8, %c0_9] : memref<32x64xf32, #tpu.memory_space<vmem>>, vector<32x64xf32>
    %cst_10 = arith.constant dense<0.000000e+00> : vector<8x64xf32>
    %26 = tpu.matmul %24, %25, %cst_10 {dimension_numbers = #tpu.dot_dimension_numbers<[1], [0], [0], [1], [0, 0, 1, 1], [], []>} : vector<8x32xf32>, vector<32x64xf32>, vector<8x64xf32> -> vector<8x64xf32>
    %c0_11 = arith.constant 0 : index
    %c0_12 = arith.constant 0 : index
    %27 = vector.load %arg4[%c0_11, %c0_12] : memref<1x64xf32, #tpu.memory_space<vmem>>, vector<1x64xf32>
    %28 = vector.broadcast %27 : vector<1x64xf32> to vector<8x64xf32>
    %29 = arith.addf %26, %28 : vector<8x64xf32>
    %c0_13 = arith.constant 0 : index
    %c0_14 = arith.constant 0 : index
    %c0_15 = arith.constant 0 : index
    %30 = vector.load %arg5[%c0_13, %c0_14, %c0_15] : memref<1x8x64xf32, #tpu.memory_space<vmem>>, vector<1x8x64xf32>
    %31 = vector.shape_cast %30 : vector<1x8x64xf32> to vector<8x64xf32>
    %32 = vector.shape_cast %29 : vector<8x64xf32> to vector<1x8x64xf32>
    tpu.vector_store %arg5[%c0_13, %c0_14, %c0_15], %32 {strides = array<i32>} : memref<1x8x64xf32, #tpu.memory_space<vmem>>, vector<1x8x64xf32>,
    return
  }
  func.func @transform_0(%arg0: i32) -> (i32, i32, i32) {
    %c0_i32 = arith.constant 0 : i32
    %c0_i32_0 = arith.constant 0 : i32
    %c0_i32_1 = arith.constant 0 : i32
    return %arg0, %c0_i32, %c0_i32_0 : i32, i32, i32
  }
  func.func @transform_1(%arg0: i32) -> (i32, i32) {
    %c0_i32 = arith.constant 0 : i32
    %c0_i32_0 = arith.constant 0 : i32
    %c0_i32_1 = arith.constant 0 : i32
    return %c0_i32, %c0_i32_0 : i32, i32
  }
  func.func @transform_2(%arg0: i32) -> (i32, i32) {
    %c0_i32 = arith.constant 0 : i32
    %c0_i32_0 = arith.constant 0 : i32
    %c0_i32_1 = arith.constant 0 : i32
    return %c0_i32, %c0_i32_0 : i32, i32
  }
  func.func @transform_3(%arg0: i32) -> (i32, i32) {
    %c0_i32 = arith.constant 0 : i32
    %c0_i32_0 = arith.constant 0 : i32
    %c0_i32_1 = arith.constant 0 : i32
    return %c0_i32, %c0_i32_0 : i32, i32
  }
  func.func @transform_4(%arg0: i32) -> (i32, i32, i32) {
    %c0_i32 = arith.constant 0 : i32
    %c0_i32_0 = arith.constant 0 : i32
    %c0_i32_1 = arith.constant 0 : i32
    return %arg0, %c0_i32, %c0_i32_0 : i32, i32, i32
  }
}

module attributes {stable_mosaic.version = 11 : i64} {
  func.func @_embed_kernel(%arg0: i32, %arg1: memref<1x4x3xf32, #tpu.memory_space<vmem>>, %arg2: memref<9x32xf32, #tpu.memory_space<vmem>>, %arg3: memref<64x32xf32, #tpu.memory_space<vmem>>, %arg4: memref<1x4x32xf32, #tpu.memory_space<vmem>>) attributes {dimension_semantics = [#tpu.dimension_semantics<parallel>], iteration_bounds = array<i64: 2>, scalar_prefetch = 0 : i64, scratch_operands = 0 : i64, tpu.core_type = #tpu.core_type<tc>, window_params = [{transform_indices = @transform_0, window_bounds = array<i64: 1, 4, 3>}, {pipeline_mode = #tpu.pipeline_mode<synchronous>, transform_indices = @transform_1, window_bounds = array<i64: 9, 32>}, {pipeline_mode = #tpu.pipeline_mode<synchronous>, transform_indices = @transform_2, window_bounds = array<i64: 64, 32>}, {transform_indices = @transform_3, window_bounds = array<i64: 1, 4, 32>}]} {
    %c0 = arith.constant 0 : index
    %c0_0 = arith.constant 0 : index
    %c0_1 = arith.constant 0 : index
    %0 = vector.load %arg1[%c0, %c0_0, %c0_1] : memref<1x4x3xf32, #tpu.memory_space<vmem>>, vector<1x4x3xf32>
    %1 = vector.shape_cast %0 : vector<1x4x3xf32> to vector<4x3xf32>
    %c0_2 = arith.constant 0 : index
    %c0_3 = arith.constant 0 : index
    %2 = vector.load %arg2[%c0_2, %c0_3] : memref<9x32xf32, #tpu.memory_space<vmem>>, vector<9x32xf32>
    %3 = vector.extract_strided_slice %1 {offsets = [3, 0], sizes = [1, 3], strides = [1, 1]} : vector<4x3xf32> to vector<1x3xf32>
    %4 = vector.extract_strided_slice %1 {offsets = [0, 0], sizes = [3, 3], strides = [1, 1]} : vector<4x3xf32> to vector<3x3xf32>
    %5 = tpu.concatenate %3, %4 in 0 : vector<1x3xf32>, vector<3x3xf32> -> vector<4x3xf32>
    %6 = vector.extract_strided_slice %1 {offsets = [1, 0], sizes = [3, 3], strides = [1, 1]} : vector<4x3xf32> to vector<3x3xf32>
    %7 = vector.extract_strided_slice %1 {offsets = [0, 0], sizes = [1, 3], strides = [1, 1]} : vector<4x3xf32> to vector<1x3xf32>
    %8 = tpu.concatenate %6, %7 in 0 : vector<3x3xf32>, vector<1x3xf32> -> vector<4x3xf32>
    %9 = vector.extract_strided_slice %2 {offsets = [0, 0], sizes = [3, 32], strides = [1, 1]} : vector<9x32xf32> to vector<3x32xf32>
    %cst = arith.constant dense<0.000000e+00> : vector<4x32xf32>
    %10 = tpu.matmul %5, %9, %cst {dimension_numbers = #tpu.dot_dimension_numbers<[1], [0], [0], [1], [0, 0, 1, 1], [], []>} : vector<4x3xf32>, vector<3x32xf32>, vector<4x32xf32> -> vector<4x32xf32>
    %11 = vector.extract_strided_slice %2 {offsets = [3, 0], sizes = [3, 32], strides = [1, 1]} : vector<9x32xf32> to vector<3x32xf32>
    %cst_4 = arith.constant dense<0.000000e+00> : vector<4x32xf32>
    %12 = tpu.matmul %1, %11, %cst_4 {dimension_numbers = #tpu.dot_dimension_numbers<[1], [0], [0], [1], [0, 0, 1, 1], [], []>} : vector<4x3xf32>, vector<3x32xf32>, vector<4x32xf32> -> vector<4x32xf32>
    %13 = arith.addf %10, %12 : vector<4x32xf32>
    %14 = vector.extract_strided_slice %2 {offsets = [6, 0], sizes = [3, 32], strides = [1, 1]} : vector<9x32xf32> to vector<3x32xf32>
    %cst_5 = arith.constant dense<0.000000e+00> : vector<4x32xf32>
    %15 = tpu.matmul %8, %14, %cst_5 {dimension_numbers = #tpu.dot_dimension_numbers<[1], [0], [0], [1], [0, 0, 1, 1], [], []>} : vector<4x3xf32>, vector<3x32xf32>, vector<4x32xf32> -> vector<4x32xf32>
    %16 = arith.addf %13, %15 : vector<4x32xf32>
    %c0_6 = arith.constant 0 : index
    %c0_7 = arith.constant 0 : index
    %17 = vector.load %arg3[%c0_6, %c0_7] : memref<64x32xf32, #tpu.memory_space<vmem>>, vector<64x32xf32>
    %18 = vector.extract_strided_slice %17 {offsets = [0, 0], sizes = [4, 32], strides = [1, 1]} : vector<64x32xf32> to vector<4x32xf32>
    %19 = arith.addf %16, %18 : vector<4x32xf32>
    %c0_8 = arith.constant 0 : index
    %c0_9 = arith.constant 0 : index
    %c0_10 = arith.constant 0 : index
    %20 = vector.load %arg4[%c0_8, %c0_9, %c0_10] : memref<1x4x32xf32, #tpu.memory_space<vmem>>, vector<1x4x32xf32>
    %21 = vector.shape_cast %20 : vector<1x4x32xf32> to vector<4x32xf32>
    %22 = vector.shape_cast %19 : vector<4x32xf32> to vector<1x4x32xf32>
    tpu.vector_store %arg4[%c0_8, %c0_9, %c0_10], %22 {strides = array<i32>} : memref<1x4x32xf32, #tpu.memory_space<vmem>>, vector<1x4x32xf32>,
    return
  }
  func.func @transform_0(%arg0: i32) -> (i32, i32, i32) {
    %c0_i32 = arith.constant 0 : i32
    %c0_i32_0 = arith.constant 0 : i32
    %c0_i32_1 = arith.constant 0 : i32
    return %arg0, %c0_i32, %c0_i32_0 : i32, i32, i32
  }
  func.func @transform_1(%arg0: i32) -> (i32, i32) {
    %c0_i32 = arith.constant 0 : i32
    %c0_i32_0 = arith.constant 0 : i32
    %c0_i32_1 = arith.constant 0 : i32
    return %c0_i32, %c0_i32_0 : i32, i32
  }
  func.func @transform_2(%arg0: i32) -> (i32, i32) {
    %c0_i32 = arith.constant 0 : i32
    %c0_i32_0 = arith.constant 0 : i32
    %c0_i32_1 = arith.constant 0 : i32
    return %c0_i32, %c0_i32_0 : i32, i32
  }
  func.func @transform_3(%arg0: i32) -> (i32, i32, i32) {
    %c0_i32 = arith.constant 0 : i32
    %c0_i32_0 = arith.constant 0 : i32
    %c0_i32_1 = arith.constant 0 : i32
    return %arg0, %c0_i32, %c0_i32_0 : i32, i32, i32
  }
}

module attributes {stable_mosaic.version = 11 : i64} {
  func.func @_final_proj_kernel(%arg0: i32, %arg1: memref<1x4x32xf32, #tpu.memory_space<vmem>>, %arg2: memref<2x32xf32, #tpu.memory_space<vmem>>, %arg3: memref<1x32xf32, #tpu.memory_space<vmem>>, %arg4: memref<1x1xf32, #tpu.memory_space<vmem>>, %arg5: memref<1x1x1xf32, #tpu.memory_space<vmem>>) attributes {dimension_semantics = [#tpu.dimension_semantics<parallel>], iteration_bounds = array<i64: 2>, scalar_prefetch = 0 : i64, scratch_operands = 0 : i64, tpu.core_type = #tpu.core_type<tc>, window_params = [{transform_indices = @transform_0, window_bounds = array<i64: 1, 4, 32>}, {pipeline_mode = #tpu.pipeline_mode<synchronous>, transform_indices = @transform_1, window_bounds = array<i64: 2, 32>}, {pipeline_mode = #tpu.pipeline_mode<synchronous>, transform_indices = @transform_2, window_bounds = array<i64: 1, 32>}, {pipeline_mode = #tpu.pipeline_mode<synchronous>, transform_indices = @transform_3, window_bounds = array<i64: 1, 1>}, {transform_indices = @transform_4, window_bounds = array<i64: 1, 1, 1>}]} {
    %c0 = arith.constant 0 : index
    %c0_0 = arith.constant 0 : index
    %c0_1 = arith.constant 0 : index
    %0 = vector.load %arg1[%c0, %c0_0, %c0_1] : memref<1x4x32xf32, #tpu.memory_space<vmem>>, vector<1x4x32xf32>
    %1 = vector.shape_cast %0 : vector<1x4x32xf32> to vector<4x32xf32>
    %2 = vector.extract_strided_slice %1 {offsets = [3, 0], sizes = [1, 32], strides = [1, 1]} : vector<4x32xf32> to vector<1x32xf32>
    %c0_2 = arith.constant 0 : index
    %c0_3 = arith.constant 0 : index
    %3 = vector.load %arg2[%c0_2, %c0_3] : memref<2x32xf32, #tpu.memory_space<vmem>>, vector<2x32xf32>
    %4 = vector.extract_strided_slice %3 {offsets = [0, 0], sizes = [1, 32], strides = [1, 1]} : vector<2x32xf32> to vector<1x32xf32>
    %5 = vector.extract_strided_slice %3 {offsets = [1, 0], sizes = [1, 32], strides = [1, 1]} : vector<2x32xf32> to vector<1x32xf32>
    %cst = arith.constant dense<0.000000e+00> : vector<1xf32>
    %6 = vector.multi_reduction <add>, %2, %cst [1] : vector<1x32xf32> to vector<1xf32>
    %7 = vector.shape_cast %6 : vector<1xf32> to vector<1x1xf32>
    %cst_4 = arith.constant 3.200000e+01 : f32
    %8 = vector.broadcast %cst_4 : f32 to vector<1x1xf32>
    %9 = arith.divf %7, %8 : vector<1x1xf32>
    %10 = vector.broadcast %9 : vector<1x1xf32> to vector<1x32xf32>
    %11 = arith.subf %2, %10 : vector<1x32xf32>
    %12 = arith.mulf %11, %11 : vector<1x32xf32>
    %cst_5 = arith.constant dense<0.000000e+00> : vector<1xf32>
    %13 = vector.multi_reduction <add>, %12, %cst_5 [1] : vector<1x32xf32> to vector<1xf32>
    %14 = vector.shape_cast %13 : vector<1xf32> to vector<1x1xf32>
    %cst_6 = arith.constant 3.200000e+01 : f32
    %15 = vector.broadcast %cst_6 : f32 to vector<1x1xf32>
    %16 = arith.divf %14, %15 : vector<1x1xf32>
    %cst_7 = arith.constant 9.99999974E-6 : f32
    %17 = vector.broadcast %cst_7 : f32 to vector<1x1xf32>
    %18 = arith.addf %16, %17 : vector<1x1xf32>
    %19 = math.rsqrt %18 : vector<1x1xf32>
    %20 = vector.broadcast %19 : vector<1x1xf32> to vector<1x32xf32>
    %21 = arith.mulf %11, %20 : vector<1x32xf32>
    %22 = arith.mulf %21, %4 : vector<1x32xf32>
    %23 = arith.addf %22, %5 : vector<1x32xf32>
    %c0_8 = arith.constant 0 : index
    %c0_9 = arith.constant 0 : index
    %24 = vector.load %arg3[%c0_8, %c0_9] : memref<1x32xf32, #tpu.memory_space<vmem>>, vector<1x32xf32>
    %25 = arith.mulf %23, %24 : vector<1x32xf32>
    %cst_10 = arith.constant dense<0.000000e+00> : vector<1xf32>
    %26 = vector.multi_reduction <add>, %25, %cst_10 [1] : vector<1x32xf32> to vector<1xf32>
    %27 = vector.shape_cast %26 : vector<1xf32> to vector<1x1xf32>
    %c0_11 = arith.constant 0 : index
    %c0_12 = arith.constant 0 : index
    %28 = vector.load %arg4[%c0_11, %c0_12] : memref<1x1xf32, #tpu.memory_space<vmem>>, vector<1x1xf32>
    %29 = arith.addf %27, %28 : vector<1x1xf32>
    %c0_13 = arith.constant 0 : index
    %c0_14 = arith.constant 0 : index
    %c0_15 = arith.constant 0 : index
    %30 = vector.load %arg5[%c0_13, %c0_14, %c0_15] : memref<1x1x1xf32, #tpu.memory_space<vmem>>, vector<1x1x1xf32>
    %31 = vector.shape_cast %30 : vector<1x1x1xf32> to vector<1x1xf32>
    %32 = vector.shape_cast %29 : vector<1x1xf32> to vector<1x1x1xf32>
    tpu.vector_store %arg5[%c0_13, %c0_14, %c0_15], %32 {strides = array<i32>} : memref<1x1x1xf32, #tpu.memory_space<vmem>>, vector<1x1x1xf32>,
    return
  }
  func.func @transform_0(%arg0: i32) -> (i32, i32, i32) {
    %c0_i32 = arith.constant 0 : i32
    %c0_i32_0 = arith.constant 0 : i32
    %c0_i32_1 = arith.constant 0 : i32
    return %arg0, %c0_i32, %c0_i32_0 : i32, i32, i32
  }
  func.func @transform_1(%arg0: i32) -> (i32, i32) {
    %c0_i32 = arith.constant 0 : i32
    %c0_i32_0 = arith.constant 0 : i32
    %c0_i32_1 = arith.constant 0 : i32
    return %c0_i32, %c0_i32_0 : i32, i32
  }
  func.func @transform_2(%arg0: i32) -> (i32, i32) {
    %c0_i32 = arith.constant 0 : i32
    %c0_i32_0 = arith.constant 0 : i32
    %c0_i32_1 = arith.constant 0 : i32
    return %c0_i32, %c0_i32_0 : i32, i32
  }
  func.func @transform_3(%arg0: i32) -> (i32, i32) {
    %c0_i32 = arith.constant 0 : i32
    %c0_i32_0 = arith.constant 0 : i32
    %c0_i32_1 = arith.constant 0 : i32
    return %c0_i32, %c0_i32_0 : i32, i32
  }
  func.func @transform_4(%arg0: i32) -> (i32, i32, i32) {
    %c0_i32 = arith.constant 0 : i32
    %c0_i32_0 = arith.constant 0 : i32
    %c0_i32_1 = arith.constant 0 : i32
    return %arg0, %c0_i32, %c0_i32_0 : i32, i32, i32
  }
}

module attributes {stable_mosaic.version = 11 : i64} {
  func.func @_dec_layer_kernel(%arg0: i32, %arg1: memref<1x4x32xf32, #tpu.memory_space<vmem>>, %arg2: memref<1x8x64xf32, #tpu.memory_space<vmem>>, %arg3: memref<32x96xf32, #tpu.memory_space<vmem>>, %arg4: memref<1x96xf32, #tpu.memory_space<vmem>>, %arg5: memref<32x32xf32, #tpu.memory_space<vmem>>, %arg6: memref<32x32xf32, #tpu.memory_space<vmem>>, %arg7: memref<32x32xf32, #tpu.memory_space<vmem>>, %arg8: memref<32x64xf32, #tpu.memory_space<vmem>>, %arg9: memref<1x64xf32, #tpu.memory_space<vmem>>, %arg10: memref<64x32xf32, #tpu.memory_space<vmem>>, %arg11: memref<10x32xf32, #tpu.memory_space<vmem>>, %arg12: memref<1x4x32xf32, #tpu.memory_space<vmem>>) attributes {dimension_semantics = [#tpu.dimension_semantics<parallel>], iteration_bounds = array<i64: 2>, scalar_prefetch = 0 : i64, scratch_operands = 0 : i64, tpu.core_type = #tpu.core_type<tc>, window_params = [{transform_indices = @transform_0, window_bounds = array<i64: 1, 4, 32>}, {transform_indices = @transform_1, window_bounds = array<i64: 1, 8, 64>}, {pipeline_mode = #tpu.pipeline_mode<synchronous>, transform_indices = @transform_2, window_bounds = array<i64: 32, 96>}, {pipeline_mode = #tpu.pipeline_mode<synchronous>, transform_indices = @transform_3, window_bounds = array<i64: 1, 96>}, {pipeline_mode = #tpu.pipeline_mode<synchronous>, transform_indices = @transform_4, window_bounds = array<i64: 32, 32>}, {pipeline_mode = #tpu.pipeline_mode<synchronous>, transform_indices = @transform_5, window_bounds = array<i64: 32, 32>}, {pipeline_mode = #tpu.pipeline_mode<synchronous>, transform_indices = @transform_6, window_bounds = array<i64: 32, 32>}, {pipeline_mode = #tpu.pipeline_mode<synchronous>, transform_indices = @transform_7, window_bounds = array<i64: 32, 64>}, {pipeline_mode = #tpu.pipeline_mode<synchronous>, transform_indices = @transform_8, window_bounds = array<i64: 1, 64>}, {pipeline_mode = #tpu.pipeline_mode<synchronous>, transform_indices = @transform_9, window_bounds = array<i64: 64, 32>}, {pipeline_mode = #tpu.pipeline_mode<synchronous>, transform_indices = @transform_10, window_bounds = array<i64: 10, 32>}, {transform_indices = @transform_11, window_bounds = array<i64: 1, 4, 32>}]} {
    %c0 = arith.constant 0 : index
    %c0_0 = arith.constant 0 : index
    %c0_1 = arith.constant 0 : index
    %0 = vector.load %arg1[%c0, %c0_0, %c0_1] : memref<1x4x32xf32, #tpu.memory_space<vmem>>, vector<1x4x32xf32>
    %1 = vector.shape_cast %0 : vector<1x4x32xf32> to vector<4x32xf32>
    %c0_2 = arith.constant 0 : index
    %c0_3 = arith.constant 0 : index
    %2 = vector.load %arg11[%c0_2, %c0_3] : memref<10x32xf32, #tpu.memory_space<vmem>>, vector<10x32xf32>
    %c0_4 = arith.constant 0 : index
    %c0_5 = arith.constant 0 : index
    %c0_6 = arith.constant 0 : index
    %3 = vector.load %arg2[%c0_4, %c0_5, %c0_6] : memref<1x8x64xf32, #tpu.memory_space<vmem>>, vector<1x8x64xf32>
    %4 = vector.shape_cast %3 : vector<1x8x64xf32> to vector<8x64xf32>
    %5 = vector.extract_strided_slice %4 {offsets = [0, 0], sizes = [8, 32], strides = [1, 1]} : vector<8x64xf32> to vector<8x32xf32>
    %6 = vector.extract_strided_slice %4 {offsets = [0, 32], sizes = [8, 32], strides = [1, 1]} : vector<8x64xf32> to vector<8x32xf32>
    %c0_7 = arith.constant 0 : index
    %c0_8 = arith.constant 0 : index
    %7 = vector.load %arg3[%c0_7, %c0_8] : memref<32x96xf32, #tpu.memory_space<vmem>>, vector<32x96xf32>
    %cst = arith.constant dense<0.000000e+00> : vector<4x96xf32>
    %8 = tpu.matmul %1, %7, %cst {dimension_numbers = #tpu.dot_dimension_numbers<[1], [0], [0], [1], [0, 0, 1, 1], [], []>} : vector<4x32xf32>, vector<32x96xf32>, vector<4x96xf32> -> vector<4x96xf32>
    %c0_9 = arith.constant 0 : index
    %c0_10 = arith.constant 0 : index
    %9 = vector.load %arg4[%c0_9, %c0_10] : memref<1x96xf32, #tpu.memory_space<vmem>>, vector<1x96xf32>
    %10 = vector.broadcast %9 : vector<1x96xf32> to vector<4x96xf32>
    %11 = arith.addf %8, %10 : vector<4x96xf32>
    %12 = vector.extract_strided_slice %11 {offsets = [0, 0], sizes = [4, 32], strides = [1, 1]} : vector<4x96xf32> to vector<4x32xf32>
    %13 = vector.extract_strided_slice %11 {offsets = [0, 32], sizes = [4, 32], strides = [1, 1]} : vector<4x96xf32> to vector<4x32xf32>
    %14 = vector.extract_strided_slice %11 {offsets = [0, 64], sizes = [4, 32], strides = [1, 1]} : vector<4x96xf32> to vector<4x32xf32>
    %cst_11 = arith.constant 0.353553385 : f32
    %15 = vector.broadcast %cst_11 : f32 to vector<4x32xf32>
    %16 = arith.mulf %12, %15 : vector<4x32xf32>
    %17 = vector.extract_strided_slice %16 {offsets = [0, 0], sizes = [4, 8], strides = [1, 1]} : vector<4x32xf32> to vector<4x8xf32>
    %18 = vector.extract_strided_slice %13 {offsets = [0, 0], sizes = [4, 8], strides = [1, 1]} : vector<4x32xf32> to vector<4x8xf32>
    %19 = vector.extract_strided_slice %14 {offsets = [0, 0], sizes = [4, 8], strides = [1, 1]} : vector<4x32xf32> to vector<4x8xf32>
    %cst_12 = arith.constant dense<0.000000e+00> : vector<4x4xf32>
    %20 = tpu.matmul %17, %18, %cst_12 {dimension_numbers = #tpu.dot_dimension_numbers<[1], [1], [0], [0], [0, 0, 1, 0], [], []>} : vector<4x8xf32>, vector<4x8xf32>, vector<4x4xf32> -> vector<4x4xf32>
    %cst_13 = arith.constant dense<0xFF800000> : vector<4xf32>
    %21 = vector.multi_reduction <maximumf>, %20, %cst_13 [1] : vector<4x4xf32> to vector<4xf32>
    %22 = vector.shape_cast %21 : vector<4xf32> to vector<4x1xf32>
    %23 = vector.broadcast %22 : vector<4x1xf32> to vector<4x4xf32>
    %24 = arith.subf %20, %23 : vector<4x4xf32>
    %25 = math.exp %24 : vector<4x4xf32>
    %cst_14 = arith.constant dense<0.000000e+00> : vector<4xf32>
    %26 = vector.multi_reduction <add>, %25, %cst_14 [1] : vector<4x4xf32> to vector<4xf32>
    %27 = vector.shape_cast %26 : vector<4xf32> to vector<4x1xf32>
    %28 = tpu.reciprocal %27 {approx = true} : vector<4x1xf32> -> vector<4x1xf32>
    %29 = vector.broadcast %28 : vector<4x1xf32> to vector<4x4xf32>
    %30 = arith.mulf %25, %29 : vector<4x4xf32>
    %cst_15 = arith.constant dense<0.000000e+00> : vector<4x8xf32>
    %31 = tpu.matmul %30, %19, %cst_15 {dimension_numbers = #tpu.dot_dimension_numbers<[1], [0], [0], [1], [0, 0, 1, 1], [], []>} : vector<4x4xf32>, vector<4x8xf32>, vector<4x8xf32> -> vector<4x8xf32>
    %32 = vector.extract_strided_slice %16 {offsets = [0, 8], sizes = [4, 8], strides = [1, 1]} : vector<4x32xf32> to vector<4x8xf32>
    %33 = vector.extract_strided_slice %13 {offsets = [0, 8], sizes = [4, 8], strides = [1, 1]} : vector<4x32xf32> to vector<4x8xf32>
    %34 = vector.extract_strided_slice %14 {offsets = [0, 8], sizes = [4, 8], strides = [1, 1]} : vector<4x32xf32> to vector<4x8xf32>
    %cst_16 = arith.constant dense<0.000000e+00> : vector<4x4xf32>
    %35 = tpu.matmul %32, %33, %cst_16 {dimension_numbers = #tpu.dot_dimension_numbers<[1], [1], [0], [0], [0, 0, 1, 0], [], []>} : vector<4x8xf32>, vector<4x8xf32>, vector<4x4xf32> -> vector<4x4xf32>
    %cst_17 = arith.constant dense<0xFF800000> : vector<4xf32>
    %36 = vector.multi_reduction <maximumf>, %35, %cst_17 [1] : vector<4x4xf32> to vector<4xf32>
    %37 = vector.shape_cast %36 : vector<4xf32> to vector<4x1xf32>
    %38 = vector.broadcast %37 : vector<4x1xf32> to vector<4x4xf32>
    %39 = arith.subf %35, %38 : vector<4x4xf32>
    %40 = math.exp %39 : vector<4x4xf32>
    %cst_18 = arith.constant dense<0.000000e+00> : vector<4xf32>
    %41 = vector.multi_reduction <add>, %40, %cst_18 [1] : vector<4x4xf32> to vector<4xf32>
    %42 = vector.shape_cast %41 : vector<4xf32> to vector<4x1xf32>
    %43 = tpu.reciprocal %42 {approx = true} : vector<4x1xf32> -> vector<4x1xf32>
    %44 = vector.broadcast %43 : vector<4x1xf32> to vector<4x4xf32>
    %45 = arith.mulf %40, %44 : vector<4x4xf32>
    %cst_19 = arith.constant dense<0.000000e+00> : vector<4x8xf32>
    %46 = tpu.matmul %45, %34, %cst_19 {dimension_numbers = #tpu.dot_dimension_numbers<[1], [0], [0], [1], [0, 0, 1, 1], [], []>} : vector<4x4xf32>, vector<4x8xf32>, vector<4x8xf32> -> vector<4x8xf32>
    %47 = vector.extract_strided_slice %16 {offsets = [0, 16], sizes = [4, 8], strides = [1, 1]} : vector<4x32xf32> to vector<4x8xf32>
    %48 = vector.extract_strided_slice %13 {offsets = [0, 16], sizes = [4, 8], strides = [1, 1]} : vector<4x32xf32> to vector<4x8xf32>
    %49 = vector.extract_strided_slice %14 {offsets = [0, 16], sizes = [4, 8], strides = [1, 1]} : vector<4x32xf32> to vector<4x8xf32>
    %cst_20 = arith.constant dense<0.000000e+00> : vector<4x4xf32>
    %50 = tpu.matmul %47, %48, %cst_20 {dimension_numbers = #tpu.dot_dimension_numbers<[1], [1], [0], [0], [0, 0, 1, 0], [], []>} : vector<4x8xf32>, vector<4x8xf32>, vector<4x4xf32> -> vector<4x4xf32>
    %cst_21 = arith.constant dense<0xFF800000> : vector<4xf32>
    %51 = vector.multi_reduction <maximumf>, %50, %cst_21 [1] : vector<4x4xf32> to vector<4xf32>
    %52 = vector.shape_cast %51 : vector<4xf32> to vector<4x1xf32>
    %53 = vector.broadcast %52 : vector<4x1xf32> to vector<4x4xf32>
    %54 = arith.subf %50, %53 : vector<4x4xf32>
    %55 = math.exp %54 : vector<4x4xf32>
    %cst_22 = arith.constant dense<0.000000e+00> : vector<4xf32>
    %56 = vector.multi_reduction <add>, %55, %cst_22 [1] : vector<4x4xf32> to vector<4xf32>
    %57 = vector.shape_cast %56 : vector<4xf32> to vector<4x1xf32>
    %58 = tpu.reciprocal %57 {approx = true} : vector<4x1xf32> -> vector<4x1xf32>
    %59 = vector.broadcast %58 : vector<4x1xf32> to vector<4x4xf32>
    %60 = arith.mulf %55, %59 : vector<4x4xf32>
    %cst_23 = arith.constant dense<0.000000e+00> : vector<4x8xf32>
    %61 = tpu.matmul %60, %49, %cst_23 {dimension_numbers = #tpu.dot_dimension_numbers<[1], [0], [0], [1], [0, 0, 1, 1], [], []>} : vector<4x4xf32>, vector<4x8xf32>, vector<4x8xf32> -> vector<4x8xf32>
    %62 = vector.extract_strided_slice %16 {offsets = [0, 24], sizes = [4, 8], strides = [1, 1]} : vector<4x32xf32> to vector<4x8xf32>
    %63 = vector.extract_strided_slice %13 {offsets = [0, 24], sizes = [4, 8], strides = [1, 1]} : vector<4x32xf32> to vector<4x8xf32>
    %64 = vector.extract_strided_slice %14 {offsets = [0, 24], sizes = [4, 8], strides = [1, 1]} : vector<4x32xf32> to vector<4x8xf32>
    %cst_24 = arith.constant dense<0.000000e+00> : vector<4x4xf32>
    %65 = tpu.matmul %62, %63, %cst_24 {dimension_numbers = #tpu.dot_dimension_numbers<[1], [1], [0], [0], [0, 0, 1, 0], [], []>} : vector<4x8xf32>, vector<4x8xf32>, vector<4x4xf32> -> vector<4x4xf32>
    %cst_25 = arith.constant dense<0xFF800000> : vector<4xf32>
    %66 = vector.multi_reduction <maximumf>, %65, %cst_25 [1] : vector<4x4xf32> to vector<4xf32>
    %67 = vector.shape_cast %66 : vector<4xf32> to vector<4x1xf32>
    %68 = vector.broadcast %67 : vector<4x1xf32> to vector<4x4xf32>
    %69 = arith.subf %65, %68 : vector<4x4xf32>
    %70 = math.exp %69 : vector<4x4xf32>
    %cst_26 = arith.constant dense<0.000000e+00> : vector<4xf32>
    %71 = vector.multi_reduction <add>, %70, %cst_26 [1] : vector<4x4xf32> to vector<4xf32>
    %72 = vector.shape_cast %71 : vector<4xf32> to vector<4x1xf32>
    %73 = tpu.reciprocal %72 {approx = true} : vector<4x1xf32> -> vector<4x1xf32>
    %74 = vector.broadcast %73 : vector<4x1xf32> to vector<4x4xf32>
    %75 = arith.mulf %70, %74 : vector<4x4xf32>
    %cst_27 = arith.constant dense<0.000000e+00> : vector<4x8xf32>
    %76 = tpu.matmul %75, %64, %cst_27 {dimension_numbers = #tpu.dot_dimension_numbers<[1], [0], [0], [1], [0, 0, 1, 1], [], []>} : vector<4x4xf32>, vector<4x8xf32>, vector<4x8xf32> -> vector<4x8xf32>
    %77 = vector.extract_strided_slice %31 {offsets = [0, 0], sizes = [1, 8], strides = [1, 1]} : vector<4x8xf32> to vector<1x8xf32>
    %78 = vector.extract_strided_slice %31 {offsets = [1, 0], sizes = [1, 8], strides = [1, 1]} : vector<4x8xf32> to vector<1x8xf32>
    %79 = vector.extract_strided_slice %31 {offsets = [2, 0], sizes = [1, 8], strides = [1, 1]} : vector<4x8xf32> to vector<1x8xf32>
    %80 = vector.extract_strided_slice %31 {offsets = [3, 0], sizes = [1, 8], strides = [1, 1]} : vector<4x8xf32> to vector<1x8xf32>
    %81 = tpu.concatenate %77, %78, %79, %80 in 1 : vector<1x8xf32>, vector<1x8xf32>, vector<1x8xf32>, vector<1x8xf32> -> vector<1x32xf32>
    %82 = vector.extract_strided_slice %46 {offsets = [0, 0], sizes = [1, 8], strides = [1, 1]} : vector<4x8xf32> to vector<1x8xf32>
    %83 = vector.extract_strided_slice %46 {offsets = [1, 0], sizes = [1, 8], strides = [1, 1]} : vector<4x8xf32> to vector<1x8xf32>
    %84 = vector.extract_strided_slice %46 {offsets = [2, 0], sizes = [1, 8], strides = [1, 1]} : vector<4x8xf32> to vector<1x8xf32>
    %85 = vector.extract_strided_slice %46 {offsets = [3, 0], sizes = [1, 8], strides = [1, 1]} : vector<4x8xf32> to vector<1x8xf32>
    %86 = tpu.concatenate %82, %83, %84, %85 in 1 : vector<1x8xf32>, vector<1x8xf32>, vector<1x8xf32>, vector<1x8xf32> -> vector<1x32xf32>
    %87 = vector.extract_strided_slice %61 {offsets = [0, 0], sizes = [1, 8], strides = [1, 1]} : vector<4x8xf32> to vector<1x8xf32>
    %88 = vector.extract_strided_slice %61 {offsets = [1, 0], sizes = [1, 8], strides = [1, 1]} : vector<4x8xf32> to vector<1x8xf32>
    %89 = vector.extract_strided_slice %61 {offsets = [2, 0], sizes = [1, 8], strides = [1, 1]} : vector<4x8xf32> to vector<1x8xf32>
    %90 = vector.extract_strided_slice %61 {offsets = [3, 0], sizes = [1, 8], strides = [1, 1]} : vector<4x8xf32> to vector<1x8xf32>
    %91 = tpu.concatenate %87, %88, %89, %90 in 1 : vector<1x8xf32>, vector<1x8xf32>, vector<1x8xf32>, vector<1x8xf32> -> vector<1x32xf32>
    %92 = vector.extract_strided_slice %76 {offsets = [0, 0], sizes = [1, 8], strides = [1, 1]} : vector<4x8xf32> to vector<1x8xf32>
    %93 = vector.extract_strided_slice %76 {offsets = [1, 0], sizes = [1, 8], strides = [1, 1]} : vector<4x8xf32> to vector<1x8xf32>
    %94 = vector.extract_strided_slice %76 {offsets = [2, 0], sizes = [1, 8], strides = [1, 1]} : vector<4x8xf32> to vector<1x8xf32>
    %95 = vector.extract_strided_slice %76 {offsets = [3, 0], sizes = [1, 8], strides = [1, 1]} : vector<4x8xf32> to vector<1x8xf32>
    %96 = tpu.concatenate %92, %93, %94, %95 in 1 : vector<1x8xf32>, vector<1x8xf32>, vector<1x8xf32>, vector<1x8xf32> -> vector<1x32xf32>
    %97 = tpu.concatenate %81, %86, %91, %96 in 0 : vector<1x32xf32>, vector<1x32xf32>, vector<1x32xf32>, vector<1x32xf32> -> vector<4x32xf32>
    %c0_28 = arith.constant 0 : index
    %c0_29 = arith.constant 0 : index
    %98 = vector.load %arg5[%c0_28, %c0_29] : memref<32x32xf32, #tpu.memory_space<vmem>>, vector<32x32xf32>
    %cst_30 = arith.constant dense<0.000000e+00> : vector<4x32xf32>
    %99 = tpu.matmul %97, %98, %cst_30 {dimension_numbers = #tpu.dot_dimension_numbers<[1], [0], [0], [1], [0, 0, 1, 1], [], []>} : vector<4x32xf32>, vector<32x32xf32>, vector<4x32xf32> -> vector<4x32xf32>
    %100 = vector.extract_strided_slice %2 {offsets = [0, 0], sizes = [1, 32], strides = [1, 1]} : vector<10x32xf32> to vector<1x32xf32>
    %101 = vector.broadcast %100 : vector<1x32xf32> to vector<4x32xf32>
    %102 = arith.addf %99, %101 : vector<4x32xf32>
    %103 = arith.addf %1, %102 : vector<4x32xf32>
    %104 = vector.extract_strided_slice %2 {offsets = [4, 0], sizes = [1, 32], strides = [1, 1]} : vector<10x32xf32> to vector<1x32xf32>
    %105 = vector.extract_strided_slice %2 {offsets = [5, 0], sizes = [1, 32], strides = [1, 1]} : vector<10x32xf32> to vector<1x32xf32>
    %cst_31 = arith.constant dense<0.000000e+00> : vector<4xf32>
    %106 = vector.multi_reduction <add>, %103, %cst_31 [1] : vector<4x32xf32> to vector<4xf32>
    %107 = vector.shape_cast %106 : vector<4xf32> to vector<4x1xf32>
    %cst_32 = arith.constant 3.200000e+01 : f32
    %108 = vector.broadcast %cst_32 : f32 to vector<4x1xf32>
    %109 = arith.divf %107, %108 : vector<4x1xf32>
    %110 = vector.broadcast %109 : vector<4x1xf32> to vector<4x32xf32>
    %111 = arith.subf %103, %110 : vector<4x32xf32>
    %112 = arith.mulf %111, %111 : vector<4x32xf32>
    %cst_33 = arith.constant dense<0.000000e+00> : vector<4xf32>
    %113 = vector.multi_reduction <add>, %112, %cst_33 [1] : vector<4x32xf32> to vector<4xf32>
    %114 = vector.shape_cast %113 : vector<4xf32> to vector<4x1xf32>
    %cst_34 = arith.constant 3.200000e+01 : f32
    %115 = vector.broadcast %cst_34 : f32 to vector<4x1xf32>
    %116 = arith.divf %114, %115 : vector<4x1xf32>
    %cst_35 = arith.constant 9.99999974E-6 : f32
    %117 = vector.broadcast %cst_35 : f32 to vector<4x1xf32>
    %118 = arith.addf %116, %117 : vector<4x1xf32>
    %119 = math.rsqrt %118 : vector<4x1xf32>
    %120 = vector.broadcast %119 : vector<4x1xf32> to vector<4x32xf32>
    %121 = arith.mulf %111, %120 : vector<4x32xf32>
    %122 = vector.broadcast %104 : vector<1x32xf32> to vector<4x32xf32>
    %123 = arith.mulf %121, %122 : vector<4x32xf32>
    %124 = vector.broadcast %105 : vector<1x32xf32> to vector<4x32xf32>
    %125 = arith.addf %123, %124 : vector<4x32xf32>
    %c0_36 = arith.constant 0 : index
    %c0_37 = arith.constant 0 : index
    %126 = vector.load %arg6[%c0_36, %c0_37] : memref<32x32xf32, #tpu.memory_space<vmem>>, vector<32x32xf32>
    %cst_38 = arith.constant dense<0.000000e+00> : vector<4x32xf32>
    %127 = tpu.matmul %125, %126, %cst_38 {dimension_numbers = #tpu.dot_dimension_numbers<[1], [0], [0], [1], [0, 0, 1, 1], [], []>} : vector<4x32xf32>, vector<32x32xf32>, vector<4x32xf32> -> vector<4x32xf32>
    %128 = vector.extract_strided_slice %2 {offsets = [1, 0], sizes = [1, 32], strides = [1, 1]} : vector<10x32xf32> to vector<1x32xf32>
    %129 = vector.broadcast %128 : vector<1x32xf32> to vector<4x32xf32>
    %130 = arith.addf %127, %129 : vector<4x32xf32>
    %cst_39 = arith.constant 0.353553385 : f32
    %131 = vector.broadcast %cst_39 : f32 to vector<4x32xf32>
    %132 = arith.mulf %130, %131 : vector<4x32xf32>
    %133 = vector.extract_strided_slice %132 {offsets = [0, 0], sizes = [4, 8], strides = [1, 1]} : vector<4x32xf32> to vector<4x8xf32>
    %134 = vector.extract_strided_slice %5 {offsets = [0, 0], sizes = [8, 8], strides = [1, 1]} : vector<8x32xf32> to vector<8x8xf32>
    %135 = vector.extract_strided_slice %6 {offsets = [0, 0], sizes = [8, 8], strides = [1, 1]} : vector<8x32xf32> to vector<8x8xf32>
    %cst_40 = arith.constant dense<0.000000e+00> : vector<4x8xf32>
    %136 = tpu.matmul %133, %134, %cst_40 {dimension_numbers = #tpu.dot_dimension_numbers<[1], [1], [0], [0], [0, 0, 1, 0], [], []>} : vector<4x8xf32>, vector<8x8xf32>, vector<4x8xf32> -> vector<4x8xf32>
    %cst_41 = arith.constant dense<0xFF800000> : vector<4xf32>
    %137 = vector.multi_reduction <maximumf>, %136, %cst_41 [1] : vector<4x8xf32> to vector<4xf32>
    %138 = vector.shape_cast %137 : vector<4xf32> to vector<4x1xf32>
    %139 = vector.broadcast %138 : vector<4x1xf32> to vector<4x8xf32>
    %140 = arith.subf %136, %139 : vector<4x8xf32>
    %141 = math.exp %140 : vector<4x8xf32>
    %cst_42 = arith.constant dense<0.000000e+00> : vector<4xf32>
    %142 = vector.multi_reduction <add>, %141, %cst_42 [1] : vector<4x8xf32> to vector<4xf32>
    %143 = vector.shape_cast %142 : vector<4xf32> to vector<4x1xf32>
    %144 = tpu.reciprocal %143 {approx = true} : vector<4x1xf32> -> vector<4x1xf32>
    %145 = vector.broadcast %144 : vector<4x1xf32> to vector<4x8xf32>
    %146 = arith.mulf %141, %145 : vector<4x8xf32>
    %cst_43 = arith.constant dense<0.000000e+00> : vector<4x8xf32>
    %147 = tpu.matmul %146, %135, %cst_43 {dimension_numbers = #tpu.dot_dimension_numbers<[1], [0], [0], [1], [0, 0, 1, 1], [], []>} : vector<4x8xf32>, vector<8x8xf32>, vector<4x8xf32> -> vector<4x8xf32>
    %148 = vector.extract_strided_slice %132 {offsets = [0, 8], sizes = [4, 8], strides = [1, 1]} : vector<4x32xf32> to vector<4x8xf32>
    %149 = vector.extract_strided_slice %5 {offsets = [0, 8], sizes = [8, 8], strides = [1, 1]} : vector<8x32xf32> to vector<8x8xf32>
    %150 = vector.extract_strided_slice %6 {offsets = [0, 8], sizes = [8, 8], strides = [1, 1]} : vector<8x32xf32> to vector<8x8xf32>
    %cst_44 = arith.constant dense<0.000000e+00> : vector<4x8xf32>
    %151 = tpu.matmul %148, %149, %cst_44 {dimension_numbers = #tpu.dot_dimension_numbers<[1], [1], [0], [0], [0, 0, 1, 0], [], []>} : vector<4x8xf32>, vector<8x8xf32>, vector<4x8xf32> -> vector<4x8xf32>
    %cst_45 = arith.constant dense<0xFF800000> : vector<4xf32>
    %152 = vector.multi_reduction <maximumf>, %151, %cst_45 [1] : vector<4x8xf32> to vector<4xf32>
    %153 = vector.shape_cast %152 : vector<4xf32> to vector<4x1xf32>
    %154 = vector.broadcast %153 : vector<4x1xf32> to vector<4x8xf32>
    %155 = arith.subf %151, %154 : vector<4x8xf32>
    %156 = math.exp %155 : vector<4x8xf32>
    %cst_46 = arith.constant dense<0.000000e+00> : vector<4xf32>
    %157 = vector.multi_reduction <add>, %156, %cst_46 [1] : vector<4x8xf32> to vector<4xf32>
    %158 = vector.shape_cast %157 : vector<4xf32> to vector<4x1xf32>
    %159 = tpu.reciprocal %158 {approx = true} : vector<4x1xf32> -> vector<4x1xf32>
    %160 = vector.broadcast %159 : vector<4x1xf32> to vector<4x8xf32>
    %161 = arith.mulf %156, %160 : vector<4x8xf32>
    %cst_47 = arith.constant dense<0.000000e+00> : vector<4x8xf32>
    %162 = tpu.matmul %161, %150, %cst_47 {dimension_numbers = #tpu.dot_dimension_numbers<[1], [0], [0], [1], [0, 0, 1, 1], [], []>} : vector<4x8xf32>, vector<8x8xf32>, vector<4x8xf32> -> vector<4x8xf32>
    %163 = vector.extract_strided_slice %132 {offsets = [0, 16], sizes = [4, 8], strides = [1, 1]} : vector<4x32xf32> to vector<4x8xf32>
    %164 = vector.extract_strided_slice %5 {offsets = [0, 16], sizes = [8, 8], strides = [1, 1]} : vector<8x32xf32> to vector<8x8xf32>
    %165 = vector.extract_strided_slice %6 {offsets = [0, 16], sizes = [8, 8], strides = [1, 1]} : vector<8x32xf32> to vector<8x8xf32>
    %cst_48 = arith.constant dense<0.000000e+00> : vector<4x8xf32>
    %166 = tpu.matmul %163, %164, %cst_48 {dimension_numbers = #tpu.dot_dimension_numbers<[1], [1], [0], [0], [0, 0, 1, 0], [], []>} : vector<4x8xf32>, vector<8x8xf32>, vector<4x8xf32> -> vector<4x8xf32>
    %cst_49 = arith.constant dense<0xFF800000> : vector<4xf32>
    %167 = vector.multi_reduction <maximumf>, %166, %cst_49 [1] : vector<4x8xf32> to vector<4xf32>
    %168 = vector.shape_cast %167 : vector<4xf32> to vector<4x1xf32>
    %169 = vector.broadcast %168 : vector<4x1xf32> to vector<4x8xf32>
    %170 = arith.subf %166, %169 : vector<4x8xf32>
    %171 = math.exp %170 : vector<4x8xf32>
    %cst_50 = arith.constant dense<0.000000e+00> : vector<4xf32>
    %172 = vector.multi_reduction <add>, %171, %cst_50 [1] : vector<4x8xf32> to vector<4xf32>
    %173 = vector.shape_cast %172 : vector<4xf32> to vector<4x1xf32>
    %174 = tpu.reciprocal %173 {approx = true} : vector<4x1xf32> -> vector<4x1xf32>
    %175 = vector.broadcast %174 : vector<4x1xf32> to vector<4x8xf32>
    %176 = arith.mulf %171, %175 : vector<4x8xf32>
    %cst_51 = arith.constant dense<0.000000e+00> : vector<4x8xf32>
    %177 = tpu.matmul %176, %165, %cst_51 {dimension_numbers = #tpu.dot_dimension_numbers<[1], [0], [0], [1], [0, 0, 1, 1], [], []>} : vector<4x8xf32>, vector<8x8xf32>, vector<4x8xf32> -> vector<4x8xf32>
    %178 = vector.extract_strided_slice %132 {offsets = [0, 24], sizes = [4, 8], strides = [1, 1]} : vector<4x32xf32> to vector<4x8xf32>
    %179 = vector.extract_strided_slice %5 {offsets = [0, 24], sizes = [8, 8], strides = [1, 1]} : vector<8x32xf32> to vector<8x8xf32>
    %180 = vector.extract_strided_slice %6 {offsets = [0, 24], sizes = [8, 8], strides = [1, 1]} : vector<8x32xf32> to vector<8x8xf32>
    %cst_52 = arith.constant dense<0.000000e+00> : vector<4x8xf32>
    %181 = tpu.matmul %178, %179, %cst_52 {dimension_numbers = #tpu.dot_dimension_numbers<[1], [1], [0], [0], [0, 0, 1, 0], [], []>} : vector<4x8xf32>, vector<8x8xf32>, vector<4x8xf32> -> vector<4x8xf32>
    %cst_53 = arith.constant dense<0xFF800000> : vector<4xf32>
    %182 = vector.multi_reduction <maximumf>, %181, %cst_53 [1] : vector<4x8xf32> to vector<4xf32>
    %183 = vector.shape_cast %182 : vector<4xf32> to vector<4x1xf32>
    %184 = vector.broadcast %183 : vector<4x1xf32> to vector<4x8xf32>
    %185 = arith.subf %181, %184 : vector<4x8xf32>
    %186 = math.exp %185 : vector<4x8xf32>
    %cst_54 = arith.constant dense<0.000000e+00> : vector<4xf32>
    %187 = vector.multi_reduction <add>, %186, %cst_54 [1] : vector<4x8xf32> to vector<4xf32>
    %188 = vector.shape_cast %187 : vector<4xf32> to vector<4x1xf32>
    %189 = tpu.reciprocal %188 {approx = true} : vector<4x1xf32> -> vector<4x1xf32>
    %190 = vector.broadcast %189 : vector<4x1xf32> to vector<4x8xf32>
    %191 = arith.mulf %186, %190 : vector<4x8xf32>
    %cst_55 = arith.constant dense<0.000000e+00> : vector<4x8xf32>
    %192 = tpu.matmul %191, %180, %cst_55 {dimension_numbers = #tpu.dot_dimension_numbers<[1], [0], [0], [1], [0, 0, 1, 1], [], []>} : vector<4x8xf32>, vector<8x8xf32>, vector<4x8xf32> -> vector<4x8xf32>
    %193 = tpu.concatenate %147, %162, %177, %192 in 1 : vector<4x8xf32>, vector<4x8xf32>, vector<4x8xf32>, vector<4x8xf32> -> vector<4x32xf32>
    %c0_56 = arith.constant 0 : index
    %c0_57 = arith.constant 0 : index
    %194 = vector.load %arg7[%c0_56, %c0_57] : memref<32x32xf32, #tpu.memory_space<vmem>>, vector<32x32xf32>
    %cst_58 = arith.constant dense<0.000000e+00> : vector<4x32xf32>
    %195 = tpu.matmul %193, %194, %cst_58 {dimension_numbers = #tpu.dot_dimension_numbers<[1], [0], [0], [1], [0, 0, 1, 1], [], []>} : vector<4x32xf32>, vector<32x32xf32>, vector<4x32xf32> -> vector<4x32xf32>
    %196 = vector.extract_strided_slice %2 {offsets = [2, 0], sizes = [1, 32], strides = [1, 1]} : vector<10x32xf32> to vector<1x32xf32>
    %197 = vector.broadcast %196 : vector<1x32xf32> to vector<4x32xf32>
    %198 = arith.addf %195, %197 : vector<4x32xf32>
    %199 = arith.addf %125, %198 : vector<4x32xf32>
    %200 = vector.extract_strided_slice %2 {offsets = [6, 0], sizes = [1, 32], strides = [1, 1]} : vector<10x32xf32> to vector<1x32xf32>
    %201 = vector.extract_strided_slice %2 {offsets = [7, 0], sizes = [1, 32], strides = [1, 1]} : vector<10x32xf32> to vector<1x32xf32>
    %cst_59 = arith.constant dense<0.000000e+00> : vector<4xf32>
    %202 = vector.multi_reduction <add>, %199, %cst_59 [1] : vector<4x32xf32> to vector<4xf32>
    %203 = vector.shape_cast %202 : vector<4xf32> to vector<4x1xf32>
    %cst_60 = arith.constant 3.200000e+01 : f32
    %204 = vector.broadcast %cst_60 : f32 to vector<4x1xf32>
    %205 = arith.divf %203, %204 : vector<4x1xf32>
    %206 = vector.broadcast %205 : vector<4x1xf32> to vector<4x32xf32>
    %207 = arith.subf %199, %206 : vector<4x32xf32>
    %208 = arith.mulf %207, %207 : vector<4x32xf32>
    %cst_61 = arith.constant dense<0.000000e+00> : vector<4xf32>
    %209 = vector.multi_reduction <add>, %208, %cst_61 [1] : vector<4x32xf32> to vector<4xf32>
    %210 = vector.shape_cast %209 : vector<4xf32> to vector<4x1xf32>
    %cst_62 = arith.constant 3.200000e+01 : f32
    %211 = vector.broadcast %cst_62 : f32 to vector<4x1xf32>
    %212 = arith.divf %210, %211 : vector<4x1xf32>
    %cst_63 = arith.constant 9.99999974E-6 : f32
    %213 = vector.broadcast %cst_63 : f32 to vector<4x1xf32>
    %214 = arith.addf %212, %213 : vector<4x1xf32>
    %215 = math.rsqrt %214 : vector<4x1xf32>
    %216 = vector.broadcast %215 : vector<4x1xf32> to vector<4x32xf32>
    %217 = arith.mulf %207, %216 : vector<4x32xf32>
    %218 = vector.broadcast %200 : vector<1x32xf32> to vector<4x32xf32>
    %219 = arith.mulf %217, %218 : vector<4x32xf32>
    %220 = vector.broadcast %201 : vector<1x32xf32> to vector<4x32xf32>
    %221 = arith.addf %219, %220 : vector<4x32xf32>
    %c0_64 = arith.constant 0 : index
    %c0_65 = arith.constant 0 : index
    %222 = vector.load %arg8[%c0_64, %c0_65] : memref<32x64xf32, #tpu.memory_space<vmem>>, vector<32x64xf32>
    %cst_66 = arith.constant dense<0.000000e+00> : vector<4x64xf32>
    %223 = tpu.matmul %221, %222, %cst_66 {dimension_numbers = #tpu.dot_dimension_numbers<[1], [0], [0], [1], [0, 0, 1, 1], [], []>} : vector<4x32xf32>, vector<32x64xf32>, vector<4x64xf32> -> vector<4x64xf32>
    %c0_67 = arith.constant 0 : index
    %c0_68 = arith.constant 0 : index
    %224 = vector.load %arg9[%c0_67, %c0_68] : memref<1x64xf32, #tpu.memory_space<vmem>>, vector<1x64xf32>
    %225 = vector.broadcast %224 : vector<1x64xf32> to vector<4x64xf32>
    %226 = arith.addf %223, %225 : vector<4x64xf32>
    %cst_69 = arith.constant 5.000000e-01 : f32
    %227 = vector.broadcast %cst_69 : f32 to vector<4x64xf32>
    %228 = arith.mulf %227, %226 : vector<4x64xf32>
    %cst_70 = arith.constant 0.707106769 : f32
    %229 = vector.broadcast %cst_70 : f32 to vector<4x64xf32>
    %230 = arith.mulf %226, %229 : vector<4x64xf32>
    %231 = math.erf %230 : vector<4x64xf32>
    %cst_71 = arith.constant 1.000000e+00 : f32
    %232 = vector.broadcast %cst_71 : f32 to vector<4x64xf32>
    %233 = arith.addf %232, %231 : vector<4x64xf32>
    %234 = arith.mulf %228, %233 : vector<4x64xf32>
    %c0_72 = arith.constant 0 : index
    %c0_73 = arith.constant 0 : index
    %235 = vector.load %arg10[%c0_72, %c0_73] : memref<64x32xf32, #tpu.memory_space<vmem>>, vector<64x32xf32>
    %cst_74 = arith.constant dense<0.000000e+00> : vector<4x32xf32>
    %236 = tpu.matmul %234, %235, %cst_74 {dimension_numbers = #tpu.dot_dimension_numbers<[1], [0], [0], [1], [0, 0, 1, 1], [], []>} : vector<4x64xf32>, vector<64x32xf32>, vector<4x32xf32> -> vector<4x32xf32>
    %237 = vector.extract_strided_slice %2 {offsets = [3, 0], sizes = [1, 32], strides = [1, 1]} : vector<10x32xf32> to vector<1x32xf32>
    %238 = vector.broadcast %237 : vector<1x32xf32> to vector<4x32xf32>
    %239 = arith.addf %236, %238 : vector<4x32xf32>
    %240 = arith.addf %221, %239 : vector<4x32xf32>
    %241 = vector.extract_strided_slice %2 {offsets = [8, 0], sizes = [1, 32], strides = [1, 1]} : vector<10x32xf32> to vector<1x32xf32>
    %242 = vector.extract_strided_slice %2 {offsets = [9, 0], sizes = [1, 32], strides = [1, 1]} : vector<10x32xf32> to vector<1x32xf32>
    %cst_75 = arith.constant dense<0.000000e+00> : vector<4xf32>
    %243 = vector.multi_reduction <add>, %240, %cst_75 [1] : vector<4x32xf32> to vector<4xf32>
    %244 = vector.shape_cast %243 : vector<4xf32> to vector<4x1xf32>
    %cst_76 = arith.constant 3.200000e+01 : f32
    %245 = vector.broadcast %cst_76 : f32 to vector<4x1xf32>
    %246 = arith.divf %244, %245 : vector<4x1xf32>
    %247 = vector.broadcast %246 : vector<4x1xf32> to vector<4x32xf32>
    %248 = arith.subf %240, %247 : vector<4x32xf32>
    %249 = arith.mulf %248, %248 : vector<4x32xf32>
    %cst_77 = arith.constant dense<0.000000e+00> : vector<4xf32>
    %250 = vector.multi_reduction <add>, %249, %cst_77 [1] : vector<4x32xf32> to vector<4xf32>
    %251 = vector.shape_cast %250 : vector<4xf32> to vector<4x1xf32>
    %cst_78 = arith.constant 3.200000e+01 : f32
    %252 = vector.broadcast %cst_78 : f32 to vector<4x1xf32>
    %253 = arith.divf %251, %252 : vector<4x1xf32>
    %cst_79 = arith.constant 9.99999974E-6 : f32
    %254 = vector.broadcast %cst_79 : f32 to vector<4x1xf32>
    %255 = arith.addf %253, %254 : vector<4x1xf32>
    %256 = math.rsqrt %255 : vector<4x1xf32>
    %257 = vector.broadcast %256 : vector<4x1xf32> to vector<4x32xf32>
    %258 = arith.mulf %248, %257 : vector<4x32xf32>
    %259 = vector.broadcast %241 : vector<1x32xf32> to vector<4x32xf32>
    %260 = arith.mulf %258, %259 : vector<4x32xf32>
    %261 = vector.broadcast %242 : vector<1x32xf32> to vector<4x32xf32>
    %262 = arith.addf %260, %261 : vector<4x32xf32>
    %c0_80 = arith.constant 0 : index
    %c0_81 = arith.constant 0 : index
    %c0_82 = arith.constant 0 : index
    %263 = vector.load %arg12[%c0_80, %c0_81, %c0_82] : memref<1x4x32xf32, #tpu.memory_space<vmem>>, vector<1x4x32xf32>
    %264 = vector.shape_cast %263 : vector<1x4x32xf32> to vector<4x32xf32>
    %265 = vector.shape_cast %262 : vector<4x32xf32> to vector<1x4x32xf32>
    tpu.vector_store %arg12[%c0_80, %c0_81, %c0_82], %265 {strides = array<i32>} : memref<1x4x32xf32, #tpu.memory_space<vmem>>, vector<1x4x32xf32>,
    return
  }
  func.func @transform_0(%arg0: i32) -> (i32, i32, i32) {
    %c0_i32 = arith.constant 0 : i32
    %c0_i32_0 = arith.constant 0 : i32
    %c0_i32_1 = arith.constant 0 : i32
    return %arg0, %c0_i32, %c0_i32_0 : i32, i32, i32
  }
  func.func @transform_1(%arg0: i32) -> (i32, i32, i32) {
    %c0_i32 = arith.constant 0 : i32
    %c0_i32_0 = arith.constant 0 : i32
    %c0_i32_1 = arith.constant 0 : i32
    return %arg0, %c0_i32, %c0_i32_0 : i32, i32, i32
  }
  func.func @transform_2(%arg0: i32) -> (i32, i32) {
    %c0_i32 = arith.constant 0 : i32
    %c0_i32_0 = arith.constant 0 : i32
    %c0_i32_1 = arith.constant 0 : i32
    return %c0_i32, %c0_i32_0 : i32, i32
  }
  func.func @transform_3(%arg0: i32) -> (i32, i32) {
    %c0_i32 = arith.constant 0 : i32
    %c0_i32_0 = arith.constant 0 : i32
    %c0_i32_1 = arith.constant 0 : i32
    return %c0_i32, %c0_i32_0 : i32, i32
  }
  func.func @transform_4(%arg0: i32) -> (i32, i32) {
    %c0_i32 = arith.constant 0 : i32
    %c0_i32_0 = arith.constant 0 : i32
    %c0_i32_1 = arith.constant 0 : i32
    return %c0_i32, %c0_i32_0 : i32, i32
  }
  func.func @transform_5(%arg0: i32) -> (i32, i32) {
    %c0_i32 = arith.constant 0 : i32
    %c0_i32_0 = arith.constant 0 : i32
    %c0_i32_1 = arith.constant 0 : i32
    return %c0_i32, %c0_i32_0 : i32, i32
  }
  func.func @transform_6(%arg0: i32) -> (i32, i32) {
    %c0_i32 = arith.constant 0 : i32
    %c0_i32_0 = arith.constant 0 : i32
    %c0_i32_1 = arith.constant 0 : i32
    return %c0_i32, %c0_i32_0 : i32, i32
  }
  func.func @transform_7(%arg0: i32) -> (i32, i32) {
    %c0_i32 = arith.constant 0 : i32
    %c0_i32_0 = arith.constant 0 : i32
    %c0_i32_1 = arith.constant 0 : i32
    return %c0_i32, %c0_i32_0 : i32, i32
  }
  func.func @transform_8(%arg0: i32) -> (i32, i32) {
    %c0_i32 = arith.constant 0 : i32
    %c0_i32_0 = arith.constant 0 : i32
    %c0_i32_1 = arith.constant 0 : i32
    return %c0_i32, %c0_i32_0 : i32, i32
  }
  func.func @transform_9(%arg0: i32) -> (i32, i32) {
    %c0_i32 = arith.constant 0 : i32
    %c0_i32_0 = arith.constant 0 : i32
    %c0_i32_1 = arith.constant 0 : i32
    return %c0_i32, %c0_i32_0 : i32, i32
  }
  func.func @transform_10(%arg0: i32) -> (i32, i32) {
    %c0_i32 = arith.constant 0 : i32
    %c0_i32_0 = arith.constant 0 : i32
    %c0_i32_1 = arith.constant 0 : i32
    return %c0_i32, %c0_i32_0 : i32, i32
  }
  func.func @transform_11(%arg0: i32) -> (i32, i32, i32) {
    %c0_i32 = arith.constant 0 : i32
    %c0_i32_0 = arith.constant 0 : i32
    %c0_i32_1 = arith.constant 0 : i32
    return %arg0, %c0_i32, %c0_i32_0 : i32, i32, i32
  }
}

module attributes {stable_mosaic.version = 11 : i64} {
  func.func @_dec_layer_kernel(%arg0: i32, %arg1: memref<1x5x32xf32, #tpu.memory_space<vmem>>, %arg2: memref<1x8x64xf32, #tpu.memory_space<vmem>>, %arg3: memref<32x96xf32, #tpu.memory_space<vmem>>, %arg4: memref<1x96xf32, #tpu.memory_space<vmem>>, %arg5: memref<32x32xf32, #tpu.memory_space<vmem>>, %arg6: memref<32x32xf32, #tpu.memory_space<vmem>>, %arg7: memref<32x32xf32, #tpu.memory_space<vmem>>, %arg8: memref<32x64xf32, #tpu.memory_space<vmem>>, %arg9: memref<1x64xf32, #tpu.memory_space<vmem>>, %arg10: memref<64x32xf32, #tpu.memory_space<vmem>>, %arg11: memref<10x32xf32, #tpu.memory_space<vmem>>, %arg12: memref<1x5x32xf32, #tpu.memory_space<vmem>>) attributes {dimension_semantics = [#tpu.dimension_semantics<parallel>], iteration_bounds = array<i64: 2>, scalar_prefetch = 0 : i64, scratch_operands = 0 : i64, tpu.core_type = #tpu.core_type<tc>, window_params = [{transform_indices = @transform_0, window_bounds = array<i64: 1, 5, 32>}, {transform_indices = @transform_1, window_bounds = array<i64: 1, 8, 64>}, {pipeline_mode = #tpu.pipeline_mode<synchronous>, transform_indices = @transform_2, window_bounds = array<i64: 32, 96>}, {pipeline_mode = #tpu.pipeline_mode<synchronous>, transform_indices = @transform_3, window_bounds = array<i64: 1, 96>}, {pipeline_mode = #tpu.pipeline_mode<synchronous>, transform_indices = @transform_4, window_bounds = array<i64: 32, 32>}, {pipeline_mode = #tpu.pipeline_mode<synchronous>, transform_indices = @transform_5, window_bounds = array<i64: 32, 32>}, {pipeline_mode = #tpu.pipeline_mode<synchronous>, transform_indices = @transform_6, window_bounds = array<i64: 32, 32>}, {pipeline_mode = #tpu.pipeline_mode<synchronous>, transform_indices = @transform_7, window_bounds = array<i64: 32, 64>}, {pipeline_mode = #tpu.pipeline_mode<synchronous>, transform_indices = @transform_8, window_bounds = array<i64: 1, 64>}, {pipeline_mode = #tpu.pipeline_mode<synchronous>, transform_indices = @transform_9, window_bounds = array<i64: 64, 32>}, {pipeline_mode = #tpu.pipeline_mode<synchronous>, transform_indices = @transform_10, window_bounds = array<i64: 10, 32>}, {transform_indices = @transform_11, window_bounds = array<i64: 1, 5, 32>}]} {
    %c0 = arith.constant 0 : index
    %c0_0 = arith.constant 0 : index
    %c0_1 = arith.constant 0 : index
    %0 = vector.load %arg1[%c0, %c0_0, %c0_1] : memref<1x5x32xf32, #tpu.memory_space<vmem>>, vector<1x5x32xf32>
    %1 = vector.shape_cast %0 : vector<1x5x32xf32> to vector<5x32xf32>
    %c0_2 = arith.constant 0 : index
    %c0_3 = arith.constant 0 : index
    %2 = vector.load %arg11[%c0_2, %c0_3] : memref<10x32xf32, #tpu.memory_space<vmem>>, vector<10x32xf32>
    %c0_4 = arith.constant 0 : index
    %c0_5 = arith.constant 0 : index
    %c0_6 = arith.constant 0 : index
    %3 = vector.load %arg2[%c0_4, %c0_5, %c0_6] : memref<1x8x64xf32, #tpu.memory_space<vmem>>, vector<1x8x64xf32>
    %4 = vector.shape_cast %3 : vector<1x8x64xf32> to vector<8x64xf32>
    %5 = vector.extract_strided_slice %4 {offsets = [0, 0], sizes = [8, 32], strides = [1, 1]} : vector<8x64xf32> to vector<8x32xf32>
    %6 = vector.extract_strided_slice %4 {offsets = [0, 32], sizes = [8, 32], strides = [1, 1]} : vector<8x64xf32> to vector<8x32xf32>
    %c0_7 = arith.constant 0 : index
    %c0_8 = arith.constant 0 : index
    %7 = vector.load %arg3[%c0_7, %c0_8] : memref<32x96xf32, #tpu.memory_space<vmem>>, vector<32x96xf32>
    %cst = arith.constant dense<0.000000e+00> : vector<5x96xf32>
    %8 = tpu.matmul %1, %7, %cst {dimension_numbers = #tpu.dot_dimension_numbers<[1], [0], [0], [1], [0, 0, 1, 1], [], []>} : vector<5x32xf32>, vector<32x96xf32>, vector<5x96xf32> -> vector<5x96xf32>
    %c0_9 = arith.constant 0 : index
    %c0_10 = arith.constant 0 : index
    %9 = vector.load %arg4[%c0_9, %c0_10] : memref<1x96xf32, #tpu.memory_space<vmem>>, vector<1x96xf32>
    %10 = vector.broadcast %9 : vector<1x96xf32> to vector<5x96xf32>
    %11 = arith.addf %8, %10 : vector<5x96xf32>
    %12 = vector.extract_strided_slice %11 {offsets = [0, 0], sizes = [5, 32], strides = [1, 1]} : vector<5x96xf32> to vector<5x32xf32>
    %13 = vector.extract_strided_slice %11 {offsets = [0, 32], sizes = [5, 32], strides = [1, 1]} : vector<5x96xf32> to vector<5x32xf32>
    %14 = vector.extract_strided_slice %11 {offsets = [0, 64], sizes = [5, 32], strides = [1, 1]} : vector<5x96xf32> to vector<5x32xf32>
    %cst_11 = arith.constant 0.353553385 : f32
    %15 = vector.broadcast %cst_11 : f32 to vector<5x32xf32>
    %16 = arith.mulf %12, %15 : vector<5x32xf32>
    %17 = vector.extract_strided_slice %16 {offsets = [0, 0], sizes = [5, 8], strides = [1, 1]} : vector<5x32xf32> to vector<5x8xf32>
    %18 = vector.extract_strided_slice %13 {offsets = [0, 0], sizes = [5, 8], strides = [1, 1]} : vector<5x32xf32> to vector<5x8xf32>
    %19 = vector.extract_strided_slice %14 {offsets = [0, 0], sizes = [5, 8], strides = [1, 1]} : vector<5x32xf32> to vector<5x8xf32>
    %cst_12 = arith.constant dense<0.000000e+00> : vector<5x5xf32>
    %20 = tpu.matmul %17, %18, %cst_12 {dimension_numbers = #tpu.dot_dimension_numbers<[1], [1], [0], [0], [0, 0, 1, 0], [], []>} : vector<5x8xf32>, vector<5x8xf32>, vector<5x5xf32> -> vector<5x5xf32>
    %cst_13 = arith.constant dense<0xFF800000> : vector<5xf32>
    %21 = vector.multi_reduction <maximumf>, %20, %cst_13 [1] : vector<5x5xf32> to vector<5xf32>
    %22 = vector.shape_cast %21 : vector<5xf32> to vector<5x1xf32>
    %23 = vector.broadcast %22 : vector<5x1xf32> to vector<5x5xf32>
    %24 = arith.subf %20, %23 : vector<5x5xf32>
    %25 = math.exp %24 : vector<5x5xf32>
    %cst_14 = arith.constant dense<0.000000e+00> : vector<5xf32>
    %26 = vector.multi_reduction <add>, %25, %cst_14 [1] : vector<5x5xf32> to vector<5xf32>
    %27 = vector.shape_cast %26 : vector<5xf32> to vector<5x1xf32>
    %28 = tpu.reciprocal %27 {approx = true} : vector<5x1xf32> -> vector<5x1xf32>
    %29 = vector.broadcast %28 : vector<5x1xf32> to vector<5x5xf32>
    %30 = arith.mulf %25, %29 : vector<5x5xf32>
    %cst_15 = arith.constant dense<0.000000e+00> : vector<5x8xf32>
    %31 = tpu.matmul %30, %19, %cst_15 {dimension_numbers = #tpu.dot_dimension_numbers<[1], [0], [0], [1], [0, 0, 1, 1], [], []>} : vector<5x5xf32>, vector<5x8xf32>, vector<5x8xf32> -> vector<5x8xf32>
    %32 = vector.extract_strided_slice %16 {offsets = [0, 8], sizes = [5, 8], strides = [1, 1]} : vector<5x32xf32> to vector<5x8xf32>
    %33 = vector.extract_strided_slice %13 {offsets = [0, 8], sizes = [5, 8], strides = [1, 1]} : vector<5x32xf32> to vector<5x8xf32>
    %34 = vector.extract_strided_slice %14 {offsets = [0, 8], sizes = [5, 8], strides = [1, 1]} : vector<5x32xf32> to vector<5x8xf32>
    %cst_16 = arith.constant dense<0.000000e+00> : vector<5x5xf32>
    %35 = tpu.matmul %32, %33, %cst_16 {dimension_numbers = #tpu.dot_dimension_numbers<[1], [1], [0], [0], [0, 0, 1, 0], [], []>} : vector<5x8xf32>, vector<5x8xf32>, vector<5x5xf32> -> vector<5x5xf32>
    %cst_17 = arith.constant dense<0xFF800000> : vector<5xf32>
    %36 = vector.multi_reduction <maximumf>, %35, %cst_17 [1] : vector<5x5xf32> to vector<5xf32>
    %37 = vector.shape_cast %36 : vector<5xf32> to vector<5x1xf32>
    %38 = vector.broadcast %37 : vector<5x1xf32> to vector<5x5xf32>
    %39 = arith.subf %35, %38 : vector<5x5xf32>
    %40 = math.exp %39 : vector<5x5xf32>
    %cst_18 = arith.constant dense<0.000000e+00> : vector<5xf32>
    %41 = vector.multi_reduction <add>, %40, %cst_18 [1] : vector<5x5xf32> to vector<5xf32>
    %42 = vector.shape_cast %41 : vector<5xf32> to vector<5x1xf32>
    %43 = tpu.reciprocal %42 {approx = true} : vector<5x1xf32> -> vector<5x1xf32>
    %44 = vector.broadcast %43 : vector<5x1xf32> to vector<5x5xf32>
    %45 = arith.mulf %40, %44 : vector<5x5xf32>
    %cst_19 = arith.constant dense<0.000000e+00> : vector<5x8xf32>
    %46 = tpu.matmul %45, %34, %cst_19 {dimension_numbers = #tpu.dot_dimension_numbers<[1], [0], [0], [1], [0, 0, 1, 1], [], []>} : vector<5x5xf32>, vector<5x8xf32>, vector<5x8xf32> -> vector<5x8xf32>
    %47 = vector.extract_strided_slice %16 {offsets = [0, 16], sizes = [5, 8], strides = [1, 1]} : vector<5x32xf32> to vector<5x8xf32>
    %48 = vector.extract_strided_slice %13 {offsets = [0, 16], sizes = [5, 8], strides = [1, 1]} : vector<5x32xf32> to vector<5x8xf32>
    %49 = vector.extract_strided_slice %14 {offsets = [0, 16], sizes = [5, 8], strides = [1, 1]} : vector<5x32xf32> to vector<5x8xf32>
    %cst_20 = arith.constant dense<0.000000e+00> : vector<5x5xf32>
    %50 = tpu.matmul %47, %48, %cst_20 {dimension_numbers = #tpu.dot_dimension_numbers<[1], [1], [0], [0], [0, 0, 1, 0], [], []>} : vector<5x8xf32>, vector<5x8xf32>, vector<5x5xf32> -> vector<5x5xf32>
    %cst_21 = arith.constant dense<0xFF800000> : vector<5xf32>
    %51 = vector.multi_reduction <maximumf>, %50, %cst_21 [1] : vector<5x5xf32> to vector<5xf32>
    %52 = vector.shape_cast %51 : vector<5xf32> to vector<5x1xf32>
    %53 = vector.broadcast %52 : vector<5x1xf32> to vector<5x5xf32>
    %54 = arith.subf %50, %53 : vector<5x5xf32>
    %55 = math.exp %54 : vector<5x5xf32>
    %cst_22 = arith.constant dense<0.000000e+00> : vector<5xf32>
    %56 = vector.multi_reduction <add>, %55, %cst_22 [1] : vector<5x5xf32> to vector<5xf32>
    %57 = vector.shape_cast %56 : vector<5xf32> to vector<5x1xf32>
    %58 = tpu.reciprocal %57 {approx = true} : vector<5x1xf32> -> vector<5x1xf32>
    %59 = vector.broadcast %58 : vector<5x1xf32> to vector<5x5xf32>
    %60 = arith.mulf %55, %59 : vector<5x5xf32>
    %cst_23 = arith.constant dense<0.000000e+00> : vector<5x8xf32>
    %61 = tpu.matmul %60, %49, %cst_23 {dimension_numbers = #tpu.dot_dimension_numbers<[1], [0], [0], [1], [0, 0, 1, 1], [], []>} : vector<5x5xf32>, vector<5x8xf32>, vector<5x8xf32> -> vector<5x8xf32>
    %62 = vector.extract_strided_slice %16 {offsets = [0, 24], sizes = [5, 8], strides = [1, 1]} : vector<5x32xf32> to vector<5x8xf32>
    %63 = vector.extract_strided_slice %13 {offsets = [0, 24], sizes = [5, 8], strides = [1, 1]} : vector<5x32xf32> to vector<5x8xf32>
    %64 = vector.extract_strided_slice %14 {offsets = [0, 24], sizes = [5, 8], strides = [1, 1]} : vector<5x32xf32> to vector<5x8xf32>
    %cst_24 = arith.constant dense<0.000000e+00> : vector<5x5xf32>
    %65 = tpu.matmul %62, %63, %cst_24 {dimension_numbers = #tpu.dot_dimension_numbers<[1], [1], [0], [0], [0, 0, 1, 0], [], []>} : vector<5x8xf32>, vector<5x8xf32>, vector<5x5xf32> -> vector<5x5xf32>
    %cst_25 = arith.constant dense<0xFF800000> : vector<5xf32>
    %66 = vector.multi_reduction <maximumf>, %65, %cst_25 [1] : vector<5x5xf32> to vector<5xf32>
    %67 = vector.shape_cast %66 : vector<5xf32> to vector<5x1xf32>
    %68 = vector.broadcast %67 : vector<5x1xf32> to vector<5x5xf32>
    %69 = arith.subf %65, %68 : vector<5x5xf32>
    %70 = math.exp %69 : vector<5x5xf32>
    %cst_26 = arith.constant dense<0.000000e+00> : vector<5xf32>
    %71 = vector.multi_reduction <add>, %70, %cst_26 [1] : vector<5x5xf32> to vector<5xf32>
    %72 = vector.shape_cast %71 : vector<5xf32> to vector<5x1xf32>
    %73 = tpu.reciprocal %72 {approx = true} : vector<5x1xf32> -> vector<5x1xf32>
    %74 = vector.broadcast %73 : vector<5x1xf32> to vector<5x5xf32>
    %75 = arith.mulf %70, %74 : vector<5x5xf32>
    %cst_27 = arith.constant dense<0.000000e+00> : vector<5x8xf32>
    %76 = tpu.matmul %75, %64, %cst_27 {dimension_numbers = #tpu.dot_dimension_numbers<[1], [0], [0], [1], [0, 0, 1, 1], [], []>} : vector<5x5xf32>, vector<5x8xf32>, vector<5x8xf32> -> vector<5x8xf32>
    %77 = vector.extract_strided_slice %31 {offsets = [0, 0], sizes = [1, 8], strides = [1, 1]} : vector<5x8xf32> to vector<1x8xf32>
    %78 = vector.extract_strided_slice %31 {offsets = [1, 0], sizes = [1, 8], strides = [1, 1]} : vector<5x8xf32> to vector<1x8xf32>
    %79 = vector.extract_strided_slice %31 {offsets = [2, 0], sizes = [1, 8], strides = [1, 1]} : vector<5x8xf32> to vector<1x8xf32>
    %80 = vector.extract_strided_slice %31 {offsets = [3, 0], sizes = [1, 8], strides = [1, 1]} : vector<5x8xf32> to vector<1x8xf32>
    %81 = tpu.concatenate %77, %78, %79, %80 in 1 : vector<1x8xf32>, vector<1x8xf32>, vector<1x8xf32>, vector<1x8xf32> -> vector<1x32xf32>
    %82 = vector.extract_strided_slice %31 {offsets = [4, 0], sizes = [1, 8], strides = [1, 1]} : vector<5x8xf32> to vector<1x8xf32>
    %83 = vector.extract_strided_slice %46 {offsets = [0, 0], sizes = [1, 8], strides = [1, 1]} : vector<5x8xf32> to vector<1x8xf32>
    %84 = vector.extract_strided_slice %46 {offsets = [1, 0], sizes = [1, 8], strides = [1, 1]} : vector<5x8xf32> to vector<1x8xf32>
    %85 = vector.extract_strided_slice %46 {offsets = [2, 0], sizes = [1, 8], strides = [1, 1]} : vector<5x8xf32> to vector<1x8xf32>
    %86 = tpu.concatenate %82, %83, %84, %85 in 1 : vector<1x8xf32>, vector<1x8xf32>, vector<1x8xf32>, vector<1x8xf32> -> vector<1x32xf32>
    %87 = vector.extract_strided_slice %46 {offsets = [3, 0], sizes = [1, 8], strides = [1, 1]} : vector<5x8xf32> to vector<1x8xf32>
    %88 = vector.extract_strided_slice %46 {offsets = [4, 0], sizes = [1, 8], strides = [1, 1]} : vector<5x8xf32> to vector<1x8xf32>
    %89 = vector.extract_strided_slice %61 {offsets = [0, 0], sizes = [1, 8], strides = [1, 1]} : vector<5x8xf32> to vector<1x8xf32>
    %90 = vector.extract_strided_slice %61 {offsets = [1, 0], sizes = [1, 8], strides = [1, 1]} : vector<5x8xf32> to vector<1x8xf32>
    %91 = tpu.concatenate %87, %88, %89, %90 in 1 : vector<1x8xf32>, vector<1x8xf32>, vector<1x8xf32>, vector<1x8xf32> -> vector<1x32xf32>
    %92 = vector.extract_strided_slice %61 {offsets = [2, 0], sizes = [1, 8], strides = [1, 1]} : vector<5x8xf32> to vector<1x8xf32>
    %93 = vector.extract_strided_slice %61 {offsets = [3, 0], sizes = [1, 8], strides = [1, 1]} : vector<5x8xf32> to vector<1x8xf32>
    %94 = vector.extract_strided_slice %61 {offsets = [4, 0], sizes = [1, 8], strides = [1, 1]} : vector<5x8xf32> to vector<1x8xf32>
    %95 = vector.extract_strided_slice %76 {offsets = [0, 0], sizes = [1, 8], strides = [1, 1]} : vector<5x8xf32> to vector<1x8xf32>
    %96 = tpu.concatenate %92, %93, %94, %95 in 1 : vector<1x8xf32>, vector<1x8xf32>, vector<1x8xf32>, vector<1x8xf32> -> vector<1x32xf32>
    %97 = vector.extract_strided_slice %76 {offsets = [1, 0], sizes = [1, 8], strides = [1, 1]} : vector<5x8xf32> to vector<1x8xf32>
    %98 = vector.extract_strided_slice %76 {offsets = [2, 0], sizes = [1, 8], strides = [1, 1]} : vector<5x8xf32> to vector<1x8xf32>
    %99 = vector.extract_strided_slice %76 {offsets = [3, 0], sizes = [1, 8], strides = [1, 1]} : vector<5x8xf32> to vector<1x8xf32>
    %100 = vector.extract_strided_slice %76 {offsets = [4, 0], sizes = [1, 8], strides = [1, 1]} : vector<5x8xf32> to vector<1x8xf32>
    %101 = tpu.concatenate %97, %98, %99, %100 in 1 : vector<1x8xf32>, vector<1x8xf32>, vector<1x8xf32>, vector<1x8xf32> -> vector<1x32xf32>
    %102 = tpu.concatenate %81, %86, %91, %96, %101 in 0 : vector<1x32xf32>, vector<1x32xf32>, vector<1x32xf32>, vector<1x32xf32>, vector<1x32xf32> -> vector<5x32xf32>
    %c0_28 = arith.constant 0 : index
    %c0_29 = arith.constant 0 : index
    %103 = vector.load %arg5[%c0_28, %c0_29] : memref<32x32xf32, #tpu.memory_space<vmem>>, vector<32x32xf32>
    %cst_30 = arith.constant dense<0.000000e+00> : vector<5x32xf32>
    %104 = tpu.matmul %102, %103, %cst_30 {dimension_numbers = #tpu.dot_dimension_numbers<[1], [0], [0], [1], [0, 0, 1, 1], [], []>} : vector<5x32xf32>, vector<32x32xf32>, vector<5x32xf32> -> vector<5x32xf32>
    %105 = vector.extract_strided_slice %2 {offsets = [0, 0], sizes = [1, 32], strides = [1, 1]} : vector<10x32xf32> to vector<1x32xf32>
    %106 = vector.broadcast %105 : vector<1x32xf32> to vector<5x32xf32>
    %107 = arith.addf %104, %106 : vector<5x32xf32>
    %108 = arith.addf %1, %107 : vector<5x32xf32>
    %109 = vector.extract_strided_slice %2 {offsets = [4, 0], sizes = [1, 32], strides = [1, 1]} : vector<10x32xf32> to vector<1x32xf32>
    %110 = vector.extract_strided_slice %2 {offsets = [5, 0], sizes = [1, 32], strides = [1, 1]} : vector<10x32xf32> to vector<1x32xf32>
    %cst_31 = arith.constant dense<0.000000e+00> : vector<5xf32>
    %111 = vector.multi_reduction <add>, %108, %cst_31 [1] : vector<5x32xf32> to vector<5xf32>
    %112 = vector.shape_cast %111 : vector<5xf32> to vector<5x1xf32>
    %cst_32 = arith.constant 3.200000e+01 : f32
    %113 = vector.broadcast %cst_32 : f32 to vector<5x1xf32>
    %114 = arith.divf %112, %113 : vector<5x1xf32>
    %115 = vector.broadcast %114 : vector<5x1xf32> to vector<5x32xf32>
    %116 = arith.subf %108, %115 : vector<5x32xf32>
    %117 = arith.mulf %116, %116 : vector<5x32xf32>
    %cst_33 = arith.constant dense<0.000000e+00> : vector<5xf32>
    %118 = vector.multi_reduction <add>, %117, %cst_33 [1] : vector<5x32xf32> to vector<5xf32>
    %119 = vector.shape_cast %118 : vector<5xf32> to vector<5x1xf32>
    %cst_34 = arith.constant 3.200000e+01 : f32
    %120 = vector.broadcast %cst_34 : f32 to vector<5x1xf32>
    %121 = arith.divf %119, %120 : vector<5x1xf32>
    %cst_35 = arith.constant 9.99999974E-6 : f32
    %122 = vector.broadcast %cst_35 : f32 to vector<5x1xf32>
    %123 = arith.addf %121, %122 : vector<5x1xf32>
    %124 = math.rsqrt %123 : vector<5x1xf32>
    %125 = vector.broadcast %124 : vector<5x1xf32> to vector<5x32xf32>
    %126 = arith.mulf %116, %125 : vector<5x32xf32>
    %127 = vector.broadcast %109 : vector<1x32xf32> to vector<5x32xf32>
    %128 = arith.mulf %126, %127 : vector<5x32xf32>
    %129 = vector.broadcast %110 : vector<1x32xf32> to vector<5x32xf32>
    %130 = arith.addf %128, %129 : vector<5x32xf32>
    %c0_36 = arith.constant 0 : index
    %c0_37 = arith.constant 0 : index
    %131 = vector.load %arg6[%c0_36, %c0_37] : memref<32x32xf32, #tpu.memory_space<vmem>>, vector<32x32xf32>
    %cst_38 = arith.constant dense<0.000000e+00> : vector<5x32xf32>
    %132 = tpu.matmul %130, %131, %cst_38 {dimension_numbers = #tpu.dot_dimension_numbers<[1], [0], [0], [1], [0, 0, 1, 1], [], []>} : vector<5x32xf32>, vector<32x32xf32>, vector<5x32xf32> -> vector<5x32xf32>
    %133 = vector.extract_strided_slice %2 {offsets = [1, 0], sizes = [1, 32], strides = [1, 1]} : vector<10x32xf32> to vector<1x32xf32>
    %134 = vector.broadcast %133 : vector<1x32xf32> to vector<5x32xf32>
    %135 = arith.addf %132, %134 : vector<5x32xf32>
    %cst_39 = arith.constant 0.353553385 : f32
    %136 = vector.broadcast %cst_39 : f32 to vector<5x32xf32>
    %137 = arith.mulf %135, %136 : vector<5x32xf32>
    %138 = vector.extract_strided_slice %137 {offsets = [0, 0], sizes = [5, 8], strides = [1, 1]} : vector<5x32xf32> to vector<5x8xf32>
    %139 = vector.extract_strided_slice %5 {offsets = [0, 0], sizes = [8, 8], strides = [1, 1]} : vector<8x32xf32> to vector<8x8xf32>
    %140 = vector.extract_strided_slice %6 {offsets = [0, 0], sizes = [8, 8], strides = [1, 1]} : vector<8x32xf32> to vector<8x8xf32>
    %cst_40 = arith.constant dense<0.000000e+00> : vector<5x8xf32>
    %141 = tpu.matmul %138, %139, %cst_40 {dimension_numbers = #tpu.dot_dimension_numbers<[1], [1], [0], [0], [0, 0, 1, 0], [], []>} : vector<5x8xf32>, vector<8x8xf32>, vector<5x8xf32> -> vector<5x8xf32>
    %cst_41 = arith.constant dense<0xFF800000> : vector<5xf32>
    %142 = vector.multi_reduction <maximumf>, %141, %cst_41 [1] : vector<5x8xf32> to vector<5xf32>
    %143 = vector.shape_cast %142 : vector<5xf32> to vector<5x1xf32>
    %144 = vector.broadcast %143 : vector<5x1xf32> to vector<5x8xf32>
    %145 = arith.subf %141, %144 : vector<5x8xf32>
    %146 = math.exp %145 : vector<5x8xf32>
    %cst_42 = arith.constant dense<0.000000e+00> : vector<5xf32>
    %147 = vector.multi_reduction <add>, %146, %cst_42 [1] : vector<5x8xf32> to vector<5xf32>
    %148 = vector.shape_cast %147 : vector<5xf32> to vector<5x1xf32>
    %149 = tpu.reciprocal %148 {approx = true} : vector<5x1xf32> -> vector<5x1xf32>
    %150 = vector.broadcast %149 : vector<5x1xf32> to vector<5x8xf32>
    %151 = arith.mulf %146, %150 : vector<5x8xf32>
    %cst_43 = arith.constant dense<0.000000e+00> : vector<5x8xf32>
    %152 = tpu.matmul %151, %140, %cst_43 {dimension_numbers = #tpu.dot_dimension_numbers<[1], [0], [0], [1], [0, 0, 1, 1], [], []>} : vector<5x8xf32>, vector<8x8xf32>, vector<5x8xf32> -> vector<5x8xf32>
    %153 = vector.extract_strided_slice %137 {offsets = [0, 8], sizes = [5, 8], strides = [1, 1]} : vector<5x32xf32> to vector<5x8xf32>
    %154 = vector.extract_strided_slice %5 {offsets = [0, 8], sizes = [8, 8], strides = [1, 1]} : vector<8x32xf32> to vector<8x8xf32>
    %155 = vector.extract_strided_slice %6 {offsets = [0, 8], sizes = [8, 8], strides = [1, 1]} : vector<8x32xf32> to vector<8x8xf32>
    %cst_44 = arith.constant dense<0.000000e+00> : vector<5x8xf32>
    %156 = tpu.matmul %153, %154, %cst_44 {dimension_numbers = #tpu.dot_dimension_numbers<[1], [1], [0], [0], [0, 0, 1, 0], [], []>} : vector<5x8xf32>, vector<8x8xf32>, vector<5x8xf32> -> vector<5x8xf32>
    %cst_45 = arith.constant dense<0xFF800000> : vector<5xf32>
    %157 = vector.multi_reduction <maximumf>, %156, %cst_45 [1] : vector<5x8xf32> to vector<5xf32>
    %158 = vector.shape_cast %157 : vector<5xf32> to vector<5x1xf32>
    %159 = vector.broadcast %158 : vector<5x1xf32> to vector<5x8xf32>
    %160 = arith.subf %156, %159 : vector<5x8xf32>
    %161 = math.exp %160 : vector<5x8xf32>
    %cst_46 = arith.constant dense<0.000000e+00> : vector<5xf32>
    %162 = vector.multi_reduction <add>, %161, %cst_46 [1] : vector<5x8xf32> to vector<5xf32>
    %163 = vector.shape_cast %162 : vector<5xf32> to vector<5x1xf32>
    %164 = tpu.reciprocal %163 {approx = true} : vector<5x1xf32> -> vector<5x1xf32>
    %165 = vector.broadcast %164 : vector<5x1xf32> to vector<5x8xf32>
    %166 = arith.mulf %161, %165 : vector<5x8xf32>
    %cst_47 = arith.constant dense<0.000000e+00> : vector<5x8xf32>
    %167 = tpu.matmul %166, %155, %cst_47 {dimension_numbers = #tpu.dot_dimension_numbers<[1], [0], [0], [1], [0, 0, 1, 1], [], []>} : vector<5x8xf32>, vector<8x8xf32>, vector<5x8xf32> -> vector<5x8xf32>
    %168 = vector.extract_strided_slice %137 {offsets = [0, 16], sizes = [5, 8], strides = [1, 1]} : vector<5x32xf32> to vector<5x8xf32>
    %169 = vector.extract_strided_slice %5 {offsets = [0, 16], sizes = [8, 8], strides = [1, 1]} : vector<8x32xf32> to vector<8x8xf32>
    %170 = vector.extract_strided_slice %6 {offsets = [0, 16], sizes = [8, 8], strides = [1, 1]} : vector<8x32xf32> to vector<8x8xf32>
    %cst_48 = arith.constant dense<0.000000e+00> : vector<5x8xf32>
    %171 = tpu.matmul %168, %169, %cst_48 {dimension_numbers = #tpu.dot_dimension_numbers<[1], [1], [0], [0], [0, 0, 1, 0], [], []>} : vector<5x8xf32>, vector<8x8xf32>, vector<5x8xf32> -> vector<5x8xf32>
    %cst_49 = arith.constant dense<0xFF800000> : vector<5xf32>
    %172 = vector.multi_reduction <maximumf>, %171, %cst_49 [1] : vector<5x8xf32> to vector<5xf32>
    %173 = vector.shape_cast %172 : vector<5xf32> to vector<5x1xf32>
    %174 = vector.broadcast %173 : vector<5x1xf32> to vector<5x8xf32>
    %175 = arith.subf %171, %174 : vector<5x8xf32>
    %176 = math.exp %175 : vector<5x8xf32>
    %cst_50 = arith.constant dense<0.000000e+00> : vector<5xf32>
    %177 = vector.multi_reduction <add>, %176, %cst_50 [1] : vector<5x8xf32> to vector<5xf32>
    %178 = vector.shape_cast %177 : vector<5xf32> to vector<5x1xf32>
    %179 = tpu.reciprocal %178 {approx = true} : vector<5x1xf32> -> vector<5x1xf32>
    %180 = vector.broadcast %179 : vector<5x1xf32> to vector<5x8xf32>
    %181 = arith.mulf %176, %180 : vector<5x8xf32>
    %cst_51 = arith.constant dense<0.000000e+00> : vector<5x8xf32>
    %182 = tpu.matmul %181, %170, %cst_51 {dimension_numbers = #tpu.dot_dimension_numbers<[1], [0], [0], [1], [0, 0, 1, 1], [], []>} : vector<5x8xf32>, vector<8x8xf32>, vector<5x8xf32> -> vector<5x8xf32>
    %183 = vector.extract_strided_slice %137 {offsets = [0, 24], sizes = [5, 8], strides = [1, 1]} : vector<5x32xf32> to vector<5x8xf32>
    %184 = vector.extract_strided_slice %5 {offsets = [0, 24], sizes = [8, 8], strides = [1, 1]} : vector<8x32xf32> to vector<8x8xf32>
    %185 = vector.extract_strided_slice %6 {offsets = [0, 24], sizes = [8, 8], strides = [1, 1]} : vector<8x32xf32> to vector<8x8xf32>
    %cst_52 = arith.constant dense<0.000000e+00> : vector<5x8xf32>
    %186 = tpu.matmul %183, %184, %cst_52 {dimension_numbers = #tpu.dot_dimension_numbers<[1], [1], [0], [0], [0, 0, 1, 0], [], []>} : vector<5x8xf32>, vector<8x8xf32>, vector<5x8xf32> -> vector<5x8xf32>
    %cst_53 = arith.constant dense<0xFF800000> : vector<5xf32>
    %187 = vector.multi_reduction <maximumf>, %186, %cst_53 [1] : vector<5x8xf32> to vector<5xf32>
    %188 = vector.shape_cast %187 : vector<5xf32> to vector<5x1xf32>
    %189 = vector.broadcast %188 : vector<5x1xf32> to vector<5x8xf32>
    %190 = arith.subf %186, %189 : vector<5x8xf32>
    %191 = math.exp %190 : vector<5x8xf32>
    %cst_54 = arith.constant dense<0.000000e+00> : vector<5xf32>
    %192 = vector.multi_reduction <add>, %191, %cst_54 [1] : vector<5x8xf32> to vector<5xf32>
    %193 = vector.shape_cast %192 : vector<5xf32> to vector<5x1xf32>
    %194 = tpu.reciprocal %193 {approx = true} : vector<5x1xf32> -> vector<5x1xf32>
    %195 = vector.broadcast %194 : vector<5x1xf32> to vector<5x8xf32>
    %196 = arith.mulf %191, %195 : vector<5x8xf32>
    %cst_55 = arith.constant dense<0.000000e+00> : vector<5x8xf32>
    %197 = tpu.matmul %196, %185, %cst_55 {dimension_numbers = #tpu.dot_dimension_numbers<[1], [0], [0], [1], [0, 0, 1, 1], [], []>} : vector<5x8xf32>, vector<8x8xf32>, vector<5x8xf32> -> vector<5x8xf32>
    %198 = tpu.concatenate %152, %167, %182, %197 in 1 : vector<5x8xf32>, vector<5x8xf32>, vector<5x8xf32>, vector<5x8xf32> -> vector<5x32xf32>
    %c0_56 = arith.constant 0 : index
    %c0_57 = arith.constant 0 : index
    %199 = vector.load %arg7[%c0_56, %c0_57] : memref<32x32xf32, #tpu.memory_space<vmem>>, vector<32x32xf32>
    %cst_58 = arith.constant dense<0.000000e+00> : vector<5x32xf32>
    %200 = tpu.matmul %198, %199, %cst_58 {dimension_numbers = #tpu.dot_dimension_numbers<[1], [0], [0], [1], [0, 0, 1, 1], [], []>} : vector<5x32xf32>, vector<32x32xf32>, vector<5x32xf32> -> vector<5x32xf32>
    %201 = vector.extract_strided_slice %2 {offsets = [2, 0], sizes = [1, 32], strides = [1, 1]} : vector<10x32xf32> to vector<1x32xf32>
    %202 = vector.broadcast %201 : vector<1x32xf32> to vector<5x32xf32>
    %203 = arith.addf %200, %202 : vector<5x32xf32>
    %204 = arith.addf %130, %203 : vector<5x32xf32>
    %205 = vector.extract_strided_slice %2 {offsets = [6, 0], sizes = [1, 32], strides = [1, 1]} : vector<10x32xf32> to vector<1x32xf32>
    %206 = vector.extract_strided_slice %2 {offsets = [7, 0], sizes = [1, 32], strides = [1, 1]} : vector<10x32xf32> to vector<1x32xf32>
    %cst_59 = arith.constant dense<0.000000e+00> : vector<5xf32>
    %207 = vector.multi_reduction <add>, %204, %cst_59 [1] : vector<5x32xf32> to vector<5xf32>
    %208 = vector.shape_cast %207 : vector<5xf32> to vector<5x1xf32>
    %cst_60 = arith.constant 3.200000e+01 : f32
    %209 = vector.broadcast %cst_60 : f32 to vector<5x1xf32>
    %210 = arith.divf %208, %209 : vector<5x1xf32>
    %211 = vector.broadcast %210 : vector<5x1xf32> to vector<5x32xf32>
    %212 = arith.subf %204, %211 : vector<5x32xf32>
    %213 = arith.mulf %212, %212 : vector<5x32xf32>
    %cst_61 = arith.constant dense<0.000000e+00> : vector<5xf32>
    %214 = vector.multi_reduction <add>, %213, %cst_61 [1] : vector<5x32xf32> to vector<5xf32>
    %215 = vector.shape_cast %214 : vector<5xf32> to vector<5x1xf32>
    %cst_62 = arith.constant 3.200000e+01 : f32
    %216 = vector.broadcast %cst_62 : f32 to vector<5x1xf32>
    %217 = arith.divf %215, %216 : vector<5x1xf32>
    %cst_63 = arith.constant 9.99999974E-6 : f32
    %218 = vector.broadcast %cst_63 : f32 to vector<5x1xf32>
    %219 = arith.addf %217, %218 : vector<5x1xf32>
    %220 = math.rsqrt %219 : vector<5x1xf32>
    %221 = vector.broadcast %220 : vector<5x1xf32> to vector<5x32xf32>
    %222 = arith.mulf %212, %221 : vector<5x32xf32>
    %223 = vector.broadcast %205 : vector<1x32xf32> to vector<5x32xf32>
    %224 = arith.mulf %222, %223 : vector<5x32xf32>
    %225 = vector.broadcast %206 : vector<1x32xf32> to vector<5x32xf32>
    %226 = arith.addf %224, %225 : vector<5x32xf32>
    %c0_64 = arith.constant 0 : index
    %c0_65 = arith.constant 0 : index
    %227 = vector.load %arg8[%c0_64, %c0_65] : memref<32x64xf32, #tpu.memory_space<vmem>>, vector<32x64xf32>
    %cst_66 = arith.constant dense<0.000000e+00> : vector<5x64xf32>
    %228 = tpu.matmul %226, %227, %cst_66 {dimension_numbers = #tpu.dot_dimension_numbers<[1], [0], [0], [1], [0, 0, 1, 1], [], []>} : vector<5x32xf32>, vector<32x64xf32>, vector<5x64xf32> -> vector<5x64xf32>
    %c0_67 = arith.constant 0 : index
    %c0_68 = arith.constant 0 : index
    %229 = vector.load %arg9[%c0_67, %c0_68] : memref<1x64xf32, #tpu.memory_space<vmem>>, vector<1x64xf32>
    %230 = vector.broadcast %229 : vector<1x64xf32> to vector<5x64xf32>
    %231 = arith.addf %228, %230 : vector<5x64xf32>
    %cst_69 = arith.constant 5.000000e-01 : f32
    %232 = vector.broadcast %cst_69 : f32 to vector<5x64xf32>
    %233 = arith.mulf %232, %231 : vector<5x64xf32>
    %cst_70 = arith.constant 0.707106769 : f32
    %234 = vector.broadcast %cst_70 : f32 to vector<5x64xf32>
    %235 = arith.mulf %231, %234 : vector<5x64xf32>
    %236 = math.erf %235 : vector<5x64xf32>
    %cst_71 = arith.constant 1.000000e+00 : f32
    %237 = vector.broadcast %cst_71 : f32 to vector<5x64xf32>
    %238 = arith.addf %237, %236 : vector<5x64xf32>
    %239 = arith.mulf %233, %238 : vector<5x64xf32>
    %c0_72 = arith.constant 0 : index
    %c0_73 = arith.constant 0 : index
    %240 = vector.load %arg10[%c0_72, %c0_73] : memref<64x32xf32, #tpu.memory_space<vmem>>, vector<64x32xf32>
    %cst_74 = arith.constant dense<0.000000e+00> : vector<5x32xf32>
    %241 = tpu.matmul %239, %240, %cst_74 {dimension_numbers = #tpu.dot_dimension_numbers<[1], [0], [0], [1], [0, 0, 1, 1], [], []>} : vector<5x64xf32>, vector<64x32xf32>, vector<5x32xf32> -> vector<5x32xf32>
    %242 = vector.extract_strided_slice %2 {offsets = [3, 0], sizes = [1, 32], strides = [1, 1]} : vector<10x32xf32> to vector<1x32xf32>
    %243 = vector.broadcast %242 : vector<1x32xf32> to vector<5x32xf32>
    %244 = arith.addf %241, %243 : vector<5x32xf32>
    %245 = arith.addf %226, %244 : vector<5x32xf32>
    %246 = vector.extract_strided_slice %2 {offsets = [8, 0], sizes = [1, 32], strides = [1, 1]} : vector<10x32xf32> to vector<1x32xf32>
    %247 = vector.extract_strided_slice %2 {offsets = [9, 0], sizes = [1, 32], strides = [1, 1]} : vector<10x32xf32> to vector<1x32xf32>
    %cst_75 = arith.constant dense<0.000000e+00> : vector<5xf32>
    %248 = vector.multi_reduction <add>, %245, %cst_75 [1] : vector<5x32xf32> to vector<5xf32>
    %249 = vector.shape_cast %248 : vector<5xf32> to vector<5x1xf32>
    %cst_76 = arith.constant 3.200000e+01 : f32
    %250 = vector.broadcast %cst_76 : f32 to vector<5x1xf32>
    %251 = arith.divf %249, %250 : vector<5x1xf32>
    %252 = vector.broadcast %251 : vector<5x1xf32> to vector<5x32xf32>
    %253 = arith.subf %245, %252 : vector<5x32xf32>
    %254 = arith.mulf %253, %253 : vector<5x32xf32>
    %cst_77 = arith.constant dense<0.000000e+00> : vector<5xf32>
    %255 = vector.multi_reduction <add>, %254, %cst_77 [1] : vector<5x32xf32> to vector<5xf32>
    %256 = vector.shape_cast %255 : vector<5xf32> to vector<5x1xf32>
    %cst_78 = arith.constant 3.200000e+01 : f32
    %257 = vector.broadcast %cst_78 : f32 to vector<5x1xf32>
    %258 = arith.divf %256, %257 : vector<5x1xf32>
    %cst_79 = arith.constant 9.99999974E-6 : f32
    %259 = vector.broadcast %cst_79 : f32 to vector<5x1xf32>
    %260 = arith.addf %258, %259 : vector<5x1xf32>
    %261 = math.rsqrt %260 : vector<5x1xf32>
    %262 = vector.broadcast %261 : vector<5x1xf32> to vector<5x32xf32>
    %263 = arith.mulf %253, %262 : vector<5x32xf32>
    %264 = vector.broadcast %246 : vector<1x32xf32> to vector<5x32xf32>
    %265 = arith.mulf %263, %264 : vector<5x32xf32>
    %266 = vector.broadcast %247 : vector<1x32xf32> to vector<5x32xf32>
    %267 = arith.addf %265, %266 : vector<5x32xf32>
    %c0_80 = arith.constant 0 : index
    %c0_81 = arith.constant 0 : index
    %c0_82 = arith.constant 0 : index
    %268 = vector.load %arg12[%c0_80, %c0_81, %c0_82] : memref<1x5x32xf32, #tpu.memory_space<vmem>>, vector<1x5x32xf32>
    %269 = vector.shape_cast %268 : vector<1x5x32xf32> to vector<5x32xf32>
    %270 = vector.shape_cast %267 : vector<5x32xf32> to vector<1x5x32xf32>
    tpu.vector_store %arg12[%c0_80, %c0_81, %c0_82], %270 {strides = array<i32>} : memref<1x5x32xf32, #tpu.memory_space<vmem>>, vector<1x5x32xf32>,
    return
  }
  func.func @transform_0(%arg0: i32) -> (i32, i32, i32) {
    %c0_i32 = arith.constant 0 : i32
    %c0_i32_0 = arith.constant 0 : i32
    %c0_i32_1 = arith.constant 0 : i32
    return %arg0, %c0_i32, %c0_i32_0 : i32, i32, i32
  }
  func.func @transform_1(%arg0: i32) -> (i32, i32, i32) {
    %c0_i32 = arith.constant 0 : i32
    %c0_i32_0 = arith.constant 0 : i32
    %c0_i32_1 = arith.constant 0 : i32
    return %arg0, %c0_i32, %c0_i32_0 : i32, i32, i32
  }
  func.func @transform_2(%arg0: i32) -> (i32, i32) {
    %c0_i32 = arith.constant 0 : i32
    %c0_i32_0 = arith.constant 0 : i32
    %c0_i32_1 = arith.constant 0 : i32
    return %c0_i32, %c0_i32_0 : i32, i32
  }
  func.func @transform_3(%arg0: i32) -> (i32, i32) {
    %c0_i32 = arith.constant 0 : i32
    %c0_i32_0 = arith.constant 0 : i32
    %c0_i32_1 = arith.constant 0 : i32
    return %c0_i32, %c0_i32_0 : i32, i32
  }
  func.func @transform_4(%arg0: i32) -> (i32, i32) {
    %c0_i32 = arith.constant 0 : i32
    %c0_i32_0 = arith.constant 0 : i32
    %c0_i32_1 = arith.constant 0 : i32
    return %c0_i32, %c0_i32_0 : i32, i32
  }
  func.func @transform_5(%arg0: i32) -> (i32, i32) {
    %c0_i32 = arith.constant 0 : i32
    %c0_i32_0 = arith.constant 0 : i32
    %c0_i32_1 = arith.constant 0 : i32
    return %c0_i32, %c0_i32_0 : i32, i32
  }
  func.func @transform_6(%arg0: i32) -> (i32, i32) {
    %c0_i32 = arith.constant 0 : i32
    %c0_i32_0 = arith.constant 0 : i32
    %c0_i32_1 = arith.constant 0 : i32
    return %c0_i32, %c0_i32_0 : i32, i32
  }
  func.func @transform_7(%arg0: i32) -> (i32, i32) {
    %c0_i32 = arith.constant 0 : i32
    %c0_i32_0 = arith.constant 0 : i32
    %c0_i32_1 = arith.constant 0 : i32
    return %c0_i32, %c0_i32_0 : i32, i32
  }
  func.func @transform_8(%arg0: i32) -> (i32, i32) {
    %c0_i32 = arith.constant 0 : i32
    %c0_i32_0 = arith.constant 0 : i32
    %c0_i32_1 = arith.constant 0 : i32
    return %c0_i32, %c0_i32_0 : i32, i32
  }
  func.func @transform_9(%arg0: i32) -> (i32, i32) {
    %c0_i32 = arith.constant 0 : i32
    %c0_i32_0 = arith.constant 0 : i32
    %c0_i32_1 = arith.constant 0 : i32
    return %c0_i32, %c0_i32_0 : i32, i32
  }
  func.func @transform_10(%arg0: i32) -> (i32, i32) {
    %c0_i32 = arith.constant 0 : i32
    %c0_i32_0 = arith.constant 0 : i32
    %c0_i32_1 = arith.constant 0 : i32
    return %c0_i32, %c0_i32_0 : i32, i32
  }
  func.func @transform_11(%arg0: i32) -> (i32, i32, i32) {
    %c0_i32 = arith.constant 0 : i32
    %c0_i32_0 = arith.constant 0 : i32
    %c0_i32_1 = arith.constant 0 : i32
    return %arg0, %c0_i32, %c0_i32_0 : i32, i32, i32
  }
}

module attributes {stable_mosaic.version = 11 : i64} {
  func.func @_final_proj_kernel(%arg0: i32, %arg1: memref<1x5x32xf32, #tpu.memory_space<vmem>>, %arg2: memref<2x32xf32, #tpu.memory_space<vmem>>, %arg3: memref<1x32xf32, #tpu.memory_space<vmem>>, %arg4: memref<1x1xf32, #tpu.memory_space<vmem>>, %arg5: memref<1x1x1xf32, #tpu.memory_space<vmem>>) attributes {dimension_semantics = [#tpu.dimension_semantics<parallel>], iteration_bounds = array<i64: 2>, scalar_prefetch = 0 : i64, scratch_operands = 0 : i64, tpu.core_type = #tpu.core_type<tc>, window_params = [{transform_indices = @transform_0, window_bounds = array<i64: 1, 5, 32>}, {pipeline_mode = #tpu.pipeline_mode<synchronous>, transform_indices = @transform_1, window_bounds = array<i64: 2, 32>}, {pipeline_mode = #tpu.pipeline_mode<synchronous>, transform_indices = @transform_2, window_bounds = array<i64: 1, 32>}, {pipeline_mode = #tpu.pipeline_mode<synchronous>, transform_indices = @transform_3, window_bounds = array<i64: 1, 1>}, {transform_indices = @transform_4, window_bounds = array<i64: 1, 1, 1>}]} {
    %c0 = arith.constant 0 : index
    %c0_0 = arith.constant 0 : index
    %c0_1 = arith.constant 0 : index
    %0 = vector.load %arg1[%c0, %c0_0, %c0_1] : memref<1x5x32xf32, #tpu.memory_space<vmem>>, vector<1x5x32xf32>
    %1 = vector.shape_cast %0 : vector<1x5x32xf32> to vector<5x32xf32>
    %2 = vector.extract_strided_slice %1 {offsets = [4, 0], sizes = [1, 32], strides = [1, 1]} : vector<5x32xf32> to vector<1x32xf32>
    %c0_2 = arith.constant 0 : index
    %c0_3 = arith.constant 0 : index
    %3 = vector.load %arg2[%c0_2, %c0_3] : memref<2x32xf32, #tpu.memory_space<vmem>>, vector<2x32xf32>
    %4 = vector.extract_strided_slice %3 {offsets = [0, 0], sizes = [1, 32], strides = [1, 1]} : vector<2x32xf32> to vector<1x32xf32>
    %5 = vector.extract_strided_slice %3 {offsets = [1, 0], sizes = [1, 32], strides = [1, 1]} : vector<2x32xf32> to vector<1x32xf32>
    %cst = arith.constant dense<0.000000e+00> : vector<1xf32>
    %6 = vector.multi_reduction <add>, %2, %cst [1] : vector<1x32xf32> to vector<1xf32>
    %7 = vector.shape_cast %6 : vector<1xf32> to vector<1x1xf32>
    %cst_4 = arith.constant 3.200000e+01 : f32
    %8 = vector.broadcast %cst_4 : f32 to vector<1x1xf32>
    %9 = arith.divf %7, %8 : vector<1x1xf32>
    %10 = vector.broadcast %9 : vector<1x1xf32> to vector<1x32xf32>
    %11 = arith.subf %2, %10 : vector<1x32xf32>
    %12 = arith.mulf %11, %11 : vector<1x32xf32>
    %cst_5 = arith.constant dense<0.000000e+00> : vector<1xf32>
    %13 = vector.multi_reduction <add>, %12, %cst_5 [1] : vector<1x32xf32> to vector<1xf32>
    %14 = vector.shape_cast %13 : vector<1xf32> to vector<1x1xf32>
    %cst_6 = arith.constant 3.200000e+01 : f32
    %15 = vector.broadcast %cst_6 : f32 to vector<1x1xf32>
    %16 = arith.divf %14, %15 : vector<1x1xf32>
    %cst_7 = arith.constant 9.99999974E-6 : f32
    %17 = vector.broadcast %cst_7 : f32 to vector<1x1xf32>
    %18 = arith.addf %16, %17 : vector<1x1xf32>
    %19 = math.rsqrt %18 : vector<1x1xf32>
    %20 = vector.broadcast %19 : vector<1x1xf32> to vector<1x32xf32>
    %21 = arith.mulf %11, %20 : vector<1x32xf32>
    %22 = arith.mulf %21, %4 : vector<1x32xf32>
    %23 = arith.addf %22, %5 : vector<1x32xf32>
    %c0_8 = arith.constant 0 : index
    %c0_9 = arith.constant 0 : index
    %24 = vector.load %arg3[%c0_8, %c0_9] : memref<1x32xf32, #tpu.memory_space<vmem>>, vector<1x32xf32>
    %25 = arith.mulf %23, %24 : vector<1x32xf32>
    %cst_10 = arith.constant dense<0.000000e+00> : vector<1xf32>
    %26 = vector.multi_reduction <add>, %25, %cst_10 [1] : vector<1x32xf32> to vector<1xf32>
    %27 = vector.shape_cast %26 : vector<1xf32> to vector<1x1xf32>
    %c0_11 = arith.constant 0 : index
    %c0_12 = arith.constant 0 : index
    %28 = vector.load %arg4[%c0_11, %c0_12] : memref<1x1xf32, #tpu.memory_space<vmem>>, vector<1x1xf32>
    %29 = arith.addf %27, %28 : vector<1x1xf32>
    %c0_13 = arith.constant 0 : index
    %c0_14 = arith.constant 0 : index
    %c0_15 = arith.constant 0 : index
    %30 = vector.load %arg5[%c0_13, %c0_14, %c0_15] : memref<1x1x1xf32, #tpu.memory_space<vmem>>, vector<1x1x1xf32>
    %31 = vector.shape_cast %30 : vector<1x1x1xf32> to vector<1x1xf32>
    %32 = vector.shape_cast %29 : vector<1x1xf32> to vector<1x1x1xf32>
    tpu.vector_store %arg5[%c0_13, %c0_14, %c0_15], %32 {strides = array<i32>} : memref<1x1x1xf32, #tpu.memory_space<vmem>>, vector<1x1x1xf32>,
    return
  }
  func.func @transform_0(%arg0: i32) -> (i32, i32, i32) {
    %c0_i32 = arith.constant 0 : i32
    %c0_i32_0 = arith.constant 0 : i32
    %c0_i32_1 = arith.constant 0 : i32
    return %arg0, %c0_i32, %c0_i32_0 : i32, i32, i32
  }
  func.func @transform_1(%arg0: i32) -> (i32, i32) {
    %c0_i32 = arith.constant 0 : i32
    %c0_i32_0 = arith.constant 0 : i32
    %c0_i32_1 = arith.constant 0 : i32
    return %c0_i32, %c0_i32_0 : i32, i32
  }
  func.func @transform_2(%arg0: i32) -> (i32, i32) {
    %c0_i32 = arith.constant 0 : i32
    %c0_i32_0 = arith.constant 0 : i32
    %c0_i32_1 = arith.constant 0 : i32
    return %c0_i32, %c0_i32_0 : i32, i32
  }
  func.func @transform_3(%arg0: i32) -> (i32, i32) {
    %c0_i32 = arith.constant 0 : i32
    %c0_i32_0 = arith.constant 0 : i32
    %c0_i32_1 = arith.constant 0 : i32
    return %c0_i32, %c0_i32_0 : i32, i32
  }
  func.func @transform_4(%arg0: i32) -> (i32, i32, i32) {
    %c0_i32 = arith.constant 0 : i32
    %c0_i32_0 = arith.constant 0 : i32
    %c0_i32_1 = arith.constant 0 : i32
    return %arg0, %c0_i32, %c0_i32_0 : i32, i32, i32
  }
}

module attributes {stable_mosaic.version = 11 : i64} {
  func.func @_embed_kernel(%arg0: i32, %arg1: memref<1x5x3xf32, #tpu.memory_space<vmem>>, %arg2: memref<9x32xf32, #tpu.memory_space<vmem>>, %arg3: memref<64x32xf32, #tpu.memory_space<vmem>>, %arg4: memref<1x5x32xf32, #tpu.memory_space<vmem>>) attributes {dimension_semantics = [#tpu.dimension_semantics<parallel>], iteration_bounds = array<i64: 2>, scalar_prefetch = 0 : i64, scratch_operands = 0 : i64, tpu.core_type = #tpu.core_type<tc>, window_params = [{transform_indices = @transform_0, window_bounds = array<i64: 1, 5, 3>}, {pipeline_mode = #tpu.pipeline_mode<synchronous>, transform_indices = @transform_1, window_bounds = array<i64: 9, 32>}, {pipeline_mode = #tpu.pipeline_mode<synchronous>, transform_indices = @transform_2, window_bounds = array<i64: 64, 32>}, {transform_indices = @transform_3, window_bounds = array<i64: 1, 5, 32>}]} {
    %c0 = arith.constant 0 : index
    %c0_0 = arith.constant 0 : index
    %c0_1 = arith.constant 0 : index
    %0 = vector.load %arg1[%c0, %c0_0, %c0_1] : memref<1x5x3xf32, #tpu.memory_space<vmem>>, vector<1x5x3xf32>
    %1 = vector.shape_cast %0 : vector<1x5x3xf32> to vector<5x3xf32>
    %c0_2 = arith.constant 0 : index
    %c0_3 = arith.constant 0 : index
    %2 = vector.load %arg2[%c0_2, %c0_3] : memref<9x32xf32, #tpu.memory_space<vmem>>, vector<9x32xf32>
    %3 = vector.extract_strided_slice %1 {offsets = [4, 0], sizes = [1, 3], strides = [1, 1]} : vector<5x3xf32> to vector<1x3xf32>
    %4 = vector.extract_strided_slice %1 {offsets = [0, 0], sizes = [4, 3], strides = [1, 1]} : vector<5x3xf32> to vector<4x3xf32>
    %5 = tpu.concatenate %3, %4 in 0 : vector<1x3xf32>, vector<4x3xf32> -> vector<5x3xf32>
    %6 = vector.extract_strided_slice %1 {offsets = [1, 0], sizes = [4, 3], strides = [1, 1]} : vector<5x3xf32> to vector<4x3xf32>
    %7 = vector.extract_strided_slice %1 {offsets = [0, 0], sizes = [1, 3], strides = [1, 1]} : vector<5x3xf32> to vector<1x3xf32>
    %8 = tpu.concatenate %6, %7 in 0 : vector<4x3xf32>, vector<1x3xf32> -> vector<5x3xf32>
    %9 = vector.extract_strided_slice %2 {offsets = [0, 0], sizes = [3, 32], strides = [1, 1]} : vector<9x32xf32> to vector<3x32xf32>
    %cst = arith.constant dense<0.000000e+00> : vector<5x32xf32>
    %10 = tpu.matmul %5, %9, %cst {dimension_numbers = #tpu.dot_dimension_numbers<[1], [0], [0], [1], [0, 0, 1, 1], [], []>} : vector<5x3xf32>, vector<3x32xf32>, vector<5x32xf32> -> vector<5x32xf32>
    %11 = vector.extract_strided_slice %2 {offsets = [3, 0], sizes = [3, 32], strides = [1, 1]} : vector<9x32xf32> to vector<3x32xf32>
    %cst_4 = arith.constant dense<0.000000e+00> : vector<5x32xf32>
    %12 = tpu.matmul %1, %11, %cst_4 {dimension_numbers = #tpu.dot_dimension_numbers<[1], [0], [0], [1], [0, 0, 1, 1], [], []>} : vector<5x3xf32>, vector<3x32xf32>, vector<5x32xf32> -> vector<5x32xf32>
    %13 = arith.addf %10, %12 : vector<5x32xf32>
    %14 = vector.extract_strided_slice %2 {offsets = [6, 0], sizes = [3, 32], strides = [1, 1]} : vector<9x32xf32> to vector<3x32xf32>
    %cst_5 = arith.constant dense<0.000000e+00> : vector<5x32xf32>
    %15 = tpu.matmul %8, %14, %cst_5 {dimension_numbers = #tpu.dot_dimension_numbers<[1], [0], [0], [1], [0, 0, 1, 1], [], []>} : vector<5x3xf32>, vector<3x32xf32>, vector<5x32xf32> -> vector<5x32xf32>
    %16 = arith.addf %13, %15 : vector<5x32xf32>
    %c0_6 = arith.constant 0 : index
    %c0_7 = arith.constant 0 : index
    %17 = vector.load %arg3[%c0_6, %c0_7] : memref<64x32xf32, #tpu.memory_space<vmem>>, vector<64x32xf32>
    %18 = vector.extract_strided_slice %17 {offsets = [0, 0], sizes = [5, 32], strides = [1, 1]} : vector<64x32xf32> to vector<5x32xf32>
    %19 = arith.addf %16, %18 : vector<5x32xf32>
    %c0_8 = arith.constant 0 : index
    %c0_9 = arith.constant 0 : index
    %c0_10 = arith.constant 0 : index
    %20 = vector.load %arg4[%c0_8, %c0_9, %c0_10] : memref<1x5x32xf32, #tpu.memory_space<vmem>>, vector<1x5x32xf32>
    %21 = vector.shape_cast %20 : vector<1x5x32xf32> to vector<5x32xf32>
    %22 = vector.shape_cast %19 : vector<5x32xf32> to vector<1x5x32xf32>
    tpu.vector_store %arg4[%c0_8, %c0_9, %c0_10], %22 {strides = array<i32>} : memref<1x5x32xf32, #tpu.memory_space<vmem>>, vector<1x5x32xf32>,
    return
  }
  func.func @transform_0(%arg0: i32) -> (i32, i32, i32) {
    %c0_i32 = arith.constant 0 : i32
    %c0_i32_0 = arith.constant 0 : i32
    %c0_i32_1 = arith.constant 0 : i32
    return %arg0, %c0_i32, %c0_i32_0 : i32, i32, i32
  }
  func.func @transform_1(%arg0: i32) -> (i32, i32) {
    %c0_i32 = arith.constant 0 : i32
    %c0_i32_0 = arith.constant 0 : i32
    %c0_i32_1 = arith.constant 0 : i32
    return %c0_i32, %c0_i32_0 : i32, i32
  }
  func.func @transform_2(%arg0: i32) -> (i32, i32) {
    %c0_i32 = arith.constant 0 : i32
    %c0_i32_0 = arith.constant 0 : i32
    %c0_i32_1 = arith.constant 0 : i32
    return %c0_i32, %c0_i32_0 : i32, i32
  }
  func.func @transform_3(%arg0: i32) -> (i32, i32, i32) {
    %c0_i32 = arith.constant 0 : i32
    %c0_i32_0 = arith.constant 0 : i32
    %c0_i32_1 = arith.constant 0 : i32
    return %arg0, %c0_i32, %c0_i32_0 : i32, i32, i32
  }
}

module attributes {stable_mosaic.version = 11 : i64} {
  func.func @_embed_kernel(%arg0: i32, %arg1: memref<1x6x3xf32, #tpu.memory_space<vmem>>, %arg2: memref<9x32xf32, #tpu.memory_space<vmem>>, %arg3: memref<64x32xf32, #tpu.memory_space<vmem>>, %arg4: memref<1x6x32xf32, #tpu.memory_space<vmem>>) attributes {dimension_semantics = [#tpu.dimension_semantics<parallel>], iteration_bounds = array<i64: 2>, scalar_prefetch = 0 : i64, scratch_operands = 0 : i64, tpu.core_type = #tpu.core_type<tc>, window_params = [{transform_indices = @transform_0, window_bounds = array<i64: 1, 6, 3>}, {pipeline_mode = #tpu.pipeline_mode<synchronous>, transform_indices = @transform_1, window_bounds = array<i64: 9, 32>}, {pipeline_mode = #tpu.pipeline_mode<synchronous>, transform_indices = @transform_2, window_bounds = array<i64: 64, 32>}, {transform_indices = @transform_3, window_bounds = array<i64: 1, 6, 32>}]} {
    %c0 = arith.constant 0 : index
    %c0_0 = arith.constant 0 : index
    %c0_1 = arith.constant 0 : index
    %0 = vector.load %arg1[%c0, %c0_0, %c0_1] : memref<1x6x3xf32, #tpu.memory_space<vmem>>, vector<1x6x3xf32>
    %1 = vector.shape_cast %0 : vector<1x6x3xf32> to vector<6x3xf32>
    %c0_2 = arith.constant 0 : index
    %c0_3 = arith.constant 0 : index
    %2 = vector.load %arg2[%c0_2, %c0_3] : memref<9x32xf32, #tpu.memory_space<vmem>>, vector<9x32xf32>
    %3 = vector.extract_strided_slice %1 {offsets = [5, 0], sizes = [1, 3], strides = [1, 1]} : vector<6x3xf32> to vector<1x3xf32>
    %4 = vector.extract_strided_slice %1 {offsets = [0, 0], sizes = [5, 3], strides = [1, 1]} : vector<6x3xf32> to vector<5x3xf32>
    %5 = tpu.concatenate %3, %4 in 0 : vector<1x3xf32>, vector<5x3xf32> -> vector<6x3xf32>
    %6 = vector.extract_strided_slice %1 {offsets = [1, 0], sizes = [5, 3], strides = [1, 1]} : vector<6x3xf32> to vector<5x3xf32>
    %7 = vector.extract_strided_slice %1 {offsets = [0, 0], sizes = [1, 3], strides = [1, 1]} : vector<6x3xf32> to vector<1x3xf32>
    %8 = tpu.concatenate %6, %7 in 0 : vector<5x3xf32>, vector<1x3xf32> -> vector<6x3xf32>
    %9 = vector.extract_strided_slice %2 {offsets = [0, 0], sizes = [3, 32], strides = [1, 1]} : vector<9x32xf32> to vector<3x32xf32>
    %cst = arith.constant dense<0.000000e+00> : vector<6x32xf32>
    %10 = tpu.matmul %5, %9, %cst {dimension_numbers = #tpu.dot_dimension_numbers<[1], [0], [0], [1], [0, 0, 1, 1], [], []>} : vector<6x3xf32>, vector<3x32xf32>, vector<6x32xf32> -> vector<6x32xf32>
    %11 = vector.extract_strided_slice %2 {offsets = [3, 0], sizes = [3, 32], strides = [1, 1]} : vector<9x32xf32> to vector<3x32xf32>
    %cst_4 = arith.constant dense<0.000000e+00> : vector<6x32xf32>
    %12 = tpu.matmul %1, %11, %cst_4 {dimension_numbers = #tpu.dot_dimension_numbers<[1], [0], [0], [1], [0, 0, 1, 1], [], []>} : vector<6x3xf32>, vector<3x32xf32>, vector<6x32xf32> -> vector<6x32xf32>
    %13 = arith.addf %10, %12 : vector<6x32xf32>
    %14 = vector.extract_strided_slice %2 {offsets = [6, 0], sizes = [3, 32], strides = [1, 1]} : vector<9x32xf32> to vector<3x32xf32>
    %cst_5 = arith.constant dense<0.000000e+00> : vector<6x32xf32>
    %15 = tpu.matmul %8, %14, %cst_5 {dimension_numbers = #tpu.dot_dimension_numbers<[1], [0], [0], [1], [0, 0, 1, 1], [], []>} : vector<6x3xf32>, vector<3x32xf32>, vector<6x32xf32> -> vector<6x32xf32>
    %16 = arith.addf %13, %15 : vector<6x32xf32>
    %c0_6 = arith.constant 0 : index
    %c0_7 = arith.constant 0 : index
    %17 = vector.load %arg3[%c0_6, %c0_7] : memref<64x32xf32, #tpu.memory_space<vmem>>, vector<64x32xf32>
    %18 = vector.extract_strided_slice %17 {offsets = [0, 0], sizes = [6, 32], strides = [1, 1]} : vector<64x32xf32> to vector<6x32xf32>
    %19 = arith.addf %16, %18 : vector<6x32xf32>
    %c0_8 = arith.constant 0 : index
    %c0_9 = arith.constant 0 : index
    %c0_10 = arith.constant 0 : index
    %20 = vector.load %arg4[%c0_8, %c0_9, %c0_10] : memref<1x6x32xf32, #tpu.memory_space<vmem>>, vector<1x6x32xf32>
    %21 = vector.shape_cast %20 : vector<1x6x32xf32> to vector<6x32xf32>
    %22 = vector.shape_cast %19 : vector<6x32xf32> to vector<1x6x32xf32>
    tpu.vector_store %arg4[%c0_8, %c0_9, %c0_10], %22 {strides = array<i32>} : memref<1x6x32xf32, #tpu.memory_space<vmem>>, vector<1x6x32xf32>,
    return
  }
  func.func @transform_0(%arg0: i32) -> (i32, i32, i32) {
    %c0_i32 = arith.constant 0 : i32
    %c0_i32_0 = arith.constant 0 : i32
    %c0_i32_1 = arith.constant 0 : i32
    return %arg0, %c0_i32, %c0_i32_0 : i32, i32, i32
  }
  func.func @transform_1(%arg0: i32) -> (i32, i32) {
    %c0_i32 = arith.constant 0 : i32
    %c0_i32_0 = arith.constant 0 : i32
    %c0_i32_1 = arith.constant 0 : i32
    return %c0_i32, %c0_i32_0 : i32, i32
  }
  func.func @transform_2(%arg0: i32) -> (i32, i32) {
    %c0_i32 = arith.constant 0 : i32
    %c0_i32_0 = arith.constant 0 : i32
    %c0_i32_1 = arith.constant 0 : i32
    return %c0_i32, %c0_i32_0 : i32, i32
  }
  func.func @transform_3(%arg0: i32) -> (i32, i32, i32) {
    %c0_i32 = arith.constant 0 : i32
    %c0_i32_0 = arith.constant 0 : i32
    %c0_i32_1 = arith.constant 0 : i32
    return %arg0, %c0_i32, %c0_i32_0 : i32, i32, i32
  }
}

module attributes {stable_mosaic.version = 11 : i64} {
  func.func @_dec_layer_kernel(%arg0: i32, %arg1: memref<1x6x32xf32, #tpu.memory_space<vmem>>, %arg2: memref<1x8x64xf32, #tpu.memory_space<vmem>>, %arg3: memref<32x96xf32, #tpu.memory_space<vmem>>, %arg4: memref<1x96xf32, #tpu.memory_space<vmem>>, %arg5: memref<32x32xf32, #tpu.memory_space<vmem>>, %arg6: memref<32x32xf32, #tpu.memory_space<vmem>>, %arg7: memref<32x32xf32, #tpu.memory_space<vmem>>, %arg8: memref<32x64xf32, #tpu.memory_space<vmem>>, %arg9: memref<1x64xf32, #tpu.memory_space<vmem>>, %arg10: memref<64x32xf32, #tpu.memory_space<vmem>>, %arg11: memref<10x32xf32, #tpu.memory_space<vmem>>, %arg12: memref<1x6x32xf32, #tpu.memory_space<vmem>>) attributes {dimension_semantics = [#tpu.dimension_semantics<parallel>], iteration_bounds = array<i64: 2>, scalar_prefetch = 0 : i64, scratch_operands = 0 : i64, tpu.core_type = #tpu.core_type<tc>, window_params = [{transform_indices = @transform_0, window_bounds = array<i64: 1, 6, 32>}, {transform_indices = @transform_1, window_bounds = array<i64: 1, 8, 64>}, {pipeline_mode = #tpu.pipeline_mode<synchronous>, transform_indices = @transform_2, window_bounds = array<i64: 32, 96>}, {pipeline_mode = #tpu.pipeline_mode<synchronous>, transform_indices = @transform_3, window_bounds = array<i64: 1, 96>}, {pipeline_mode = #tpu.pipeline_mode<synchronous>, transform_indices = @transform_4, window_bounds = array<i64: 32, 32>}, {pipeline_mode = #tpu.pipeline_mode<synchronous>, transform_indices = @transform_5, window_bounds = array<i64: 32, 32>}, {pipeline_mode = #tpu.pipeline_mode<synchronous>, transform_indices = @transform_6, window_bounds = array<i64: 32, 32>}, {pipeline_mode = #tpu.pipeline_mode<synchronous>, transform_indices = @transform_7, window_bounds = array<i64: 32, 64>}, {pipeline_mode = #tpu.pipeline_mode<synchronous>, transform_indices = @transform_8, window_bounds = array<i64: 1, 64>}, {pipeline_mode = #tpu.pipeline_mode<synchronous>, transform_indices = @transform_9, window_bounds = array<i64: 64, 32>}, {pipeline_mode = #tpu.pipeline_mode<synchronous>, transform_indices = @transform_10, window_bounds = array<i64: 10, 32>}, {transform_indices = @transform_11, window_bounds = array<i64: 1, 6, 32>}]} {
    %c0 = arith.constant 0 : index
    %c0_0 = arith.constant 0 : index
    %c0_1 = arith.constant 0 : index
    %0 = vector.load %arg1[%c0, %c0_0, %c0_1] : memref<1x6x32xf32, #tpu.memory_space<vmem>>, vector<1x6x32xf32>
    %1 = vector.shape_cast %0 : vector<1x6x32xf32> to vector<6x32xf32>
    %c0_2 = arith.constant 0 : index
    %c0_3 = arith.constant 0 : index
    %2 = vector.load %arg11[%c0_2, %c0_3] : memref<10x32xf32, #tpu.memory_space<vmem>>, vector<10x32xf32>
    %c0_4 = arith.constant 0 : index
    %c0_5 = arith.constant 0 : index
    %c0_6 = arith.constant 0 : index
    %3 = vector.load %arg2[%c0_4, %c0_5, %c0_6] : memref<1x8x64xf32, #tpu.memory_space<vmem>>, vector<1x8x64xf32>
    %4 = vector.shape_cast %3 : vector<1x8x64xf32> to vector<8x64xf32>
    %5 = vector.extract_strided_slice %4 {offsets = [0, 0], sizes = [8, 32], strides = [1, 1]} : vector<8x64xf32> to vector<8x32xf32>
    %6 = vector.extract_strided_slice %4 {offsets = [0, 32], sizes = [8, 32], strides = [1, 1]} : vector<8x64xf32> to vector<8x32xf32>
    %c0_7 = arith.constant 0 : index
    %c0_8 = arith.constant 0 : index
    %7 = vector.load %arg3[%c0_7, %c0_8] : memref<32x96xf32, #tpu.memory_space<vmem>>, vector<32x96xf32>
    %cst = arith.constant dense<0.000000e+00> : vector<6x96xf32>
    %8 = tpu.matmul %1, %7, %cst {dimension_numbers = #tpu.dot_dimension_numbers<[1], [0], [0], [1], [0, 0, 1, 1], [], []>} : vector<6x32xf32>, vector<32x96xf32>, vector<6x96xf32> -> vector<6x96xf32>
    %c0_9 = arith.constant 0 : index
    %c0_10 = arith.constant 0 : index
    %9 = vector.load %arg4[%c0_9, %c0_10] : memref<1x96xf32, #tpu.memory_space<vmem>>, vector<1x96xf32>
    %10 = vector.broadcast %9 : vector<1x96xf32> to vector<6x96xf32>
    %11 = arith.addf %8, %10 : vector<6x96xf32>
    %12 = vector.extract_strided_slice %11 {offsets = [0, 0], sizes = [6, 32], strides = [1, 1]} : vector<6x96xf32> to vector<6x32xf32>
    %13 = vector.extract_strided_slice %11 {offsets = [0, 32], sizes = [6, 32], strides = [1, 1]} : vector<6x96xf32> to vector<6x32xf32>
    %14 = vector.extract_strided_slice %11 {offsets = [0, 64], sizes = [6, 32], strides = [1, 1]} : vector<6x96xf32> to vector<6x32xf32>
    %cst_11 = arith.constant 0.353553385 : f32
    %15 = vector.broadcast %cst_11 : f32 to vector<6x32xf32>
    %16 = arith.mulf %12, %15 : vector<6x32xf32>
    %17 = vector.extract_strided_slice %16 {offsets = [0, 0], sizes = [6, 8], strides = [1, 1]} : vector<6x32xf32> to vector<6x8xf32>
    %18 = vector.extract_strided_slice %13 {offsets = [0, 0], sizes = [6, 8], strides = [1, 1]} : vector<6x32xf32> to vector<6x8xf32>
    %19 = vector.extract_strided_slice %14 {offsets = [0, 0], sizes = [6, 8], strides = [1, 1]} : vector<6x32xf32> to vector<6x8xf32>
    %cst_12 = arith.constant dense<0.000000e+00> : vector<6x6xf32>
    %20 = tpu.matmul %17, %18, %cst_12 {dimension_numbers = #tpu.dot_dimension_numbers<[1], [1], [0], [0], [0, 0, 1, 0], [], []>} : vector<6x8xf32>, vector<6x8xf32>, vector<6x6xf32> -> vector<6x6xf32>
    %cst_13 = arith.constant dense<0xFF800000> : vector<6xf32>
    %21 = vector.multi_reduction <maximumf>, %20, %cst_13 [1] : vector<6x6xf32> to vector<6xf32>
    %22 = vector.shape_cast %21 : vector<6xf32> to vector<6x1xf32>
    %23 = vector.broadcast %22 : vector<6x1xf32> to vector<6x6xf32>
    %24 = arith.subf %20, %23 : vector<6x6xf32>
    %25 = math.exp %24 : vector<6x6xf32>
    %cst_14 = arith.constant dense<0.000000e+00> : vector<6xf32>
    %26 = vector.multi_reduction <add>, %25, %cst_14 [1] : vector<6x6xf32> to vector<6xf32>
    %27 = vector.shape_cast %26 : vector<6xf32> to vector<6x1xf32>
    %28 = tpu.reciprocal %27 {approx = true} : vector<6x1xf32> -> vector<6x1xf32>
    %29 = vector.broadcast %28 : vector<6x1xf32> to vector<6x6xf32>
    %30 = arith.mulf %25, %29 : vector<6x6xf32>
    %cst_15 = arith.constant dense<0.000000e+00> : vector<6x8xf32>
    %31 = tpu.matmul %30, %19, %cst_15 {dimension_numbers = #tpu.dot_dimension_numbers<[1], [0], [0], [1], [0, 0, 1, 1], [], []>} : vector<6x6xf32>, vector<6x8xf32>, vector<6x8xf32> -> vector<6x8xf32>
    %32 = vector.extract_strided_slice %16 {offsets = [0, 8], sizes = [6, 8], strides = [1, 1]} : vector<6x32xf32> to vector<6x8xf32>
    %33 = vector.extract_strided_slice %13 {offsets = [0, 8], sizes = [6, 8], strides = [1, 1]} : vector<6x32xf32> to vector<6x8xf32>
    %34 = vector.extract_strided_slice %14 {offsets = [0, 8], sizes = [6, 8], strides = [1, 1]} : vector<6x32xf32> to vector<6x8xf32>
    %cst_16 = arith.constant dense<0.000000e+00> : vector<6x6xf32>
    %35 = tpu.matmul %32, %33, %cst_16 {dimension_numbers = #tpu.dot_dimension_numbers<[1], [1], [0], [0], [0, 0, 1, 0], [], []>} : vector<6x8xf32>, vector<6x8xf32>, vector<6x6xf32> -> vector<6x6xf32>
    %cst_17 = arith.constant dense<0xFF800000> : vector<6xf32>
    %36 = vector.multi_reduction <maximumf>, %35, %cst_17 [1] : vector<6x6xf32> to vector<6xf32>
    %37 = vector.shape_cast %36 : vector<6xf32> to vector<6x1xf32>
    %38 = vector.broadcast %37 : vector<6x1xf32> to vector<6x6xf32>
    %39 = arith.subf %35, %38 : vector<6x6xf32>
    %40 = math.exp %39 : vector<6x6xf32>
    %cst_18 = arith.constant dense<0.000000e+00> : vector<6xf32>
    %41 = vector.multi_reduction <add>, %40, %cst_18 [1] : vector<6x6xf32> to vector<6xf32>
    %42 = vector.shape_cast %41 : vector<6xf32> to vector<6x1xf32>
    %43 = tpu.reciprocal %42 {approx = true} : vector<6x1xf32> -> vector<6x1xf32>
    %44 = vector.broadcast %43 : vector<6x1xf32> to vector<6x6xf32>
    %45 = arith.mulf %40, %44 : vector<6x6xf32>
    %cst_19 = arith.constant dense<0.000000e+00> : vector<6x8xf32>
    %46 = tpu.matmul %45, %34, %cst_19 {dimension_numbers = #tpu.dot_dimension_numbers<[1], [0], [0], [1], [0, 0, 1, 1], [], []>} : vector<6x6xf32>, vector<6x8xf32>, vector<6x8xf32> -> vector<6x8xf32>
    %47 = vector.extract_strided_slice %16 {offsets = [0, 16], sizes = [6, 8], strides = [1, 1]} : vector<6x32xf32> to vector<6x8xf32>
    %48 = vector.extract_strided_slice %13 {offsets = [0, 16], sizes = [6, 8], strides = [1, 1]} : vector<6x32xf32> to vector<6x8xf32>
    %49 = vector.extract_strided_slice %14 {offsets = [0, 16], sizes = [6, 8], strides = [1, 1]} : vector<6x32xf32> to vector<6x8xf32>
    %cst_20 = arith.constant dense<0.000000e+00> : vector<6x6xf32>
    %50 = tpu.matmul %47, %48, %cst_20 {dimension_numbers = #tpu.dot_dimension_numbers<[1], [1], [0], [0], [0, 0, 1, 0], [], []>} : vector<6x8xf32>, vector<6x8xf32>, vector<6x6xf32> -> vector<6x6xf32>
    %cst_21 = arith.constant dense<0xFF800000> : vector<6xf32>
    %51 = vector.multi_reduction <maximumf>, %50, %cst_21 [1] : vector<6x6xf32> to vector<6xf32>
    %52 = vector.shape_cast %51 : vector<6xf32> to vector<6x1xf32>
    %53 = vector.broadcast %52 : vector<6x1xf32> to vector<6x6xf32>
    %54 = arith.subf %50, %53 : vector<6x6xf32>
    %55 = math.exp %54 : vector<6x6xf32>
    %cst_22 = arith.constant dense<0.000000e+00> : vector<6xf32>
    %56 = vector.multi_reduction <add>, %55, %cst_22 [1] : vector<6x6xf32> to vector<6xf32>
    %57 = vector.shape_cast %56 : vector<6xf32> to vector<6x1xf32>
    %58 = tpu.reciprocal %57 {approx = true} : vector<6x1xf32> -> vector<6x1xf32>
    %59 = vector.broadcast %58 : vector<6x1xf32> to vector<6x6xf32>
    %60 = arith.mulf %55, %59 : vector<6x6xf32>
    %cst_23 = arith.constant dense<0.000000e+00> : vector<6x8xf32>
    %61 = tpu.matmul %60, %49, %cst_23 {dimension_numbers = #tpu.dot_dimension_numbers<[1], [0], [0], [1], [0, 0, 1, 1], [], []>} : vector<6x6xf32>, vector<6x8xf32>, vector<6x8xf32> -> vector<6x8xf32>
    %62 = vector.extract_strided_slice %16 {offsets = [0, 24], sizes = [6, 8], strides = [1, 1]} : vector<6x32xf32> to vector<6x8xf32>
    %63 = vector.extract_strided_slice %13 {offsets = [0, 24], sizes = [6, 8], strides = [1, 1]} : vector<6x32xf32> to vector<6x8xf32>
    %64 = vector.extract_strided_slice %14 {offsets = [0, 24], sizes = [6, 8], strides = [1, 1]} : vector<6x32xf32> to vector<6x8xf32>
    %cst_24 = arith.constant dense<0.000000e+00> : vector<6x6xf32>
    %65 = tpu.matmul %62, %63, %cst_24 {dimension_numbers = #tpu.dot_dimension_numbers<[1], [1], [0], [0], [0, 0, 1, 0], [], []>} : vector<6x8xf32>, vector<6x8xf32>, vector<6x6xf32> -> vector<6x6xf32>
    %cst_25 = arith.constant dense<0xFF800000> : vector<6xf32>
    %66 = vector.multi_reduction <maximumf>, %65, %cst_25 [1] : vector<6x6xf32> to vector<6xf32>
    %67 = vector.shape_cast %66 : vector<6xf32> to vector<6x1xf32>
    %68 = vector.broadcast %67 : vector<6x1xf32> to vector<6x6xf32>
    %69 = arith.subf %65, %68 : vector<6x6xf32>
    %70 = math.exp %69 : vector<6x6xf32>
    %cst_26 = arith.constant dense<0.000000e+00> : vector<6xf32>
    %71 = vector.multi_reduction <add>, %70, %cst_26 [1] : vector<6x6xf32> to vector<6xf32>
    %72 = vector.shape_cast %71 : vector<6xf32> to vector<6x1xf32>
    %73 = tpu.reciprocal %72 {approx = true} : vector<6x1xf32> -> vector<6x1xf32>
    %74 = vector.broadcast %73 : vector<6x1xf32> to vector<6x6xf32>
    %75 = arith.mulf %70, %74 : vector<6x6xf32>
    %cst_27 = arith.constant dense<0.000000e+00> : vector<6x8xf32>
    %76 = tpu.matmul %75, %64, %cst_27 {dimension_numbers = #tpu.dot_dimension_numbers<[1], [0], [0], [1], [0, 0, 1, 1], [], []>} : vector<6x6xf32>, vector<6x8xf32>, vector<6x8xf32> -> vector<6x8xf32>
    %77 = vector.extract_strided_slice %31 {offsets = [0, 0], sizes = [1, 8], strides = [1, 1]} : vector<6x8xf32> to vector<1x8xf32>
    %78 = vector.extract_strided_slice %31 {offsets = [1, 0], sizes = [1, 8], strides = [1, 1]} : vector<6x8xf32> to vector<1x8xf32>
    %79 = vector.extract_strided_slice %31 {offsets = [2, 0], sizes = [1, 8], strides = [1, 1]} : vector<6x8xf32> to vector<1x8xf32>
    %80 = vector.extract_strided_slice %31 {offsets = [3, 0], sizes = [1, 8], strides = [1, 1]} : vector<6x8xf32> to vector<1x8xf32>
    %81 = tpu.concatenate %77, %78, %79, %80 in 1 : vector<1x8xf32>, vector<1x8xf32>, vector<1x8xf32>, vector<1x8xf32> -> vector<1x32xf32>
    %82 = vector.extract_strided_slice %31 {offsets = [4, 0], sizes = [1, 8], strides = [1, 1]} : vector<6x8xf32> to vector<1x8xf32>
    %83 = vector.extract_strided_slice %31 {offsets = [5, 0], sizes = [1, 8], strides = [1, 1]} : vector<6x8xf32> to vector<1x8xf32>
    %84 = vector.extract_strided_slice %46 {offsets = [0, 0], sizes = [1, 8], strides = [1, 1]} : vector<6x8xf32> to vector<1x8xf32>
    %85 = vector.extract_strided_slice %46 {offsets = [1, 0], sizes = [1, 8], strides = [1, 1]} : vector<6x8xf32> to vector<1x8xf32>
    %86 = tpu.concatenate %82, %83, %84, %85 in 1 : vector<1x8xf32>, vector<1x8xf32>, vector<1x8xf32>, vector<1x8xf32> -> vector<1x32xf32>
    %87 = vector.extract_strided_slice %46 {offsets = [2, 0], sizes = [1, 8], strides = [1, 1]} : vector<6x8xf32> to vector<1x8xf32>
    %88 = vector.extract_strided_slice %46 {offsets = [3, 0], sizes = [1, 8], strides = [1, 1]} : vector<6x8xf32> to vector<1x8xf32>
    %89 = vector.extract_strided_slice %46 {offsets = [4, 0], sizes = [1, 8], strides = [1, 1]} : vector<6x8xf32> to vector<1x8xf32>
    %90 = vector.extract_strided_slice %46 {offsets = [5, 0], sizes = [1, 8], strides = [1, 1]} : vector<6x8xf32> to vector<1x8xf32>
    %91 = tpu.concatenate %87, %88, %89, %90 in 1 : vector<1x8xf32>, vector<1x8xf32>, vector<1x8xf32>, vector<1x8xf32> -> vector<1x32xf32>
    %92 = vector.extract_strided_slice %61 {offsets = [0, 0], sizes = [1, 8], strides = [1, 1]} : vector<6x8xf32> to vector<1x8xf32>
    %93 = vector.extract_strided_slice %61 {offsets = [1, 0], sizes = [1, 8], strides = [1, 1]} : vector<6x8xf32> to vector<1x8xf32>
    %94 = vector.extract_strided_slice %61 {offsets = [2, 0], sizes = [1, 8], strides = [1, 1]} : vector<6x8xf32> to vector<1x8xf32>
    %95 = vector.extract_strided_slice %61 {offsets = [3, 0], sizes = [1, 8], strides = [1, 1]} : vector<6x8xf32> to vector<1x8xf32>
    %96 = tpu.concatenate %92, %93, %94, %95 in 1 : vector<1x8xf32>, vector<1x8xf32>, vector<1x8xf32>, vector<1x8xf32> -> vector<1x32xf32>
    %97 = vector.extract_strided_slice %61 {offsets = [4, 0], sizes = [1, 8], strides = [1, 1]} : vector<6x8xf32> to vector<1x8xf32>
    %98 = vector.extract_strided_slice %61 {offsets = [5, 0], sizes = [1, 8], strides = [1, 1]} : vector<6x8xf32> to vector<1x8xf32>
    %99 = vector.extract_strided_slice %76 {offsets = [0, 0], sizes = [1, 8], strides = [1, 1]} : vector<6x8xf32> to vector<1x8xf32>
    %100 = vector.extract_strided_slice %76 {offsets = [1, 0], sizes = [1, 8], strides = [1, 1]} : vector<6x8xf32> to vector<1x8xf32>
    %101 = tpu.concatenate %97, %98, %99, %100 in 1 : vector<1x8xf32>, vector<1x8xf32>, vector<1x8xf32>, vector<1x8xf32> -> vector<1x32xf32>
    %102 = vector.extract_strided_slice %76 {offsets = [2, 0], sizes = [1, 8], strides = [1, 1]} : vector<6x8xf32> to vector<1x8xf32>
    %103 = vector.extract_strided_slice %76 {offsets = [3, 0], sizes = [1, 8], strides = [1, 1]} : vector<6x8xf32> to vector<1x8xf32>
    %104 = vector.extract_strided_slice %76 {offsets = [4, 0], sizes = [1, 8], strides = [1, 1]} : vector<6x8xf32> to vector<1x8xf32>
    %105 = vector.extract_strided_slice %76 {offsets = [5, 0], sizes = [1, 8], strides = [1, 1]} : vector<6x8xf32> to vector<1x8xf32>
    %106 = tpu.concatenate %102, %103, %104, %105 in 1 : vector<1x8xf32>, vector<1x8xf32>, vector<1x8xf32>, vector<1x8xf32> -> vector<1x32xf32>
    %107 = tpu.concatenate %81, %86, %91, %96, %101, %106 in 0 : vector<1x32xf32>, vector<1x32xf32>, vector<1x32xf32>, vector<1x32xf32>, vector<1x32xf32>, vector<1x32xf32> -> vector<6x32xf32>
    %c0_28 = arith.constant 0 : index
    %c0_29 = arith.constant 0 : index
    %108 = vector.load %arg5[%c0_28, %c0_29] : memref<32x32xf32, #tpu.memory_space<vmem>>, vector<32x32xf32>
    %cst_30 = arith.constant dense<0.000000e+00> : vector<6x32xf32>
    %109 = tpu.matmul %107, %108, %cst_30 {dimension_numbers = #tpu.dot_dimension_numbers<[1], [0], [0], [1], [0, 0, 1, 1], [], []>} : vector<6x32xf32>, vector<32x32xf32>, vector<6x32xf32> -> vector<6x32xf32>
    %110 = vector.extract_strided_slice %2 {offsets = [0, 0], sizes = [1, 32], strides = [1, 1]} : vector<10x32xf32> to vector<1x32xf32>
    %111 = vector.broadcast %110 : vector<1x32xf32> to vector<6x32xf32>
    %112 = arith.addf %109, %111 : vector<6x32xf32>
    %113 = arith.addf %1, %112 : vector<6x32xf32>
    %114 = vector.extract_strided_slice %2 {offsets = [4, 0], sizes = [1, 32], strides = [1, 1]} : vector<10x32xf32> to vector<1x32xf32>
    %115 = vector.extract_strided_slice %2 {offsets = [5, 0], sizes = [1, 32], strides = [1, 1]} : vector<10x32xf32> to vector<1x32xf32>
    %cst_31 = arith.constant dense<0.000000e+00> : vector<6xf32>
    %116 = vector.multi_reduction <add>, %113, %cst_31 [1] : vector<6x32xf32> to vector<6xf32>
    %117 = vector.shape_cast %116 : vector<6xf32> to vector<6x1xf32>
    %cst_32 = arith.constant 3.200000e+01 : f32
    %118 = vector.broadcast %cst_32 : f32 to vector<6x1xf32>
    %119 = arith.divf %117, %118 : vector<6x1xf32>
    %120 = vector.broadcast %119 : vector<6x1xf32> to vector<6x32xf32>
    %121 = arith.subf %113, %120 : vector<6x32xf32>
    %122 = arith.mulf %121, %121 : vector<6x32xf32>
    %cst_33 = arith.constant dense<0.000000e+00> : vector<6xf32>
    %123 = vector.multi_reduction <add>, %122, %cst_33 [1] : vector<6x32xf32> to vector<6xf32>
    %124 = vector.shape_cast %123 : vector<6xf32> to vector<6x1xf32>
    %cst_34 = arith.constant 3.200000e+01 : f32
    %125 = vector.broadcast %cst_34 : f32 to vector<6x1xf32>
    %126 = arith.divf %124, %125 : vector<6x1xf32>
    %cst_35 = arith.constant 9.99999974E-6 : f32
    %127 = vector.broadcast %cst_35 : f32 to vector<6x1xf32>
    %128 = arith.addf %126, %127 : vector<6x1xf32>
    %129 = math.rsqrt %128 : vector<6x1xf32>
    %130 = vector.broadcast %129 : vector<6x1xf32> to vector<6x32xf32>
    %131 = arith.mulf %121, %130 : vector<6x32xf32>
    %132 = vector.broadcast %114 : vector<1x32xf32> to vector<6x32xf32>
    %133 = arith.mulf %131, %132 : vector<6x32xf32>
    %134 = vector.broadcast %115 : vector<1x32xf32> to vector<6x32xf32>
    %135 = arith.addf %133, %134 : vector<6x32xf32>
    %c0_36 = arith.constant 0 : index
    %c0_37 = arith.constant 0 : index
    %136 = vector.load %arg6[%c0_36, %c0_37] : memref<32x32xf32, #tpu.memory_space<vmem>>, vector<32x32xf32>
    %cst_38 = arith.constant dense<0.000000e+00> : vector<6x32xf32>
    %137 = tpu.matmul %135, %136, %cst_38 {dimension_numbers = #tpu.dot_dimension_numbers<[1], [0], [0], [1], [0, 0, 1, 1], [], []>} : vector<6x32xf32>, vector<32x32xf32>, vector<6x32xf32> -> vector<6x32xf32>
    %138 = vector.extract_strided_slice %2 {offsets = [1, 0], sizes = [1, 32], strides = [1, 1]} : vector<10x32xf32> to vector<1x32xf32>
    %139 = vector.broadcast %138 : vector<1x32xf32> to vector<6x32xf32>
    %140 = arith.addf %137, %139 : vector<6x32xf32>
    %cst_39 = arith.constant 0.353553385 : f32
    %141 = vector.broadcast %cst_39 : f32 to vector<6x32xf32>
    %142 = arith.mulf %140, %141 : vector<6x32xf32>
    %143 = vector.extract_strided_slice %142 {offsets = [0, 0], sizes = [6, 8], strides = [1, 1]} : vector<6x32xf32> to vector<6x8xf32>
    %144 = vector.extract_strided_slice %5 {offsets = [0, 0], sizes = [8, 8], strides = [1, 1]} : vector<8x32xf32> to vector<8x8xf32>
    %145 = vector.extract_strided_slice %6 {offsets = [0, 0], sizes = [8, 8], strides = [1, 1]} : vector<8x32xf32> to vector<8x8xf32>
    %cst_40 = arith.constant dense<0.000000e+00> : vector<6x8xf32>
    %146 = tpu.matmul %143, %144, %cst_40 {dimension_numbers = #tpu.dot_dimension_numbers<[1], [1], [0], [0], [0, 0, 1, 0], [], []>} : vector<6x8xf32>, vector<8x8xf32>, vector<6x8xf32> -> vector<6x8xf32>
    %cst_41 = arith.constant dense<0xFF800000> : vector<6xf32>
    %147 = vector.multi_reduction <maximumf>, %146, %cst_41 [1] : vector<6x8xf32> to vector<6xf32>
    %148 = vector.shape_cast %147 : vector<6xf32> to vector<6x1xf32>
    %149 = vector.broadcast %148 : vector<6x1xf32> to vector<6x8xf32>
    %150 = arith.subf %146, %149 : vector<6x8xf32>
    %151 = math.exp %150 : vector<6x8xf32>
    %cst_42 = arith.constant dense<0.000000e+00> : vector<6xf32>
    %152 = vector.multi_reduction <add>, %151, %cst_42 [1] : vector<6x8xf32> to vector<6xf32>
    %153 = vector.shape_cast %152 : vector<6xf32> to vector<6x1xf32>
    %154 = tpu.reciprocal %153 {approx = true} : vector<6x1xf32> -> vector<6x1xf32>
    %155 = vector.broadcast %154 : vector<6x1xf32> to vector<6x8xf32>
    %156 = arith.mulf %151, %155 : vector<6x8xf32>
    %cst_43 = arith.constant dense<0.000000e+00> : vector<6x8xf32>
    %157 = tpu.matmul %156, %145, %cst_43 {dimension_numbers = #tpu.dot_dimension_numbers<[1], [0], [0], [1], [0, 0, 1, 1], [], []>} : vector<6x8xf32>, vector<8x8xf32>, vector<6x8xf32> -> vector<6x8xf32>
    %158 = vector.extract_strided_slice %142 {offsets = [0, 8], sizes = [6, 8], strides = [1, 1]} : vector<6x32xf32> to vector<6x8xf32>
    %159 = vector.extract_strided_slice %5 {offsets = [0, 8], sizes = [8, 8], strides = [1, 1]} : vector<8x32xf32> to vector<8x8xf32>
    %160 = vector.extract_strided_slice %6 {offsets = [0, 8], sizes = [8, 8], strides = [1, 1]} : vector<8x32xf32> to vector<8x8xf32>
    %cst_44 = arith.constant dense<0.000000e+00> : vector<6x8xf32>
    %161 = tpu.matmul %158, %159, %cst_44 {dimension_numbers = #tpu.dot_dimension_numbers<[1], [1], [0], [0], [0, 0, 1, 0], [], []>} : vector<6x8xf32>, vector<8x8xf32>, vector<6x8xf32> -> vector<6x8xf32>
    %cst_45 = arith.constant dense<0xFF800000> : vector<6xf32>
    %162 = vector.multi_reduction <maximumf>, %161, %cst_45 [1] : vector<6x8xf32> to vector<6xf32>
    %163 = vector.shape_cast %162 : vector<6xf32> to vector<6x1xf32>
    %164 = vector.broadcast %163 : vector<6x1xf32> to vector<6x8xf32>
    %165 = arith.subf %161, %164 : vector<6x8xf32>
    %166 = math.exp %165 : vector<6x8xf32>
    %cst_46 = arith.constant dense<0.000000e+00> : vector<6xf32>
    %167 = vector.multi_reduction <add>, %166, %cst_46 [1] : vector<6x8xf32> to vector<6xf32>
    %168 = vector.shape_cast %167 : vector<6xf32> to vector<6x1xf32>
    %169 = tpu.reciprocal %168 {approx = true} : vector<6x1xf32> -> vector<6x1xf32>
    %170 = vector.broadcast %169 : vector<6x1xf32> to vector<6x8xf32>
    %171 = arith.mulf %166, %170 : vector<6x8xf32>
    %cst_47 = arith.constant dense<0.000000e+00> : vector<6x8xf32>
    %172 = tpu.matmul %171, %160, %cst_47 {dimension_numbers = #tpu.dot_dimension_numbers<[1], [0], [0], [1], [0, 0, 1, 1], [], []>} : vector<6x8xf32>, vector<8x8xf32>, vector<6x8xf32> -> vector<6x8xf32>
    %173 = vector.extract_strided_slice %142 {offsets = [0, 16], sizes = [6, 8], strides = [1, 1]} : vector<6x32xf32> to vector<6x8xf32>
    %174 = vector.extract_strided_slice %5 {offsets = [0, 16], sizes = [8, 8], strides = [1, 1]} : vector<8x32xf32> to vector<8x8xf32>
    %175 = vector.extract_strided_slice %6 {offsets = [0, 16], sizes = [8, 8], strides = [1, 1]} : vector<8x32xf32> to vector<8x8xf32>
    %cst_48 = arith.constant dense<0.000000e+00> : vector<6x8xf32>
    %176 = tpu.matmul %173, %174, %cst_48 {dimension_numbers = #tpu.dot_dimension_numbers<[1], [1], [0], [0], [0, 0, 1, 0], [], []>} : vector<6x8xf32>, vector<8x8xf32>, vector<6x8xf32> -> vector<6x8xf32>
    %cst_49 = arith.constant dense<0xFF800000> : vector<6xf32>
    %177 = vector.multi_reduction <maximumf>, %176, %cst_49 [1] : vector<6x8xf32> to vector<6xf32>
    %178 = vector.shape_cast %177 : vector<6xf32> to vector<6x1xf32>
    %179 = vector.broadcast %178 : vector<6x1xf32> to vector<6x8xf32>
    %180 = arith.subf %176, %179 : vector<6x8xf32>
    %181 = math.exp %180 : vector<6x8xf32>
    %cst_50 = arith.constant dense<0.000000e+00> : vector<6xf32>
    %182 = vector.multi_reduction <add>, %181, %cst_50 [1] : vector<6x8xf32> to vector<6xf32>
    %183 = vector.shape_cast %182 : vector<6xf32> to vector<6x1xf32>
    %184 = tpu.reciprocal %183 {approx = true} : vector<6x1xf32> -> vector<6x1xf32>
    %185 = vector.broadcast %184 : vector<6x1xf32> to vector<6x8xf32>
    %186 = arith.mulf %181, %185 : vector<6x8xf32>
    %cst_51 = arith.constant dense<0.000000e+00> : vector<6x8xf32>
    %187 = tpu.matmul %186, %175, %cst_51 {dimension_numbers = #tpu.dot_dimension_numbers<[1], [0], [0], [1], [0, 0, 1, 1], [], []>} : vector<6x8xf32>, vector<8x8xf32>, vector<6x8xf32> -> vector<6x8xf32>
    %188 = vector.extract_strided_slice %142 {offsets = [0, 24], sizes = [6, 8], strides = [1, 1]} : vector<6x32xf32> to vector<6x8xf32>
    %189 = vector.extract_strided_slice %5 {offsets = [0, 24], sizes = [8, 8], strides = [1, 1]} : vector<8x32xf32> to vector<8x8xf32>
    %190 = vector.extract_strided_slice %6 {offsets = [0, 24], sizes = [8, 8], strides = [1, 1]} : vector<8x32xf32> to vector<8x8xf32>
    %cst_52 = arith.constant dense<0.000000e+00> : vector<6x8xf32>
    %191 = tpu.matmul %188, %189, %cst_52 {dimension_numbers = #tpu.dot_dimension_numbers<[1], [1], [0], [0], [0, 0, 1, 0], [], []>} : vector<6x8xf32>, vector<8x8xf32>, vector<6x8xf32> -> vector<6x8xf32>
    %cst_53 = arith.constant dense<0xFF800000> : vector<6xf32>
    %192 = vector.multi_reduction <maximumf>, %191, %cst_53 [1] : vector<6x8xf32> to vector<6xf32>
    %193 = vector.shape_cast %192 : vector<6xf32> to vector<6x1xf32>
    %194 = vector.broadcast %193 : vector<6x1xf32> to vector<6x8xf32>
    %195 = arith.subf %191, %194 : vector<6x8xf32>
    %196 = math.exp %195 : vector<6x8xf32>
    %cst_54 = arith.constant dense<0.000000e+00> : vector<6xf32>
    %197 = vector.multi_reduction <add>, %196, %cst_54 [1] : vector<6x8xf32> to vector<6xf32>
    %198 = vector.shape_cast %197 : vector<6xf32> to vector<6x1xf32>
    %199 = tpu.reciprocal %198 {approx = true} : vector<6x1xf32> -> vector<6x1xf32>
    %200 = vector.broadcast %199 : vector<6x1xf32> to vector<6x8xf32>
    %201 = arith.mulf %196, %200 : vector<6x8xf32>
    %cst_55 = arith.constant dense<0.000000e+00> : vector<6x8xf32>
    %202 = tpu.matmul %201, %190, %cst_55 {dimension_numbers = #tpu.dot_dimension_numbers<[1], [0], [0], [1], [0, 0, 1, 1], [], []>} : vector<6x8xf32>, vector<8x8xf32>, vector<6x8xf32> -> vector<6x8xf32>
    %203 = tpu.concatenate %157, %172, %187, %202 in 1 : vector<6x8xf32>, vector<6x8xf32>, vector<6x8xf32>, vector<6x8xf32> -> vector<6x32xf32>
    %c0_56 = arith.constant 0 : index
    %c0_57 = arith.constant 0 : index
    %204 = vector.load %arg7[%c0_56, %c0_57] : memref<32x32xf32, #tpu.memory_space<vmem>>, vector<32x32xf32>
    %cst_58 = arith.constant dense<0.000000e+00> : vector<6x32xf32>
    %205 = tpu.matmul %203, %204, %cst_58 {dimension_numbers = #tpu.dot_dimension_numbers<[1], [0], [0], [1], [0, 0, 1, 1], [], []>} : vector<6x32xf32>, vector<32x32xf32>, vector<6x32xf32> -> vector<6x32xf32>
    %206 = vector.extract_strided_slice %2 {offsets = [2, 0], sizes = [1, 32], strides = [1, 1]} : vector<10x32xf32> to vector<1x32xf32>
    %207 = vector.broadcast %206 : vector<1x32xf32> to vector<6x32xf32>
    %208 = arith.addf %205, %207 : vector<6x32xf32>
    %209 = arith.addf %135, %208 : vector<6x32xf32>
    %210 = vector.extract_strided_slice %2 {offsets = [6, 0], sizes = [1, 32], strides = [1, 1]} : vector<10x32xf32> to vector<1x32xf32>
    %211 = vector.extract_strided_slice %2 {offsets = [7, 0], sizes = [1, 32], strides = [1, 1]} : vector<10x32xf32> to vector<1x32xf32>
    %cst_59 = arith.constant dense<0.000000e+00> : vector<6xf32>
    %212 = vector.multi_reduction <add>, %209, %cst_59 [1] : vector<6x32xf32> to vector<6xf32>
    %213 = vector.shape_cast %212 : vector<6xf32> to vector<6x1xf32>
    %cst_60 = arith.constant 3.200000e+01 : f32
    %214 = vector.broadcast %cst_60 : f32 to vector<6x1xf32>
    %215 = arith.divf %213, %214 : vector<6x1xf32>
    %216 = vector.broadcast %215 : vector<6x1xf32> to vector<6x32xf32>
    %217 = arith.subf %209, %216 : vector<6x32xf32>
    %218 = arith.mulf %217, %217 : vector<6x32xf32>
    %cst_61 = arith.constant dense<0.000000e+00> : vector<6xf32>
    %219 = vector.multi_reduction <add>, %218, %cst_61 [1] : vector<6x32xf32> to vector<6xf32>
    %220 = vector.shape_cast %219 : vector<6xf32> to vector<6x1xf32>
    %cst_62 = arith.constant 3.200000e+01 : f32
    %221 = vector.broadcast %cst_62 : f32 to vector<6x1xf32>
    %222 = arith.divf %220, %221 : vector<6x1xf32>
    %cst_63 = arith.constant 9.99999974E-6 : f32
    %223 = vector.broadcast %cst_63 : f32 to vector<6x1xf32>
    %224 = arith.addf %222, %223 : vector<6x1xf32>
    %225 = math.rsqrt %224 : vector<6x1xf32>
    %226 = vector.broadcast %225 : vector<6x1xf32> to vector<6x32xf32>
    %227 = arith.mulf %217, %226 : vector<6x32xf32>
    %228 = vector.broadcast %210 : vector<1x32xf32> to vector<6x32xf32>
    %229 = arith.mulf %227, %228 : vector<6x32xf32>
    %230 = vector.broadcast %211 : vector<1x32xf32> to vector<6x32xf32>
    %231 = arith.addf %229, %230 : vector<6x32xf32>
    %c0_64 = arith.constant 0 : index
    %c0_65 = arith.constant 0 : index
    %232 = vector.load %arg8[%c0_64, %c0_65] : memref<32x64xf32, #tpu.memory_space<vmem>>, vector<32x64xf32>
    %cst_66 = arith.constant dense<0.000000e+00> : vector<6x64xf32>
    %233 = tpu.matmul %231, %232, %cst_66 {dimension_numbers = #tpu.dot_dimension_numbers<[1], [0], [0], [1], [0, 0, 1, 1], [], []>} : vector<6x32xf32>, vector<32x64xf32>, vector<6x64xf32> -> vector<6x64xf32>
    %c0_67 = arith.constant 0 : index
    %c0_68 = arith.constant 0 : index
    %234 = vector.load %arg9[%c0_67, %c0_68] : memref<1x64xf32, #tpu.memory_space<vmem>>, vector<1x64xf32>
    %235 = vector.broadcast %234 : vector<1x64xf32> to vector<6x64xf32>
    %236 = arith.addf %233, %235 : vector<6x64xf32>
    %cst_69 = arith.constant 5.000000e-01 : f32
    %237 = vector.broadcast %cst_69 : f32 to vector<6x64xf32>
    %238 = arith.mulf %237, %236 : vector<6x64xf32>
    %cst_70 = arith.constant 0.707106769 : f32
    %239 = vector.broadcast %cst_70 : f32 to vector<6x64xf32>
    %240 = arith.mulf %236, %239 : vector<6x64xf32>
    %241 = math.erf %240 : vector<6x64xf32>
    %cst_71 = arith.constant 1.000000e+00 : f32
    %242 = vector.broadcast %cst_71 : f32 to vector<6x64xf32>
    %243 = arith.addf %242, %241 : vector<6x64xf32>
    %244 = arith.mulf %238, %243 : vector<6x64xf32>
    %c0_72 = arith.constant 0 : index
    %c0_73 = arith.constant 0 : index
    %245 = vector.load %arg10[%c0_72, %c0_73] : memref<64x32xf32, #tpu.memory_space<vmem>>, vector<64x32xf32>
    %cst_74 = arith.constant dense<0.000000e+00> : vector<6x32xf32>
    %246 = tpu.matmul %244, %245, %cst_74 {dimension_numbers = #tpu.dot_dimension_numbers<[1], [0], [0], [1], [0, 0, 1, 1], [], []>} : vector<6x64xf32>, vector<64x32xf32>, vector<6x32xf32> -> vector<6x32xf32>
    %247 = vector.extract_strided_slice %2 {offsets = [3, 0], sizes = [1, 32], strides = [1, 1]} : vector<10x32xf32> to vector<1x32xf32>
    %248 = vector.broadcast %247 : vector<1x32xf32> to vector<6x32xf32>
    %249 = arith.addf %246, %248 : vector<6x32xf32>
    %250 = arith.addf %231, %249 : vector<6x32xf32>
    %251 = vector.extract_strided_slice %2 {offsets = [8, 0], sizes = [1, 32], strides = [1, 1]} : vector<10x32xf32> to vector<1x32xf32>
    %252 = vector.extract_strided_slice %2 {offsets = [9, 0], sizes = [1, 32], strides = [1, 1]} : vector<10x32xf32> to vector<1x32xf32>
    %cst_75 = arith.constant dense<0.000000e+00> : vector<6xf32>
    %253 = vector.multi_reduction <add>, %250, %cst_75 [1] : vector<6x32xf32> to vector<6xf32>
    %254 = vector.shape_cast %253 : vector<6xf32> to vector<6x1xf32>
    %cst_76 = arith.constant 3.200000e+01 : f32
    %255 = vector.broadcast %cst_76 : f32 to vector<6x1xf32>
    %256 = arith.divf %254, %255 : vector<6x1xf32>
    %257 = vector.broadcast %256 : vector<6x1xf32> to vector<6x32xf32>
    %258 = arith.subf %250, %257 : vector<6x32xf32>
    %259 = arith.mulf %258, %258 : vector<6x32xf32>
    %cst_77 = arith.constant dense<0.000000e+00> : vector<6xf32>
    %260 = vector.multi_reduction <add>, %259, %cst_77 [1] : vector<6x32xf32> to vector<6xf32>
    %261 = vector.shape_cast %260 : vector<6xf32> to vector<6x1xf32>
    %cst_78 = arith.constant 3.200000e+01 : f32
    %262 = vector.broadcast %cst_78 : f32 to vector<6x1xf32>
    %263 = arith.divf %261, %262 : vector<6x1xf32>
    %cst_79 = arith.constant 9.99999974E-6 : f32
    %264 = vector.broadcast %cst_79 : f32 to vector<6x1xf32>
    %265 = arith.addf %263, %264 : vector<6x1xf32>
    %266 = math.rsqrt %265 : vector<6x1xf32>
    %267 = vector.broadcast %266 : vector<6x1xf32> to vector<6x32xf32>
    %268 = arith.mulf %258, %267 : vector<6x32xf32>
    %269 = vector.broadcast %251 : vector<1x32xf32> to vector<6x32xf32>
    %270 = arith.mulf %268, %269 : vector<6x32xf32>
    %271 = vector.broadcast %252 : vector<1x32xf32> to vector<6x32xf32>
    %272 = arith.addf %270, %271 : vector<6x32xf32>
    %c0_80 = arith.constant 0 : index
    %c0_81 = arith.constant 0 : index
    %c0_82 = arith.constant 0 : index
    %273 = vector.load %arg12[%c0_80, %c0_81, %c0_82] : memref<1x6x32xf32, #tpu.memory_space<vmem>>, vector<1x6x32xf32>
    %274 = vector.shape_cast %273 : vector<1x6x32xf32> to vector<6x32xf32>
    %275 = vector.shape_cast %272 : vector<6x32xf32> to vector<1x6x32xf32>
    tpu.vector_store %arg12[%c0_80, %c0_81, %c0_82], %275 {strides = array<i32>} : memref<1x6x32xf32, #tpu.memory_space<vmem>>, vector<1x6x32xf32>,
    return
  }
  func.func @transform_0(%arg0: i32) -> (i32, i32, i32) {
    %c0_i32 = arith.constant 0 : i32
    %c0_i32_0 = arith.constant 0 : i32
    %c0_i32_1 = arith.constant 0 : i32
    return %arg0, %c0_i32, %c0_i32_0 : i32, i32, i32
  }
  func.func @transform_1(%arg0: i32) -> (i32, i32, i32) {
    %c0_i32 = arith.constant 0 : i32
    %c0_i32_0 = arith.constant 0 : i32
    %c0_i32_1 = arith.constant 0 : i32
    return %arg0, %c0_i32, %c0_i32_0 : i32, i32, i32
  }
  func.func @transform_2(%arg0: i32) -> (i32, i32) {
    %c0_i32 = arith.constant 0 : i32
    %c0_i32_0 = arith.constant 0 : i32
    %c0_i32_1 = arith.constant 0 : i32
    return %c0_i32, %c0_i32_0 : i32, i32
  }
  func.func @transform_3(%arg0: i32) -> (i32, i32) {
    %c0_i32 = arith.constant 0 : i32
    %c0_i32_0 = arith.constant 0 : i32
    %c0_i32_1 = arith.constant 0 : i32
    return %c0_i32, %c0_i32_0 : i32, i32
  }
  func.func @transform_4(%arg0: i32) -> (i32, i32) {
    %c0_i32 = arith.constant 0 : i32
    %c0_i32_0 = arith.constant 0 : i32
    %c0_i32_1 = arith.constant 0 : i32
    return %c0_i32, %c0_i32_0 : i32, i32
  }
  func.func @transform_5(%arg0: i32) -> (i32, i32) {
    %c0_i32 = arith.constant 0 : i32
    %c0_i32_0 = arith.constant 0 : i32
    %c0_i32_1 = arith.constant 0 : i32
    return %c0_i32, %c0_i32_0 : i32, i32
  }
  func.func @transform_6(%arg0: i32) -> (i32, i32) {
    %c0_i32 = arith.constant 0 : i32
    %c0_i32_0 = arith.constant 0 : i32
    %c0_i32_1 = arith.constant 0 : i32
    return %c0_i32, %c0_i32_0 : i32, i32
  }
  func.func @transform_7(%arg0: i32) -> (i32, i32) {
    %c0_i32 = arith.constant 0 : i32
    %c0_i32_0 = arith.constant 0 : i32
    %c0_i32_1 = arith.constant 0 : i32
    return %c0_i32, %c0_i32_0 : i32, i32
  }
  func.func @transform_8(%arg0: i32) -> (i32, i32) {
    %c0_i32 = arith.constant 0 : i32
    %c0_i32_0 = arith.constant 0 : i32
    %c0_i32_1 = arith.constant 0 : i32
    return %c0_i32, %c0_i32_0 : i32, i32
  }
  func.func @transform_9(%arg0: i32) -> (i32, i32) {
    %c0_i32 = arith.constant 0 : i32
    %c0_i32_0 = arith.constant 0 : i32
    %c0_i32_1 = arith.constant 0 : i32
    return %c0_i32, %c0_i32_0 : i32, i32
  }
  func.func @transform_10(%arg0: i32) -> (i32, i32) {
    %c0_i32 = arith.constant 0 : i32
    %c0_i32_0 = arith.constant 0 : i32
    %c0_i32_1 = arith.constant 0 : i32
    return %c0_i32, %c0_i32_0 : i32, i32
  }
  func.func @transform_11(%arg0: i32) -> (i32, i32, i32) {
    %c0_i32 = arith.constant 0 : i32
    %c0_i32_0 = arith.constant 0 : i32
    %c0_i32_1 = arith.constant 0 : i32
    return %arg0, %c0_i32, %c0_i32_0 : i32, i32, i32
  }
}

module attributes {stable_mosaic.version = 11 : i64} {
  func.func @_final_proj_kernel(%arg0: i32, %arg1: memref<1x6x32xf32, #tpu.memory_space<vmem>>, %arg2: memref<2x32xf32, #tpu.memory_space<vmem>>, %arg3: memref<1x32xf32, #tpu.memory_space<vmem>>, %arg4: memref<1x1xf32, #tpu.memory_space<vmem>>, %arg5: memref<1x1x1xf32, #tpu.memory_space<vmem>>) attributes {dimension_semantics = [#tpu.dimension_semantics<parallel>], iteration_bounds = array<i64: 2>, scalar_prefetch = 0 : i64, scratch_operands = 0 : i64, tpu.core_type = #tpu.core_type<tc>, window_params = [{transform_indices = @transform_0, window_bounds = array<i64: 1, 6, 32>}, {pipeline_mode = #tpu.pipeline_mode<synchronous>, transform_indices = @transform_1, window_bounds = array<i64: 2, 32>}, {pipeline_mode = #tpu.pipeline_mode<synchronous>, transform_indices = @transform_2, window_bounds = array<i64: 1, 32>}, {pipeline_mode = #tpu.pipeline_mode<synchronous>, transform_indices = @transform_3, window_bounds = array<i64: 1, 1>}, {transform_indices = @transform_4, window_bounds = array<i64: 1, 1, 1>}]} {
    %c0 = arith.constant 0 : index
    %c0_0 = arith.constant 0 : index
    %c0_1 = arith.constant 0 : index
    %0 = vector.load %arg1[%c0, %c0_0, %c0_1] : memref<1x6x32xf32, #tpu.memory_space<vmem>>, vector<1x6x32xf32>
    %1 = vector.shape_cast %0 : vector<1x6x32xf32> to vector<6x32xf32>
    %2 = vector.extract_strided_slice %1 {offsets = [5, 0], sizes = [1, 32], strides = [1, 1]} : vector<6x32xf32> to vector<1x32xf32>
    %c0_2 = arith.constant 0 : index
    %c0_3 = arith.constant 0 : index
    %3 = vector.load %arg2[%c0_2, %c0_3] : memref<2x32xf32, #tpu.memory_space<vmem>>, vector<2x32xf32>
    %4 = vector.extract_strided_slice %3 {offsets = [0, 0], sizes = [1, 32], strides = [1, 1]} : vector<2x32xf32> to vector<1x32xf32>
    %5 = vector.extract_strided_slice %3 {offsets = [1, 0], sizes = [1, 32], strides = [1, 1]} : vector<2x32xf32> to vector<1x32xf32>
    %cst = arith.constant dense<0.000000e+00> : vector<1xf32>
    %6 = vector.multi_reduction <add>, %2, %cst [1] : vector<1x32xf32> to vector<1xf32>
    %7 = vector.shape_cast %6 : vector<1xf32> to vector<1x1xf32>
    %cst_4 = arith.constant 3.200000e+01 : f32
    %8 = vector.broadcast %cst_4 : f32 to vector<1x1xf32>
    %9 = arith.divf %7, %8 : vector<1x1xf32>
    %10 = vector.broadcast %9 : vector<1x1xf32> to vector<1x32xf32>
    %11 = arith.subf %2, %10 : vector<1x32xf32>
    %12 = arith.mulf %11, %11 : vector<1x32xf32>
    %cst_5 = arith.constant dense<0.000000e+00> : vector<1xf32>
    %13 = vector.multi_reduction <add>, %12, %cst_5 [1] : vector<1x32xf32> to vector<1xf32>
    %14 = vector.shape_cast %13 : vector<1xf32> to vector<1x1xf32>
    %cst_6 = arith.constant 3.200000e+01 : f32
    %15 = vector.broadcast %cst_6 : f32 to vector<1x1xf32>
    %16 = arith.divf %14, %15 : vector<1x1xf32>
    %cst_7 = arith.constant 9.99999974E-6 : f32
    %17 = vector.broadcast %cst_7 : f32 to vector<1x1xf32>
    %18 = arith.addf %16, %17 : vector<1x1xf32>
    %19 = math.rsqrt %18 : vector<1x1xf32>
    %20 = vector.broadcast %19 : vector<1x1xf32> to vector<1x32xf32>
    %21 = arith.mulf %11, %20 : vector<1x32xf32>
    %22 = arith.mulf %21, %4 : vector<1x32xf32>
    %23 = arith.addf %22, %5 : vector<1x32xf32>
    %c0_8 = arith.constant 0 : index
    %c0_9 = arith.constant 0 : index
    %24 = vector.load %arg3[%c0_8, %c0_9] : memref<1x32xf32, #tpu.memory_space<vmem>>, vector<1x32xf32>
    %25 = arith.mulf %23, %24 : vector<1x32xf32>
    %cst_10 = arith.constant dense<0.000000e+00> : vector<1xf32>
    %26 = vector.multi_reduction <add>, %25, %cst_10 [1] : vector<1x32xf32> to vector<1xf32>
    %27 = vector.shape_cast %26 : vector<1xf32> to vector<1x1xf32>
    %c0_11 = arith.constant 0 : index
    %c0_12 = arith.constant 0 : index
    %28 = vector.load %arg4[%c0_11, %c0_12] : memref<1x1xf32, #tpu.memory_space<vmem>>, vector<1x1xf32>
    %29 = arith.addf %27, %28 : vector<1x1xf32>
    %c0_13 = arith.constant 0 : index
    %c0_14 = arith.constant 0 : index
    %c0_15 = arith.constant 0 : index
    %30 = vector.load %arg5[%c0_13, %c0_14, %c0_15] : memref<1x1x1xf32, #tpu.memory_space<vmem>>, vector<1x1x1xf32>
    %31 = vector.shape_cast %30 : vector<1x1x1xf32> to vector<1x1xf32>
    %32 = vector.shape_cast %29 : vector<1x1xf32> to vector<1x1x1xf32>
    tpu.vector_store %arg5[%c0_13, %c0_14, %c0_15], %32 {strides = array<i32>} : memref<1x1x1xf32, #tpu.memory_space<vmem>>, vector<1x1x1xf32>,
    return
  }
  func.func @transform_0(%arg0: i32) -> (i32, i32, i32) {
    %c0_i32 = arith.constant 0 : i32
    %c0_i32_0 = arith.constant 0 : i32
    %c0_i32_1 = arith.constant 0 : i32
    return %arg0, %c0_i32, %c0_i32_0 : i32, i32, i32
  }
  func.func @transform_1(%arg0: i32) -> (i32, i32) {
    %c0_i32 = arith.constant 0 : i32
    %c0_i32_0 = arith.constant 0 : i32
    %c0_i32_1 = arith.constant 0 : i32
    return %c0_i32, %c0_i32_0 : i32, i32
  }
  func.func @transform_2(%arg0: i32) -> (i32, i32) {
    %c0_i32 = arith.constant 0 : i32
    %c0_i32_0 = arith.constant 0 : i32
    %c0_i32_1 = arith.constant 0 : i32
    return %c0_i32, %c0_i32_0 : i32, i32
  }
  func.func @transform_3(%arg0: i32) -> (i32, i32) {
    %c0_i32 = arith.constant 0 : i32
    %c0_i32_0 = arith.constant 0 : i32
    %c0_i32_1 = arith.constant 0 : i32
    return %c0_i32, %c0_i32_0 : i32, i32
  }
  func.func @transform_4(%arg0: i32) -> (i32, i32, i32) {
    %c0_i32 = arith.constant 0 : i32
    %c0_i32_0 = arith.constant 0 : i32
    %c0_i32_1 = arith.constant 0 : i32
    return %arg0, %c0_i32, %c0_i32_0 : i32, i32, i32
  }
}

module attributes {stable_mosaic.version = 11 : i64} {
  func.func @_dec_layer_kernel(%arg0: i32, %arg1: memref<1x7x32xf32, #tpu.memory_space<vmem>>, %arg2: memref<1x8x64xf32, #tpu.memory_space<vmem>>, %arg3: memref<32x96xf32, #tpu.memory_space<vmem>>, %arg4: memref<1x96xf32, #tpu.memory_space<vmem>>, %arg5: memref<32x32xf32, #tpu.memory_space<vmem>>, %arg6: memref<32x32xf32, #tpu.memory_space<vmem>>, %arg7: memref<32x32xf32, #tpu.memory_space<vmem>>, %arg8: memref<32x64xf32, #tpu.memory_space<vmem>>, %arg9: memref<1x64xf32, #tpu.memory_space<vmem>>, %arg10: memref<64x32xf32, #tpu.memory_space<vmem>>, %arg11: memref<10x32xf32, #tpu.memory_space<vmem>>, %arg12: memref<1x7x32xf32, #tpu.memory_space<vmem>>) attributes {dimension_semantics = [#tpu.dimension_semantics<parallel>], iteration_bounds = array<i64: 2>, scalar_prefetch = 0 : i64, scratch_operands = 0 : i64, tpu.core_type = #tpu.core_type<tc>, window_params = [{transform_indices = @transform_0, window_bounds = array<i64: 1, 7, 32>}, {transform_indices = @transform_1, window_bounds = array<i64: 1, 8, 64>}, {pipeline_mode = #tpu.pipeline_mode<synchronous>, transform_indices = @transform_2, window_bounds = array<i64: 32, 96>}, {pipeline_mode = #tpu.pipeline_mode<synchronous>, transform_indices = @transform_3, window_bounds = array<i64: 1, 96>}, {pipeline_mode = #tpu.pipeline_mode<synchronous>, transform_indices = @transform_4, window_bounds = array<i64: 32, 32>}, {pipeline_mode = #tpu.pipeline_mode<synchronous>, transform_indices = @transform_5, window_bounds = array<i64: 32, 32>}, {pipeline_mode = #tpu.pipeline_mode<synchronous>, transform_indices = @transform_6, window_bounds = array<i64: 32, 32>}, {pipeline_mode = #tpu.pipeline_mode<synchronous>, transform_indices = @transform_7, window_bounds = array<i64: 32, 64>}, {pipeline_mode = #tpu.pipeline_mode<synchronous>, transform_indices = @transform_8, window_bounds = array<i64: 1, 64>}, {pipeline_mode = #tpu.pipeline_mode<synchronous>, transform_indices = @transform_9, window_bounds = array<i64: 64, 32>}, {pipeline_mode = #tpu.pipeline_mode<synchronous>, transform_indices = @transform_10, window_bounds = array<i64: 10, 32>}, {transform_indices = @transform_11, window_bounds = array<i64: 1, 7, 32>}]} {
    %c0 = arith.constant 0 : index
    %c0_0 = arith.constant 0 : index
    %c0_1 = arith.constant 0 : index
    %0 = vector.load %arg1[%c0, %c0_0, %c0_1] : memref<1x7x32xf32, #tpu.memory_space<vmem>>, vector<1x7x32xf32>
    %1 = vector.shape_cast %0 : vector<1x7x32xf32> to vector<7x32xf32>
    %c0_2 = arith.constant 0 : index
    %c0_3 = arith.constant 0 : index
    %2 = vector.load %arg11[%c0_2, %c0_3] : memref<10x32xf32, #tpu.memory_space<vmem>>, vector<10x32xf32>
    %c0_4 = arith.constant 0 : index
    %c0_5 = arith.constant 0 : index
    %c0_6 = arith.constant 0 : index
    %3 = vector.load %arg2[%c0_4, %c0_5, %c0_6] : memref<1x8x64xf32, #tpu.memory_space<vmem>>, vector<1x8x64xf32>
    %4 = vector.shape_cast %3 : vector<1x8x64xf32> to vector<8x64xf32>
    %5 = vector.extract_strided_slice %4 {offsets = [0, 0], sizes = [8, 32], strides = [1, 1]} : vector<8x64xf32> to vector<8x32xf32>
    %6 = vector.extract_strided_slice %4 {offsets = [0, 32], sizes = [8, 32], strides = [1, 1]} : vector<8x64xf32> to vector<8x32xf32>
    %c0_7 = arith.constant 0 : index
    %c0_8 = arith.constant 0 : index
    %7 = vector.load %arg3[%c0_7, %c0_8] : memref<32x96xf32, #tpu.memory_space<vmem>>, vector<32x96xf32>
    %cst = arith.constant dense<0.000000e+00> : vector<7x96xf32>
    %8 = tpu.matmul %1, %7, %cst {dimension_numbers = #tpu.dot_dimension_numbers<[1], [0], [0], [1], [0, 0, 1, 1], [], []>} : vector<7x32xf32>, vector<32x96xf32>, vector<7x96xf32> -> vector<7x96xf32>
    %c0_9 = arith.constant 0 : index
    %c0_10 = arith.constant 0 : index
    %9 = vector.load %arg4[%c0_9, %c0_10] : memref<1x96xf32, #tpu.memory_space<vmem>>, vector<1x96xf32>
    %10 = vector.broadcast %9 : vector<1x96xf32> to vector<7x96xf32>
    %11 = arith.addf %8, %10 : vector<7x96xf32>
    %12 = vector.extract_strided_slice %11 {offsets = [0, 0], sizes = [7, 32], strides = [1, 1]} : vector<7x96xf32> to vector<7x32xf32>
    %13 = vector.extract_strided_slice %11 {offsets = [0, 32], sizes = [7, 32], strides = [1, 1]} : vector<7x96xf32> to vector<7x32xf32>
    %14 = vector.extract_strided_slice %11 {offsets = [0, 64], sizes = [7, 32], strides = [1, 1]} : vector<7x96xf32> to vector<7x32xf32>
    %cst_11 = arith.constant 0.353553385 : f32
    %15 = vector.broadcast %cst_11 : f32 to vector<7x32xf32>
    %16 = arith.mulf %12, %15 : vector<7x32xf32>
    %17 = vector.extract_strided_slice %16 {offsets = [0, 0], sizes = [7, 8], strides = [1, 1]} : vector<7x32xf32> to vector<7x8xf32>
    %18 = vector.extract_strided_slice %13 {offsets = [0, 0], sizes = [7, 8], strides = [1, 1]} : vector<7x32xf32> to vector<7x8xf32>
    %19 = vector.extract_strided_slice %14 {offsets = [0, 0], sizes = [7, 8], strides = [1, 1]} : vector<7x32xf32> to vector<7x8xf32>
    %cst_12 = arith.constant dense<0.000000e+00> : vector<7x7xf32>
    %20 = tpu.matmul %17, %18, %cst_12 {dimension_numbers = #tpu.dot_dimension_numbers<[1], [1], [0], [0], [0, 0, 1, 0], [], []>} : vector<7x8xf32>, vector<7x8xf32>, vector<7x7xf32> -> vector<7x7xf32>
    %cst_13 = arith.constant dense<0xFF800000> : vector<7xf32>
    %21 = vector.multi_reduction <maximumf>, %20, %cst_13 [1] : vector<7x7xf32> to vector<7xf32>
    %22 = vector.shape_cast %21 : vector<7xf32> to vector<7x1xf32>
    %23 = vector.broadcast %22 : vector<7x1xf32> to vector<7x7xf32>
    %24 = arith.subf %20, %23 : vector<7x7xf32>
    %25 = math.exp %24 : vector<7x7xf32>
    %cst_14 = arith.constant dense<0.000000e+00> : vector<7xf32>
    %26 = vector.multi_reduction <add>, %25, %cst_14 [1] : vector<7x7xf32> to vector<7xf32>
    %27 = vector.shape_cast %26 : vector<7xf32> to vector<7x1xf32>
    %28 = tpu.reciprocal %27 {approx = true} : vector<7x1xf32> -> vector<7x1xf32>
    %29 = vector.broadcast %28 : vector<7x1xf32> to vector<7x7xf32>
    %30 = arith.mulf %25, %29 : vector<7x7xf32>
    %cst_15 = arith.constant dense<0.000000e+00> : vector<7x8xf32>
    %31 = tpu.matmul %30, %19, %cst_15 {dimension_numbers = #tpu.dot_dimension_numbers<[1], [0], [0], [1], [0, 0, 1, 1], [], []>} : vector<7x7xf32>, vector<7x8xf32>, vector<7x8xf32> -> vector<7x8xf32>
    %32 = vector.extract_strided_slice %16 {offsets = [0, 8], sizes = [7, 8], strides = [1, 1]} : vector<7x32xf32> to vector<7x8xf32>
    %33 = vector.extract_strided_slice %13 {offsets = [0, 8], sizes = [7, 8], strides = [1, 1]} : vector<7x32xf32> to vector<7x8xf32>
    %34 = vector.extract_strided_slice %14 {offsets = [0, 8], sizes = [7, 8], strides = [1, 1]} : vector<7x32xf32> to vector<7x8xf32>
    %cst_16 = arith.constant dense<0.000000e+00> : vector<7x7xf32>
    %35 = tpu.matmul %32, %33, %cst_16 {dimension_numbers = #tpu.dot_dimension_numbers<[1], [1], [0], [0], [0, 0, 1, 0], [], []>} : vector<7x8xf32>, vector<7x8xf32>, vector<7x7xf32> -> vector<7x7xf32>
    %cst_17 = arith.constant dense<0xFF800000> : vector<7xf32>
    %36 = vector.multi_reduction <maximumf>, %35, %cst_17 [1] : vector<7x7xf32> to vector<7xf32>
    %37 = vector.shape_cast %36 : vector<7xf32> to vector<7x1xf32>
    %38 = vector.broadcast %37 : vector<7x1xf32> to vector<7x7xf32>
    %39 = arith.subf %35, %38 : vector<7x7xf32>
    %40 = math.exp %39 : vector<7x7xf32>
    %cst_18 = arith.constant dense<0.000000e+00> : vector<7xf32>
    %41 = vector.multi_reduction <add>, %40, %cst_18 [1] : vector<7x7xf32> to vector<7xf32>
    %42 = vector.shape_cast %41 : vector<7xf32> to vector<7x1xf32>
    %43 = tpu.reciprocal %42 {approx = true} : vector<7x1xf32> -> vector<7x1xf32>
    %44 = vector.broadcast %43 : vector<7x1xf32> to vector<7x7xf32>
    %45 = arith.mulf %40, %44 : vector<7x7xf32>
    %cst_19 = arith.constant dense<0.000000e+00> : vector<7x8xf32>
    %46 = tpu.matmul %45, %34, %cst_19 {dimension_numbers = #tpu.dot_dimension_numbers<[1], [0], [0], [1], [0, 0, 1, 1], [], []>} : vector<7x7xf32>, vector<7x8xf32>, vector<7x8xf32> -> vector<7x8xf32>
    %47 = vector.extract_strided_slice %16 {offsets = [0, 16], sizes = [7, 8], strides = [1, 1]} : vector<7x32xf32> to vector<7x8xf32>
    %48 = vector.extract_strided_slice %13 {offsets = [0, 16], sizes = [7, 8], strides = [1, 1]} : vector<7x32xf32> to vector<7x8xf32>
    %49 = vector.extract_strided_slice %14 {offsets = [0, 16], sizes = [7, 8], strides = [1, 1]} : vector<7x32xf32> to vector<7x8xf32>
    %cst_20 = arith.constant dense<0.000000e+00> : vector<7x7xf32>
    %50 = tpu.matmul %47, %48, %cst_20 {dimension_numbers = #tpu.dot_dimension_numbers<[1], [1], [0], [0], [0, 0, 1, 0], [], []>} : vector<7x8xf32>, vector<7x8xf32>, vector<7x7xf32> -> vector<7x7xf32>
    %cst_21 = arith.constant dense<0xFF800000> : vector<7xf32>
    %51 = vector.multi_reduction <maximumf>, %50, %cst_21 [1] : vector<7x7xf32> to vector<7xf32>
    %52 = vector.shape_cast %51 : vector<7xf32> to vector<7x1xf32>
    %53 = vector.broadcast %52 : vector<7x1xf32> to vector<7x7xf32>
    %54 = arith.subf %50, %53 : vector<7x7xf32>
    %55 = math.exp %54 : vector<7x7xf32>
    %cst_22 = arith.constant dense<0.000000e+00> : vector<7xf32>
    %56 = vector.multi_reduction <add>, %55, %cst_22 [1] : vector<7x7xf32> to vector<7xf32>
    %57 = vector.shape_cast %56 : vector<7xf32> to vector<7x1xf32>
    %58 = tpu.reciprocal %57 {approx = true} : vector<7x1xf32> -> vector<7x1xf32>
    %59 = vector.broadcast %58 : vector<7x1xf32> to vector<7x7xf32>
    %60 = arith.mulf %55, %59 : vector<7x7xf32>
    %cst_23 = arith.constant dense<0.000000e+00> : vector<7x8xf32>
    %61 = tpu.matmul %60, %49, %cst_23 {dimension_numbers = #tpu.dot_dimension_numbers<[1], [0], [0], [1], [0, 0, 1, 1], [], []>} : vector<7x7xf32>, vector<7x8xf32>, vector<7x8xf32> -> vector<7x8xf32>
    %62 = vector.extract_strided_slice %16 {offsets = [0, 24], sizes = [7, 8], strides = [1, 1]} : vector<7x32xf32> to vector<7x8xf32>
    %63 = vector.extract_strided_slice %13 {offsets = [0, 24], sizes = [7, 8], strides = [1, 1]} : vector<7x32xf32> to vector<7x8xf32>
    %64 = vector.extract_strided_slice %14 {offsets = [0, 24], sizes = [7, 8], strides = [1, 1]} : vector<7x32xf32> to vector<7x8xf32>
    %cst_24 = arith.constant dense<0.000000e+00> : vector<7x7xf32>
    %65 = tpu.matmul %62, %63, %cst_24 {dimension_numbers = #tpu.dot_dimension_numbers<[1], [1], [0], [0], [0, 0, 1, 0], [], []>} : vector<7x8xf32>, vector<7x8xf32>, vector<7x7xf32> -> vector<7x7xf32>
    %cst_25 = arith.constant dense<0xFF800000> : vector<7xf32>
    %66 = vector.multi_reduction <maximumf>, %65, %cst_25 [1] : vector<7x7xf32> to vector<7xf32>
    %67 = vector.shape_cast %66 : vector<7xf32> to vector<7x1xf32>
    %68 = vector.broadcast %67 : vector<7x1xf32> to vector<7x7xf32>
    %69 = arith.subf %65, %68 : vector<7x7xf32>
    %70 = math.exp %69 : vector<7x7xf32>
    %cst_26 = arith.constant dense<0.000000e+00> : vector<7xf32>
    %71 = vector.multi_reduction <add>, %70, %cst_26 [1] : vector<7x7xf32> to vector<7xf32>
    %72 = vector.shape_cast %71 : vector<7xf32> to vector<7x1xf32>
    %73 = tpu.reciprocal %72 {approx = true} : vector<7x1xf32> -> vector<7x1xf32>
    %74 = vector.broadcast %73 : vector<7x1xf32> to vector<7x7xf32>
    %75 = arith.mulf %70, %74 : vector<7x7xf32>
    %cst_27 = arith.constant dense<0.000000e+00> : vector<7x8xf32>
    %76 = tpu.matmul %75, %64, %cst_27 {dimension_numbers = #tpu.dot_dimension_numbers<[1], [0], [0], [1], [0, 0, 1, 1], [], []>} : vector<7x7xf32>, vector<7x8xf32>, vector<7x8xf32> -> vector<7x8xf32>
    %77 = vector.extract_strided_slice %31 {offsets = [0, 0], sizes = [1, 8], strides = [1, 1]} : vector<7x8xf32> to vector<1x8xf32>
    %78 = vector.extract_strided_slice %31 {offsets = [1, 0], sizes = [1, 8], strides = [1, 1]} : vector<7x8xf32> to vector<1x8xf32>
    %79 = vector.extract_strided_slice %31 {offsets = [2, 0], sizes = [1, 8], strides = [1, 1]} : vector<7x8xf32> to vector<1x8xf32>
    %80 = vector.extract_strided_slice %31 {offsets = [3, 0], sizes = [1, 8], strides = [1, 1]} : vector<7x8xf32> to vector<1x8xf32>
    %81 = tpu.concatenate %77, %78, %79, %80 in 1 : vector<1x8xf32>, vector<1x8xf32>, vector<1x8xf32>, vector<1x8xf32> -> vector<1x32xf32>
    %82 = vector.extract_strided_slice %31 {offsets = [4, 0], sizes = [1, 8], strides = [1, 1]} : vector<7x8xf32> to vector<1x8xf32>
    %83 = vector.extract_strided_slice %31 {offsets = [5, 0], sizes = [1, 8], strides = [1, 1]} : vector<7x8xf32> to vector<1x8xf32>
    %84 = vector.extract_strided_slice %31 {offsets = [6, 0], sizes = [1, 8], strides = [1, 1]} : vector<7x8xf32> to vector<1x8xf32>
    %85 = vector.extract_strided_slice %46 {offsets = [0, 0], sizes = [1, 8], strides = [1, 1]} : vector<7x8xf32> to vector<1x8xf32>
    %86 = tpu.concatenate %82, %83, %84, %85 in 1 : vector<1x8xf32>, vector<1x8xf32>, vector<1x8xf32>, vector<1x8xf32> -> vector<1x32xf32>
    %87 = vector.extract_strided_slice %46 {offsets = [1, 0], sizes = [1, 8], strides = [1, 1]} : vector<7x8xf32> to vector<1x8xf32>
    %88 = vector.extract_strided_slice %46 {offsets = [2, 0], sizes = [1, 8], strides = [1, 1]} : vector<7x8xf32> to vector<1x8xf32>
    %89 = vector.extract_strided_slice %46 {offsets = [3, 0], sizes = [1, 8], strides = [1, 1]} : vector<7x8xf32> to vector<1x8xf32>
    %90 = vector.extract_strided_slice %46 {offsets = [4, 0], sizes = [1, 8], strides = [1, 1]} : vector<7x8xf32> to vector<1x8xf32>
    %91 = tpu.concatenate %87, %88, %89, %90 in 1 : vector<1x8xf32>, vector<1x8xf32>, vector<1x8xf32>, vector<1x8xf32> -> vector<1x32xf32>
    %92 = vector.extract_strided_slice %46 {offsets = [5, 0], sizes = [1, 8], strides = [1, 1]} : vector<7x8xf32> to vector<1x8xf32>
    %93 = vector.extract_strided_slice %46 {offsets = [6, 0], sizes = [1, 8], strides = [1, 1]} : vector<7x8xf32> to vector<1x8xf32>
    %94 = vector.extract_strided_slice %61 {offsets = [0, 0], sizes = [1, 8], strides = [1, 1]} : vector<7x8xf32> to vector<1x8xf32>
    %95 = vector.extract_strided_slice %61 {offsets = [1, 0], sizes = [1, 8], strides = [1, 1]} : vector<7x8xf32> to vector<1x8xf32>
    %96 = tpu.concatenate %92, %93, %94, %95 in 1 : vector<1x8xf32>, vector<1x8xf32>, vector<1x8xf32>, vector<1x8xf32> -> vector<1x32xf32>
    %97 = vector.extract_strided_slice %61 {offsets = [2, 0], sizes = [1, 8], strides = [1, 1]} : vector<7x8xf32> to vector<1x8xf32>
    %98 = vector.extract_strided_slice %61 {offsets = [3, 0], sizes = [1, 8], strides = [1, 1]} : vector<7x8xf32> to vector<1x8xf32>
    %99 = vector.extract_strided_slice %61 {offsets = [4, 0], sizes = [1, 8], strides = [1, 1]} : vector<7x8xf32> to vector<1x8xf32>
    %100 = vector.extract_strided_slice %61 {offsets = [5, 0], sizes = [1, 8], strides = [1, 1]} : vector<7x8xf32> to vector<1x8xf32>
    %101 = tpu.concatenate %97, %98, %99, %100 in 1 : vector<1x8xf32>, vector<1x8xf32>, vector<1x8xf32>, vector<1x8xf32> -> vector<1x32xf32>
    %102 = vector.extract_strided_slice %61 {offsets = [6, 0], sizes = [1, 8], strides = [1, 1]} : vector<7x8xf32> to vector<1x8xf32>
    %103 = vector.extract_strided_slice %76 {offsets = [0, 0], sizes = [1, 8], strides = [1, 1]} : vector<7x8xf32> to vector<1x8xf32>
    %104 = vector.extract_strided_slice %76 {offsets = [1, 0], sizes = [1, 8], strides = [1, 1]} : vector<7x8xf32> to vector<1x8xf32>
    %105 = vector.extract_strided_slice %76 {offsets = [2, 0], sizes = [1, 8], strides = [1, 1]} : vector<7x8xf32> to vector<1x8xf32>
    %106 = tpu.concatenate %102, %103, %104, %105 in 1 : vector<1x8xf32>, vector<1x8xf32>, vector<1x8xf32>, vector<1x8xf32> -> vector<1x32xf32>
    %107 = vector.extract_strided_slice %76 {offsets = [3, 0], sizes = [1, 8], strides = [1, 1]} : vector<7x8xf32> to vector<1x8xf32>
    %108 = vector.extract_strided_slice %76 {offsets = [4, 0], sizes = [1, 8], strides = [1, 1]} : vector<7x8xf32> to vector<1x8xf32>
    %109 = vector.extract_strided_slice %76 {offsets = [5, 0], sizes = [1, 8], strides = [1, 1]} : vector<7x8xf32> to vector<1x8xf32>
    %110 = vector.extract_strided_slice %76 {offsets = [6, 0], sizes = [1, 8], strides = [1, 1]} : vector<7x8xf32> to vector<1x8xf32>
    %111 = tpu.concatenate %107, %108, %109, %110 in 1 : vector<1x8xf32>, vector<1x8xf32>, vector<1x8xf32>, vector<1x8xf32> -> vector<1x32xf32>
    %112 = tpu.concatenate %81, %86, %91, %96, %101, %106, %111 in 0 : vector<1x32xf32>, vector<1x32xf32>, vector<1x32xf32>, vector<1x32xf32>, vector<1x32xf32>, vector<1x32xf32>, vector<1x32xf32> -> vector<7x32xf32>
    %c0_28 = arith.constant 0 : index
    %c0_29 = arith.constant 0 : index
    %113 = vector.load %arg5[%c0_28, %c0_29] : memref<32x32xf32, #tpu.memory_space<vmem>>, vector<32x32xf32>
    %cst_30 = arith.constant dense<0.000000e+00> : vector<7x32xf32>
    %114 = tpu.matmul %112, %113, %cst_30 {dimension_numbers = #tpu.dot_dimension_numbers<[1], [0], [0], [1], [0, 0, 1, 1], [], []>} : vector<7x32xf32>, vector<32x32xf32>, vector<7x32xf32> -> vector<7x32xf32>
    %115 = vector.extract_strided_slice %2 {offsets = [0, 0], sizes = [1, 32], strides = [1, 1]} : vector<10x32xf32> to vector<1x32xf32>
    %116 = vector.broadcast %115 : vector<1x32xf32> to vector<7x32xf32>
    %117 = arith.addf %114, %116 : vector<7x32xf32>
    %118 = arith.addf %1, %117 : vector<7x32xf32>
    %119 = vector.extract_strided_slice %2 {offsets = [4, 0], sizes = [1, 32], strides = [1, 1]} : vector<10x32xf32> to vector<1x32xf32>
    %120 = vector.extract_strided_slice %2 {offsets = [5, 0], sizes = [1, 32], strides = [1, 1]} : vector<10x32xf32> to vector<1x32xf32>
    %cst_31 = arith.constant dense<0.000000e+00> : vector<7xf32>
    %121 = vector.multi_reduction <add>, %118, %cst_31 [1] : vector<7x32xf32> to vector<7xf32>
    %122 = vector.shape_cast %121 : vector<7xf32> to vector<7x1xf32>
    %cst_32 = arith.constant 3.200000e+01 : f32
    %123 = vector.broadcast %cst_32 : f32 to vector<7x1xf32>
    %124 = arith.divf %122, %123 : vector<7x1xf32>
    %125 = vector.broadcast %124 : vector<7x1xf32> to vector<7x32xf32>
    %126 = arith.subf %118, %125 : vector<7x32xf32>
    %127 = arith.mulf %126, %126 : vector<7x32xf32>
    %cst_33 = arith.constant dense<0.000000e+00> : vector<7xf32>
    %128 = vector.multi_reduction <add>, %127, %cst_33 [1] : vector<7x32xf32> to vector<7xf32>
    %129 = vector.shape_cast %128 : vector<7xf32> to vector<7x1xf32>
    %cst_34 = arith.constant 3.200000e+01 : f32
    %130 = vector.broadcast %cst_34 : f32 to vector<7x1xf32>
    %131 = arith.divf %129, %130 : vector<7x1xf32>
    %cst_35 = arith.constant 9.99999974E-6 : f32
    %132 = vector.broadcast %cst_35 : f32 to vector<7x1xf32>
    %133 = arith.addf %131, %132 : vector<7x1xf32>
    %134 = math.rsqrt %133 : vector<7x1xf32>
    %135 = vector.broadcast %134 : vector<7x1xf32> to vector<7x32xf32>
    %136 = arith.mulf %126, %135 : vector<7x32xf32>
    %137 = vector.broadcast %119 : vector<1x32xf32> to vector<7x32xf32>
    %138 = arith.mulf %136, %137 : vector<7x32xf32>
    %139 = vector.broadcast %120 : vector<1x32xf32> to vector<7x32xf32>
    %140 = arith.addf %138, %139 : vector<7x32xf32>
    %c0_36 = arith.constant 0 : index
    %c0_37 = arith.constant 0 : index
    %141 = vector.load %arg6[%c0_36, %c0_37] : memref<32x32xf32, #tpu.memory_space<vmem>>, vector<32x32xf32>
    %cst_38 = arith.constant dense<0.000000e+00> : vector<7x32xf32>
    %142 = tpu.matmul %140, %141, %cst_38 {dimension_numbers = #tpu.dot_dimension_numbers<[1], [0], [0], [1], [0, 0, 1, 1], [], []>} : vector<7x32xf32>, vector<32x32xf32>, vector<7x32xf32> -> vector<7x32xf32>
    %143 = vector.extract_strided_slice %2 {offsets = [1, 0], sizes = [1, 32], strides = [1, 1]} : vector<10x32xf32> to vector<1x32xf32>
    %144 = vector.broadcast %143 : vector<1x32xf32> to vector<7x32xf32>
    %145 = arith.addf %142, %144 : vector<7x32xf32>
    %cst_39 = arith.constant 0.353553385 : f32
    %146 = vector.broadcast %cst_39 : f32 to vector<7x32xf32>
    %147 = arith.mulf %145, %146 : vector<7x32xf32>
    %148 = vector.extract_strided_slice %147 {offsets = [0, 0], sizes = [7, 8], strides = [1, 1]} : vector<7x32xf32> to vector<7x8xf32>
    %149 = vector.extract_strided_slice %5 {offsets = [0, 0], sizes = [8, 8], strides = [1, 1]} : vector<8x32xf32> to vector<8x8xf32>
    %150 = vector.extract_strided_slice %6 {offsets = [0, 0], sizes = [8, 8], strides = [1, 1]} : vector<8x32xf32> to vector<8x8xf32>
    %cst_40 = arith.constant dense<0.000000e+00> : vector<7x8xf32>
    %151 = tpu.matmul %148, %149, %cst_40 {dimension_numbers = #tpu.dot_dimension_numbers<[1], [1], [0], [0], [0, 0, 1, 0], [], []>} : vector<7x8xf32>, vector<8x8xf32>, vector<7x8xf32> -> vector<7x8xf32>
    %cst_41 = arith.constant dense<0xFF800000> : vector<7xf32>
    %152 = vector.multi_reduction <maximumf>, %151, %cst_41 [1] : vector<7x8xf32> to vector<7xf32>
    %153 = vector.shape_cast %152 : vector<7xf32> to vector<7x1xf32>
    %154 = vector.broadcast %153 : vector<7x1xf32> to vector<7x8xf32>
    %155 = arith.subf %151, %154 : vector<7x8xf32>
    %156 = math.exp %155 : vector<7x8xf32>
    %cst_42 = arith.constant dense<0.000000e+00> : vector<7xf32>
    %157 = vector.multi_reduction <add>, %156, %cst_42 [1] : vector<7x8xf32> to vector<7xf32>
    %158 = vector.shape_cast %157 : vector<7xf32> to vector<7x1xf32>
    %159 = tpu.reciprocal %158 {approx = true} : vector<7x1xf32> -> vector<7x1xf32>
    %160 = vector.broadcast %159 : vector<7x1xf32> to vector<7x8xf32>
    %161 = arith.mulf %156, %160 : vector<7x8xf32>
    %cst_43 = arith.constant dense<0.000000e+00> : vector<7x8xf32>
    %162 = tpu.matmul %161, %150, %cst_43 {dimension_numbers = #tpu.dot_dimension_numbers<[1], [0], [0], [1], [0, 0, 1, 1], [], []>} : vector<7x8xf32>, vector<8x8xf32>, vector<7x8xf32> -> vector<7x8xf32>
    %163 = vector.extract_strided_slice %147 {offsets = [0, 8], sizes = [7, 8], strides = [1, 1]} : vector<7x32xf32> to vector<7x8xf32>
    %164 = vector.extract_strided_slice %5 {offsets = [0, 8], sizes = [8, 8], strides = [1, 1]} : vector<8x32xf32> to vector<8x8xf32>
    %165 = vector.extract_strided_slice %6 {offsets = [0, 8], sizes = [8, 8], strides = [1, 1]} : vector<8x32xf32> to vector<8x8xf32>
    %cst_44 = arith.constant dense<0.000000e+00> : vector<7x8xf32>
    %166 = tpu.matmul %163, %164, %cst_44 {dimension_numbers = #tpu.dot_dimension_numbers<[1], [1], [0], [0], [0, 0, 1, 0], [], []>} : vector<7x8xf32>, vector<8x8xf32>, vector<7x8xf32> -> vector<7x8xf32>
    %cst_45 = arith.constant dense<0xFF800000> : vector<7xf32>
    %167 = vector.multi_reduction <maximumf>, %166, %cst_45 [1] : vector<7x8xf32> to vector<7xf32>
    %168 = vector.shape_cast %167 : vector<7xf32> to vector<7x1xf32>
    %169 = vector.broadcast %168 : vector<7x1xf32> to vector<7x8xf32>
    %170 = arith.subf %166, %169 : vector<7x8xf32>
    %171 = math.exp %170 : vector<7x8xf32>
    %cst_46 = arith.constant dense<0.000000e+00> : vector<7xf32>
    %172 = vector.multi_reduction <add>, %171, %cst_46 [1] : vector<7x8xf32> to vector<7xf32>
    %173 = vector.shape_cast %172 : vector<7xf32> to vector<7x1xf32>
    %174 = tpu.reciprocal %173 {approx = true} : vector<7x1xf32> -> vector<7x1xf32>
    %175 = vector.broadcast %174 : vector<7x1xf32> to vector<7x8xf32>
    %176 = arith.mulf %171, %175 : vector<7x8xf32>
    %cst_47 = arith.constant dense<0.000000e+00> : vector<7x8xf32>
    %177 = tpu.matmul %176, %165, %cst_47 {dimension_numbers = #tpu.dot_dimension_numbers<[1], [0], [0], [1], [0, 0, 1, 1], [], []>} : vector<7x8xf32>, vector<8x8xf32>, vector<7x8xf32> -> vector<7x8xf32>
    %178 = vector.extract_strided_slice %147 {offsets = [0, 16], sizes = [7, 8], strides = [1, 1]} : vector<7x32xf32> to vector<7x8xf32>
    %179 = vector.extract_strided_slice %5 {offsets = [0, 16], sizes = [8, 8], strides = [1, 1]} : vector<8x32xf32> to vector<8x8xf32>
    %180 = vector.extract_strided_slice %6 {offsets = [0, 16], sizes = [8, 8], strides = [1, 1]} : vector<8x32xf32> to vector<8x8xf32>
    %cst_48 = arith.constant dense<0.000000e+00> : vector<7x8xf32>
    %181 = tpu.matmul %178, %179, %cst_48 {dimension_numbers = #tpu.dot_dimension_numbers<[1], [1], [0], [0], [0, 0, 1, 0], [], []>} : vector<7x8xf32>, vector<8x8xf32>, vector<7x8xf32> -> vector<7x8xf32>
    %cst_49 = arith.constant dense<0xFF800000> : vector<7xf32>
    %182 = vector.multi_reduction <maximumf>, %181, %cst_49 [1] : vector<7x8xf32> to vector<7xf32>
    %183 = vector.shape_cast %182 : vector<7xf32> to vector<7x1xf32>
    %184 = vector.broadcast %183 : vector<7x1xf32> to vector<7x8xf32>
    %185 = arith.subf %181, %184 : vector<7x8xf32>
    %186 = math.exp %185 : vector<7x8xf32>
    %cst_50 = arith.constant dense<0.000000e+00> : vector<7xf32>
    %187 = vector.multi_reduction <add>, %186, %cst_50 [1] : vector<7x8xf32> to vector<7xf32>
    %188 = vector.shape_cast %187 : vector<7xf32> to vector<7x1xf32>
    %189 = tpu.reciprocal %188 {approx = true} : vector<7x1xf32> -> vector<7x1xf32>
    %190 = vector.broadcast %189 : vector<7x1xf32> to vector<7x8xf32>
    %191 = arith.mulf %186, %190 : vector<7x8xf32>
    %cst_51 = arith.constant dense<0.000000e+00> : vector<7x8xf32>
    %192 = tpu.matmul %191, %180, %cst_51 {dimension_numbers = #tpu.dot_dimension_numbers<[1], [0], [0], [1], [0, 0, 1, 1], [], []>} : vector<7x8xf32>, vector<8x8xf32>, vector<7x8xf32> -> vector<7x8xf32>
    %193 = vector.extract_strided_slice %147 {offsets = [0, 24], sizes = [7, 8], strides = [1, 1]} : vector<7x32xf32> to vector<7x8xf32>
    %194 = vector.extract_strided_slice %5 {offsets = [0, 24], sizes = [8, 8], strides = [1, 1]} : vector<8x32xf32> to vector<8x8xf32>
    %195 = vector.extract_strided_slice %6 {offsets = [0, 24], sizes = [8, 8], strides = [1, 1]} : vector<8x32xf32> to vector<8x8xf32>
    %cst_52 = arith.constant dense<0.000000e+00> : vector<7x8xf32>
    %196 = tpu.matmul %193, %194, %cst_52 {dimension_numbers = #tpu.dot_dimension_numbers<[1], [1], [0], [0], [0, 0, 1, 0], [], []>} : vector<7x8xf32>, vector<8x8xf32>, vector<7x8xf32> -> vector<7x8xf32>
    %cst_53 = arith.constant dense<0xFF800000> : vector<7xf32>
    %197 = vector.multi_reduction <maximumf>, %196, %cst_53 [1] : vector<7x8xf32> to vector<7xf32>
    %198 = vector.shape_cast %197 : vector<7xf32> to vector<7x1xf32>
    %199 = vector.broadcast %198 : vector<7x1xf32> to vector<7x8xf32>
    %200 = arith.subf %196, %199 : vector<7x8xf32>
    %201 = math.exp %200 : vector<7x8xf32>
    %cst_54 = arith.constant dense<0.000000e+00> : vector<7xf32>
    %202 = vector.multi_reduction <add>, %201, %cst_54 [1] : vector<7x8xf32> to vector<7xf32>
    %203 = vector.shape_cast %202 : vector<7xf32> to vector<7x1xf32>
    %204 = tpu.reciprocal %203 {approx = true} : vector<7x1xf32> -> vector<7x1xf32>
    %205 = vector.broadcast %204 : vector<7x1xf32> to vector<7x8xf32>
    %206 = arith.mulf %201, %205 : vector<7x8xf32>
    %cst_55 = arith.constant dense<0.000000e+00> : vector<7x8xf32>
    %207 = tpu.matmul %206, %195, %cst_55 {dimension_numbers = #tpu.dot_dimension_numbers<[1], [0], [0], [1], [0, 0, 1, 1], [], []>} : vector<7x8xf32>, vector<8x8xf32>, vector<7x8xf32> -> vector<7x8xf32>
    %208 = tpu.concatenate %162, %177, %192, %207 in 1 : vector<7x8xf32>, vector<7x8xf32>, vector<7x8xf32>, vector<7x8xf32> -> vector<7x32xf32>
    %c0_56 = arith.constant 0 : index
    %c0_57 = arith.constant 0 : index
    %209 = vector.load %arg7[%c0_56, %c0_57] : memref<32x32xf32, #tpu.memory_space<vmem>>, vector<32x32xf32>
    %cst_58 = arith.constant dense<0.000000e+00> : vector<7x32xf32>
    %210 = tpu.matmul %208, %209, %cst_58 {dimension_numbers = #tpu.dot_dimension_numbers<[1], [0], [0], [1], [0, 0, 1, 1], [], []>} : vector<7x32xf32>, vector<32x32xf32>, vector<7x32xf32> -> vector<7x32xf32>
    %211 = vector.extract_strided_slice %2 {offsets = [2, 0], sizes = [1, 32], strides = [1, 1]} : vector<10x32xf32> to vector<1x32xf32>
    %212 = vector.broadcast %211 : vector<1x32xf32> to vector<7x32xf32>
    %213 = arith.addf %210, %212 : vector<7x32xf32>
    %214 = arith.addf %140, %213 : vector<7x32xf32>
    %215 = vector.extract_strided_slice %2 {offsets = [6, 0], sizes = [1, 32], strides = [1, 1]} : vector<10x32xf32> to vector<1x32xf32>
    %216 = vector.extract_strided_slice %2 {offsets = [7, 0], sizes = [1, 32], strides = [1, 1]} : vector<10x32xf32> to vector<1x32xf32>
    %cst_59 = arith.constant dense<0.000000e+00> : vector<7xf32>
    %217 = vector.multi_reduction <add>, %214, %cst_59 [1] : vector<7x32xf32> to vector<7xf32>
    %218 = vector.shape_cast %217 : vector<7xf32> to vector<7x1xf32>
    %cst_60 = arith.constant 3.200000e+01 : f32
    %219 = vector.broadcast %cst_60 : f32 to vector<7x1xf32>
    %220 = arith.divf %218, %219 : vector<7x1xf32>
    %221 = vector.broadcast %220 : vector<7x1xf32> to vector<7x32xf32>
    %222 = arith.subf %214, %221 : vector<7x32xf32>
    %223 = arith.mulf %222, %222 : vector<7x32xf32>
    %cst_61 = arith.constant dense<0.000000e+00> : vector<7xf32>
    %224 = vector.multi_reduction <add>, %223, %cst_61 [1] : vector<7x32xf32> to vector<7xf32>
    %225 = vector.shape_cast %224 : vector<7xf32> to vector<7x1xf32>
    %cst_62 = arith.constant 3.200000e+01 : f32
    %226 = vector.broadcast %cst_62 : f32 to vector<7x1xf32>
    %227 = arith.divf %225, %226 : vector<7x1xf32>
    %cst_63 = arith.constant 9.99999974E-6 : f32
    %228 = vector.broadcast %cst_63 : f32 to vector<7x1xf32>
    %229 = arith.addf %227, %228 : vector<7x1xf32>
    %230 = math.rsqrt %229 : vector<7x1xf32>
    %231 = vector.broadcast %230 : vector<7x1xf32> to vector<7x32xf32>
    %232 = arith.mulf %222, %231 : vector<7x32xf32>
    %233 = vector.broadcast %215 : vector<1x32xf32> to vector<7x32xf32>
    %234 = arith.mulf %232, %233 : vector<7x32xf32>
    %235 = vector.broadcast %216 : vector<1x32xf32> to vector<7x32xf32>
    %236 = arith.addf %234, %235 : vector<7x32xf32>
    %c0_64 = arith.constant 0 : index
    %c0_65 = arith.constant 0 : index
    %237 = vector.load %arg8[%c0_64, %c0_65] : memref<32x64xf32, #tpu.memory_space<vmem>>, vector<32x64xf32>
    %cst_66 = arith.constant dense<0.000000e+00> : vector<7x64xf32>
    %238 = tpu.matmul %236, %237, %cst_66 {dimension_numbers = #tpu.dot_dimension_numbers<[1], [0], [0], [1], [0, 0, 1, 1], [], []>} : vector<7x32xf32>, vector<32x64xf32>, vector<7x64xf32> -> vector<7x64xf32>
    %c0_67 = arith.constant 0 : index
    %c0_68 = arith.constant 0 : index
    %239 = vector.load %arg9[%c0_67, %c0_68] : memref<1x64xf32, #tpu.memory_space<vmem>>, vector<1x64xf32>
    %240 = vector.broadcast %239 : vector<1x64xf32> to vector<7x64xf32>
    %241 = arith.addf %238, %240 : vector<7x64xf32>
    %cst_69 = arith.constant 5.000000e-01 : f32
    %242 = vector.broadcast %cst_69 : f32 to vector<7x64xf32>
    %243 = arith.mulf %242, %241 : vector<7x64xf32>
    %cst_70 = arith.constant 0.707106769 : f32
    %244 = vector.broadcast %cst_70 : f32 to vector<7x64xf32>
    %245 = arith.mulf %241, %244 : vector<7x64xf32>
    %246 = math.erf %245 : vector<7x64xf32>
    %cst_71 = arith.constant 1.000000e+00 : f32
    %247 = vector.broadcast %cst_71 : f32 to vector<7x64xf32>
    %248 = arith.addf %247, %246 : vector<7x64xf32>
    %249 = arith.mulf %243, %248 : vector<7x64xf32>
    %c0_72 = arith.constant 0 : index
    %c0_73 = arith.constant 0 : index
    %250 = vector.load %arg10[%c0_72, %c0_73] : memref<64x32xf32, #tpu.memory_space<vmem>>, vector<64x32xf32>
    %cst_74 = arith.constant dense<0.000000e+00> : vector<7x32xf32>
    %251 = tpu.matmul %249, %250, %cst_74 {dimension_numbers = #tpu.dot_dimension_numbers<[1], [0], [0], [1], [0, 0, 1, 1], [], []>} : vector<7x64xf32>, vector<64x32xf32>, vector<7x32xf32> -> vector<7x32xf32>
    %252 = vector.extract_strided_slice %2 {offsets = [3, 0], sizes = [1, 32], strides = [1, 1]} : vector<10x32xf32> to vector<1x32xf32>
    %253 = vector.broadcast %252 : vector<1x32xf32> to vector<7x32xf32>
    %254 = arith.addf %251, %253 : vector<7x32xf32>
    %255 = arith.addf %236, %254 : vector<7x32xf32>
    %256 = vector.extract_strided_slice %2 {offsets = [8, 0], sizes = [1, 32], strides = [1, 1]} : vector<10x32xf32> to vector<1x32xf32>
    %257 = vector.extract_strided_slice %2 {offsets = [9, 0], sizes = [1, 32], strides = [1, 1]} : vector<10x32xf32> to vector<1x32xf32>
    %cst_75 = arith.constant dense<0.000000e+00> : vector<7xf32>
    %258 = vector.multi_reduction <add>, %255, %cst_75 [1] : vector<7x32xf32> to vector<7xf32>
    %259 = vector.shape_cast %258 : vector<7xf32> to vector<7x1xf32>
    %cst_76 = arith.constant 3.200000e+01 : f32
    %260 = vector.broadcast %cst_76 : f32 to vector<7x1xf32>
    %261 = arith.divf %259, %260 : vector<7x1xf32>
    %262 = vector.broadcast %261 : vector<7x1xf32> to vector<7x32xf32>
    %263 = arith.subf %255, %262 : vector<7x32xf32>
    %264 = arith.mulf %263, %263 : vector<7x32xf32>
    %cst_77 = arith.constant dense<0.000000e+00> : vector<7xf32>
    %265 = vector.multi_reduction <add>, %264, %cst_77 [1] : vector<7x32xf32> to vector<7xf32>
    %266 = vector.shape_cast %265 : vector<7xf32> to vector<7x1xf32>
    %cst_78 = arith.constant 3.200000e+01 : f32
    %267 = vector.broadcast %cst_78 : f32 to vector<7x1xf32>
    %268 = arith.divf %266, %267 : vector<7x1xf32>
    %cst_79 = arith.constant 9.99999974E-6 : f32
    %269 = vector.broadcast %cst_79 : f32 to vector<7x1xf32>
    %270 = arith.addf %268, %269 : vector<7x1xf32>
    %271 = math.rsqrt %270 : vector<7x1xf32>
    %272 = vector.broadcast %271 : vector<7x1xf32> to vector<7x32xf32>
    %273 = arith.mulf %263, %272 : vector<7x32xf32>
    %274 = vector.broadcast %256 : vector<1x32xf32> to vector<7x32xf32>
    %275 = arith.mulf %273, %274 : vector<7x32xf32>
    %276 = vector.broadcast %257 : vector<1x32xf32> to vector<7x32xf32>
    %277 = arith.addf %275, %276 : vector<7x32xf32>
    %c0_80 = arith.constant 0 : index
    %c0_81 = arith.constant 0 : index
    %c0_82 = arith.constant 0 : index
    %278 = vector.load %arg12[%c0_80, %c0_81, %c0_82] : memref<1x7x32xf32, #tpu.memory_space<vmem>>, vector<1x7x32xf32>
    %279 = vector.shape_cast %278 : vector<1x7x32xf32> to vector<7x32xf32>
    %280 = vector.shape_cast %277 : vector<7x32xf32> to vector<1x7x32xf32>
    tpu.vector_store %arg12[%c0_80, %c0_81, %c0_82], %280 {strides = array<i32>} : memref<1x7x32xf32, #tpu.memory_space<vmem>>, vector<1x7x32xf32>,
    return
  }
  func.func @transform_0(%arg0: i32) -> (i32, i32, i32) {
    %c0_i32 = arith.constant 0 : i32
    %c0_i32_0 = arith.constant 0 : i32
    %c0_i32_1 = arith.constant 0 : i32
    return %arg0, %c0_i32, %c0_i32_0 : i32, i32, i32
  }
  func.func @transform_1(%arg0: i32) -> (i32, i32, i32) {
    %c0_i32 = arith.constant 0 : i32
    %c0_i32_0 = arith.constant 0 : i32
    %c0_i32_1 = arith.constant 0 : i32
    return %arg0, %c0_i32, %c0_i32_0 : i32, i32, i32
  }
  func.func @transform_2(%arg0: i32) -> (i32, i32) {
    %c0_i32 = arith.constant 0 : i32
    %c0_i32_0 = arith.constant 0 : i32
    %c0_i32_1 = arith.constant 0 : i32
    return %c0_i32, %c0_i32_0 : i32, i32
  }
  func.func @transform_3(%arg0: i32) -> (i32, i32) {
    %c0_i32 = arith.constant 0 : i32
    %c0_i32_0 = arith.constant 0 : i32
    %c0_i32_1 = arith.constant 0 : i32
    return %c0_i32, %c0_i32_0 : i32, i32
  }
  func.func @transform_4(%arg0: i32) -> (i32, i32) {
    %c0_i32 = arith.constant 0 : i32
    %c0_i32_0 = arith.constant 0 : i32
    %c0_i32_1 = arith.constant 0 : i32
    return %c0_i32, %c0_i32_0 : i32, i32
  }
  func.func @transform_5(%arg0: i32) -> (i32, i32) {
    %c0_i32 = arith.constant 0 : i32
    %c0_i32_0 = arith.constant 0 : i32
    %c0_i32_1 = arith.constant 0 : i32
    return %c0_i32, %c0_i32_0 : i32, i32
  }
  func.func @transform_6(%arg0: i32) -> (i32, i32) {
    %c0_i32 = arith.constant 0 : i32
    %c0_i32_0 = arith.constant 0 : i32
    %c0_i32_1 = arith.constant 0 : i32
    return %c0_i32, %c0_i32_0 : i32, i32
  }
  func.func @transform_7(%arg0: i32) -> (i32, i32) {
    %c0_i32 = arith.constant 0 : i32
    %c0_i32_0 = arith.constant 0 : i32
    %c0_i32_1 = arith.constant 0 : i32
    return %c0_i32, %c0_i32_0 : i32, i32
  }
  func.func @transform_8(%arg0: i32) -> (i32, i32) {
    %c0_i32 = arith.constant 0 : i32
    %c0_i32_0 = arith.constant 0 : i32
    %c0_i32_1 = arith.constant 0 : i32
    return %c0_i32, %c0_i32_0 : i32, i32
  }
  func.func @transform_9(%arg0: i32) -> (i32, i32) {
    %c0_i32 = arith.constant 0 : i32
    %c0_i32_0 = arith.constant 0 : i32
    %c0_i32_1 = arith.constant 0 : i32
    return %c0_i32, %c0_i32_0 : i32, i32
  }
  func.func @transform_10(%arg0: i32) -> (i32, i32) {
    %c0_i32 = arith.constant 0 : i32
    %c0_i32_0 = arith.constant 0 : i32
    %c0_i32_1 = arith.constant 0 : i32
    return %c0_i32, %c0_i32_0 : i32, i32
  }
  func.func @transform_11(%arg0: i32) -> (i32, i32, i32) {
    %c0_i32 = arith.constant 0 : i32
    %c0_i32_0 = arith.constant 0 : i32
    %c0_i32_1 = arith.constant 0 : i32
    return %arg0, %c0_i32, %c0_i32_0 : i32, i32, i32
  }
}

module attributes {stable_mosaic.version = 11 : i64} {
  func.func @_embed_kernel(%arg0: i32, %arg1: memref<1x7x3xf32, #tpu.memory_space<vmem>>, %arg2: memref<9x32xf32, #tpu.memory_space<vmem>>, %arg3: memref<64x32xf32, #tpu.memory_space<vmem>>, %arg4: memref<1x7x32xf32, #tpu.memory_space<vmem>>) attributes {dimension_semantics = [#tpu.dimension_semantics<parallel>], iteration_bounds = array<i64: 2>, scalar_prefetch = 0 : i64, scratch_operands = 0 : i64, tpu.core_type = #tpu.core_type<tc>, window_params = [{transform_indices = @transform_0, window_bounds = array<i64: 1, 7, 3>}, {pipeline_mode = #tpu.pipeline_mode<synchronous>, transform_indices = @transform_1, window_bounds = array<i64: 9, 32>}, {pipeline_mode = #tpu.pipeline_mode<synchronous>, transform_indices = @transform_2, window_bounds = array<i64: 64, 32>}, {transform_indices = @transform_3, window_bounds = array<i64: 1, 7, 32>}]} {
    %c0 = arith.constant 0 : index
    %c0_0 = arith.constant 0 : index
    %c0_1 = arith.constant 0 : index
    %0 = vector.load %arg1[%c0, %c0_0, %c0_1] : memref<1x7x3xf32, #tpu.memory_space<vmem>>, vector<1x7x3xf32>
    %1 = vector.shape_cast %0 : vector<1x7x3xf32> to vector<7x3xf32>
    %c0_2 = arith.constant 0 : index
    %c0_3 = arith.constant 0 : index
    %2 = vector.load %arg2[%c0_2, %c0_3] : memref<9x32xf32, #tpu.memory_space<vmem>>, vector<9x32xf32>
    %3 = vector.extract_strided_slice %1 {offsets = [6, 0], sizes = [1, 3], strides = [1, 1]} : vector<7x3xf32> to vector<1x3xf32>
    %4 = vector.extract_strided_slice %1 {offsets = [0, 0], sizes = [6, 3], strides = [1, 1]} : vector<7x3xf32> to vector<6x3xf32>
    %5 = tpu.concatenate %3, %4 in 0 : vector<1x3xf32>, vector<6x3xf32> -> vector<7x3xf32>
    %6 = vector.extract_strided_slice %1 {offsets = [1, 0], sizes = [6, 3], strides = [1, 1]} : vector<7x3xf32> to vector<6x3xf32>
    %7 = vector.extract_strided_slice %1 {offsets = [0, 0], sizes = [1, 3], strides = [1, 1]} : vector<7x3xf32> to vector<1x3xf32>
    %8 = tpu.concatenate %6, %7 in 0 : vector<6x3xf32>, vector<1x3xf32> -> vector<7x3xf32>
    %9 = vector.extract_strided_slice %2 {offsets = [0, 0], sizes = [3, 32], strides = [1, 1]} : vector<9x32xf32> to vector<3x32xf32>
    %cst = arith.constant dense<0.000000e+00> : vector<7x32xf32>
    %10 = tpu.matmul %5, %9, %cst {dimension_numbers = #tpu.dot_dimension_numbers<[1], [0], [0], [1], [0, 0, 1, 1], [], []>} : vector<7x3xf32>, vector<3x32xf32>, vector<7x32xf32> -> vector<7x32xf32>
    %11 = vector.extract_strided_slice %2 {offsets = [3, 0], sizes = [3, 32], strides = [1, 1]} : vector<9x32xf32> to vector<3x32xf32>
    %cst_4 = arith.constant dense<0.000000e+00> : vector<7x32xf32>
    %12 = tpu.matmul %1, %11, %cst_4 {dimension_numbers = #tpu.dot_dimension_numbers<[1], [0], [0], [1], [0, 0, 1, 1], [], []>} : vector<7x3xf32>, vector<3x32xf32>, vector<7x32xf32> -> vector<7x32xf32>
    %13 = arith.addf %10, %12 : vector<7x32xf32>
    %14 = vector.extract_strided_slice %2 {offsets = [6, 0], sizes = [3, 32], strides = [1, 1]} : vector<9x32xf32> to vector<3x32xf32>
    %cst_5 = arith.constant dense<0.000000e+00> : vector<7x32xf32>
    %15 = tpu.matmul %8, %14, %cst_5 {dimension_numbers = #tpu.dot_dimension_numbers<[1], [0], [0], [1], [0, 0, 1, 1], [], []>} : vector<7x3xf32>, vector<3x32xf32>, vector<7x32xf32> -> vector<7x32xf32>
    %16 = arith.addf %13, %15 : vector<7x32xf32>
    %c0_6 = arith.constant 0 : index
    %c0_7 = arith.constant 0 : index
    %17 = vector.load %arg3[%c0_6, %c0_7] : memref<64x32xf32, #tpu.memory_space<vmem>>, vector<64x32xf32>
    %18 = vector.extract_strided_slice %17 {offsets = [0, 0], sizes = [7, 32], strides = [1, 1]} : vector<64x32xf32> to vector<7x32xf32>
    %19 = arith.addf %16, %18 : vector<7x32xf32>
    %c0_8 = arith.constant 0 : index
    %c0_9 = arith.constant 0 : index
    %c0_10 = arith.constant 0 : index
    %20 = vector.load %arg4[%c0_8, %c0_9, %c0_10] : memref<1x7x32xf32, #tpu.memory_space<vmem>>, vector<1x7x32xf32>
    %21 = vector.shape_cast %20 : vector<1x7x32xf32> to vector<7x32xf32>
    %22 = vector.shape_cast %19 : vector<7x32xf32> to vector<1x7x32xf32>
    tpu.vector_store %arg4[%c0_8, %c0_9, %c0_10], %22 {strides = array<i32>} : memref<1x7x32xf32, #tpu.memory_space<vmem>>, vector<1x7x32xf32>,
    return
  }
  func.func @transform_0(%arg0: i32) -> (i32, i32, i32) {
    %c0_i32 = arith.constant 0 : i32
    %c0_i32_0 = arith.constant 0 : i32
    %c0_i32_1 = arith.constant 0 : i32
    return %arg0, %c0_i32, %c0_i32_0 : i32, i32, i32
  }
  func.func @transform_1(%arg0: i32) -> (i32, i32) {
    %c0_i32 = arith.constant 0 : i32
    %c0_i32_0 = arith.constant 0 : i32
    %c0_i32_1 = arith.constant 0 : i32
    return %c0_i32, %c0_i32_0 : i32, i32
  }
  func.func @transform_2(%arg0: i32) -> (i32, i32) {
    %c0_i32 = arith.constant 0 : i32
    %c0_i32_0 = arith.constant 0 : i32
    %c0_i32_1 = arith.constant 0 : i32
    return %c0_i32, %c0_i32_0 : i32, i32
  }
  func.func @transform_3(%arg0: i32) -> (i32, i32, i32) {
    %c0_i32 = arith.constant 0 : i32
    %c0_i32_0 = arith.constant 0 : i32
    %c0_i32_1 = arith.constant 0 : i32
    return %arg0, %c0_i32, %c0_i32_0 : i32, i32, i32
  }
}

module attributes {stable_mosaic.version = 11 : i64} {
  func.func @_final_proj_kernel(%arg0: i32, %arg1: memref<1x7x32xf32, #tpu.memory_space<vmem>>, %arg2: memref<2x32xf32, #tpu.memory_space<vmem>>, %arg3: memref<1x32xf32, #tpu.memory_space<vmem>>, %arg4: memref<1x1xf32, #tpu.memory_space<vmem>>, %arg5: memref<1x1x1xf32, #tpu.memory_space<vmem>>) attributes {dimension_semantics = [#tpu.dimension_semantics<parallel>], iteration_bounds = array<i64: 2>, scalar_prefetch = 0 : i64, scratch_operands = 0 : i64, tpu.core_type = #tpu.core_type<tc>, window_params = [{transform_indices = @transform_0, window_bounds = array<i64: 1, 7, 32>}, {pipeline_mode = #tpu.pipeline_mode<synchronous>, transform_indices = @transform_1, window_bounds = array<i64: 2, 32>}, {pipeline_mode = #tpu.pipeline_mode<synchronous>, transform_indices = @transform_2, window_bounds = array<i64: 1, 32>}, {pipeline_mode = #tpu.pipeline_mode<synchronous>, transform_indices = @transform_3, window_bounds = array<i64: 1, 1>}, {transform_indices = @transform_4, window_bounds = array<i64: 1, 1, 1>}]} {
    %c0 = arith.constant 0 : index
    %c0_0 = arith.constant 0 : index
    %c0_1 = arith.constant 0 : index
    %0 = vector.load %arg1[%c0, %c0_0, %c0_1] : memref<1x7x32xf32, #tpu.memory_space<vmem>>, vector<1x7x32xf32>
    %1 = vector.shape_cast %0 : vector<1x7x32xf32> to vector<7x32xf32>
    %2 = vector.extract_strided_slice %1 {offsets = [6, 0], sizes = [1, 32], strides = [1, 1]} : vector<7x32xf32> to vector<1x32xf32>
    %c0_2 = arith.constant 0 : index
    %c0_3 = arith.constant 0 : index
    %3 = vector.load %arg2[%c0_2, %c0_3] : memref<2x32xf32, #tpu.memory_space<vmem>>, vector<2x32xf32>
    %4 = vector.extract_strided_slice %3 {offsets = [0, 0], sizes = [1, 32], strides = [1, 1]} : vector<2x32xf32> to vector<1x32xf32>
    %5 = vector.extract_strided_slice %3 {offsets = [1, 0], sizes = [1, 32], strides = [1, 1]} : vector<2x32xf32> to vector<1x32xf32>
    %cst = arith.constant dense<0.000000e+00> : vector<1xf32>
    %6 = vector.multi_reduction <add>, %2, %cst [1] : vector<1x32xf32> to vector<1xf32>
    %7 = vector.shape_cast %6 : vector<1xf32> to vector<1x1xf32>
    %cst_4 = arith.constant 3.200000e+01 : f32
    %8 = vector.broadcast %cst_4 : f32 to vector<1x1xf32>
    %9 = arith.divf %7, %8 : vector<1x1xf32>
    %10 = vector.broadcast %9 : vector<1x1xf32> to vector<1x32xf32>
    %11 = arith.subf %2, %10 : vector<1x32xf32>
    %12 = arith.mulf %11, %11 : vector<1x32xf32>
    %cst_5 = arith.constant dense<0.000000e+00> : vector<1xf32>
    %13 = vector.multi_reduction <add>, %12, %cst_5 [1] : vector<1x32xf32> to vector<1xf32>
    %14 = vector.shape_cast %13 : vector<1xf32> to vector<1x1xf32>
    %cst_6 = arith.constant 3.200000e+01 : f32
    %15 = vector.broadcast %cst_6 : f32 to vector<1x1xf32>
    %16 = arith.divf %14, %15 : vector<1x1xf32>
    %cst_7 = arith.constant 9.99999974E-6 : f32
    %17 = vector.broadcast %cst_7 : f32 to vector<1x1xf32>
    %18 = arith.addf %16, %17 : vector<1x1xf32>
    %19 = math.rsqrt %18 : vector<1x1xf32>
    %20 = vector.broadcast %19 : vector<1x1xf32> to vector<1x32xf32>
    %21 = arith.mulf %11, %20 : vector<1x32xf32>
    %22 = arith.mulf %21, %4 : vector<1x32xf32>
    %23 = arith.addf %22, %5 : vector<1x32xf32>
    %c0_8 = arith.constant 0 : index
    %c0_9 = arith.constant 0 : index
    %24 = vector.load %arg3[%c0_8, %c0_9] : memref<1x32xf32, #tpu.memory_space<vmem>>, vector<1x32xf32>
    %25 = arith.mulf %23, %24 : vector<1x32xf32>
    %cst_10 = arith.constant dense<0.000000e+00> : vector<1xf32>
    %26 = vector.multi_reduction <add>, %25, %cst_10 [1] : vector<1x32xf32> to vector<1xf32>
    %27 = vector.shape_cast %26 : vector<1xf32> to vector<1x1xf32>
    %c0_11 = arith.constant 0 : index
    %c0_12 = arith.constant 0 : index
    %28 = vector.load %arg4[%c0_11, %c0_12] : memref<1x1xf32, #tpu.memory_space<vmem>>, vector<1x1xf32>
    %29 = arith.addf %27, %28 : vector<1x1xf32>
    %c0_13 = arith.constant 0 : index
    %c0_14 = arith.constant 0 : index
    %c0_15 = arith.constant 0 : index
    %30 = vector.load %arg5[%c0_13, %c0_14, %c0_15] : memref<1x1x1xf32, #tpu.memory_space<vmem>>, vector<1x1x1xf32>
    %31 = vector.shape_cast %30 : vector<1x1x1xf32> to vector<1x1xf32>
    %32 = vector.shape_cast %29 : vector<1x1xf32> to vector<1x1x1xf32>
    tpu.vector_store %arg5[%c0_13, %c0_14, %c0_15], %32 {strides = array<i32>} : memref<1x1x1xf32, #tpu.memory_space<vmem>>, vector<1x1x1xf32>,
    return
  }
  func.func @transform_0(%arg0: i32) -> (i32, i32, i32) {
    %c0_i32 = arith.constant 0 : i32
    %c0_i32_0 = arith.constant 0 : i32
    %c0_i32_1 = arith.constant 0 : i32
    return %arg0, %c0_i32, %c0_i32_0 : i32, i32, i32
  }
  func.func @transform_1(%arg0: i32) -> (i32, i32) {
    %c0_i32 = arith.constant 0 : i32
    %c0_i32_0 = arith.constant 0 : i32
    %c0_i32_1 = arith.constant 0 : i32
    return %c0_i32, %c0_i32_0 : i32, i32
  }
  func.func @transform_2(%arg0: i32) -> (i32, i32) {
    %c0_i32 = arith.constant 0 : i32
    %c0_i32_0 = arith.constant 0 : i32
    %c0_i32_1 = arith.constant 0 : i32
    return %c0_i32, %c0_i32_0 : i32, i32
  }
  func.func @transform_3(%arg0: i32) -> (i32, i32) {
    %c0_i32 = arith.constant 0 : i32
    %c0_i32_0 = arith.constant 0 : i32
    %c0_i32_1 = arith.constant 0 : i32
    return %c0_i32, %c0_i32_0 : i32, i32
  }
  func.func @transform_4(%arg0: i32) -> (i32, i32, i32) {
    %c0_i32 = arith.constant 0 : i32
    %c0_i32_0 = arith.constant 0 : i32
    %c0_i32_1 = arith.constant 0 : i32
    return %arg0, %c0_i32, %c0_i32_0 : i32, i32, i32
  }
}

</mosaic_0001>

<bundles_post_ra>
// kernel: informer_forward.19
= control target key start
LH: loop header
LB: loop body
LE: loop exit
PB: predicated region body
PF: predicated region fallthrough
CT: control target
= control target key end

     0   :  { %s441_s15 = smov 0   ;;  %s486_s0 = inlined_call_operand.vmem [shape: f32[2,8,32], index: 0, kind: input, shape index: {}]   ;;  %s487_s1 = inlined_call_operand.vmem [shape: f32[2,32], index: 1, kind: input, shape index: {}]   ;;  %s488_s2 = inlined_call_operand.vmem [shape: f32[32,64], index: 2, kind: input, shape index: {}]   ;;  %s489_s3 = inlined_call_operand.vmem [shape: f32[1,64], index: 3, kind: input, shape index: {}]   ;;  %s490_s4 = inlined_call_operand.vmem [shape: f32[2,8,64], index: 4, kind: output, shape index: {}]  }
   0x1 LB: > { %s359_s16 = sadd.s32 4294967295, %s411_s15   ;;  %p363_p0 = scmp.ge.s32.totalorder %s411_s15, 1  ;;  %s411_s15 = sphi %s441_s15, %s14_s15  }
   0x2   : > { %p161_p1 = scmp.lt.s32.totalorder %s411_s15, 3 }
   0x4   : > { %p162_p2 = pnand %p363_p0, %p161_p1 }
   0x5   : > { %p185_p3 = scmp.lt.s32.totalorder (!%p162_p2), %s359_s16, 1  ;;  %vm195_vm0 = vcmask (!%p162_p2), 261120   ;;  %v220_v7 = vld [vmem:[%s488_s2] sm:$0xff] (!%p162_p2)  ;;  %v221_v8 = vld [vmem:[%s488_s2 + $0x8] sm:$0xff] (!%p162_p2)  ;;  %v222_v9 = vld [vmem:[%s488_s2 + $0x10] sm:$0xff] (!%p162_p2)  ;;  %v413_v10 = vmov (!%p162_p2), 0.0|0.0   ;;  %v210_v17 = vlaneseq (!%p162_p2) }
   0x6   : > { %165 = sbr.rel (%p162_p2) target bundleno = 545 (0x221), region = 36  ;;  %386 = vmatprep.subr.bf16.mxu0 (!%p162_p2), %v413_v10  ;;  %v387_v11 = vpack.c.bf16 (!%p162_p2), %v221_v8, %v220_v7  ;;  %v223_v12 = vld [vmem:[%s488_s2 + $0x18] sm:$0xff] (!%p162_p2)  ;;  %vm414_vm1 = vmmov (!%p162_p2), 0   ;;  %v415_v13 = vmov (!%p162_p2), 0.0   ;;  %v194_v21 = vld [vmem:[%s487_s1] sm:$0x3] (!%p162_p2) }
   0x7   : > { %383 = vmatprep.mubr.msk.f32.mxu0 (!%p162_p2), %vm414_vm1, %v415_v13  ;;  %v390_v14 = vpack.c.bf16 (!%p162_p2), %v223_v12, %v222_v9  ;;  %v211_v19 = vshrl.u32 (!%p162_p2), %v210_v17, 7  ;;  %v366_v29 = vld [vmem:[%s489_s3] ss:$0 sm:$0xff] (!%p162_p2)  ;;  %vm304_vm2 = vcmask (!%p162_p2), 523264  }
   0x8   : > { %388 = vmatpush3.bf16.msra.mxu0 (!%p162_p2), %v387_v11 }
   0x9   : > { %389 = vmatprep.subr.bf16.mxu0 (!%p162_p2), %v413_v10  ;;  %v212_v20 = vsub.s32 (!%p162_p2), 0, %v211_v19  ;;  %v217_v22 = vsub.s32 (!%p162_p2), 1, %v211_v19 }
   0xb   : > { %v213_v23 = vrot.slane (!%p162_p2), %v194_v21, %v212_v20  ;;  %v218_v26 = vrot.slane (!%p162_p2), %v194_v21, %v217_v22 }
   0xc   : > { %391 = vmatpush3.bf16.msra.mxu0 (!%p162_p2), %v390_v14 }
   0xd   : > { %s492_s16 = smov (!%p185_p3, %s359_s16), 1 }
   0xe   : > { %s364_s17 = sshll.u32 %s492_s16, 3 }
   0xf   : > { %s188_s20 = scalar_lea.vmem %s486_s0, %s364_s17  ;;  %s192_s9 = scalar_lea.vmem %s490_s4, %s364_s17 }
  0x10   : > { %v193_v0 = vld [vmem:[%s188_s20] sm:$0xff] }
  0x11   : > { %v196_v1 = vsel %vm195_vm0, %v193_v0, 0.0 }
  0x12   : > { %197 = vadd.xlane.f32.xlu0 %v196_v1 }
  0x9f   : > { %v198_v2 = vpop.xlane.xlu0 %197 }
  0xa0   : > { %v200_v3 = vmul.f32 0.03125, %v198_v2 }
  0xa2   : > { %v201_v4 = vsub.f32 %v193_v0, %v200_v3 }
  0xa4   : > { %v202_v5 = vmul.f32 %v201_v4, %v201_v4 }
  0xa6   : > { %v203_v6 = vsel %vm195_vm0, %v202_v5, 0.0 }
  0xa7   : > { %204 = vadd.xlane.f32.xlu0 %v203_v6 }
 0x134   : > { %v205_v15 = vpop.xlane.xlu0 %204 }
 0x135   : > { %v206_v16 = vmul.f32 0.03125, %v205_v15 }
 0x137   : > { %v207_v18 = vadd.f32 1e-05, %v206_v16 }
 0x139   : > { %403 = vrsqrt.f32 %v207_v18 }
 0x143   : > { %v404_v24 = vpop.eup %403 }
 0x144   : > { %v209_v25 = vmul.f32 %v404_v24, %v201_v4 }
 0x146   : > { %v214_v27 = vmul.f32 %v213_v23, %v209_v25 }
 0x148   : > { %v219_v28 = vadd.f32 %v218_v26, %v214_v27 }
 0x14a   : > { %384 = vmatmul.mubr.msk.f32.vlgmr.msra.gmra.mrb[0].mxu0 %vm195_vm0, %v219_v28 }
 0x21d   : > { %v300_v30 = vpop.f32.mrb[0].mxu0 }
 0x21e   : > { %v301_v31 = vadd.f32 %v366_v29, %v300_v30  ;;  %v385_v32 = vpop.f32.mrb[1].mxu0 }
 0x220   : > { %305 = vst.msk [vmem:[%s192_s9] sm:$0xff] %vm304_vm2, %v301_v31 }
 0x221 PF: > { %s14_s15 = sadd.s32 1, %s411_s15  }
 0x222   : > { %p11_p4 = scmp.ge.s32.totalorder %s14_s15, 4  }
 0x224   :  { %13 = sbr.rel (!%p11_p4) target bundleno = 1 (0x1), region = 66 }

// kernel: informer_forward.16
= control target key start
LH: loop header
LB: loop body
LE: loop exit
PB: predicated region body
PF: predicated region fallthrough
CT: control target
= control target key end

     0   :  { %s545_s12 = smov 0   ;;  %s580_s0 = inlined_call_operand.vmem [shape: f32[2,8,3], index: 0, kind: input, shape index: {}]   ;;  %s581_s1 = inlined_call_operand.vmem [shape: f32[9,32], index: 1, kind: input, shape index: {}]   ;;  %s582_s2 = inlined_call_operand.vmem [shape: f32[64,32], index: 2, kind: input, shape index: {}]   ;;  %s583_s3 = inlined_call_operand.vmem [shape: f32[2,8,32], index: 3, kind: output, shape index: {}]  }
   0x1 LB: > { %s469_s13 = sadd.s32 4294967295, %s521_s12   ;;  %p473_p0 = scmp.ge.s32.totalorder %s521_s12, 1  ;;  %s521_s12 = sphi %s545_s12, %s13_s12  }
   0x2   : > { %p136_p1 = scmp.lt.s32.totalorder %s521_s12, 3 }
   0x4   : > { %p137_p2 = pnand %p473_p0, %p136_p1 }
   0x5   : > { %v167_v0 = vld [vmem:[%s581_s1] sm:$0xff] (!%p137_p2)  ;;  %vm183_vm0 = vcmask (!%p137_p2), 1042432   ;;  %p158_p3 = scmp.lt.s32.totalorder (!%p137_p2), %s469_s13, 1  ;;  %v523_v1 = vmov (!%p137_p2), 0.0   ;;  %vm524_vm1 = vmmov (!%p137_p2), 0   ;;  %vm332_vm2 = vcmask (!%p137_p2), 1041408  }
   0x6   : > { %140 = sbr.rel (%p137_p2) target bundleno = 238 (0xee), region = 32  ;;  %490 = vmatprep.subr.mxu0 (!%p137_p2), %v523_v1  ;;  %v179_v2 = vrot.slane (!%p137_p2), %v167_v0, 3  ;;  %v333_v3 = vrot.slane (!%p137_p2), %v167_v0, 6  ;;  %492 = vmatprep.mubr.msk.f32.mxu0 (!%p137_p2), %vm524_vm1, %v523_v1  ;;  %v168_v4 = vld [vmem:[%s581_s1 + $0x8] sm:$0x1] (!%p137_p2)  ;;  %vm180_vm3 = vcmask (!%p137_p2), 23552  }
   0x7   : > { %495 = vmatprep.subr.mxu1 (!%p137_p2), %v523_v1  ;;  %v334_v5 = vrot.slane (!%p137_p2), %v168_v4, 6  ;;  %497 = vmatprep.mubr.msk.f32.mxu1 (!%p137_p2), %vm524_vm1, %v523_v1  ;;  %v412_v16 = vld [vmem:[%s582_s2] sm:$0xff] (!%p137_p2)  ;;  %vm414_vm4 = vcmask (!%p137_p2), 261120  }
   0x8   : > { %491 = vmatpush3.msk.msra.mxu0 (!%p137_p2), %vm183_vm0, %v179_v2  ;;  %496 = vmatpush3.msk.msra.mxu1 (!%p137_p2), %vm183_vm0, %v167_v0 }
   0x9   : > { %500 = vmatprep.subr.mxu0 (!%p137_p2), %v523_v1  ;;  %v335_v6 = vsel (!%p137_p2), %vm332_vm2, %v333_v3, %v334_v5 }
   0xd   : > { %s585_s13 = smov (!%p158_p3, %s469_s13), 1 }
   0xe   : > { %s474_s18 = sshll.u32 %s585_s13, 3 }
   0xf   : > { %s161_s21 = scalar_lea.vmem %s580_s0, %s474_s18  ;;  %s165_s26 = scalar_lea.vmem %s583_s3, %s474_s18 }
  0x10   : > { %v166_v7 = vld [vmem:[%s161_s21] sm:$0xff] }
  0x11   : > { %v170_v8 = vrot.slane %v166_v7, 7  ;;  %v174_v9 = vrot.slane %v166_v7, 1  ;;  %493 = vmatmul.mubr.msk.f32.vlgmr.msra.gmra.mrb[0].mxu0 %vm180_vm3, %v166_v7 }
  0x12   : > { %501 = vmatpush3.msk.msra.mxu0 %vm183_vm0, %v335_v6  ;;  %502 = vmatprep.mubr.msk.f32.mxu0 %vm524_vm1, %v523_v1 }
  0x13   : > { %498 = vmatmul.mubr.msk.f32.vlgmr.msra.gmra.mrb[0].mxu1 %vm180_vm3, %v170_v8 }
  0x15   : > { %503 = vmatmul.mubr.msk.f32.vlgmr.msra.gmra.mrb[2].mxu0 %vm180_vm3, %v174_v9 }
  0xe4   : > { %v252_v10 = vpop.f32.mrb[0].mxu0 }
  0xe5   : > { %v494_v11 = vpop.f32.mrb[1].mxu0 }
  0xe6   : > { %v327_v12 = vpop.f32.mrb[0].mxu1 }
  0xe7   : > { %v328_v13 = vadd.f32 %v327_v12, %v252_v10  ;;  %v499_v14 = vpop.f32.mrb[1].mxu1 }
  0xe8   : > { %v407_v15 = vpop.f32.mrb[2].mxu0 }
  0xe9   : > { %v411_v17 = vadd.f32 %v407_v15, %v328_v13  ;;  %v504_v18 = vpop.f32.mrb[3].mxu0 }
  0xeb   : > { %v413_v19 = vadd.f32 %v412_v16, %v411_v17 }
  0xed   : > { %415 = vst.msk [vmem:[%s165_s26] sm:$0xff] %vm414_vm4, %v413_v19 }
  0xee PF: > { %s13_s12 = sadd.s32 1, %s521_s12  }
  0xef   : > { %p10_p4 = scmp.ge.s32.totalorder %s13_s12, 4  }
  0xf1   :  { %12 = sbr.rel (!%p10_p4) target bundleno = 1 (0x1), region = 62 }

// kernel: informer_forward.17
= control target key start
LH: loop header
LB: loop body
LE: loop exit
PB: predicated region body
PF: predicated region fallthrough
CT: control target
= control target key end

     0   :  { %s1732_s27 = smov 0   ;;  %s1927_s0 = inlined_call_operand.vmem [shape: f32[2,8,32], index: 0, kind: input, shape index: {}]   ;;  %s1928_s1 = inlined_call_operand.vmem [shape: f32[32,96], index: 1, kind: input, shape index: {}]   ;;  %s1929_s2 = inlined_call_operand.vmem [shape: f32[1,96], index: 2, kind: input, shape index: {}]   ;;  %s1930_s3 = inlined_call_operand.vmem [shape: f32[32,32], index: 3, kind: input, shape index: {}]   ;;  %s1931_s4 = inlined_call_operand.vmem [shape: f32[32,64], index: 4, kind: input, shape index: {}]   ;;  %s1932_s5 = inlined_call_operand.vmem [shape: f32[1,64], index: 5, kind: input, shape index: {}]   ;;  %s1933_s6 = inlined_call_operand.vmem [shape: f32[64,32], index: 6, kind: input, shape index: {}]   ;;  %s1934_s7 = inlined_call_operand.vmem [shape: f32[6,32], index: 7, kind: input, shape index: {}]   ;;  %s1935_s8 = inlined_call_operand.vmem [shape: f32[2,8,32], index: 8, kind: output, shape index: {}]  }
   0x1 LB: > { %s1426_s28 = sadd.s32 4294967295, %s1668_s27   ;;  %p1430_p0 = scmp.ge.s32.totalorder %s1668_s27, 1  ;;  %s1668_s27 = sphi %s1732_s27, %s18_s27  }
   0x2   : > { %p261_p1 = scmp.lt.s32.totalorder %s1668_s27, 3 }
   0x4   : > { %p262_p2 = pnand %p1430_p0, %p261_p1 }
   0x5   : > { %v303_v0 = vld [vmem:[%s1928_s1] sm:$0xff] (!%p262_p2)  ;;  %v304_v1 = vld [vmem:[%s1928_s1 + $0x8] sm:$0xff] (!%p262_p2)  ;;  %v305_v2 = vld [vmem:[%s1928_s1 + $0x10] sm:$0xff] (!%p262_p2)  ;;  %v1670_v3 = vmov (!%p262_p2), 0.0|0.0   ;;  %vm1671_vm0 = vmmov (!%p262_p2), 0   ;;  %v1672_v6 = vmov (!%p262_p2), 0.0  }
   0x6   : > { %265 = sbr.rel (%p262_p2) target bundleno = 2550 (0x9f6), region = 52  ;;  %1585 = vmatprep.subr.bf16.mxu1 (!%p262_p2), %v1670_v3  ;;  %v1586_v4 = vpack.c.bf16 (!%p262_p2), %v304_v1, %v303_v0  ;;  %v306_v5 = vld [vmem:[%s1928_s1 + $0x18] sm:$0xff] (!%p262_p2)  ;;  %1501 = vmatprep.mubr.msk.f32.mxu1 (!%p262_p2), %vm1671_vm0, %v1672_v6  ;;  %p293_p3 = scmp.lt.s32.totalorder (!%p262_p2), %s1426_s28, 1  ;;  %vm314_vm1 = vcmask (!%p262_p2), 261120   ;;  %v1433_v9 = vld [vmem:[%s1929_s2] ss:$0 sm:$0xff] (!%p262_p2) }
   0x7   : > { %1514 = vmatprep.subr.mxu0 (!%p262_p2), %v1672_v6  ;;  %1516 = vmatprep.mubr.msk.f32.mxu0 (!%p262_p2), %vm1671_vm0, %v1672_v6  ;;  %v1589_v7 = vpack.c.bf16 (!%p262_p2), %v306_v5, %v305_v2  ;;  %s1673_s21 = smov (!%p262_p2), 96   ;;  %s1674_s22 = smov (!%p262_p2), 120   ;;  %vm392_vm2 = vcmask (!%p262_p2), 64512   ;;  %vm1063_vm3 = vcmask (!%p262_p2), 130048   ;;  %vm1065_vm4 = vcmask (!%p262_p2), 195584  }
   0x8   : > { %1587 = vmatpush3.bf16.msra.mxu1 (!%p262_p2), %v1586_v4  ;;  %s1675_s23 = smov (!%p262_p2), 88   ;;  %s1676_s24 = smov (!%p262_p2), 80   ;;  %vm1274_vm5 = vcmask (!%p262_p2), 523264  }
   0x9   : > { %1588 = vmatprep.subr.bf16.mxu1 (!%p262_p2), %v1670_v3  ;;  %s1677_s25 = smov (!%p262_p2), 112   ;;  %s1678_s26 = smov (!%p262_p2), 72  }
   0xa   : > { %s1679_s29 = smov (!%p262_p2), 104   ;;  %s1680_s30 = smov (!%p262_p2), 56  }
   0xb   : > { %s1681_s9 = smov (!%p262_p2), 64   ;;  %s1682_s10 = smov (!%p262_p2), 48  }
   0xc   : > { %1590 = vmatpush3.bf16.msra.mxu1 (!%p262_p2), %v1589_v7  ;;  %s1683_s11 = smov (!%p262_p2), 40   ;;  %v1067_v7 = vld [vmem:[%s1930_s3] sm:$0xff] (!%p262_p2)  ;;  %s1684_s17 = smov (!%p262_p2), 8  }
   0xd   : > { %s1937_s28 = smov (!%p293_p3, %s1426_s28), 1  ;;  %1504 = vmatprep.subr.mxu1 %v1672_v6 }
   0xe   : > { %s1431_s15 = sshll.u32 %s1937_s28, 3 }
   0xf   : > { %s296_s18 = scalar_lea.vmem %s1927_s0, %s1431_s15  ;;  %s300_s16 = scalar_lea.vmem %s1935_s8, %s1431_s15 }
  0x10   : > { %v1767_v8 = vld [vmem:[%s296_s18] sm:$0xff] }
  0x11   : > { %1502 = vmatmul.mubr.msk.f32.vlgmr.msra.gmra.mrb[0].mxu1 %vm314_vm1, %v1767_v8 }
  0x12   : > { %1506 = vmatprep.mubr.msk.f32.mxu1 %vm1671_vm0, %v1672_v6 }
  0xe4   : > { %v384_v10 = vpop.f32.mrb[0].mxu1 }
  0xe5   : > { %v1777_v11 = vadd.f32 %v1433_v9, %v384_v10  ;;  %v1503_v12 = vpop.f32.mrb[1].mxu1  ;;  %v1068_v9 = vld [vmem:[%s1930_s3 + $0x8] sm:$0xff] }
  0xe6   : > { %v1592_v10 = vpack.c.bf16 %v1068_v9, %v1067_v7  ;;  %v1448_v9 = vld [vmem:[%s1932_s5] ss:$0 sm:$0xff] }
  0xe7   : > { %390 = vrot.lane.b32.xlu0 %v1777_v11, %s1673_s21  ;;  %v388_v13 = vmul.f32 0.35355338, %v1777_v11 }
  0xe9   : > { %555 = vrot.lane.b32.xlu1 %v388_v13, %s1674_s22  ;;  %s1685_s22 = smov 16  }
  0xeb   : > { %557 = vrot.lane.b32.xlu0 %v1777_v11, %s1675_s23  ;;  %s1686_s23 = smov 24  }
  0xed   : > { %722 = vrot.lane.b32.xlu1 %v1777_v11, %s1676_s24 }
  0xef   : > { %720 = vrot.lane.b32.xlu0 %v388_v13, %s1677_s25 }
  0xf1   : > { %887 = vrot.lane.b32.xlu1 %v1777_v11, %s1678_s26 }
  0xf3   : > { %885 = vrot.lane.b32.xlu0 %v388_v13, %s1679_s29 }
 0x159   : > { %v391_v14 = vpop.permute.xlu0 %390 }
 0x15a   : > { %1505 = vmatpush3.xpose.msk.msra.mxu1 %vm392_vm2, %v391_v14 }
 0x15b   : > { %v556_v15 = vpop.permute.xlu1 %555  ;;  %1509 = vmatprep.subr.mxu1 %v1672_v6 }
 0x15d   : > { %v558_v16 = vpop.permute.xlu0 %557  ;;  %1507 = vmatmul.mubr.msk.f32.vlgmr.msra.gmra.mrb[2].mxu1 %vm392_vm2, %v388_v13 }
 0x15e   : > { %1515 = vmatpush3.xpose.msk.msra.mxu0 %vm392_vm2, %v558_v16  ;;  %1511 = vmatprep.mubr.msk.f32.mxu1 %vm1671_vm0, %v1672_v6  ;;  %v1070_v16 = vld [vmem:[%s1930_s3 + $0x18] sm:$0xff] }
 0x15f   : > { %v723_v17 = vpop.permute.xlu1 %722  ;;  %1524 = vmatprep.subr.mxu0 %v1672_v6 }
 0x161   : > { %1517 = vmatmul.mubr.msk.f32.vlgmr.msra.gmra.mrb[0].mxu0 %vm392_vm2, %v556_v15  ;;  %v721_v18 = vpop.permute.xlu0 %720  ;;  %v1069_v15 = vld [vmem:[%s1930_s3 + $0x10] sm:$0xff] }
 0x162   : > { %1525 = vmatpush3.xpose.msk.msra.mxu0 %vm392_vm2, %v723_v17  ;;  %1526 = vmatprep.mubr.msk.f32.mxu0 %vm1671_vm0, %v1672_v6  ;;  %v1595_v17 = vpack.c.bf16 %v1070_v16, %v1069_v15 }
 0x163   : > { %1534 = vmatprep.subr.mxu0 %v1672_v6  ;;  %v888_v19 = vpop.permute.xlu1 %887 }
 0x165   : > { %1527 = vmatmul.mubr.msk.f32.vlgmr.msra.gmra.mrb[2].mxu0 %vm392_vm2, %v721_v18  ;;  %v886_v20 = vpop.permute.xlu0 %885 }
 0x166   : > { %1535 = vmatpush3.xpose.msk.msra.mxu0 %vm392_vm2, %v888_v19  ;;  %1536 = vmatprep.mubr.msk.f32.mxu0 %vm1671_vm0, %v1672_v6 }
 0x167   : > { %1591 = vmatprep.subr.bf16.mxu0 %v1670_v3 }
 0x169   : > { %1537 = vmatmul.mubr.msk.f32.vlgmr.msra.gmra.mrb[4].mxu0 %vm392_vm2, %v886_v20 }
 0x16a   : > { %1552 = vmatprep.mubr.msk.f32.mxu0 %vm1671_vm0, %v1672_v6  ;;  %1593 = vmatpush3.bf16.msra.mxu0 %v1592_v10 }
 0x16b   : > { %1594 = vmatprep.subr.bf16.mxu0 %v1670_v3 }
 0x16e   : > { %1596 = vmatpush3.bf16.msra.mxu0 %v1595_v17 }
 0x16f   : > { %1603 = vmatprep.subr.bf16.mxu0 %v1670_v3 }
 0x230   : > { %v464_v21 = vpop.f32.mrb[2].mxu1 }
 0x231   : > { %v1508_v22 = vpop.f32.mrb[3].mxu1  ;;  %v468_v23 = vsel %vm392_vm2, %v464_v21, -inf }
 0x232   : > { %469 = vmax.xlane.f32.xlu1 %v468_v23 }
 0x234   : > { %v629_v24 = vpop.f32.mrb[0].mxu0 }
 0x235   : > { %v1518_v25 = vpop.f32.mrb[1].mxu0  ;;  %v633_v26 = vsel %vm392_vm2, %v629_v24, -inf }
 0x236   : > { %634 = vmax.xlane.f32.xlu0 %v633_v26 }
 0x238   : > { %v794_v27 = vpop.f32.mrb[2].mxu0 }
 0x239   : > { %v1528_v28 = vpop.f32.mrb[3].mxu0  ;;  %v798_v29 = vsel %vm392_vm2, %v794_v27, -inf }
 0x23a   : > { %799 = vmax.xlane.f32.xlu0 %v798_v29  ;;  %v1071_v28 = vlaneseq }
 0x23c   : > { %v959_v30 = vpop.f32.mrb[4].mxu0  ;;  %v1850_v29 = vshrl.u32 %v1071_v28, 7 }
 0x23d   : > { %v1538_v31 = vpop.f32.mrb[5].mxu0  ;;  %v963_v32 = vsel %vm392_vm2, %v959_v30, -inf }
 0x23e   : > { %964 = vmax.xlane.f32.xlu1 %v963_v32  ;;  %v1856_v31 = vld [vmem:[%s1934_s7] sm:$0x3f]  ;;  %v1272_v17 = vsub.s32 1, %v1850_v29 }
 0x24f   : > { %644 = vrot.lane.b32.xlu1 %v1777_v11, %s1680_s30 }
 0x2bf   : > { %v470_v33 = vpop.xlane.xlu1 %469 }
 0x2c0   : > { %v471_v34 = vsub.f32 %v464_v21, %v470_v33 }
 0x2c2   : > { %v472_v35 = vmul.f32 1.442695, %v471_v34 }
 0x2c3   : > { %v635_v36 = vpop.xlane.xlu0 %634 }
 0x2c4   : > { %1640 = vpow2.f32 %v472_v35  ;;  %v636_v37 = vsub.f32 %v629_v24, %v635_v36 }
 0x2c6   : > { %v637_v38 = vmul.f32 1.442695, %v636_v37 }
 0x2c7   : > { %v800_v48 = vpop.xlane.xlu0 %799 }
 0x2c8   : > { %1642 = vpow2.f32 %v637_v38  ;;  %v801_v49 = vsub.f32 %v794_v27, %v800_v48 }
 0x2ca   : > { %v802_v50 = vmul.f32 1.442695, %v801_v49 }
 0x2cb   : > { %v965_v39 = vpop.xlane.xlu1 %964 }
 0x2cc   : > { %v966_v40 = vsub.f32 %v959_v30, %v965_v39  ;;  %v1073_v30 = vsub.s32 0, %v1850_v29 }
 0x2ce   : > { %v1641_v41 = vpop.eup %1640  ;;  %v967_v42 = vmul.f32 1.442695, %v966_v40  ;;  %v1074_v32 = vrot.slane %v1856_v31, %v1073_v30 }
 0x2cf   : > { %v474_v43 = vsel %vm392_vm2, %v1641_v41, 0.0  ;;  %v645_v53 = vpop.permute.xlu1 %644 }
 0x2d0   : > { %1644 = vpow2.f32 %v967_v42  ;;  %475 = vadd.xlane.f32.xlu0 %v474_v43  ;;  %v1173_v42 = vld [vmem:[%s1931_s4] sm:$0xff]  ;;  %v1174_v43 = vld [vmem:[%s1931_s4 + $0x8] sm:$0xff] }
 0x2d1   : > { %1646 = vpow2.f32 %v802_v50  ;;  %v1165_v50 = vsub.s32 2, %v1850_v29 }
 0x2d2   : > { %v1643_v44 = vpop.eup %1642 }
 0x2d3   : > { %v639_v45 = vsel %vm392_vm2, %v1643_v44, 0.0 }
 0x2d4   : > { %640 = vadd.xlane.f32.xlu1 %v639_v45  ;;  %v1176_v45 = vld [vmem:[%s1931_s4 + $0x18] sm:$0xff] }
 0x2da   : > { %v1645_v46 = vpop.eup %1644 }
 0x2db   : > { %v969_v47 = vsel %vm392_vm2, %v1645_v46, 0.0  ;;  %v1647_v51 = vpop.eup %1646 }
 0x2dc   : > { %970 = vadd.xlane.f32.xlu1 %v969_v47  ;;  %v804_v52 = vsel %vm392_vm2, %v1647_v51, 0.0 }
 0x2e6   : > { %479 = vrot.lane.b32.xlu0 %v1777_v11, %s1681_s9 }
 0x2ed   : > { %809 = vrot.lane.b32.xlu1 %v1777_v11, %s1682_s10 }
 0x305   : > { %805 = vadd.xlane.f32.xlu0 %v804_v52  ;;  %v1166_v52 = vrot.slane %v1856_v31, %v1165_v50 }
 0x31b   : > { %974 = vrot.lane.b32.xlu0 %v1777_v11, %s1683_s11 }
 0x35d   : > { %v476_v54 = vpop.xlane.xlu0 %475 }
 0x35e   : > { %1648 = vrcp.f32 %v476_v54 }
 0x361   : > { %v480_v55 = vpop.permute.xlu0 %479  ;;  %v641_v56 = vpop.xlane.xlu1 %640 }
 0x362   : > { %1650 = vrcp.f32 %v641_v56  ;;  %1510 = vmatpush3.msra.mxu1 %v480_v55 }
 0x363   : > { %1519 = vmatprep.subr.mxu1 %v1672_v6 }
 0x368   : > { %v1649_v57 = vpop.eup %1648 }
 0x369   : > { %v478_v58 = vmul.f32 %v1649_v57, %v1641_v41  ;;  %v971_v59 = vpop.xlane.xlu1 %970 }
 0x36b   : > { %1512 = vmatmul.mubr.msk.f32.vlgmr.msra.gmra.mrb[4].mxu1 %vm392_vm2, %v478_v58  ;;  %v1262_v58 = vld [vmem:[%s1933_s6] sm:$0xff] }
 0x36c   : > { %v1651_v60 = vpop.eup %1650  ;;  %1520 = vmatpush3.msra.mxu1 %v645_v53  ;;  %1521 = vmatprep.mubr.msk.f32.mxu1 %vm1671_vm0, %v1672_v6 }
 0x36d   : > { %v643_v61 = vmul.f32 %v1651_v60, %v1643_v44  ;;  %v810_v62 = vpop.permute.xlu1 %809  ;;  %1529 = vmatprep.subr.mxu1 %v1672_v6  ;;  %v1598_v44 = vpack.c.bf16 %v1174_v43, %v1173_v42 }
 0x36f   : > { %1522 = vmatmul.mubr.msk.f32.vlgmr.msra.gmra.mrb[6].mxu1 %vm392_vm2, %v643_v61  ;;  %v1264_v61 = vld [vmem:[%s1933_s6 + $0x10] sm:$0xff] }
 0x370   : > { %1530 = vmatpush3.msra.mxu1 %v810_v62  ;;  %1531 = vmatprep.mubr.msk.f32.mxu1 %vm1671_vm0, %v1672_v6  ;;  %v1265_v62 = vld [vmem:[%s1933_s6 + $0x18] sm:$0xff] }
 0x371   : > { %1539 = vmatprep.subr.mxu1 %v1672_v6 }
 0x392   : > { %v806_v63 = vpop.xlane.xlu0 %805 }
 0x393   : > { %1652 = vrcp.f32 %v806_v63  ;;  %v1607_v63 = vpack.c.bf16 %v1265_v62, %v1264_v61 }
 0x394   : > { %1654 = vrcp.f32 %v971_v59  ;;  %v1263_v59 = vld [vmem:[%s1933_s6 + $0x8] sm:$0xff] }
 0x395   : > { %v1604_v60 = vpack.c.bf16 %v1263_v59, %v1262_v58 }
 0x396   : > { %v975_v4 = vpop.permute.xlu0 %974 }
 0x39d   : > { %v1653_v0 = vpop.eup %1652 }
 0x39e   : > { %v808_v1 = vmul.f32 %v1653_v0, %v1647_v51  ;;  %v1655_v2 = vpop.eup %1654  ;;  %v1170_v51 = vsub.s32 3, %v1850_v29  ;;  %v1266_v0 = vld [vmem:[%s1933_s6 + $0x20] sm:$0xff] }
 0x39f   : > { %v973_v5 = vmul.f32 %v1655_v2, %v1645_v46 }
 0x3a0   : > { %1532 = vmatmul.mubr.msk.f32.vlgmr.msra.gmra.mrb[8].mxu1 %vm392_vm2, %v808_v1  ;;  %v1171_v55 = vrot.slane %v1856_v31, %v1170_v51  ;;  %v1267_v1 = vld [vmem:[%s1933_s6 + $0x28] sm:$0xff] }
 0x3a1   : > { %1540 = vmatpush3.msra.mxu1 %v975_v4  ;;  %1541 = vmatprep.mubr.msk.f32.mxu1 %vm1671_vm0, %v1672_v6  ;;  %v1610_v2 = vpack.c.bf16 %v1267_v1, %v1266_v0  ;;  %v1268_v4 = vld [vmem:[%s1933_s6 + $0x30] sm:$0xff] }
 0x3a2   : > { %1597 = vmatprep.subr.bf16.mxu1 %v1670_v3 }
 0x3a4   : > { %1542 = vmatmul.mubr.msk.f32.vlgmr.msra.gmra.mrb[10].mxu1 %vm392_vm2, %v973_v5  ;;  %v1269_v5 = vld [vmem:[%s1933_s6 + $0x38] sm:$0xff] }
 0x3a5   : > { %1563 = vmatprep.mubr.msk.f32.mxu1 %vm1671_vm0, %v1672_v6  ;;  %1599 = vmatpush3.bf16.msra.mxu1 %v1598_v44  ;;  %v1613_v7 = vpack.c.bf16 %v1269_v5, %v1268_v4 }
 0x3a6   : > { %1600 = vmatprep.subr.bf16.mxu1 %v1670_v3 }
 0x43e   : > { %v551_v11 = vpop.f32.mrb[4].mxu1 }
 0x43f   : > { %v1513_v12 = vpop.f32.mrb[5].mxu1 }
 0x442   : > { %v716_v13 = vpop.f32.mrb[6].mxu1 }
 0x443   : > { %1051 = vrot.lane.b32.xlu1 %v716_v13, %s1684_s17  ;;  %v1523_v14 = vpop.f32.mrb[7].mxu1 }
 0x473   : > { %v881_v18 = vpop.f32.mrb[8].mxu1 }
 0x474   : > { %1055 = vrot.lane.b32.xlu0 %v881_v18, %s1685_s22  ;;  %v1533_v19 = vpop.f32.mrb[9].mxu1  ;;  %v1273_v18 = vrot.slane %v1856_v31, %v1272_v17 }
 0x477   : > { %v1046_v20 = vpop.f32.mrb[10].mxu1 }
 0x478   : > { %1059 = vrot.lane.b32.xlu1 %v1046_v20, %s1686_s23  ;;  %v1543_v21 = vpop.f32.mrb[11].mxu1 }
 0x4b5   : > { %v1052_v22 = vpop.permute.xlu1 %1051 }
 0x4b6   : > { %v1062_v24 = vsel %vm392_vm2, %v551_v11, %v1052_v22 }
 0x4e6   : > { %v1056_v23 = vpop.permute.xlu0 %1055 }
 0x4e7   : > { %v1064_v25 = vsel %vm1063_vm3, %v1062_v24, %v1056_v23 }
 0x4ea   : > { %v1060_v26 = vpop.permute.xlu1 %1059 }
 0x4eb   : > { %v1066_v27 = vsel %vm1065_vm4, %v1064_v25, %v1060_v26 }
 0x4ec   : > { %1553 = vmatmul.mubr.msk.f32.vlgmr.msra.gmra.mrb[6].mxu0 %vm314_vm1, %v1066_v27 }
 0x4ed   : > { %1582 = vmatprep.mubr.msk.f32.mxu0 %vm1671_vm0, %v1672_v6  ;;  %1605 = vmatpush3.bf16.msra.mxu0 %v1604_v60 }
 0x4ee   : > { %1606 = vmatprep.subr.bf16.mxu0 %v1670_v3 }
 0x4f1   : > { %1608 = vmatpush3.bf16.msra.mxu0 %v1607_v63 }
 0x4f2   : > { %1609 = vmatprep.subr.bf16.mxu0 %v1670_v3 }
 0x4f5   : > { %1611 = vmatpush3.bf16.msra.mxu0 %v1610_v2 }
 0x4f6   : > { %1612 = vmatprep.subr.bf16.mxu0 %v1670_v3 }
 0x4f9   : > { %1614 = vmatpush3.bf16.msra.mxu0 %v1613_v7 }
 0x5bf   : > { %v1144_v33 = vpop.f32.mrb[6].mxu0 }
 0x5c0   : > { %v1145_v34 = vadd.f32 %v1144_v33, %v1074_v32  ;;  %v1554_v35 = vpop.f32.mrb[7].mxu0 }
 0x5c1   : > { %v1369_v35 = vsub.s32 5, %v1850_v29 }
 0x5c2   : > { %v1148_v36 = vadd.f32 %v1145_v34, %v1767_v8  ;;  %v1175_v8 = vld [vmem:[%s1931_s4 + $0x10] sm:$0xff]  ;;  %v1364_v34 = vsub.s32 4, %v1850_v29 }
 0x5c3   : > { %v1601_v46 = vpack.c.bf16 %v1176_v45, %v1175_v8 }
 0x5c4   : > { %v1149_v37 = vsel %vm314_vm1, %v1148_v36, 0.0 }
 0x5c5   : > { %1150 = vadd.xlane.f32.xlu0 %v1149_v37  ;;  %1602 = vmatpush3.bf16.msra.mxu1 %v1601_v46 }
 0x652   : > { %v1151_v6 = vpop.xlane.xlu0 %1150 }
 0x653   : > { %v1153_v38 = vmul.f32 0.03125, %v1151_v6  ;;  %v1370_v6 = vrot.slane %v1856_v31, %v1369_v35 }
 0x655   : > { %v1154_v39 = vsub.f32 %v1148_v36, %v1153_v38  ;;  %v1365_v36 = vrot.slane %v1856_v31, %v1364_v34 }
 0x657   : > { %v1155_v40 = vmul.f32 %v1154_v39, %v1154_v39 }
 0x659   : > { %v1156_v41 = vsel %vm314_vm1, %v1155_v40, 0.0 }
 0x65a   : > { %1157 = vadd.xlane.f32.xlu1 %v1156_v41 }
 0x6e7   : > { %v1158_v47 = vpop.xlane.xlu1 %1157 }
 0x6e8   : > { %v1159_v48 = vmul.f32 0.03125, %v1158_v47 }
 0x6ea   : > { %v1160_v49 = vadd.f32 1e-05, %v1159_v48 }
 0x6ec   : > { %1656 = vrsqrt.f32 %v1160_v49 }
 0x6f6   : > { %v1657_v53 = vpop.eup %1656 }
 0x6f7   : > { %v1162_v54 = vmul.f32 %v1657_v53, %v1154_v39 }
 0x6f9   : > { %v1167_v56 = vmul.f32 %v1166_v52, %v1162_v54 }
 0x6fb   : > { %v1172_v57 = vadd.f32 %v1171_v55, %v1167_v56 }
 0x6fd   : > { %1564 = vmatmul.mubr.msk.f32.vlgmr.msra.gmra.mrb[12].mxu1 %vm314_vm1, %v1172_v57 }
 0x7d0   : > { %v1253_v10 = vpop.f32.mrb[12].mxu1 }
 0x7d1   : > { %v1254_v11 = vadd.f32 %v1448_v9, %v1253_v10  ;;  %v1565_v12 = vpop.f32.mrb[13].mxu1 }
 0x7d3   : > { %v1258_v13 = vmul.f32 0.70710677, %v1254_v11  ;;  %v1257_v14 = vmul.f32 0.5, %v1254_v11 }
 0x7d5   : > { %1658 = verf.f32 %v1258_v13 }
 0x7df   : > { %v1659_v3 = vpop.eup %1658 }
 0x7e0   : > { %v1260_v15 = vadd.f32 1.0, %v1659_v3 }
 0x7e2   : > { %v1261_v16 = vmul.f32 %v1260_v15, %v1257_v14 }
 0x7e4   : > { %1583 = vmatmul.mubr.msk.f32.vlgmr.msra.gmra.mrb[8].mxu0 %vm1274_vm5, %v1261_v16 }
 0x8b7   : > { %v1344_v19 = vpop.f32.mrb[8].mxu0 }
 0x8b8   : > { %v1345_v20 = vadd.f32 %v1344_v19, %v1273_v18  ;;  %v1584_v21 = vpop.f32.mrb[9].mxu0 }
 0x8ba   : > { %v1348_v22 = vadd.f32 %v1345_v20, %v1172_v57 }
 0x8bc   : > { %v1349_v23 = vsel %vm314_vm1, %v1348_v22, 0.0 }
 0x8bd   : > { %1350 = vadd.xlane.f32.xlu0 %v1349_v23 }
 0x94a   : > { %v1351_v24 = vpop.xlane.xlu0 %1350 }
 0x94b   : > { %v1352_v25 = vmul.f32 0.03125, %v1351_v24 }
 0x94d   : > { %v1353_v26 = vsub.f32 %v1348_v22, %v1352_v25 }
 0x94f   : > { %v1354_v27 = vmul.f32 %v1353_v26, %v1353_v26 }
 0x951   : > { %v1355_v28 = vsel %vm314_vm1, %v1354_v27, 0.0 }
 0x952   : > { %1356 = vadd.xlane.f32.xlu0 %v1355_v28 }
 0x9df   : > { %v1357_v30 = vpop.xlane.xlu0 %1356 }
 0x9e0   : > { %v1358_v32 = vmul.f32 0.03125, %v1357_v30 }
 0x9e2   : > { %v1359_v33 = vadd.f32 1e-05, %v1358_v32 }
 0x9e4   : > { %1660 = vrsqrt.f32 %v1359_v33 }
 0x9ee   : > { %v1661_v37 = vpop.eup %1660 }
 0x9ef   : > { %v1361_v38 = vmul.f32 %v1661_v37, %v1353_v26 }
 0x9f1   : > { %v1366_v39 = vmul.f32 %v1365_v36, %v1361_v38 }
 0x9f3   : > { %v1371_v40 = vadd.f32 %v1370_v6, %v1366_v39 }
 0x9f5   : > { %1372 = vst.msk [vmem:[%s300_s16] sm:$0xff] %vm314_vm1, %v1371_v40 }
 0x9f6 PF: > { %s18_s27 = sadd.s32 1, %s1668_s27  }
 0x9f7   : > { %p15_p4 = scmp.ge.s32.totalorder %s18_s27, 4  }
 0x9f9   :  { %17 = sbr.rel (!%p15_p4) target bundleno = 1 (0x1), region = 82 }

// kernel: informer_forward.20
= control target key start
LH: loop header
LB: loop body
LE: loop exit
PB: predicated region body
PF: predicated region fallthrough
CT: control target
= control target key end

     0   :  { %s548_s12 = smov 0   ;;  %s587_s0 = inlined_call_operand.vmem [shape: f32[2,4,3], index: 0, kind: input, shape index: {}]   ;;  %s588_s1 = inlined_call_operand.vmem [shape: f32[9,32], index: 1, kind: input, shape index: {}]   ;;  %s589_s2 = inlined_call_operand.vmem [shape: f32[64,32], index: 2, kind: input, shape index: {}]   ;;  %s590_s3 = inlined_call_operand.vmem [shape: f32[2,4,32], index: 3, kind: output, shape index: {}]  }
   0x1 LB: > { %s472_s13 = sadd.s32 4294967295, %s524_s12   ;;  %p476_p0 = scmp.ge.s32.totalorder %s524_s12, 1  ;;  %s524_s12 = sphi %s548_s12, %s13_s12  }
   0x2   : > { %p136_p1 = scmp.lt.s32.totalorder %s524_s12, 3 }
   0x4   : > { %p137_p2 = pnand %p476_p0, %p136_p1 }
   0x5   : > { %v167_v0 = vld [vmem:[%s588_s1] sm:$0xff] (!%p137_p2)  ;;  %vm180_vm0 = vcmask (!%p137_p2), 1042432   ;;  %p158_p3 = scmp.lt.s32.totalorder (!%p137_p2), %s472_s13, 1  ;;  %v526_v1 = vmov (!%p137_p2), 0.0   ;;  %vm527_vm1 = vmmov (!%p137_p2), 0   ;;  %vm335_vm2 = vcmask (!%p137_p2), 1041408  }
   0x6   : > { %140 = sbr.rel (%p137_p2) target bundleno = 239 (0xef), region = 32  ;;  %493 = vmatprep.subr.mxu0 (!%p137_p2), %v526_v1  ;;  %v183_v2 = vrot.slane (!%p137_p2), %v167_v0, 3  ;;  %v336_v3 = vrot.slane (!%p137_p2), %v167_v0, 6  ;;  %495 = vmatprep.mubr.msk.f32.mxu0 (!%p137_p2), %vm527_vm1, %v526_v1  ;;  %v168_v4 = vld [vmem:[%s588_s1 + $0x8] sm:$0x1] (!%p137_p2)  ;;  %vm184_vm3 = vcmask (!%p137_p2), 23552  }
   0x7   : > { %498 = vmatprep.subr.mxu1 (!%p137_p2), %v526_v1  ;;  %v337_v5 = vrot.slane (!%p137_p2), %v168_v4, 6  ;;  %500 = vmatprep.mubr.msk.f32.mxu1 (!%p137_p2), %vm527_vm1, %v526_v1  ;;  %vm174_vm4 = vcmask (!%p137_p2), 1040384   ;;  %v415_v20 = vld [vmem:[%s589_s2] sm:$0xff] (!%p137_p2)  ;;  %vm417_vm5 = vcmask (!%p137_p2), 257024  }
   0x8   : > { %494 = vmatpush3.msk.msra.mxu0 (!%p137_p2), %vm180_vm0, %v183_v2  ;;  %499 = vmatpush3.msk.msra.mxu1 (!%p137_p2), %vm180_vm0, %v167_v0 }
   0x9   : > { %503 = vmatprep.subr.mxu0 (!%p137_p2), %v526_v1  ;;  %v338_v6 = vsel (!%p137_p2), %vm335_vm2, %v336_v3, %v337_v5 }
   0xd   : > { %s592_s13 = smov (!%p158_p3, %s472_s13), 1 }
   0xe   : > { %s477_s18 = sshll.u32 %s592_s13, 2 }
   0xf   : > { %s161_s21 = scalar_lea.vmem %s587_s0, %s477_s18  ;;  %s165_s26 = scalar_lea.vmem %s590_s3, %s477_s18 }
  0x10   : > { %v166_v7 = vld [vmem:[%s161_s21] sm:$0xf] }
  0x11   : > { %496 = vmatmul.mubr.msk.f32.vlgmr.msra.gmra.mrb[0].mxu0 %vm184_vm3, %v166_v7  ;;  %v170_v8 = vrot.slane %v166_v7, 3  ;;  %v172_v9 = vrot.slane %v166_v7, 7  ;;  %v176_v10 = vrot.slane %v166_v7, 1  ;;  %v178_v11 = vrot.slane %v166_v7, 5 }
  0x12   : > { %504 = vmatpush3.msk.msra.mxu0 %vm180_vm0, %v338_v6  ;;  %505 = vmatprep.mubr.msk.f32.mxu0 %vm527_vm1, %v526_v1 }
  0x13   : > { %v175_v12 = vsel %vm174_vm4, %v170_v8, %v172_v9  ;;  %v181_v13 = vsel %vm180_vm0, %v176_v10, %v178_v11 }
  0x14   : > { %501 = vmatmul.mubr.msk.f32.vlgmr.msra.gmra.mrb[0].mxu1 %vm184_vm3, %v175_v12 }
  0x15   : > { %506 = vmatmul.mubr.msk.f32.vlgmr.msra.gmra.mrb[2].mxu0 %vm184_vm3, %v181_v13 }
  0xe4   : > { %v255_v14 = vpop.f32.mrb[0].mxu0 }
  0xe5   : > { %v497_v15 = vpop.f32.mrb[1].mxu0 }
  0xe7   : > { %v330_v16 = vpop.f32.mrb[0].mxu1 }
  0xe8   : > { %v331_v17 = vadd.f32 %v330_v16, %v255_v14  ;;  %v502_v18 = vpop.f32.mrb[1].mxu1  ;;  %v410_v19 = vpop.f32.mrb[2].mxu0 }
  0xe9   : > { %v507_v21 = vpop.f32.mrb[3].mxu0 }
  0xea   : > { %v414_v22 = vadd.f32 %v410_v19, %v331_v17 }
  0xec   : > { %v416_v23 = vadd.f32 %v415_v20, %v414_v22 }
  0xee   : > { %418 = vst.msk [vmem:[%s165_s26] sm:$0xf] %vm417_vm5, %v416_v23 }
  0xef PF: > { %s13_s12 = sadd.s32 1, %s524_s12  }
  0xf0   : > { %p10_p4 = scmp.ge.s32.totalorder %s13_s12, 4  }
  0xf2   :  { %12 = sbr.rel (!%p10_p4) target bundleno = 1 (0x1), region = 62 }

// kernel: informer_forward.22
= control target key start
LH: loop header
LB: loop body
LE: loop exit
PB: predicated region body
PF: predicated region fallthrough
CT: control target
= control target key end

     0   :  { %s341_s17 = smov 0   ;;  %s371_s0 = inlined_call_operand.vmem [shape: f32[2,4,32], index: 0, kind: input, shape index: {}]   ;;  %s372_s1 = inlined_call_operand.vmem [shape: f32[2,32], index: 1, kind: input, shape index: {}]   ;;  %s373_s2 = inlined_call_operand.vmem [shape: f32[1,32], index: 2, kind: input, shape index: {}]   ;;  %s374_s3 = inlined_call_operand.<no memory space> [shape: f32[1,1], index: 3, kind: input, shape index: {}]   ;;  %s375_s4 = inlined_call_operand.vmem [shape: f32[2,1,1], index: 4, kind: output, shape index: {}]  }
   0x1   :  { %v9_v0 = vstv %s374_s3 }
   0x2   :  { %10 = vst [vmem:[#allocation2] sm:$0x1] %v9_v0 }
   0x3 LB: > { %s285_s18 = sadd.s32 4294967295, %s311_s17   ;;  %p289_p0 = scmp.ge.s32.totalorder %s311_s17, 1  ;;  %s311_s17 = sphi %s341_s17, %s16_s17  }
   0x4   : > { %p163_p1 = scmp.lt.s32.totalorder %s311_s17, 3 }
   0x6   : > { %p164_p2 = pnand %p289_p0, %p163_p1 }
   0x7   : > { %p186_p3 = scmp.lt.s32.totalorder (!%p164_p2), %s285_s18, 1  ;;  %vm195_vm0 = vcmask (!%p164_p2), 257027   ;;  %v194_v11 = vld [vmem:[%s372_s1] sm:$0x3] (!%p164_p2)  ;;  %vm236_vm1 = vcmask (!%p164_p2), 3075  }
   0x8   : > { %167 = sbr.rel (%p164_p2) target bundleno = 480 (0x1e0), region = 36  ;;  %v211_v12 = vrot.slane (!%p164_p2), %v194_v11, 5  ;;  %v214_v15 = vrot.slane (!%p164_p2), %v194_v11, 6  ;;  %v291_v17 = vld [vmem:[%s373_s2] ss:$0 sm:$0xff] (!%p164_p2) }
   0x9   : > { %v292_v21 = vld [vmem:[#allocation2] ss:$0 sm:$0xff] (!%p164_p2) }
   0xf   : > { %s377_s18 = smov (!%p186_p3, %s285_s18), 1 }
  0x10   : > { %s290_s3 = sshll.u32 %s377_s18, 2  ;;  %s192_s28 = scalar_lea.vmem %s375_s4, %s377_s18 }
  0x11   : > { %s189_s21 = scalar_lea.vmem %s371_s0, %s290_s3 }
  0x12   : > { %v193_v1 = vld [vmem:[%s189_s21] sm:$0xf] }
  0x13   : > { %v196_v2 = vsel %vm195_vm0, %v193_v1, 0.0 }
  0x14   : > { %197 = vadd.xlane.f32.xlu0 %v196_v2 }
  0xa1   : > { %v198_v3 = vpop.xlane.xlu0 %197 }
  0xa2   : > { %v200_v4 = vmul.f32 0.03125, %v198_v3 }
  0xa4   : > { %v201_v5 = vsub.f32 %v193_v1, %v200_v4 }
  0xa6   : > { %v202_v6 = vmul.f32 %v201_v5, %v201_v5 }
  0xa8   : > { %v203_v7 = vsel %vm195_vm0, %v202_v6, 0.0 }
  0xa9   : > { %204 = vadd.xlane.f32.xlu0 %v203_v7 }
 0x136   : > { %v205_v8 = vpop.xlane.xlu0 %204 }
 0x137   : > { %v206_v9 = vmul.f32 0.03125, %v205_v8 }
 0x139   : > { %v207_v10 = vadd.f32 1e-05, %v206_v9 }
 0x13b   : > { %303 = vrsqrt.f32 %v207_v10 }
 0x145   : > { %v304_v13 = vpop.eup %303 }
 0x146   : > { %v209_v14 = vmul.f32 %v304_v13, %v201_v5 }
 0x148   : > { %v213_v16 = vmul.f32 %v211_v12, %v209_v14 }
 0x14a   : > { %v216_v18 = vadd.f32 %v214_v15, %v213_v16 }
 0x14c   : > { %v224_v19 = vmul.f32 %v291_v17, %v216_v18 }
 0x14e   : > { %v225_v20 = vsel %vm195_vm0, %v224_v19, 0.0 }
 0x14f   : > { %226 = vadd.xlane.f32.xlu1 %v225_v20 }
 0x1dc   : > { %v227_v22 = vpop.xlane.xlu1 %226 }
 0x1dd   : > { %v235_v23 = vadd.f32 %v292_v21, %v227_v22 }
 0x1df   : > { %237 = vst.msk [vmem:[%s192_s28 - $0x3] sm:$0x8] %vm236_vm1, %v235_v23 }
 0x1e0 PF: > { %s16_s17 = sadd.s32 1, %s311_s17  }
 0x1e1   : > { %p13_p4 = scmp.ge.s32.totalorder %s16_s17, 4  }
 0x1e3   :  { %15 = sbr.rel (!%p13_p4) target bundleno = 3 (0x3), region = 66 }

// kernel: informer_forward.25
= control target key start
LH: loop header
LB: loop body
LE: loop exit
PB: predicated region body
PF: predicated region fallthrough
CT: control target
= control target key end

     0   :  { %s341_s17 = smov 0   ;;  %s371_s0 = inlined_call_operand.vmem [shape: f32[2,5,32], index: 0, kind: input, shape index: {}]   ;;  %s372_s1 = inlined_call_operand.vmem [shape: f32[2,32], index: 1, kind: input, shape index: {}]   ;;  %s373_s2 = inlined_call_operand.vmem [shape: f32[1,32], index: 2, kind: input, shape index: {}]   ;;  %s374_s3 = inlined_call_operand.<no memory space> [shape: f32[1,1], index: 3, kind: input, shape index: {}]   ;;  %s375_s4 = inlined_call_operand.vmem [shape: f32[2,1,1], index: 4, kind: output, shape index: {}]  }
   0x1   :  { %v9_v0 = vstv %s374_s3 }
   0x2   :  { %10 = vst [vmem:[#allocation2] sm:$0x1] %v9_v0 }
   0x3 LB: > { %s285_s18 = sadd.s32 4294967295, %s311_s17   ;;  %p289_p0 = scmp.ge.s32.totalorder %s311_s17, 1  ;;  %s311_s17 = sphi %s341_s17, %s16_s17  }
   0x4   : > { %p163_p1 = scmp.lt.s32.totalorder %s311_s17, 3 }
   0x6   : > { %p164_p2 = pnand %p289_p0, %p163_p1 }
   0x7   : > { %p186_p3 = scmp.lt.s32.totalorder (!%p164_p2), %s285_s18, 1  ;;  %vm195_vm0 = vcmask (!%p164_p2), 258052   ;;  %v194_v11 = vld [vmem:[%s372_s1] sm:$0x3] (!%p164_p2)  ;;  %vm236_vm1 = vcmask (!%p164_p2), 4100  }
   0x8   : > { %167 = sbr.rel (%p164_p2) target bundleno = 480 (0x1e0), region = 36  ;;  %v211_v12 = vrot.slane (!%p164_p2), %v194_v11, 4  ;;  %v214_v15 = vrot.slane (!%p164_p2), %v194_v11, 5  ;;  %v291_v17 = vld [vmem:[%s373_s2] ss:$0 sm:$0xff] (!%p164_p2) }
   0x9   : > { %v292_v21 = vld [vmem:[#allocation2] ss:$0 sm:$0xff] (!%p164_p2) }
   0xf   : > { %s377_s18 = smov (!%p186_p3, %s285_s18), 1 }
  0x10   : > { %s290_s3 = sshll.u32 %s377_s18, 3  ;;  %s192_s28 = scalar_lea.vmem %s375_s4, %s377_s18 }
  0x11   : > { %s189_s21 = scalar_lea.vmem %s371_s0, %s290_s3 }
  0x12   : > { %v193_v1 = vld [vmem:[%s189_s21] sm:$0x1f] }
  0x13   : > { %v196_v2 = vsel %vm195_vm0, %v193_v1, 0.0 }
  0x14   : > { %197 = vadd.xlane.f32.xlu0 %v196_v2 }
  0xa1   : > { %v198_v3 = vpop.xlane.xlu0 %197 }
  0xa2   : > { %v200_v4 = vmul.f32 0.03125, %v198_v3 }
  0xa4   : > { %v201_v5 = vsub.f32 %v193_v1, %v200_v4 }
  0xa6   : > { %v202_v6 = vmul.f32 %v201_v5, %v201_v5 }
  0xa8   : > { %v203_v7 = vsel %vm195_vm0, %v202_v6, 0.0 }
  0xa9   : > { %204 = vadd.xlane.f32.xlu0 %v203_v7 }
 0x136   : > { %v205_v8 = vpop.xlane.xlu0 %204 }
 0x137   : > { %v206_v9 = vmul.f32 0.03125, %v205_v8 }
 0x139   : > { %v207_v10 = vadd.f32 1e-05, %v206_v9 }
 0x13b   : > { %303 = vrsqrt.f32 %v207_v10 }
 0x145   : > { %v304_v13 = vpop.eup %303 }
 0x146   : > { %v209_v14 = vmul.f32 %v304_v13, %v201_v5 }
 0x148   : > { %v213_v16 = vmul.f32 %v211_v12, %v209_v14 }
 0x14a   : > { %v216_v18 = vadd.f32 %v214_v15, %v213_v16 }
 0x14c   : > { %v224_v19 = vmul.f32 %v291_v17, %v216_v18 }
 0x14e   : > { %v225_v20 = vsel %vm195_vm0, %v224_v19, 0.0 }
 0x14f   : > { %226 = vadd.xlane.f32.xlu1 %v225_v20 }
 0x1dc   : > { %v227_v22 = vpop.xlane.xlu1 %226 }
 0x1dd   : > { %v235_v23 = vadd.f32 %v292_v21, %v227_v22 }
 0x1df   : > { %237 = vst.msk [vmem:[%s192_s28 - $0x4] sm:$0x10] %vm236_vm1, %v235_v23 }
 0x1e0 PF: > { %s16_s17 = sadd.s32 1, %s311_s17  }
 0x1e1   : > { %p13_p4 = scmp.ge.s32.totalorder %s16_s17, 4  }
 0x1e3   :  { %15 = sbr.rel (!%p13_p4) target bundleno = 3 (0x3), region = 66 }

// kernel: informer_forward.23
= control target key start
LH: loop header
LB: loop body
LE: loop exit
PB: predicated region body
PF: predicated region fallthrough
CT: control target
= control target key end

     0   :  { %s547_s12 = smov 0   ;;  %s585_s0 = inlined_call_operand.vmem [shape: f32[2,5,3], index: 0, kind: input, shape index: {}]   ;;  %s586_s1 = inlined_call_operand.vmem [shape: f32[9,32], index: 1, kind: input, shape index: {}]   ;;  %s587_s2 = inlined_call_operand.vmem [shape: f32[64,32], index: 2, kind: input, shape index: {}]   ;;  %s588_s3 = inlined_call_operand.vmem [shape: f32[2,5,32], index: 3, kind: output, shape index: {}]  }
   0x1 LB: > { %s471_s13 = sadd.s32 4294967295, %s523_s12   ;;  %p475_p0 = scmp.ge.s32.totalorder %s523_s12, 1  ;;  %s523_s12 = sphi %s547_s12, %s13_s12  }
   0x2   : > { %p136_p1 = scmp.lt.s32.totalorder %s523_s12, 3 }
   0x4   : > { %p137_p2 = pnand %p475_p0, %p136_p1 }
   0x5   : > { %v167_v0 = vld [vmem:[%s586_s1] sm:$0xff] (!%p137_p2)  ;;  %vm185_vm0 = vcmask (!%p137_p2), 1042432   ;;  %p158_p3 = scmp.lt.s32.totalorder (!%p137_p2), %s471_s13, 1  ;;  %v525_v1 = vmov (!%p137_p2), 0.0   ;;  %vm526_vm1 = vmmov (!%p137_p2), 0   ;;  %vm334_vm2 = vcmask (!%p137_p2), 1041408  }
   0x6   : > { %140 = sbr.rel (%p137_p2) target bundleno = 239 (0xef), region = 32  ;;  %492 = vmatprep.subr.mxu0 (!%p137_p2), %v525_v1  ;;  %v181_v2 = vrot.slane (!%p137_p2), %v167_v0, 3  ;;  %v335_v3 = vrot.slane (!%p137_p2), %v167_v0, 6  ;;  %494 = vmatprep.mubr.msk.f32.mxu0 (!%p137_p2), %vm526_vm1, %v525_v1  ;;  %v168_v4 = vld [vmem:[%s586_s1 + $0x8] sm:$0x1] (!%p137_p2)  ;;  %vm182_vm3 = vcmask (!%p137_p2), 23552  }
   0x7   : > { %497 = vmatprep.subr.mxu1 (!%p137_p2), %v525_v1  ;;  %v336_v5 = vrot.slane (!%p137_p2), %v168_v4, 6  ;;  %499 = vmatprep.mubr.msk.f32.mxu1 (!%p137_p2), %vm526_vm1, %v525_v1  ;;  %vm174_vm4 = vcmask (!%p137_p2), 1040384   ;;  %vm178_vm5 = vcmask (!%p137_p2), 1043456   ;;  %v414_v19 = vld [vmem:[%s587_s2] sm:$0xff] (!%p137_p2)  ;;  %vm416_vm6 = vcmask (!%p137_p2), 258048  }
   0x8   : > { %493 = vmatpush3.msk.msra.mxu0 (!%p137_p2), %vm185_vm0, %v181_v2  ;;  %498 = vmatpush3.msk.msra.mxu1 (!%p137_p2), %vm185_vm0, %v167_v0 }
   0x9   : > { %502 = vmatprep.subr.mxu0 (!%p137_p2), %v525_v1  ;;  %v337_v6 = vsel (!%p137_p2), %vm334_vm2, %v335_v3, %v336_v5 }
   0xd   : > { %s590_s13 = smov (!%p158_p3, %s471_s13), 1 }
   0xe   : > { %s476_s18 = sshll.u32 %s590_s13, 3 }
   0xf   : > { %s161_s21 = scalar_lea.vmem %s585_s0, %s476_s18  ;;  %s165_s26 = scalar_lea.vmem %s588_s3, %s476_s18 }
  0x10   : > { %v166_v7 = vld [vmem:[%s161_s21] sm:$0x1f] }
  0x11   : > { %v170_v8 = vrot.slane %v166_v7, 4  ;;  %v172_v9 = vrot.slane %v166_v7, 7  ;;  %v176_v10 = vrot.slane %v166_v7, 1  ;;  %495 = vmatmul.mubr.msk.f32.vlgmr.msra.gmra.mrb[0].mxu0 %vm182_vm3, %v166_v7 }
  0x12   : > { %503 = vmatpush3.msk.msra.mxu0 %vm185_vm0, %v337_v6  ;;  %504 = vmatprep.mubr.msk.f32.mxu0 %vm526_vm1, %v525_v1 }
  0x13   : > { %v175_v11 = vsel %vm174_vm4, %v170_v8, %v172_v9  ;;  %v179_v12 = vsel %vm178_vm5, %v176_v10, %v170_v8 }
  0x14   : > { %500 = vmatmul.mubr.msk.f32.vlgmr.msra.gmra.mrb[0].mxu1 %vm182_vm3, %v175_v11 }
  0x15   : > { %505 = vmatmul.mubr.msk.f32.vlgmr.msra.gmra.mrb[2].mxu0 %vm182_vm3, %v179_v12 }
  0xe4   : > { %v254_v13 = vpop.f32.mrb[0].mxu0 }
  0xe5   : > { %v496_v14 = vpop.f32.mrb[1].mxu0 }
  0xe7   : > { %v329_v15 = vpop.f32.mrb[0].mxu1 }
  0xe8   : > { %v330_v16 = vadd.f32 %v329_v15, %v254_v13  ;;  %v501_v17 = vpop.f32.mrb[1].mxu1  ;;  %v409_v18 = vpop.f32.mrb[2].mxu0 }
  0xe9   : > { %v506_v20 = vpop.f32.mrb[3].mxu0 }
  0xea   : > { %v413_v21 = vadd.f32 %v409_v18, %v330_v16 }
  0xec   : > { %v415_v22 = vadd.f32 %v414_v19, %v413_v21 }
  0xee   : > { %417 = vst.msk [vmem:[%s165_s26] sm:$0x1f] %vm416_vm6, %v415_v22 }
  0xef PF: > { %s13_s12 = sadd.s32 1, %s523_s12  }
  0xf0   : > { %p10_p4 = scmp.ge.s32.totalorder %s13_s12, 4  }
  0xf2   :  { %12 = sbr.rel (!%p10_p4) target bundleno = 1 (0x1), region = 62 }

// kernel: informer_forward.21
= control target key start
LH: loop header
LB: loop body
LE: loop exit
PB: predicated region body
PF: predicated region fallthrough
CT: control target
= control target key end

     0   :  { %s2929_s17 = smov 0   ;;  %s3293_s0 = inlined_call_operand.vmem [shape: f32[2,4,32], index: 0, kind: input, shape index: {}]   ;;  %s3294_s1 = inlined_call_operand.vmem [shape: f32[2,8,64], index: 1, kind: input, shape index: {}]   ;;  %s3295_s2 = inlined_call_operand.vmem [shape: f32[32,96], index: 2, kind: input, shape index: {}]   ;;  %s3296_s3 = inlined_call_operand.vmem [shape: f32[1,96], index: 3, kind: input, shape index: {}]   ;;  %s3297_s4 = inlined_call_operand.vmem [shape: f32[32,32], index: 4, kind: input, shape index: {}]   ;;  %s3298_s5 = inlined_call_operand.vmem [shape: f32[32,32], index: 5, kind: input, shape index: {}]   ;;  %s3299_s6 = inlined_call_operand.vmem [shape: f32[32,32], index: 6, kind: input, shape index: {}]   ;;  %s3300_s7 = inlined_call_operand.vmem [shape: f32[32,64], index: 7, kind: input, shape index: {}]   ;;  %s3301_s8 = inlined_call_operand.vmem [shape: f32[1,64], index: 8, kind: input, shape index: {}]   ;;  %s3302_s9 = inlined_call_operand.vmem [shape: f32[64,32], index: 9, kind: input, shape index: {}]   ;;  %s3303_s10 = inlined_call_operand.vmem [shape: f32[10,32], index: 10, kind: input, shape index: {}]   ;;  %s3304_s11 = inlined_call_operand.vmem [shape: f32[2,4,32], index: 11, kind: output, shape index: {}]  }
   0x1 LB: > { %s2471_s18 = sadd.s32 4294967295, %s2850_s17   ;;  %p2475_p0 = scmp.ge.s32.totalorder %s2850_s17, 1  ;;  %s2850_s17 = sphi %s2929_s17, %s21_s17  }
   0x2   : > { %p345_p1 = scmp.lt.s32.totalorder %s2850_s17, 3 }
   0x4   : > { %p346_p2 = pnand %p2475_p0, %p345_p1 }
   0x5   : > { %v403_v0 = vld [vmem:[%s3295_s2] sm:$0xff] (!%p346_p2)  ;;  %v404_v1 = vld [vmem:[%s3295_s2 + $0x8] sm:$0xff] (!%p346_p2)  ;;  %v405_v2 = vld [vmem:[%s3295_s2 + $0x10] sm:$0xff] (!%p346_p2)  ;;  %v2852_v3 = vmov (!%p346_p2), 0.0|0.0   ;;  %vm2853_vm0 = vmmov (!%p346_p2), 0   ;;  %v2854_v6 = vmov (!%p346_p2), 0.0  }
   0x6   : > { %349 = sbr.rel (%p346_p2) target bundleno = 4288 (0x10c0), region = 64  ;;  %2737 = vmatprep.subr.bf16.mxu1 (!%p346_p2), %v2852_v3  ;;  %v2738_v4 = vpack.c.bf16 (!%p346_p2), %v404_v1, %v403_v0  ;;  %v406_v5 = vld [vmem:[%s3295_s2 + $0x18] sm:$0xff] (!%p346_p2)  ;;  %2591 = vmatprep.mubr.msk.f32.mxu1 (!%p346_p2), %vm2853_vm0, %v2854_v6  ;;  %p387_p3 = scmp.lt.s32.totalorder (!%p346_p2), %s2471_s18, 1  ;;  %vm414_vm1 = vcmask (!%p346_p2), 261120   ;;  %v2479_v9 = vld [vmem:[%s3296_s3] ss:$0 sm:$0xff] (!%p346_p2) }
   0x7   : > { %2604 = vmatprep.subr.mxu0 (!%p346_p2), %v2854_v6  ;;  %2606 = vmatprep.mubr.msk.f32.mxu0 (!%p346_p2), %vm2853_vm0, %v2854_v6  ;;  %v2741_v7 = vpack.c.bf16 (!%p346_p2), %v406_v5, %v405_v2  ;;  %s2855_s14 = smov (!%p346_p2), 96   ;;  %s2856_s15 = smov (!%p346_p2), 120   ;;  %vm492_vm2 = vcmask (!%p346_p2), 64512   ;;  %vm568_vm3 = vcmask (!%p346_p2), 27648   ;;  %vm586_vm4 = vcmask (!%p346_p2), 1043456  }
   0x8   : > { %2739 = vmatpush3.bf16.msra.mxu1 (!%p346_p2), %v2738_v4  ;;  %s2857_s16 = smov (!%p346_p2), 88   ;;  %s2858_s19 = smov (!%p346_p2), 80   ;;  %vm582_vm5 = vcmask (!%p346_p2), 31744   ;;  %vm1171_vm6 = vcmask (!%p346_p2), 130048   ;;  %vm1173_vm7 = vcmask (!%p346_p2), 195584   ;;  %vm1232_vm8 = vcmask (!%p346_p2), 1040384  }
   0x9   : > { %2740 = vmatprep.subr.bf16.mxu1 (!%p346_p2), %v2852_v3  ;;  %s2859_s20 = smov (!%p346_p2), 112   ;;  %s3306_s21 = smov (!%p346_p2), 72   ;;  %vm1234_vm9 = vcmask (!%p346_p2), 1041408   ;;  %vm1236_vm10 = vcmask (!%p346_p2), 1042432   ;;  %vm1320_vm11 = vcmask (!%p346_p2), 257024   ;;  %vm1503_vm12 = vcmask (!%p346_p2), 60416  }
   0xa   : > { %s2861_s22 = smov (!%p346_p2), 104   ;;  %s2862_s23 = smov (!%p346_p2), 56   ;;  %vm2307_vm13 = vcmask (!%p346_p2), 523264  }
   0xb   : > { %s2863_s24 = smov (!%p346_p2), 64   ;;  %s2864_s25 = smov (!%p346_p2), 48  }
   0xc   : > { %2742 = vmatpush3.bf16.msra.mxu1 (!%p346_p2), %v2741_v7  ;;  %s2865_s26 = smov (!%p346_p2), 40   ;;  %s2866_s28 = smov (!%p346_p2), 8  }
   0xd   : > { %s3310_s18 = smov (!%p387_p3, %s2471_s18), 1  ;;  %2594 = vmatprep.subr.mxu1 %v2854_v6  ;;  %s2867_s29 = smov 16  }
   0xe   : > { %s3305_s27 = sshll.u32 %s3310_s18, 2 }
   0xf   : > { %s390_s30 = scalar_lea.vmem %s3293_s0, %s3305_s27  ;;  %s2477_s27 = sshll.u32 %s3310_s18, 3 }
  0x10   : > { %v2964_v8 = vld [vmem:[%s390_s30] sm:$0xf]  ;;  %s2868_s30 = smov 24   ;;  %s394_s13 = scalar_lea.vmem %s3294_s1, %s2477_s27 }
  0x11   : > { %2592 = vmatmul.mubr.msk.f32.vlgmr.msra.gmra.mrb[0].mxu1 %vm414_vm1, %v2964_v8 }
  0x12   : > { %2596 = vmatprep.mubr.msk.f32.mxu1 %vm2853_vm0, %v2854_v6 }
  0xe4   : > { %v484_v10 = vpop.f32.mrb[0].mxu1 }
  0xe5   : > { %v2974_v11 = vadd.f32 %v2479_v9, %v484_v10  ;;  %v2593_v12 = vpop.f32.mrb[1].mxu1 }
  0xe7   : > { %490 = vrot.lane.b32.xlu0 %v2974_v11, %s2855_s14  ;;  %v488_v13 = vmul.f32 0.35355338, %v2974_v11 }
  0xe9   : > { %659 = vrot.lane.b32.xlu1 %v488_v13, %s2856_s15 }
  0xeb   : > { %661 = vrot.lane.b32.xlu0 %v2974_v11, %s2857_s16 }
  0xed   : > { %827 = vrot.lane.b32.xlu1 %v2974_v11, %s2858_s19 }
  0xef   : > { %825 = vrot.lane.b32.xlu0 %v488_v13, %s2859_s20 }
  0xf1   : > { %993 = vrot.lane.b32.xlu1 %v2974_v11, %s3306_s21 }
  0xf3   : > { %991 = vrot.lane.b32.xlu0 %v488_v13, %s2861_s22 }
 0x159   : > { %v491_v14 = vpop.permute.xlu0 %490 }
 0x15a   : > { %2595 = vmatpush3.xpose.msk.msra.mxu1 %vm492_vm2, %v491_v14 }
 0x15b   : > { %v660_v15 = vpop.permute.xlu1 %659  ;;  %2599 = vmatprep.subr.mxu1 %v2854_v6 }
 0x15d   : > { %v662_v16 = vpop.permute.xlu0 %661  ;;  %2597 = vmatmul.mubr.msk.f32.vlgmr.msra.gmra.mrb[2].mxu1 %vm492_vm2, %v488_v13 }
 0x15e   : > { %2605 = vmatpush3.xpose.msk.msra.mxu0 %vm492_vm2, %v662_v16  ;;  %2601 = vmatprep.mubr.msk.f32.mxu1 %vm2853_vm0, %v2854_v6 }
 0x15f   : > { %v828_v17 = vpop.permute.xlu1 %827  ;;  %2614 = vmatprep.subr.mxu0 %v2854_v6 }
 0x161   : > { %2607 = vmatmul.mubr.msk.f32.vlgmr.msra.gmra.mrb[0].mxu0 %vm492_vm2, %v660_v15  ;;  %v826_v18 = vpop.permute.xlu0 %825 }
 0x162   : > { %2615 = vmatpush3.xpose.msk.msra.mxu0 %vm492_vm2, %v828_v17  ;;  %2616 = vmatprep.mubr.msk.f32.mxu0 %vm2853_vm0, %v2854_v6  ;;  %v1238_v17 = vld [vmem:[%s3297_s4] sm:$0xff] }
 0x163   : > { %2624 = vmatprep.subr.mxu0 %v2854_v6  ;;  %v994_v19 = vpop.permute.xlu1 %993 }
 0x165   : > { %2617 = vmatmul.mubr.msk.f32.vlgmr.msra.gmra.mrb[2].mxu0 %vm492_vm2, %v826_v18  ;;  %v992_v20 = vpop.permute.xlu0 %991  ;;  %v1239_v18 = vld [vmem:[%s3297_s4 + $0x8] sm:$0xff] }
 0x166   : > { %2625 = vmatpush3.xpose.msk.msra.mxu0 %vm492_vm2, %v994_v19  ;;  %2626 = vmatprep.mubr.msk.f32.mxu0 %vm2853_vm0, %v2854_v6  ;;  %v2744_v19 = vpack.c.bf16 %v1239_v18, %v1238_v17 }
 0x167   : > { %2743 = vmatprep.subr.bf16.mxu0 %v2852_v3 }
 0x169   : > { %2627 = vmatmul.mubr.msk.f32.vlgmr.msra.gmra.mrb[4].mxu0 %vm492_vm2, %v992_v20 }
 0x16a   : > { %2642 = vmatprep.mubr.msk.f32.mxu0 %vm2853_vm0, %v2854_v6  ;;  %2745 = vmatpush3.bf16.msra.mxu0 %v2744_v19  ;;  %v1345_v19 = vld [vmem:[%s3298_s5] sm:$0xff] }
 0x16b   : > { %2746 = vmatprep.subr.bf16.mxu0 %v2852_v3 }
 0x230   : > { %v564_v21 = vpop.f32.mrb[2].mxu1 }
 0x231   : > { %v2598_v22 = vpop.f32.mrb[3].mxu1  ;;  %v569_v23 = vsel %vm568_vm3, %v564_v21, -inf }
 0x232   : > { %570 = vmax.xlane.f32.xlu1 %v569_v23 }
 0x234   : > { %v733_v24 = vpop.f32.mrb[0].mxu0 }
 0x235   : > { %v2608_v25 = vpop.f32.mrb[1].mxu0  ;;  %v737_v26 = vsel %vm568_vm3, %v733_v24, -inf }
 0x236   : > { %738 = vmax.xlane.f32.xlu0 %v737_v26  ;;  %v1241_v25 = vld [vmem:[%s3297_s4 + $0x18] sm:$0xff] }
 0x238   : > { %v899_v27 = vpop.f32.mrb[2].mxu0 }
 0x239   : > { %v2618_v28 = vpop.f32.mrb[3].mxu0  ;;  %v903_v29 = vsel %vm568_vm3, %v899_v27, -inf }
 0x23a   : > { %904 = vmax.xlane.f32.xlu0 %v903_v29 }
 0x23c   : > { %v1065_v30 = vpop.f32.mrb[4].mxu0 }
 0x23d   : > { %v2628_v31 = vpop.f32.mrb[5].mxu0  ;;  %v1069_v32 = vsel %vm568_vm3, %v1065_v30, -inf }
 0x23e   : > { %1070 = vmax.xlane.f32.xlu1 %v1069_v32 }
 0x24f   : > { %748 = vrot.lane.b32.xlu1 %v2974_v11, %s2862_s23 }
 0x2bf   : > { %v571_v33 = vpop.xlane.xlu1 %570 }
 0x2c0   : > { %v572_v34 = vsub.f32 %v564_v21, %v571_v33 }
 0x2c2   : > { %v573_v35 = vmul.f32 1.442695, %v572_v34 }
 0x2c3   : > { %v739_v36 = vpop.xlane.xlu0 %738 }
 0x2c4   : > { %2804 = vpow2.f32 %v573_v35  ;;  %v740_v37 = vsub.f32 %v733_v24, %v739_v36  ;;  %v1240_v24 = vld [vmem:[%s3297_s4 + $0x10] sm:$0xff] }
 0x2c5   : > { %v2747_v26 = vpack.c.bf16 %v1241_v25, %v1240_v24 }
 0x2c6   : > { %v741_v38 = vmul.f32 1.442695, %v740_v37 }
 0x2c7   : > { %v905_v48 = vpop.xlane.xlu0 %904  ;;  %2748 = vmatpush3.bf16.msra.mxu0 %v2747_v26 }
 0x2c8   : > { %2806 = vpow2.f32 %v741_v38  ;;  %v906_v49 = vsub.f32 %v899_v27, %v905_v48  ;;  %2656 = vmatprep.subr.mxu0 %v2854_v6 }
 0x2ca   : > { %v907_v50 = vmul.f32 1.442695, %v906_v49 }
 0x2cb   : > { %v1071_v39 = vpop.xlane.xlu1 %1070 }
 0x2cc   : > { %v1072_v40 = vsub.f32 %v1065_v30, %v1071_v39 }
 0x2ce   : > { %v2805_v41 = vpop.eup %2804  ;;  %v1073_v42 = vmul.f32 1.442695, %v1072_v40 }
 0x2cf   : > { %v575_v43 = vsel %vm568_vm3, %v2805_v41, 0.0  ;;  %v749_v53 = vpop.permute.xlu1 %748 }
 0x2d0   : > { %2808 = vpow2.f32 %v1073_v42  ;;  %576 = vadd.xlane.f32.xlu0 %v575_v43 }
 0x2d1   : > { %2810 = vpow2.f32 %v907_v50 }
 0x2d2   : > { %v2807_v44 = vpop.eup %2806 }
 0x2d3   : > { %v743_v45 = vsel %vm568_vm3, %v2807_v44, 0.0 }
 0x2d4   : > { %744 = vadd.xlane.f32.xlu1 %v743_v45 }
 0x2da   : > { %v2809_v46 = vpop.eup %2808 }
 0x2db   : > { %v1075_v47 = vsel %vm568_vm3, %v2809_v46, 0.0  ;;  %v2811_v51 = vpop.eup %2810 }
 0x2dc   : > { %1076 = vadd.xlane.f32.xlu1 %v1075_v47  ;;  %v909_v52 = vsel %vm568_vm3, %v2811_v51, 0.0 }
 0x2e6   : > { %580 = vrot.lane.b32.xlu0 %v2974_v11, %s2863_s24 }
 0x2ed   : > { %914 = vrot.lane.b32.xlu1 %v2974_v11, %s2864_s25 }
 0x305   : > { %910 = vadd.xlane.f32.xlu0 %v909_v52 }
 0x31b   : > { %1080 = vrot.lane.b32.xlu0 %v2974_v11, %s2865_s26 }
 0x35d   : > { %v577_v54 = vpop.xlane.xlu0 %576 }
 0x35e   : > { %2812 = vrcp.f32 %v577_v54 }
 0x361   : > { %v581_v55 = vpop.permute.xlu0 %580  ;;  %v745_v56 = vpop.xlane.xlu1 %744 }
 0x362   : > { %2814 = vrcp.f32 %v745_v56  ;;  %2600 = vmatpush3.msk.msra.mxu1 %vm586_vm4, %v581_v55 }
 0x363   : > { %2609 = vmatprep.subr.mxu1 %v2854_v6 }
 0x368   : > { %v2813_v57 = vpop.eup %2812 }
 0x369   : > { %v579_v58 = vmul.f32 %v2813_v57, %v2805_v41  ;;  %v1077_v59 = vpop.xlane.xlu1 %1076 }
 0x36b   : > { %2602 = vmatmul.mubr.msk.f32.vlgmr.msra.gmra.mrb[4].mxu1 %vm582_vm5, %v579_v58 }
 0x36c   : > { %v2815_v60 = vpop.eup %2814  ;;  %2610 = vmatpush3.msk.msra.mxu1 %vm586_vm4, %v749_v53  ;;  %2611 = vmatprep.mubr.msk.f32.mxu1 %vm2853_vm0, %v2854_v6 }
 0x36d   : > { %v747_v61 = vmul.f32 %v2815_v60, %v2807_v44  ;;  %v915_v62 = vpop.permute.xlu1 %914  ;;  %2619 = vmatprep.subr.mxu1 %v2854_v6 }
 0x36f   : > { %2612 = vmatmul.mubr.msk.f32.vlgmr.msra.gmra.mrb[6].mxu1 %vm582_vm5, %v747_v61 }
 0x370   : > { %2620 = vmatpush3.msk.msra.mxu1 %vm586_vm4, %v915_v62  ;;  %2621 = vmatprep.mubr.msk.f32.mxu1 %vm2853_vm0, %v2854_v6  ;;  %v3088_v62 = vld [vmem:[%s394_s13] sm:$0xff] }
 0x371   : > { %2629 = vmatprep.subr.mxu1 %v2854_v6 }
 0x392   : > { %v911_v63 = vpop.xlane.xlu0 %910 }
 0x393   : > { %2816 = vrcp.f32 %v911_v63 }
 0x394   : > { %2818 = vrcp.f32 %v1077_v59 }
 0x396   : > { %v1081_v4 = vpop.permute.xlu0 %1080 }
 0x39d   : > { %v2817_v0 = vpop.eup %2816 }
 0x39e   : > { %v913_v1 = vmul.f32 %v2817_v0, %v2811_v51  ;;  %v2819_v2 = vpop.eup %2818 }
 0x39f   : > { %v1079_v5 = vmul.f32 %v2819_v2, %v2809_v46 }
 0x3a0   : > { %2622 = vmatmul.mubr.msk.f32.vlgmr.msra.gmra.mrb[8].mxu1 %vm582_vm5, %v913_v1  ;;  %v1242_v1 = vlaneseq }
 0x3a1   : > { %2630 = vmatpush3.msk.msra.mxu1 %vm586_vm4, %v1081_v4  ;;  %2631 = vmatprep.mubr.msk.f32.mxu1 %vm2853_vm0, %v2854_v6 }
 0x3a2   : > { %2749 = vmatprep.subr.bf16.mxu1 %v2852_v3  ;;  %v3096_v2 = vshrl.u32 %v1242_v1, 7 }
 0x3a4   : > { %2632 = vmatmul.mubr.msk.f32.vlgmr.msra.gmra.mrb[10].mxu1 %vm582_vm5, %v1079_v5  ;;  %v1244_v4 = vsub.s32 0, %v3096_v2  ;;  %v3102_v5 = vld [vmem:[%s3303_s10] sm:$0xff] }
 0x3a5   : > { %2653 = vmatprep.mubr.msk.f32.mxu1 %vm2853_vm0, %v2854_v6 }
 0x43e   : > { %v3040_v7 = vpop.f32.mrb[4].mxu1 }
 0x43f   : > { %v2603_v9 = vpop.f32.mrb[5].mxu1  ;;  %v1158_v10 = vrot.slane %v3040_v7, 1  ;;  %v1162_v13 = vrot.slane %v3040_v7, 2  ;;  %v1166_v33 = vrot.slane %v3040_v7, 3 }
 0x441   : > { %1159 = vrot.lane.b32.xlu0 %v1158_v10, %s2866_s28 }
 0x442   : > { %v821_v11 = vpop.f32.mrb[6].mxu1 }
 0x443   : > { %v2613_v12 = vpop.f32.mrb[7].mxu1  ;;  %v1176_v14 = vrot.slane %v821_v11, 1  ;;  %v1180_v15 = vrot.slane %v821_v11, 2  ;;  %v1184_v16 = vrot.slane %v821_v11, 3 }
 0x445   : > { %1163 = vrot.lane.b32.xlu0 %v1162_v13, %s2867_s29  ;;  %1177 = vrot.lane.b32.xlu1 %v1176_v14, %s2866_s28 }
 0x449   : > { %1181 = vrot.lane.b32.xlu0 %v1180_v15, %s2867_s29  ;;  %1185 = vrot.lane.b32.xlu1 %v1184_v16, %s2868_s30 }
 0x473   : > { %v987_v20 = vpop.f32.mrb[8].mxu1 }
 0x474   : > { %v2623_v21 = vpop.f32.mrb[9].mxu1  ;;  %v1196_v22 = vrot.slane %v987_v20, 2  ;;  %v1192_v23 = vrot.slane %v987_v20, 1  ;;  %v1200_v29 = vrot.slane %v987_v20, 3 }
 0x475   : > { %v1347_v21 = vld [vmem:[%s3298_s5 + $0x10] sm:$0xff] }
 0x476   : > { %1197 = vrot.lane.b32.xlu0 %v1196_v22, %s2867_s29  ;;  %1193 = vrot.lane.b32.xlu1 %v1192_v23, %s2866_s28  ;;  %v1348_v22 = vld [vmem:[%s3298_s5 + $0x18] sm:$0xff] }
 0x477   : > { %v1153_v27 = vpop.f32.mrb[10].mxu1  ;;  %v2753_v23 = vpack.c.bf16 %v1348_v22, %v1347_v21 }
 0x478   : > { %v2633_v28 = vpop.f32.mrb[11].mxu1  ;;  %v1212_v30 = vrot.slane %v1153_v27, 2  ;;  %v1216_v31 = vrot.slane %v1153_v27, 3  ;;  %v1208_v32 = vrot.slane %v1153_v27, 1 }
 0x479   : > { %v1342_v28 = vsub.s32 5, %v3096_v2 }
 0x47a   : > { %1201 = vrot.lane.b32.xlu1 %v1200_v29, %s2868_s30  ;;  %1213 = vrot.lane.b32.xlu0 %v1212_v30, %s2867_s29 }
 0x47e   : > { %1217 = vrot.lane.b32.xlu0 %v1216_v31, %s2868_s30  ;;  %1209 = vrot.lane.b32.xlu1 %v1208_v32, %s2866_s28  ;;  %v1343_v32 = vrot.slane %v3102_v5, %v1342_v28 }
 0x482   : > { %1167 = vrot.lane.b32.xlu1 %v1166_v33, %s2868_s30 }
 0x4b3   : > { %v1160_v34 = vpop.permute.xlu0 %1159 }
 0x4b4   : > { %v1170_v53 = vsel %vm492_vm2, %v3040_v7, %v1160_v34  ;;  %v1245_v7 = vrot.slane %v3102_v5, %v1244_v4 }
 0x4b7   : > { %v1164_v35 = vpop.permute.xlu0 %1163  ;;  %v1178_v36 = vpop.permute.xlu1 %1177 }
 0x4b8   : > { %v1188_v43 = vsel %vm492_vm2, %v821_v11, %v1178_v36  ;;  %v1172_v55 = vsel %vm1171_vm6, %v1170_v53, %v1164_v35  ;;  %v1351_v35 = vsub.s32 1, %v3096_v2 }
 0x4ba   : > { %v1352_v36 = vrot.slane %v3102_v5, %v1351_v35 }
 0x4bb   : > { %v1182_v37 = vpop.permute.xlu0 %1181  ;;  %v1186_v38 = vpop.permute.xlu1 %1185 }
 0x4bc   : > { %v1189_v44 = vsel %vm1171_vm6, %v1188_v43, %v1182_v37 }
 0x4bd   : > { %v1190_v47 = vsel %vm1173_vm7, %v1189_v44, %v1186_v38 }
 0x4be   : > { %v1224_v56 = vrot.slane %v1190_v47, 7 }
 0x4e8   : > { %v1198_v39 = vpop.permute.xlu0 %1197  ;;  %v1194_v40 = vpop.permute.xlu1 %1193 }
 0x4e9   : > { %v1204_v45 = vsel %vm492_vm2, %v987_v20, %v1194_v40 }
 0x4ea   : > { %v1205_v48 = vsel %vm1171_vm6, %v1204_v45, %v1198_v39 }
 0x4ec   : > { %v1202_v41 = vpop.permute.xlu1 %1201  ;;  %v1214_v42 = vpop.permute.xlu0 %1213 }
 0x4ed   : > { %v1206_v50 = vsel %vm1173_vm7, %v1205_v48, %v1202_v41 }
 0x4ee   : > { %v1227_v58 = vrot.slane %v1206_v50, 6 }
 0x4f0   : > { %v1210_v46 = vpop.permute.xlu1 %1209  ;;  %v1218_v51 = vpop.permute.xlu0 %1217 }
 0x4f1   : > { %v1220_v49 = vsel %vm492_vm2, %v1153_v27, %v1210_v46  ;;  %v1337_v27 = vsub.s32 4, %v3096_v2 }
 0x4f2   : > { %v1221_v52 = vsel %vm1171_vm6, %v1220_v49, %v1214_v42 }
 0x4f3   : > { %v1222_v54 = vsel %vm1173_vm7, %v1221_v52, %v1218_v51  ;;  %v1338_v29 = vrot.slane %v3102_v5, %v1337_v27 }
 0x4f4   : > { %v1168_v57 = vpop.permute.xlu1 %1167  ;;  %v1230_v60 = vrot.slane %v1222_v54, 5 }
 0x4f5   : > { %v1174_v59 = vsel %vm1173_vm7, %v1172_v55, %v1168_v57 }
 0x4f6   : > { %v1233_v61 = vsel %vm1232_vm8, %v1174_v59, %v1224_v56 }
 0x4f7   : > { %v1235_v63 = vsel %vm1234_vm9, %v1233_v61, %v1227_v58 }
 0x4f8   : > { %v1237_v0 = vsel %vm1236_vm10, %v1235_v63, %v1230_v60 }
 0x4f9   : > { %2643 = vmatmul.mubr.msk.f32.vlgmr.msra.gmra.mrb[6].mxu0 %vm414_vm1, %v1237_v0 }
 0x4fa   : > { %2657 = vmatpush3.xpose.msk.msra.mxu0 %vm492_vm2, %v3088_v62  ;;  %2658 = vmatprep.mubr.msk.f32.mxu0 %vm2853_vm0, %v2854_v6 }
 0x4fb   : > { %2666 = vmatprep.subr.mxu0 %v2854_v6 }
 0x5cc   : > { %v1315_v9 = vpop.f32.mrb[6].mxu0 }
 0x5cd   : > { %v1316_v10 = vadd.f32 %v1315_v9, %v1245_v7  ;;  %v2644_v11 = vpop.f32.mrb[7].mxu0 }
 0x5cf   : > { %v1319_v12 = vadd.f32 %v1316_v10, %v2964_v8  ;;  %v1346_v8 = vld [vmem:[%s3298_s5 + $0x8] sm:$0xff] }
 0x5d0   : > { %v2750_v20 = vpack.c.bf16 %v1346_v8, %v1345_v19 }
 0x5d1   : > { %v1321_v13 = vsel %vm1320_vm11, %v1319_v12, 0.0 }
 0x5d2   : > { %1322 = vadd.xlane.f32.xlu1 %v1321_v13  ;;  %2751 = vmatpush3.bf16.msra.mxu1 %v2750_v20 }
 0x5d3   : > { %2752 = vmatprep.subr.bf16.mxu1 %v2852_v3 }
 0x5d6   : > { %2754 = vmatpush3.bf16.msra.mxu1 %v2753_v23 }
 0x5d7   : > { %2661 = vmatprep.subr.mxu1 %v2854_v6 }
 0x65f   : > { %v1323_v14 = vpop.xlane.xlu1 %1322 }
 0x660   : > { %v1325_v15 = vmul.f32 0.03125, %v1323_v14 }
 0x662   : > { %v1326_v16 = vsub.f32 %v1319_v12, %v1325_v15 }
 0x664   : > { %v1327_v17 = vmul.f32 %v1326_v16, %v1326_v16 }
 0x666   : > { %v1328_v18 = vsel %vm1320_vm11, %v1327_v17, 0.0 }
 0x667   : > { %1329 = vadd.xlane.f32.xlu0 %v1328_v18 }
 0x67d   : > { %1593 = vrot.lane.b32.xlu0 %v3088_v62, %s2856_s15 }
 0x6f4   : > { %v1330_v24 = vpop.xlane.xlu0 %1329 }
 0x6f5   : > { %v1331_v25 = vmul.f32 0.03125, %v1330_v24 }
 0x6f7   : > { %v1332_v26 = vadd.f32 1e-05, %v1331_v25 }
 0x6f8   : > { %v1594_v41 = vpop.permute.xlu0 %1593 }
 0x6f9   : > { %2820 = vrsqrt.f32 %v1332_v26 }
 0x703   : > { %v2821_v30 = vpop.eup %2820 }
 0x704   : > { %v1334_v31 = vmul.f32 %v2821_v30, %v1326_v16 }
 0x706   : > { %v1339_v33 = vmul.f32 %v1338_v29, %v1334_v31 }
 0x708   : > { %v3130_v34 = vadd.f32 %v1343_v32, %v1339_v33 }
 0x70a   : > { %2654 = vmatmul.mubr.msk.f32.vlgmr.msra.gmra.mrb[12].mxu1 %vm414_vm1, %v3130_v34 }
 0x70b   : > { %2663 = vmatprep.mubr.msk.f32.mxu1 %vm2853_vm0, %v2854_v6 }
 0x7dd   : > { %v1422_v37 = vpop.f32.mrb[12].mxu1 }
 0x7de   : > { %v1423_v38 = vadd.f32 %v1422_v37, %v1352_v36  ;;  %v2655_v39 = vpop.f32.mrb[13].mxu1 }
 0x7e0   : > { %v1426_v40 = vmul.f32 0.35355338, %v1423_v38 }
 0x7e2   : > { %1756 = vrot.lane.b32.xlu0 %v1426_v40, %s2859_s20  ;;  %1591 = vrot.lane.b32.xlu1 %v1426_v40, %s2856_s15 }
 0x7e3   : > { %2659 = vmatmul.mubr.msk.f32.vlgmr.msra.gmra.mrb[8].mxu0 %vm492_vm2, %v1426_v40 }
 0x7e4   : > { %2667 = vmatpush3.xpose.msk.msra.mxu0 %vm492_vm2, %v1594_v41  ;;  %2668 = vmatprep.mubr.msk.f32.mxu0 %vm2853_vm0, %v2854_v6  ;;  %v2102_v41 = vld [vmem:[%s3299_s6 + $0x8] sm:$0xff] }
 0x7e5   : > { %2676 = vmatprep.subr.mxu0 %v2854_v6 }
 0x7e6   : > { %1921 = vrot.lane.b32.xlu0 %v1426_v40, %s2861_s22  ;;  %1758 = vrot.lane.b32.xlu1 %v3088_v62, %s2859_s20  ;;  %v2101_v40 = vld [vmem:[%s3299_s6] sm:$0xff] }
 0x7ea   : > { %1923 = vrot.lane.b32.xlu1 %v3088_v62, %s2861_s22 }
 0x854   : > { %v1592_v42 = vpop.permute.xlu1 %1591  ;;  %v1757_v44 = vpop.permute.xlu0 %1756 }
 0x855   : > { %2669 = vmatmul.mubr.msk.f32.vlgmr.msra.gmra.mrb[10].mxu0 %vm492_vm2, %v1592_v42  ;;  %v2756_v42 = vpack.c.bf16 %v2102_v41, %v2101_v40  ;;  %v2512_v40 = vld [vmem:[%s3301_s8] ss:$0 sm:$0xff] }
 0x856   : > { %2678 = vmatprep.mubr.msk.f32.mxu0 %vm2853_vm0, %v2854_v6 }
 0x858   : > { %v1759_v43 = vpop.permute.xlu1 %1758  ;;  %v1922_v46 = vpop.permute.xlu0 %1921 }
 0x859   : > { %2677 = vmatpush3.xpose.msk.msra.mxu0 %vm492_vm2, %v1759_v43  ;;  %v2103_v43 = vld [vmem:[%s3299_s6 + $0x10] sm:$0xff] }
 0x85a   : > { %2686 = vmatprep.subr.mxu0 %v2854_v6 }
 0x85c   : > { %v1924_v45 = vpop.permute.xlu1 %1923  ;;  %2679 = vmatmul.mubr.msk.f32.vlgmr.msra.gmra.mrb[12].mxu0 %vm492_vm2, %v1757_v44  ;;  %v2104_v44 = vld [vmem:[%s3299_s6 + $0x18] sm:$0xff] }
 0x85d   : > { %2687 = vmatpush3.xpose.msk.msra.mxu0 %vm492_vm2, %v1924_v45  ;;  %2688 = vmatprep.mubr.msk.f32.mxu0 %vm2853_vm0, %v2854_v6  ;;  %v2759_v45 = vpack.c.bf16 %v2104_v44, %v2103_v43 }
 0x85e   : > { %2755 = vmatprep.subr.bf16.mxu0 %v2852_v3 }
 0x860   : > { %2689 = vmatmul.mubr.msk.f32.vlgmr.msra.gmra.mrb[14].mxu0 %vm492_vm2, %v1922_v46 }
 0x861   : > { %2704 = vmatprep.mubr.msk.f32.mxu0 %vm2853_vm0, %v2854_v6  ;;  %2757 = vmatpush3.bf16.msra.mxu0 %v2756_v42 }
 0x862   : > { %2758 = vmatprep.subr.bf16.mxu0 %v2852_v3 }
 0x865   : > { %2760 = vmatpush3.bf16.msra.mxu0 %v2759_v45 }
 0x866   : > { %2767 = vmatprep.subr.bf16.mxu0 %v2852_v3 }
 0x8b6   : > { %v1499_v47 = vpop.f32.mrb[8].mxu0 }
 0x8b7   : > { %v2660_v48 = vpop.f32.mrb[9].mxu0  ;;  %v1504_v49 = vsel %vm1503_vm12, %v1499_v47, -inf }
 0x8b8   : > { %1505 = vmax.xlane.f32.xlu1 %v1504_v49 }
 0x928   : > { %v1665_v50 = vpop.f32.mrb[10].mxu0 }
 0x929   : > { %v2670_v51 = vpop.f32.mrb[11].mxu0  ;;  %v1669_v52 = vsel %vm1503_vm12, %v1665_v50, -inf }
 0x92a   : > { %1670 = vmax.xlane.f32.xlu0 %v1669_v52 }
 0x92f   : > { %v1830_v53 = vpop.f32.mrb[12].mxu0 }
 0x930   : > { %v2680_v54 = vpop.f32.mrb[13].mxu0  ;;  %v1834_v55 = vsel %vm1503_vm12, %v1830_v53, -inf }
 0x931   : > { %1835 = vmax.xlane.f32.xlu0 %v1834_v55 }
 0x933   : > { %v1995_v56 = vpop.f32.mrb[14].mxu0 }
 0x934   : > { %v2690_v57 = vpop.f32.mrb[15].mxu0  ;;  %v1999_v58 = vsel %vm1503_vm12, %v1995_v56, -inf }
 0x935   : > { %2000 = vmax.xlane.f32.xlu1 %v1999_v58  ;;  %v2107_v58 = vsub.s32 2, %v3096_v2 }
 0x945   : > { %v1506_v59 = vpop.xlane.xlu1 %1505 }
 0x946   : > { %v1507_v60 = vsub.f32 %v1499_v47, %v1506_v59  ;;  %1680 = vrot.lane.b32.xlu1 %v3088_v62, %s2857_s16  ;;  %v2108_v59 = vrot.slane %v3102_v5, %v2107_v58 }
 0x948   : > { %v1508_v61 = vmul.f32 1.442695, %v1507_v60 }
 0x94a   : > { %2822 = vpow2.f32 %v1508_v61 }
 0x954   : > { %v2823_v63 = vpop.eup %2822 }
 0x955   : > { %v1510_v0 = vsel %vm1503_vm12, %v2823_v63, 0.0 }
 0x956   : > { %1511 = vadd.xlane.f32.xlu0 %v1510_v0 }
 0x96c   : > { %1515 = vrot.lane.b32.xlu0 %v3088_v62, %s2855_s14  ;;  %s3307_s14 = smov 72  }
 0x9b7   : > { %v1671_v1 = vpop.xlane.xlu0 %1670 }
 0x9b8   : > { %v1672_v7 = vsub.f32 %v1665_v50, %v1671_v1 }
 0x9ba   : > { %v1673_v9 = vmul.f32 1.442695, %v1672_v7 }
 0x9bc   : > { %2824 = vpow2.f32 %v1673_v9 }
 0x9be   : > { %v1836_v10 = vpop.xlane.xlu0 %1835 }
 0x9bf   : > { %v1837_v11 = vsub.f32 %v1830_v53, %v1836_v10 }
 0x9c1   : > { %v1838_v12 = vmul.f32 1.442695, %v1837_v11 }
 0x9c2   : > { %v2001_v13 = vpop.xlane.xlu1 %2000 }
 0x9c3   : > { %2826 = vpow2.f32 %v1838_v12  ;;  %v2002_v14 = vsub.f32 %v1995_v56, %v2001_v13  ;;  %v2207_v13 = vld [vmem:[%s3300_s7 + $0x8] sm:$0xff] }
 0x9c5   : > { %v2003_v15 = vmul.f32 1.442695, %v2002_v14 }
 0x9c6   : > { %v2825_v16 = vpop.eup %2824  ;;  %v1681_v25 = vpop.permute.xlu1 %1680 }
 0x9c7   : > { %2828 = vpow2.f32 %v2003_v15  ;;  %v1675_v17 = vsel %vm1503_vm12, %v2825_v16, 0.0  ;;  %v2209_v15 = vld [vmem:[%s3300_s7 + $0x18] sm:$0xff] }
 0x9c8   : > { %1676 = vadd.xlane.f32.xlu1 %v1675_v17 }
 0x9cd   : > { %v2827_v18 = vpop.eup %2826 }
 0x9ce   : > { %v1840_v19 = vsel %vm1503_vm12, %v2827_v18, 0.0 }
 0x9cf   : > { %1841 = vadd.xlane.f32.xlu0 %v1840_v19 }
 0x9d1   : > { %v2829_v8 = vpop.eup %2828 }
 0x9d2   : > { %v2005_v20 = vsel %vm1503_vm12, %v2829_v8, 0.0 }
 0x9d3   : > { %2006 = vadd.xlane.f32.xlu1 %v2005_v20  ;;  %v2203_v20 = vsub.s32 7, %v3096_v2 }
 0x9e3   : > { %v1512_v21 = vpop.xlane.xlu0 %1511 }
 0x9e4   : > { %2830 = vrcp.f32 %v1512_v21  ;;  %1845 = vrot.lane.b32.xlu1 %v3088_v62, %s2858_s19  ;;  %s3308_s19 = sshll.u32 %s3310_s18, 2 }
 0x9e5   : > { %2010 = vrot.lane.b32.xlu0 %v3088_v62, %s3307_s14  ;;  %s398_s25 = scalar_lea.vmem %s3304_s11, %s3308_s19 }
 0x9e7   : > { %v1516_v22 = vpop.permute.xlu0 %1515 }
 0x9e8   : > { %2662 = vmatpush3.msra.mxu1 %v1516_v22 }
 0x9e9   : > { %2671 = vmatprep.subr.mxu1 %v2854_v6 }
 0x9ee   : > { %v2831_v23 = vpop.eup %2830 }
 0x9ef   : > { %v1514_v24 = vmul.f32 %v2831_v23, %v2823_v63 }
 0x9f1   : > { %2664 = vmatmul.mubr.msk.f32.vlgmr.msra.gmra.mrb[14].mxu1 %vm492_vm2, %v1514_v24  ;;  %v2204_v24 = vrot.slane %v3102_v5, %v2203_v20 }
 0x9f2   : > { %2672 = vmatpush3.msra.mxu1 %v1681_v25  ;;  %2673 = vmatprep.mubr.msk.f32.mxu1 %vm2853_vm0, %v2854_v6 }
 0x9f3   : > { %2681 = vmatprep.subr.mxu1 %v2854_v6 }
 0xa55   : > { %v1677_v26 = vpop.xlane.xlu1 %1676 }
 0xa56   : > { %2832 = vrcp.f32 %v1677_v26 }
 0xa5c   : > { %v1842_v27 = vpop.xlane.xlu0 %1841 }
 0xa5d   : > { %2834 = vrcp.f32 %v1842_v27  ;;  %v2295_v27 = vld [vmem:[%s3302_s9] sm:$0xff] }
 0xa60   : > { %v2833_v62 = vpop.eup %2832  ;;  %v2007_v28 = vpop.xlane.xlu1 %2006 }
 0xa61   : > { %v1679_v29 = vmul.f32 %v2833_v62, %v2825_v16  ;;  %2836 = vrcp.f32 %v2007_v28  ;;  %v2011_v33 = vpop.permute.xlu0 %2010  ;;  %v2296_v62 = vld [vmem:[%s3302_s9 + $0x8] sm:$0xff] }
 0xa62   : > { %v2768_v28 = vpack.c.bf16 %v2296_v62, %v2295_v27 }
 0xa63   : > { %2674 = vmatmul.mubr.msk.f32.vlgmr.msra.gmra.mrb[16].mxu1 %vm492_vm2, %v1679_v29  ;;  %v2297_v29 = vld [vmem:[%s3302_s9 + $0x10] sm:$0xff] }
 0xa64   : > { %v1846_v30 = vpop.permute.xlu1 %1845  ;;  %2683 = vmatprep.mubr.msk.f32.mxu1 %vm2853_vm0, %v2854_v6 }
 0xa65   : > { %2682 = vmatpush3.msra.mxu1 %v1846_v30  ;;  %v2298_v30 = vld [vmem:[%s3302_s9 + $0x18] sm:$0xff] }
 0xa66   : > { %2691 = vmatprep.subr.mxu1 %v2854_v6 }
 0xa67   : > { %v2835_v31 = vpop.eup %2834 }
 0xa68   : > { %v1844_v32 = vmul.f32 %v2835_v31, %v2827_v18  ;;  %v2771_v31 = vpack.c.bf16 %v2298_v30, %v2297_v29 }
 0xa6a   : > { %2684 = vmatmul.mubr.msk.f32.vlgmr.msra.gmra.mrb[18].mxu1 %vm492_vm2, %v1844_v32  ;;  %v2299_v32 = vld [vmem:[%s3302_s9 + $0x20] sm:$0xff] }
 0xa6b   : > { %v2837_v36 = vpop.eup %2836  ;;  %2692 = vmatpush3.msra.mxu1 %v2011_v33  ;;  %2693 = vmatprep.mubr.msk.f32.mxu1 %vm2853_vm0, %v2854_v6  ;;  %v2300_v33 = vld [vmem:[%s3302_s9 + $0x28] sm:$0xff] }
 0xa6c   : > { %v2009_v37 = vmul.f32 %v2837_v36, %v2829_v8  ;;  %2761 = vmatprep.subr.bf16.mxu1 %v2852_v3  ;;  %v2198_v8 = vsub.s32 6, %v3096_v2  ;;  %v2774_v36 = vpack.c.bf16 %v2300_v33, %v2299_v32 }
 0xa6e   : > { %2694 = vmatmul.mubr.msk.f32.vlgmr.msra.gmra.mrb[20].mxu1 %vm492_vm2, %v2009_v37  ;;  %v2199_v21 = vrot.slane %v3102_v5, %v2198_v8  ;;  %v2301_v37 = vld [vmem:[%s3302_s9 + $0x30] sm:$0xff] }
 0xa6f   : > { %2715 = vmatprep.mubr.msk.f32.mxu1 %vm2853_vm0, %v2854_v6 }
 0xac4   : > { %v1587_v38 = vpop.f32.mrb[14].mxu1 }
 0xac5   : > { %v2665_v39 = vpop.f32.mrb[15].mxu1 }
 0xb36   : > { %v1752_v46 = vpop.f32.mrb[16].mxu1 }
 0xb37   : > { %2087 = vrot.lane.b32.xlu1 %v1752_v46, %s2866_s28  ;;  %v2675_v47 = vpop.f32.mrb[17].mxu1 }
 0xb3d   : > { %v1917_v48 = vpop.f32.mrb[18].mxu1 }
 0xb3e   : > { %2091 = vrot.lane.b32.xlu0 %v1917_v48, %s2867_s29  ;;  %v2685_v49 = vpop.f32.mrb[19].mxu1  ;;  %v2305_v48 = vsub.s32 3, %v3096_v2 }
 0xb40   : > { %v2306_v49 = vrot.slane %v3102_v5, %v2305_v48  ;;  %v401_v5 = vld [vmem:[%s3303_s10 + $0x8] sm:$0x3] }
 0xb41   : > { %v2082_v50 = vpop.f32.mrb[20].mxu1 }
 0xb42   : > { %2095 = vrot.lane.b32.xlu1 %v2082_v50, %s2868_s30  ;;  %v2695_v51 = vpop.f32.mrb[21].mxu1 }
 0xba9   : > { %v2088_v52 = vpop.permute.xlu1 %2087 }
 0xbaa   : > { %v2098_v54 = vsel %vm492_vm2, %v1587_v38, %v2088_v52  ;;  %v2302_v38 = vld [vmem:[%s3302_s9 + $0x38] sm:$0xff] }
 0xbab   : > { %v2777_v39 = vpack.c.bf16 %v2302_v38, %v2301_v37 }
 0xbb0   : > { %v2092_v53 = vpop.permute.xlu0 %2091 }
 0xbb1   : > { %v2099_v55 = vsel %vm1171_vm6, %v2098_v54, %v2092_v53 }
 0xbb4   : > { %v2096_v56 = vpop.permute.xlu1 %2095 }
 0xbb5   : > { %v2100_v57 = vsel %vm1173_vm7, %v2099_v55, %v2096_v56 }
 0xbb6   : > { %2705 = vmatmul.mubr.msk.f32.vlgmr.msra.gmra.mrb[16].mxu0 %vm414_vm1, %v2100_v57 }
 0xbb7   : > { %2734 = vmatprep.mubr.msk.f32.mxu0 %vm2853_vm0, %v2854_v6  ;;  %v2206_v6 = vld [vmem:[%s3300_s7] sm:$0xff]  ;;  %2769 = vmatpush3.bf16.msra.mxu0 %v2768_v28 }
 0xbb8   : > { %v2762_v14 = vpack.c.bf16 %v2207_v13, %v2206_v6  ;;  %2770 = vmatprep.subr.bf16.mxu0 %v2852_v3 }
 0xbba   : > { %2763 = vmatpush3.bf16.msra.mxu1 %v2762_v14 }
 0xbbb   : > { %2764 = vmatprep.subr.bf16.mxu1 %v2852_v3  ;;  %2772 = vmatpush3.bf16.msra.mxu0 %v2771_v31 }
 0xbbc   : > { %2773 = vmatprep.subr.bf16.mxu0 %v2852_v3 }
 0xbbf   : > { %2775 = vmatpush3.bf16.msra.mxu0 %v2774_v36 }
 0xbc0   : > { %2776 = vmatprep.subr.bf16.mxu0 %v2852_v3 }
 0xbc3   : > { %2778 = vmatpush3.bf16.msra.mxu0 %v2777_v39 }
 0xc89   : > { %v2178_v60 = vpop.f32.mrb[16].mxu0 }
 0xc8a   : > { %v2179_v61 = vadd.f32 %v2178_v60, %v2108_v59  ;;  %v2706_v63 = vpop.f32.mrb[17].mxu0 }
 0xc8c   : > { %v2182_v0 = vadd.f32 %v2179_v61, %v3130_v34  ;;  %v2208_v34 = vld [vmem:[%s3300_s7 + $0x10] sm:$0xff] }
 0xc8d   : > { %v2765_v16 = vpack.c.bf16 %v2209_v15, %v2208_v34 }
 0xc8e   : > { %v2183_v1 = vsel %vm1320_vm11, %v2182_v0, 0.0 }
 0xc8f   : > { %2184 = vadd.xlane.f32.xlu0 %v2183_v1  ;;  %2766 = vmatpush3.bf16.msra.mxu1 %v2765_v16 }
 0xd1c   : > { %v2185_v7 = vpop.xlane.xlu0 %2184 }
 0xd1d   : > { %v2186_v9 = vmul.f32 0.03125, %v2185_v7  ;;  %v2403_v7 = vrot.slane %v401_v5, %v1351_v35 }
 0xd1f   : > { %v2187_v10 = vsub.f32 %v2182_v0, %v2186_v9  ;;  %v2398_v0 = vrot.slane %v401_v5, %v1244_v4 }
 0xd21   : > { %v2188_v11 = vmul.f32 %v2187_v10, %v2187_v10 }
 0xd23   : > { %v2189_v12 = vsel %vm1320_vm11, %v2188_v11, 0.0 }
 0xd24   : > { %2190 = vadd.xlane.f32.xlu1 %v2189_v12 }
 0xdb1   : > { %v2191_v17 = vpop.xlane.xlu1 %2190 }
 0xdb2   : > { %v2192_v18 = vmul.f32 0.03125, %v2191_v17 }
 0xdb4   : > { %v2193_v19 = vadd.f32 1e-05, %v2192_v18 }
 0xdb6   : > { %2838 = vrsqrt.f32 %v2193_v19 }
 0xdc0   : > { %v2839_v22 = vpop.eup %2838 }
 0xdc1   : > { %v2195_v23 = vmul.f32 %v2839_v22, %v2187_v10 }
 0xdc3   : > { %v2200_v25 = vmul.f32 %v2199_v21, %v2195_v23 }
 0xdc5   : > { %v2205_v26 = vadd.f32 %v2204_v24, %v2200_v25 }
 0xdc7   : > { %2716 = vmatmul.mubr.msk.f32.vlgmr.msra.gmra.mrb[22].mxu1 %vm414_vm1, %v2205_v26 }
 0xe9a   : > { %v2286_v41 = vpop.f32.mrb[22].mxu1 }
 0xe9b   : > { %v2287_v42 = vadd.f32 %v2512_v40, %v2286_v41  ;;  %v2717_v43 = vpop.f32.mrb[23].mxu1 }
 0xe9d   : > { %v2291_v44 = vmul.f32 0.70710677, %v2287_v42  ;;  %v2290_v45 = vmul.f32 0.5, %v2287_v42 }
 0xe9f   : > { %2840 = verf.f32 %v2291_v44 }
 0xea9   : > { %v2841_v3 = vpop.eup %2840 }
 0xeaa   : > { %v2293_v46 = vadd.f32 1.0, %v2841_v3 }
 0xeac   : > { %v2294_v47 = vmul.f32 %v2293_v46, %v2290_v45 }
 0xeae   : > { %2735 = vmatmul.mubr.msk.f32.vlgmr.msra.gmra.mrb[18].mxu0 %vm2307_vm13, %v2294_v47 }
 0xf81   : > { %v2377_v50 = vpop.f32.mrb[18].mxu0 }
 0xf82   : > { %v2378_v51 = vadd.f32 %v2377_v50, %v2306_v49  ;;  %v2736_v52 = vpop.f32.mrb[19].mxu0 }
 0xf84   : > { %v2381_v53 = vadd.f32 %v2378_v51, %v2205_v26 }
 0xf86   : > { %v2382_v54 = vsel %vm1320_vm11, %v2381_v53, 0.0 }
 0xf87   : > { %2383 = vadd.xlane.f32.xlu0 %v2382_v54 }
0x1014   : > { %v2384_v55 = vpop.xlane.xlu0 %2383 }
0x1015   : > { %v2385_v56 = vmul.f32 0.03125, %v2384_v55 }
0x1017   : > { %v2386_v57 = vsub.f32 %v2381_v53, %v2385_v56 }
0x1019   : > { %v2387_v58 = vmul.f32 %v2386_v57, %v2386_v57 }
0x101b   : > { %v2388_v59 = vsel %vm1320_vm11, %v2387_v58, 0.0 }
0x101c   : > { %2389 = vadd.xlane.f32.xlu0 %v2388_v59 }
0x10a9   : > { %v2390_v60 = vpop.xlane.xlu0 %2389 }
0x10aa   : > { %v2391_v61 = vmul.f32 0.03125, %v2390_v60 }
0x10ac   : > { %v2392_v63 = vadd.f32 1e-05, %v2391_v61 }
0x10ae   : > { %2842 = vrsqrt.f32 %v2392_v63 }
0x10b8   : > { %v2843_v1 = vpop.eup %2842 }
0x10b9   : > { %v2394_v9 = vmul.f32 %v2843_v1, %v2386_v57 }
0x10bb   : > { %v2399_v10 = vmul.f32 %v2398_v0, %v2394_v9 }
0x10bd   : > { %v2404_v11 = vadd.f32 %v2403_v7, %v2399_v10 }
0x10bf   : > { %2405 = vst.msk [vmem:[%s398_s25] sm:$0xf] %vm1320_vm11, %v2404_v11 }
0x10c0 PF: > { %s21_s17 = sadd.s32 1, %s2850_s17  }
0x10c1   : > { %p18_p4 = scmp.ge.s32.totalorder %s21_s17, 4  }
0x10c3   :  { %20 = sbr.rel (!%p18_p4) target bundleno = 1 (0x1), region = 97 }

// kernel: informer_forward.26
= control target key start
LH: loop header
LB: loop body
LE: loop exit
PB: predicated region body
PF: predicated region fallthrough
CT: control target
= control target key end

     0   :  { %s549_s12 = smov 0   ;;  %s587_s0 = inlined_call_operand.vmem [shape: f32[2,6,3], index: 0, kind: input, shape index: {}]   ;;  %s588_s1 = inlined_call_operand.vmem [shape: f32[9,32], index: 1, kind: input, shape index: {}]   ;;  %s589_s2 = inlined_call_operand.vmem [shape: f32[64,32], index: 2, kind: input, shape index: {}]   ;;  %s590_s3 = inlined_call_operand.vmem [shape: f32[2,6,32], index: 3, kind: output, shape index: {}]  }
   0x1 LB: > { %s473_s13 = sadd.s32 4294967295, %s525_s12   ;;  %p477_p0 = scmp.ge.s32.totalorder %s525_s12, 1  ;;  %s525_s12 = sphi %s549_s12, %s13_s12  }
   0x2   : > { %p136_p1 = scmp.lt.s32.totalorder %s525_s12, 3 }
   0x4   : > { %p137_p2 = pnand %p477_p0, %p136_p1 }
   0x5   : > { %v167_v0 = vld [vmem:[%s588_s1] sm:$0xff] (!%p137_p2)  ;;  %vm187_vm0 = vcmask (!%p137_p2), 1042432   ;;  %p158_p3 = scmp.lt.s32.totalorder (!%p137_p2), %s473_s13, 1  ;;  %v527_v1 = vmov (!%p137_p2), 0.0   ;;  %vm528_vm1 = vmmov (!%p137_p2), 0   ;;  %vm336_vm2 = vcmask (!%p137_p2), 1041408  }
   0x6   : > { %140 = sbr.rel (%p137_p2) target bundleno = 239 (0xef), region = 32  ;;  %494 = vmatprep.subr.mxu0 (!%p137_p2), %v527_v1  ;;  %v183_v2 = vrot.slane (!%p137_p2), %v167_v0, 3  ;;  %v337_v3 = vrot.slane (!%p137_p2), %v167_v0, 6  ;;  %496 = vmatprep.mubr.msk.f32.mxu0 (!%p137_p2), %vm528_vm1, %v527_v1  ;;  %v168_v4 = vld [vmem:[%s588_s1 + $0x8] sm:$0x1] (!%p137_p2)  ;;  %vm184_vm3 = vcmask (!%p137_p2), 23552  }
   0x7   : > { %499 = vmatprep.subr.mxu1 (!%p137_p2), %v527_v1  ;;  %v338_v5 = vrot.slane (!%p137_p2), %v168_v4, 6  ;;  %501 = vmatprep.mubr.msk.f32.mxu1 (!%p137_p2), %vm528_vm1, %v527_v1  ;;  %vm174_vm4 = vcmask (!%p137_p2), 1040384   ;;  %vm180_vm5 = vcmask (!%p137_p2), 1044480   ;;  %v416_v20 = vld [vmem:[%s589_s2] sm:$0xff] (!%p137_p2)  ;;  %vm418_vm6 = vcmask (!%p137_p2), 259072  }
   0x8   : > { %495 = vmatpush3.msk.msra.mxu0 (!%p137_p2), %vm187_vm0, %v183_v2  ;;  %500 = vmatpush3.msk.msra.mxu1 (!%p137_p2), %vm187_vm0, %v167_v0 }
   0x9   : > { %504 = vmatprep.subr.mxu0 (!%p137_p2), %v527_v1  ;;  %v339_v6 = vsel (!%p137_p2), %vm336_vm2, %v337_v3, %v338_v5 }
   0xd   : > { %s592_s13 = smov (!%p158_p3, %s473_s13), 1 }
   0xe   : > { %s478_s18 = sshll.u32 %s592_s13, 3 }
   0xf   : > { %s161_s21 = scalar_lea.vmem %s587_s0, %s478_s18  ;;  %s165_s26 = scalar_lea.vmem %s590_s3, %s478_s18 }
  0x10   : > { %v166_v7 = vld [vmem:[%s161_s21] sm:$0x3f] }
  0x11   : > { %497 = vmatmul.mubr.msk.f32.vlgmr.msra.gmra.mrb[0].mxu0 %vm184_vm3, %v166_v7  ;;  %v170_v8 = vrot.slane %v166_v7, 5  ;;  %v172_v9 = vrot.slane %v166_v7, 7  ;;  %v176_v10 = vrot.slane %v166_v7, 1  ;;  %v178_v11 = vrot.slane %v166_v7, 3 }
  0x12   : > { %505 = vmatpush3.msk.msra.mxu0 %vm187_vm0, %v339_v6  ;;  %506 = vmatprep.mubr.msk.f32.mxu0 %vm528_vm1, %v527_v1 }
  0x13   : > { %v175_v12 = vsel %vm174_vm4, %v170_v8, %v172_v9  ;;  %v181_v13 = vsel %vm180_vm5, %v176_v10, %v178_v11 }
  0x14   : > { %502 = vmatmul.mubr.msk.f32.vlgmr.msra.gmra.mrb[0].mxu1 %vm184_vm3, %v175_v12 }
  0x15   : > { %507 = vmatmul.mubr.msk.f32.vlgmr.msra.gmra.mrb[2].mxu0 %vm184_vm3, %v181_v13 }
  0xe4   : > { %v256_v14 = vpop.f32.mrb[0].mxu0 }
  0xe5   : > { %v498_v15 = vpop.f32.mrb[1].mxu0 }
  0xe7   : > { %v331_v16 = vpop.f32.mrb[0].mxu1 }
  0xe8   : > { %v332_v17 = vadd.f32 %v331_v16, %v256_v14  ;;  %v503_v18 = vpop.f32.mrb[1].mxu1  ;;  %v411_v19 = vpop.f32.mrb[2].mxu0 }
  0xe9   : > { %v508_v21 = vpop.f32.mrb[3].mxu0 }
  0xea   : > { %v415_v22 = vadd.f32 %v411_v19, %v332_v17 }
  0xec   : > { %v417_v23 = vadd.f32 %v416_v20, %v415_v22 }
  0xee   : > { %419 = vst.msk [vmem:[%s165_s26] sm:$0x3f] %vm418_vm6, %v417_v23 }
  0xef PF: > { %s13_s12 = sadd.s32 1, %s525_s12  }
  0xf0   : > { %p10_p4 = scmp.ge.s32.totalorder %s13_s12, 4  }
  0xf2   :  { %12 = sbr.rel (!%p10_p4) target bundleno = 1 (0x1), region = 62 }

// kernel: informer_forward.24
= control target key start
LH: loop header
LB: loop body
LE: loop exit
PB: predicated region body
PF: predicated region fallthrough
CT: control target
= control target key end

     0   :  { %s2949_s17 = smov 0   ;;  %s3317_s0 = inlined_call_operand.vmem [shape: f32[2,5,32], index: 0, kind: input, shape index: {}]   ;;  %s3318_s1 = inlined_call_operand.vmem [shape: f32[2,8,64], index: 1, kind: input, shape index: {}]   ;;  %s3319_s2 = inlined_call_operand.vmem [shape: f32[32,96], index: 2, kind: input, shape index: {}]   ;;  %s3320_s3 = inlined_call_operand.vmem [shape: f32[1,96], index: 3, kind: input, shape index: {}]   ;;  %s3321_s4 = inlined_call_operand.vmem [shape: f32[32,32], index: 4, kind: input, shape index: {}]   ;;  %s3322_s5 = inlined_call_operand.vmem [shape: f32[32,32], index: 5, kind: input, shape index: {}]   ;;  %s3323_s6 = inlined_call_operand.vmem [shape: f32[32,32], index: 6, kind: input, shape index: {}]   ;;  %s3324_s7 = inlined_call_operand.vmem [shape: f32[32,64], index: 7, kind: input, shape index: {}]   ;;  %s3325_s8 = inlined_call_operand.vmem [shape: f32[1,64], index: 8, kind: input, shape index: {}]   ;;  %s3326_s9 = inlined_call_operand.vmem [shape: f32[64,32], index: 9, kind: input, shape index: {}]   ;;  %s3327_s10 = inlined_call_operand.vmem [shape: f32[10,32], index: 10, kind: input, shape index: {}]   ;;  %s3328_s11 = inlined_call_operand.vmem [shape: f32[2,5,32], index: 11, kind: output, shape index: {}]  }
   0x1 LB: > { %s2491_s18 = sadd.s32 4294967295, %s2870_s17   ;;  %p2495_p0 = scmp.ge.s32.totalorder %s2870_s17, 1  ;;  %s2870_s17 = sphi %s2949_s17, %s21_s17  }
   0x2   : > { %p345_p1 = scmp.lt.s32.totalorder %s2870_s17, 3 }
   0x4   : > { %p346_p2 = pnand %p2495_p0, %p345_p1 }
   0x5   : > { %v403_v0 = vld [vmem:[%s3319_s2] sm:$0xff] (!%p346_p2)  ;;  %v404_v1 = vld [vmem:[%s3319_s2 + $0x8] sm:$0xff] (!%p346_p2)  ;;  %v405_v2 = vld [vmem:[%s3319_s2 + $0x10] sm:$0xff] (!%p346_p2)  ;;  %v2872_v3 = vmov (!%p346_p2), 0.0|0.0   ;;  %vm2873_vm0 = vmmov (!%p346_p2), 0   ;;  %v2874_v6 = vmov (!%p346_p2), 0.0  }
   0x6   : > { %349 = sbr.rel (%p346_p2) target bundleno = 4289 (0x10c1), region = 64  ;;  %2757 = vmatprep.subr.bf16.mxu1 (!%p346_p2), %v2872_v3  ;;  %v2758_v4 = vpack.c.bf16 (!%p346_p2), %v404_v1, %v403_v0  ;;  %v406_v5 = vld [vmem:[%s3319_s2 + $0x18] sm:$0xff] (!%p346_p2)  ;;  %2611 = vmatprep.mubr.msk.f32.mxu1 (!%p346_p2), %vm2873_vm0, %v2874_v6  ;;  %p387_p3 = scmp.lt.s32.totalorder (!%p346_p2), %s2491_s18, 1  ;;  %vm414_vm1 = vcmask (!%p346_p2), 261120   ;;  %v2499_v9 = vld [vmem:[%s3320_s3] ss:$0 sm:$0xff] (!%p346_p2) }
   0x7   : > { %2624 = vmatprep.subr.mxu0 (!%p346_p2), %v2874_v6  ;;  %2626 = vmatprep.mubr.msk.f32.mxu0 (!%p346_p2), %vm2873_vm0, %v2874_v6  ;;  %v2761_v7 = vpack.c.bf16 (!%p346_p2), %v406_v5, %v405_v2  ;;  %s2875_s14 = smov (!%p346_p2), 96   ;;  %s2876_s15 = smov (!%p346_p2), 120   ;;  %vm492_vm2 = vcmask (!%p346_p2), 64512   ;;  %vm568_vm3 = vcmask (!%p346_p2), 36864   ;;  %vm586_vm4 = vcmask (!%p346_p2), 1044480  }
   0x8   : > { %2759 = vmatpush3.bf16.msra.mxu1 (!%p346_p2), %v2758_v4  ;;  %s2877_s16 = smov (!%p346_p2), 88   ;;  %s2879_s19 = smov (!%p346_p2), 112   ;;  %vm582_vm5 = vcmask (!%p346_p2), 39936   ;;  %vm1171_vm6 = vcmask (!%p346_p2), 130048   ;;  %vm1173_vm7 = vcmask (!%p346_p2), 195584   ;;  %vm1250_vm8 = vcmask (!%p346_p2), 1040384  }
   0x9   : > { %2760 = vmatprep.subr.bf16.mxu1 (!%p346_p2), %v2872_v3  ;;  %s2880_s20 = smov (!%p346_p2), 72   ;;  %s2881_s21 = smov (!%p346_p2), 104   ;;  %vm1252_vm9 = vcmask (!%p346_p2), 1041408   ;;  %vm1254_vm10 = vcmask (!%p346_p2), 1042432   ;;  %vm1256_vm11 = vcmask (!%p346_p2), 1043456   ;;  %vm1340_vm12 = vcmask (!%p346_p2), 258048  }
   0xa   : > { %s2882_s22 = smov (!%p346_p2), 56   ;;  %s2883_s23 = smov (!%p346_p2), 64   ;;  %vm1523_vm13 = vcmask (!%p346_p2), 61440   ;;  %vm2327_vm14 = vcmask (!%p346_p2), 523264  }
   0xb   : > { %s2884_s24 = smov (!%p346_p2), 48   ;;  %s2885_s25 = smov (!%p346_p2), 40  }
   0xc   : > { %2762 = vmatpush3.bf16.msra.mxu1 (!%p346_p2), %v2761_v7  ;;  %s2886_s26 = smov (!%p346_p2), 8   ;;  %s2887_s28 = smov (!%p346_p2), 16  }
   0xd   : > { %s3332_s18 = smov (!%p387_p3, %s2491_s18), 1  ;;  %2614 = vmatprep.subr.mxu1 %v2874_v6  ;;  %s3329_s29 = smov 24  }
   0xe   : > { %s2976_s27 = sshll.u32 %s3332_s18, 3  ;;  %s2878_s18 = smov 80  }
   0xf   : > { %s390_s30 = scalar_lea.vmem %s3317_s0, %s2976_s27 }
  0x10   : > { %v2982_v8 = vld [vmem:[%s390_s30] sm:$0x1f] }
  0x11   : > { %2612 = vmatmul.mubr.msk.f32.vlgmr.msra.gmra.mrb[0].mxu1 %vm414_vm1, %v2982_v8 }
  0x12   : > { %2616 = vmatprep.mubr.msk.f32.mxu1 %vm2873_vm0, %v2874_v6 }
  0xe4   : > { %v484_v10 = vpop.f32.mrb[0].mxu1 }
  0xe5   : > { %v2992_v11 = vadd.f32 %v2499_v9, %v484_v10  ;;  %v2613_v12 = vpop.f32.mrb[1].mxu1 }
  0xe7   : > { %490 = vrot.lane.b32.xlu0 %v2992_v11, %s2875_s14  ;;  %v488_v13 = vmul.f32 0.35355338, %v2992_v11 }
  0xe9   : > { %659 = vrot.lane.b32.xlu1 %v488_v13, %s2876_s15 }
  0xeb   : > { %661 = vrot.lane.b32.xlu0 %v2992_v11, %s2877_s16 }
  0xed   : > { %827 = vrot.lane.b32.xlu1 %v2992_v11, %s2878_s18 }
  0xef   : > { %825 = vrot.lane.b32.xlu0 %v488_v13, %s2879_s19 }
  0xf1   : > { %993 = vrot.lane.b32.xlu1 %v2992_v11, %s2880_s20 }
  0xf3   : > { %991 = vrot.lane.b32.xlu0 %v488_v13, %s2881_s21 }
 0x159   : > { %v491_v14 = vpop.permute.xlu0 %490 }
 0x15a   : > { %2615 = vmatpush3.xpose.msk.msra.mxu1 %vm492_vm2, %v491_v14 }
 0x15b   : > { %v660_v15 = vpop.permute.xlu1 %659  ;;  %2619 = vmatprep.subr.mxu1 %v2874_v6 }
 0x15d   : > { %v662_v16 = vpop.permute.xlu0 %661  ;;  %2617 = vmatmul.mubr.msk.f32.vlgmr.msra.gmra.mrb[2].mxu1 %vm492_vm2, %v488_v13 }
 0x15e   : > { %2625 = vmatpush3.xpose.msk.msra.mxu0 %vm492_vm2, %v662_v16  ;;  %2621 = vmatprep.mubr.msk.f32.mxu1 %vm2873_vm0, %v2874_v6 }
 0x15f   : > { %v828_v17 = vpop.permute.xlu1 %827  ;;  %2634 = vmatprep.subr.mxu0 %v2874_v6 }
 0x161   : > { %2627 = vmatmul.mubr.msk.f32.vlgmr.msra.gmra.mrb[0].mxu0 %vm492_vm2, %v660_v15  ;;  %v826_v18 = vpop.permute.xlu0 %825 }
 0x162   : > { %2635 = vmatpush3.xpose.msk.msra.mxu0 %vm492_vm2, %v828_v17  ;;  %2636 = vmatprep.mubr.msk.f32.mxu0 %vm2873_vm0, %v2874_v6 }
 0x163   : > { %2644 = vmatprep.subr.mxu0 %v2874_v6  ;;  %v994_v19 = vpop.permute.xlu1 %993 }
 0x165   : > { %2637 = vmatmul.mubr.msk.f32.vlgmr.msra.gmra.mrb[2].mxu0 %vm492_vm2, %v826_v18  ;;  %v992_v20 = vpop.permute.xlu0 %991 }
 0x166   : > { %2645 = vmatpush3.xpose.msk.msra.mxu0 %vm492_vm2, %v994_v19  ;;  %2646 = vmatprep.mubr.msk.f32.mxu0 %vm2873_vm0, %v2874_v6 }
 0x167   : > { %2763 = vmatprep.subr.bf16.mxu0 %v2872_v3 }
 0x169   : > { %2647 = vmatmul.mubr.msk.f32.vlgmr.msra.gmra.mrb[4].mxu0 %vm492_vm2, %v992_v20 }
 0x16a   : > { %2662 = vmatprep.mubr.msk.f32.mxu0 %vm2873_vm0, %v2874_v6 }
 0x230   : > { %v564_v21 = vpop.f32.mrb[2].mxu1 }
 0x231   : > { %v2618_v22 = vpop.f32.mrb[3].mxu1  ;;  %v569_v23 = vsel %vm568_vm3, %v564_v21, -inf }
 0x232   : > { %570 = vmax.xlane.f32.xlu1 %v569_v23  ;;  %v1258_v23 = vld [vmem:[%s3321_s4] sm:$0xff] }
 0x234   : > { %v733_v24 = vpop.f32.mrb[0].mxu0 }
 0x235   : > { %v2628_v25 = vpop.f32.mrb[1].mxu0  ;;  %v737_v26 = vsel %vm568_vm3, %v733_v24, -inf }
 0x236   : > { %738 = vmax.xlane.f32.xlu0 %v737_v26 }
 0x238   : > { %v899_v27 = vpop.f32.mrb[2].mxu0 }
 0x239   : > { %v2638_v28 = vpop.f32.mrb[3].mxu0  ;;  %v903_v29 = vsel %vm568_vm3, %v899_v27, -inf }
 0x23a   : > { %904 = vmax.xlane.f32.xlu0 %v903_v29 }
 0x23c   : > { %v1065_v30 = vpop.f32.mrb[4].mxu0 }
 0x23d   : > { %v2648_v31 = vpop.f32.mrb[5].mxu0  ;;  %v1069_v32 = vsel %vm568_vm3, %v1065_v30, -inf }
 0x23e   : > { %1070 = vmax.xlane.f32.xlu1 %v1069_v32  ;;  %v1261_v31 = vld [vmem:[%s3321_s4 + $0x18] sm:$0xff] }
 0x24f   : > { %748 = vrot.lane.b32.xlu1 %v2992_v11, %s2882_s22  ;;  %s394_s22 = scalar_lea.vmem %s3318_s1, %s2976_s27 }
 0x2bf   : > { %v571_v33 = vpop.xlane.xlu1 %570 }
 0x2c0   : > { %v572_v34 = vsub.f32 %v564_v21, %v571_v33 }
 0x2c2   : > { %v573_v35 = vmul.f32 1.442695, %v572_v34 }
 0x2c3   : > { %v739_v36 = vpop.xlane.xlu0 %738 }
 0x2c4   : > { %2824 = vpow2.f32 %v573_v35  ;;  %v740_v37 = vsub.f32 %v733_v24, %v739_v36  ;;  %v1259_v24 = vld [vmem:[%s3321_s4 + $0x8] sm:$0xff] }
 0x2c5   : > { %v2764_v25 = vpack.c.bf16 %v1259_v24, %v1258_v23 }
 0x2c6   : > { %v741_v38 = vmul.f32 1.442695, %v740_v37 }
 0x2c7   : > { %v905_v48 = vpop.xlane.xlu0 %904  ;;  %2765 = vmatpush3.bf16.msra.mxu0 %v2764_v25 }
 0x2c8   : > { %2826 = vpow2.f32 %v741_v38  ;;  %v906_v49 = vsub.f32 %v899_v27, %v905_v48  ;;  %2766 = vmatprep.subr.bf16.mxu0 %v2872_v3 }
 0x2ca   : > { %v907_v50 = vmul.f32 1.442695, %v906_v49 }
 0x2cb   : > { %v1071_v39 = vpop.xlane.xlu1 %1070 }
 0x2cc   : > { %v1072_v40 = vsub.f32 %v1065_v30, %v1071_v39  ;;  %v1260_v30 = vld [vmem:[%s3321_s4 + $0x10] sm:$0xff] }
 0x2cd   : > { %v2767_v32 = vpack.c.bf16 %v1261_v31, %v1260_v30  ;;  %v1366_v30 = vld [vmem:[%s3322_s5 + $0x8] sm:$0xff] }
 0x2ce   : > { %v2825_v41 = vpop.eup %2824  ;;  %v1073_v42 = vmul.f32 1.442695, %v1072_v40 }
 0x2cf   : > { %v575_v43 = vsel %vm568_vm3, %v2825_v41, 0.0  ;;  %v749_v53 = vpop.permute.xlu1 %748  ;;  %2768 = vmatpush3.bf16.msra.mxu0 %v2767_v32  ;;  %v1367_v32 = vld [vmem:[%s3322_s5 + $0x10] sm:$0xff] }
 0x2d0   : > { %2828 = vpow2.f32 %v1073_v42  ;;  %576 = vadd.xlane.f32.xlu0 %v575_v43  ;;  %2676 = vmatprep.subr.mxu0 %v2874_v6 }
 0x2d1   : > { %2830 = vpow2.f32 %v907_v50 }
 0x2d2   : > { %v2827_v44 = vpop.eup %2826 }
 0x2d3   : > { %v743_v45 = vsel %vm568_vm3, %v2827_v44, 0.0 }
 0x2d4   : > { %744 = vadd.xlane.f32.xlu1 %v743_v45 }
 0x2da   : > { %v2829_v46 = vpop.eup %2828 }
 0x2db   : > { %v1075_v47 = vsel %vm568_vm3, %v2829_v46, 0.0  ;;  %v2831_v51 = vpop.eup %2830 }
 0x2dc   : > { %1076 = vadd.xlane.f32.xlu1 %v1075_v47  ;;  %v909_v52 = vsel %vm568_vm3, %v2831_v51, 0.0 }
 0x2e6   : > { %580 = vrot.lane.b32.xlu0 %v2992_v11, %s2883_s23 }
 0x2ed   : > { %914 = vrot.lane.b32.xlu1 %v2992_v11, %s2884_s24 }
 0x305   : > { %910 = vadd.xlane.f32.xlu0 %v909_v52 }
 0x31b   : > { %1080 = vrot.lane.b32.xlu0 %v2992_v11, %s2885_s25  ;;  %s3330_s25 = smov 24  }
 0x35d   : > { %v577_v54 = vpop.xlane.xlu0 %576 }
 0x35e   : > { %2832 = vrcp.f32 %v577_v54 }
 0x361   : > { %v581_v55 = vpop.permute.xlu0 %580  ;;  %v745_v56 = vpop.xlane.xlu1 %744 }
 0x362   : > { %2834 = vrcp.f32 %v745_v56  ;;  %2620 = vmatpush3.msk.msra.mxu1 %vm586_vm4, %v581_v55 }
 0x363   : > { %2629 = vmatprep.subr.mxu1 %v2874_v6 }
 0x368   : > { %v2833_v57 = vpop.eup %2832 }
 0x369   : > { %v579_v58 = vmul.f32 %v2833_v57, %v2825_v41  ;;  %v1077_v59 = vpop.xlane.xlu1 %1076 }
 0x36b   : > { %2622 = vmatmul.mubr.msk.f32.vlgmr.msra.gmra.mrb[4].mxu1 %vm582_vm5, %v579_v58 }
 0x36c   : > { %v2835_v60 = vpop.eup %2834  ;;  %2630 = vmatpush3.msk.msra.mxu1 %vm586_vm4, %v749_v53  ;;  %2631 = vmatprep.mubr.msk.f32.mxu1 %vm2873_vm0, %v2874_v6 }
 0x36d   : > { %v747_v61 = vmul.f32 %v2835_v60, %v2827_v44  ;;  %v915_v62 = vpop.permute.xlu1 %914  ;;  %2639 = vmatprep.subr.mxu1 %v2874_v6 }
 0x36f   : > { %2632 = vmatmul.mubr.msk.f32.vlgmr.msra.gmra.mrb[6].mxu1 %vm582_vm5, %v747_v61 }
 0x370   : > { %2640 = vmatpush3.msk.msra.mxu1 %vm586_vm4, %v915_v62  ;;  %2641 = vmatprep.mubr.msk.f32.mxu1 %vm2873_vm0, %v2874_v6 }
 0x371   : > { %2649 = vmatprep.subr.mxu1 %v2874_v6 }
 0x392   : > { %v911_v63 = vpop.xlane.xlu0 %910 }
 0x393   : > { %2836 = vrcp.f32 %v911_v63 }
 0x394   : > { %2838 = vrcp.f32 %v1077_v59 }
 0x396   : > { %v1081_v4 = vpop.permute.xlu0 %1080 }
 0x39d   : > { %v2837_v0 = vpop.eup %2836 }
 0x39e   : > { %v913_v1 = vmul.f32 %v2837_v0, %v2831_v51  ;;  %v2839_v2 = vpop.eup %2838 }
 0x39f   : > { %v1079_v5 = vmul.f32 %v2839_v2, %v2829_v46 }
 0x3a0   : > { %2642 = vmatmul.mubr.msk.f32.vlgmr.msra.gmra.mrb[8].mxu1 %vm582_vm5, %v913_v1 }
 0x3a1   : > { %2650 = vmatpush3.msk.msra.mxu1 %vm586_vm4, %v1081_v4  ;;  %2651 = vmatprep.mubr.msk.f32.mxu1 %vm2873_vm0, %v2874_v6 }
 0x3a2   : > { %2769 = vmatprep.subr.bf16.mxu1 %v2872_v3 }
 0x3a4   : > { %2652 = vmatmul.mubr.msk.f32.vlgmr.msra.gmra.mrb[10].mxu1 %vm582_vm5, %v1079_v5 }
 0x3a5   : > { %2673 = vmatprep.mubr.msk.f32.mxu1 %vm2873_vm0, %v2874_v6 }
 0x43e   : > { %v3058_v7 = vpop.f32.mrb[4].mxu1 }
 0x43f   : > { %v2623_v9 = vpop.f32.mrb[5].mxu1  ;;  %v1158_v10 = vrot.slane %v3058_v7, 1  ;;  %v1162_v13 = vrot.slane %v3058_v7, 2  ;;  %v1166_v15 = vrot.slane %v3058_v7, 3 }
 0x441   : > { %1159 = vrot.lane.b32.xlu0 %v1158_v10, %s2886_s26 }
 0x442   : > { %v821_v11 = vpop.f32.mrb[6].mxu1 }
 0x443   : > { %v2633_v12 = vpop.f32.mrb[7].mxu1  ;;  %v1176_v14 = vrot.slane %v821_v11, 4  ;;  %v1191_v16 = vrot.slane %v821_v11, 1  ;;  %v1180_v17 = vrot.slane %v821_v11, 5  ;;  %v1184_v18 = vrot.slane %v821_v11, 6 }
 0x445   : > { %1163 = vrot.lane.b32.xlu0 %v1162_v13, %s2887_s28  ;;  %1177 = vrot.lane.b32.xlu1 %v1176_v14, %s2886_s26  ;;  %v3113_v13 = vld [vmem:[%s394_s22] sm:$0xff] }
 0x449   : > { %1167 = vrot.lane.b32.xlu0 %v1166_v15, %s3329_s29  ;;  %1192 = vrot.lane.b32.xlu1 %v1191_v16, %s2886_s26  ;;  %v1262_v15 = vlaneseq }
 0x44b   : > { %v3121_v16 = vshrl.u32 %v1262_v15, 7 }
 0x44d   : > { %1181 = vrot.lane.b32.xlu0 %v1180_v17, %s2887_s28  ;;  %1185 = vrot.lane.b32.xlu1 %v1184_v18, %s3329_s29  ;;  %v1264_v17 = vsub.s32 0, %v3121_v16  ;;  %v3127_v18 = vld [vmem:[%s3327_s10] sm:$0xff] }
 0x473   : > { %v987_v19 = vpop.f32.mrb[8].mxu1 }
 0x474   : > { %v2643_v20 = vpop.f32.mrb[9].mxu1  ;;  %v1207_v21 = vrot.slane %v987_v19, 1  ;;  %v1196_v22 = vrot.slane %v987_v19, 5  ;;  %v1200_v28 = vrot.slane %v987_v19, 6  ;;  %v1211_v29 = vrot.slane %v987_v19, 2 }
 0x476   : > { %1208 = vrot.lane.b32.xlu1 %v1207_v21, %s2886_s26  ;;  %1197 = vrot.lane.b32.xlu0 %v1196_v22, %s2887_s28 }
 0x477   : > { %v1153_v26 = vpop.f32.mrb[10].mxu1 }
 0x478   : > { %v2653_v27 = vpop.f32.mrb[11].mxu1  ;;  %v1227_v33 = vrot.slane %v1153_v26, 2  ;;  %v1223_v34 = vrot.slane %v1153_v26, 1  ;;  %v1216_v35 = vrot.slane %v1153_v26, 6  ;;  %v1231_v36 = vrot.slane %v1153_v26, 3 }
 0x47a   : > { %1201 = vrot.lane.b32.xlu1 %v1200_v28, %s3329_s29  ;;  %1212 = vrot.lane.b32.xlu0 %v1211_v29, %s2887_s28 }
 0x47e   : > { %1228 = vrot.lane.b32.xlu0 %v1227_v33, %s2887_s28  ;;  %1224 = vrot.lane.b32.xlu1 %v1223_v34, %s2886_s26  ;;  %v1368_v33 = vld [vmem:[%s3322_s5 + $0x18] sm:$0xff] }
 0x47f   : > { %v2773_v34 = vpack.c.bf16 %v1368_v33, %v1367_v32 }
 0x482   : > { %1217 = vrot.lane.b32.xlu1 %v1216_v35, %s3329_s29 }
 0x486   : > { %1232 = vrot.lane.b32.xlu1 %v1231_v36, %s3329_s29 }
 0x4b3   : > { %v1160_v37 = vpop.permute.xlu0 %1159 }
 0x4b4   : > { %v1170_v51 = vsel %vm492_vm2, %v3058_v7, %v1160_v37 }
 0x4b7   : > { %v1164_v38 = vpop.permute.xlu0 %1163  ;;  %v1178_v39 = vpop.permute.xlu1 %1177 }
 0x4b8   : > { %v1188_v43 = vsel %vm492_vm2, %v3058_v7, %v1178_v39  ;;  %v1172_v54 = vsel %vm1171_vm6, %v1170_v51, %v1164_v38  ;;  %v1357_v38 = vsub.s32 4, %v3121_v16  ;;  %v1362_v39 = vsub.s32 5, %v3121_v16 }
 0x4bb   : > { %v1168_v40 = vpop.permute.xlu0 %1167  ;;  %v1193_v41 = vpop.permute.xlu1 %1192 }
 0x4bc   : > { %v1204_v49 = vsel %vm492_vm2, %v821_v11, %v1193_v41  ;;  %v1174_v56 = vsel %vm1173_vm7, %v1172_v54, %v1168_v40  ;;  %v1358_v40 = vrot.slane %v3127_v18, %v1357_v38 }
 0x4bf   : > { %v1182_v42 = vpop.permute.xlu0 %1181  ;;  %v1186_v44 = vpop.permute.xlu1 %1185 }
 0x4c0   : > { %v1189_v45 = vsel %vm1171_vm6, %v1188_v43, %v1182_v42  ;;  %v1363_v43 = vrot.slane %v3127_v18, %v1362_v39 }
 0x4c1   : > { %v1190_v46 = vsel %vm1173_vm7, %v1189_v45, %v1186_v44 }
 0x4c2   : > { %v1239_v50 = vrot.slane %v1190_v46, 3  ;;  %v1371_v46 = vsub.s32 1, %v3121_v16 }
 0x4c4   : > { %v1251_v58 = vsel %vm1250_vm8, %v1174_v56, %v1239_v50 }
 0x4e8   : > { %v1209_v47 = vpop.permute.xlu1 %1208  ;;  %v1198_v48 = vpop.permute.xlu0 %1197 }
 0x4e9   : > { %v1205_v52 = vsel %vm1171_vm6, %v1204_v49, %v1198_v48  ;;  %v1220_v62 = vsel %vm492_vm2, %v987_v19, %v1209_v47  ;;  %v1265_v19 = vrot.slane %v3127_v18, %v1264_v17  ;;  %v1372_v47 = vrot.slane %v3127_v18, %v1371_v46 }
 0x4ec   : > { %v1202_v53 = vpop.permute.xlu1 %1201  ;;  %v1213_v59 = vpop.permute.xlu0 %1212 }
 0x4ed   : > { %v1206_v55 = vsel %vm1173_vm7, %v1205_v52, %v1202_v53  ;;  %v1221_v63 = vsel %vm1171_vm6, %v1220_v62, %v1213_v59 }
 0x4ee   : > { %v1242_v57 = vrot.slane %v1206_v55, 1 }
 0x4f0   : > { %v1253_v60 = vsel %vm1252_vm9, %v1251_v58, %v1242_v57  ;;  %v1225_v61 = vpop.permute.xlu1 %1224  ;;  %v1229_v1 = vpop.permute.xlu0 %1228 }
 0x4f1   : > { %v1235_v2 = vsel %vm492_vm2, %v1153_v26, %v1225_v61 }
 0x4f2   : > { %v1236_v9 = vsel %vm1171_vm6, %v1235_v2, %v1229_v1 }
 0x4f4   : > { %v1218_v0 = vpop.permute.xlu1 %1217 }
 0x4f5   : > { %v1222_v4 = vsel %vm1173_vm7, %v1221_v63, %v1218_v0 }
 0x4f6   : > { %v1245_v5 = vrot.slane %v1222_v4, 7 }
 0x4f8   : > { %v1255_v7 = vsel %vm1254_vm10, %v1253_v60, %v1245_v5  ;;  %v1233_v10 = vpop.permute.xlu1 %1232 }
 0x4f9   : > { %v1237_v11 = vsel %vm1173_vm7, %v1236_v9, %v1233_v10 }
 0x4fa   : > { %v1248_v12 = vrot.slane %v1237_v11, 5 }
 0x4fc   : > { %v1257_v14 = vsel %vm1256_vm11, %v1255_v7, %v1248_v12 }
 0x4fd   : > { %2663 = vmatmul.mubr.msk.f32.vlgmr.msra.gmra.mrb[6].mxu0 %vm414_vm1, %v1257_v14 }
 0x4fe   : > { %2677 = vmatpush3.xpose.msk.msra.mxu0 %vm492_vm2, %v3113_v13  ;;  %2678 = vmatprep.mubr.msk.f32.mxu0 %vm2873_vm0, %v2874_v6 }
 0x4ff   : > { %2686 = vmatprep.subr.mxu0 %v2874_v6 }
 0x5d0   : > { %v1335_v20 = vpop.f32.mrb[6].mxu0 }
 0x5d1   : > { %v1336_v21 = vadd.f32 %v1335_v20, %v1265_v19  ;;  %v2664_v22 = vpop.f32.mrb[7].mxu0 }
 0x5d3   : > { %v1339_v23 = vadd.f32 %v1336_v21, %v2982_v8  ;;  %v1365_v8 = vld [vmem:[%s3322_s5] sm:$0xff] }
 0x5d4   : > { %v2770_v31 = vpack.c.bf16 %v1366_v30, %v1365_v8 }
 0x5d5   : > { %v1341_v24 = vsel %vm1340_vm12, %v1339_v23, 0.0 }
 0x5d6   : > { %1342 = vadd.xlane.f32.xlu0 %v1341_v24  ;;  %2771 = vmatpush3.bf16.msra.mxu1 %v2770_v31 }
 0x5d7   : > { %2772 = vmatprep.subr.bf16.mxu1 %v2872_v3 }
 0x5da   : > { %2774 = vmatpush3.bf16.msra.mxu1 %v2773_v34 }
 0x5db   : > { %2681 = vmatprep.subr.mxu1 %v2874_v6 }
 0x5ec   : > { %1613 = vrot.lane.b32.xlu0 %v3113_v13, %s2876_s15 }
 0x5f0   : > { %1778 = vrot.lane.b32.xlu0 %v3113_v13, %s2879_s19 }
 0x5f4   : > { %1943 = vrot.lane.b32.xlu0 %v3113_v13, %s2881_s21 }
 0x663   : > { %v1343_v25 = vpop.xlane.xlu0 %1342 }
 0x664   : > { %v1345_v26 = vmul.f32 0.03125, %v1343_v25 }
 0x666   : > { %v1346_v27 = vsub.f32 %v1339_v23, %v1345_v26 }
 0x667   : > { %v1614_v52 = vpop.permute.xlu0 %1613 }
 0x668   : > { %v1347_v28 = vmul.f32 %v1346_v27, %v1346_v27 }
 0x66a   : > { %v1348_v29 = vsel %vm1340_vm12, %v1347_v28, 0.0 }
 0x66b   : > { %1349 = vadd.xlane.f32.xlu1 %v1348_v29  ;;  %v1779_v53 = vpop.permute.xlu0 %1778 }
 0x66f   : > { %v1944_v55 = vpop.permute.xlu0 %1943 }
 0x6f8   : > { %v1350_v35 = vpop.xlane.xlu1 %1349 }
 0x6f9   : > { %v1351_v36 = vmul.f32 0.03125, %v1350_v35 }
 0x6fb   : > { %v1352_v37 = vadd.f32 1e-05, %v1351_v36 }
 0x6fd   : > { %2840 = vrsqrt.f32 %v1352_v37 }
 0x707   : > { %v2841_v41 = vpop.eup %2840 }
 0x708   : > { %v1354_v42 = vmul.f32 %v2841_v41, %v1346_v27 }
 0x70a   : > { %v1359_v44 = vmul.f32 %v1358_v40, %v1354_v42 }
 0x70c   : > { %v3159_v45 = vadd.f32 %v1363_v43, %v1359_v44 }
 0x70e   : > { %2674 = vmatmul.mubr.msk.f32.vlgmr.msra.gmra.mrb[12].mxu1 %vm414_vm1, %v3159_v45 }
 0x70f   : > { %2683 = vmatprep.mubr.msk.f32.mxu1 %vm2873_vm0, %v2874_v6 }
 0x7e1   : > { %v1442_v48 = vpop.f32.mrb[12].mxu1 }
 0x7e2   : > { %v1443_v49 = vadd.f32 %v1442_v48, %v1372_v47  ;;  %v2675_v50 = vpop.f32.mrb[13].mxu1 }
 0x7e4   : > { %v1446_v51 = vmul.f32 0.35355338, %v1443_v49 }
 0x7e6   : > { %1611 = vrot.lane.b32.xlu1 %v1446_v51, %s2876_s15  ;;  %2679 = vmatmul.mubr.msk.f32.vlgmr.msra.gmra.mrb[8].mxu0 %vm492_vm2, %v1446_v51 }
 0x7e7   : > { %2687 = vmatpush3.xpose.msk.msra.mxu0 %vm492_vm2, %v1614_v52  ;;  %2688 = vmatprep.mubr.msk.f32.mxu0 %vm2873_vm0, %v2874_v6  ;;  %v2122_v52 = vld [vmem:[%s3323_s6 + $0x8] sm:$0xff] }
 0x7e8   : > { %2696 = vmatprep.subr.mxu0 %v2874_v6 }
 0x7ea   : > { %1776 = vrot.lane.b32.xlu1 %v1446_v51, %s2879_s19 }
 0x7ee   : > { %1941 = vrot.lane.b32.xlu1 %v1446_v51, %s2881_s21  ;;  %v2121_v51 = vld [vmem:[%s3323_s6] sm:$0xff] }
 0x858   : > { %v1612_v54 = vpop.permute.xlu1 %1611 }
 0x859   : > { %2689 = vmatmul.mubr.msk.f32.vlgmr.msra.gmra.mrb[10].mxu0 %vm492_vm2, %v1612_v54  ;;  %v2123_v54 = vld [vmem:[%s3323_s6 + $0x10] sm:$0xff] }
 0x85a   : > { %2697 = vmatpush3.xpose.msk.msra.mxu0 %vm492_vm2, %v1779_v53  ;;  %2698 = vmatprep.mubr.msk.f32.mxu0 %vm2873_vm0, %v2874_v6  ;;  %v2776_v53 = vpack.c.bf16 %v2122_v52, %v2121_v51  ;;  %v2532_v51 = vld [vmem:[%s3325_s8] ss:$0 sm:$0xff] }
 0x85b   : > { %2706 = vmatprep.subr.mxu0 %v2874_v6 }
 0x85c   : > { %v1777_v56 = vpop.permute.xlu1 %1776 }
 0x85d   : > { %2699 = vmatmul.mubr.msk.f32.vlgmr.msra.gmra.mrb[12].mxu0 %vm492_vm2, %v1777_v56 }
 0x85e   : > { %2707 = vmatpush3.xpose.msk.msra.mxu0 %vm492_vm2, %v1944_v55  ;;  %2708 = vmatprep.mubr.msk.f32.mxu0 %vm2873_vm0, %v2874_v6  ;;  %v2124_v55 = vld [vmem:[%s3323_s6 + $0x18] sm:$0xff] }
 0x85f   : > { %2775 = vmatprep.subr.bf16.mxu0 %v2872_v3  ;;  %v2779_v56 = vpack.c.bf16 %v2124_v55, %v2123_v54 }
 0x860   : > { %v1942_v57 = vpop.permute.xlu1 %1941 }
 0x861   : > { %2709 = vmatmul.mubr.msk.f32.vlgmr.msra.gmra.mrb[14].mxu0 %vm492_vm2, %v1942_v57 }
 0x862   : > { %2724 = vmatprep.mubr.msk.f32.mxu0 %vm2873_vm0, %v2874_v6  ;;  %2777 = vmatpush3.bf16.msra.mxu0 %v2776_v53 }
 0x863   : > { %2778 = vmatprep.subr.bf16.mxu0 %v2872_v3 }
 0x866   : > { %2780 = vmatpush3.bf16.msra.mxu0 %v2779_v56 }
 0x867   : > { %2787 = vmatprep.subr.bf16.mxu0 %v2872_v3 }
 0x8b9   : > { %v1519_v58 = vpop.f32.mrb[8].mxu0 }
 0x8ba   : > { %v2680_v59 = vpop.f32.mrb[9].mxu0  ;;  %v1524_v60 = vsel %vm1523_vm13, %v1519_v58, -inf }
 0x8bb   : > { %1525 = vmax.xlane.f32.xlu0 %v1524_v60 }
 0x92c   : > { %v1685_v61 = vpop.f32.mrb[10].mxu0 }
 0x92d   : > { %v2690_v62 = vpop.f32.mrb[11].mxu0  ;;  %v1689_v63 = vsel %vm1523_vm13, %v1685_v61, -inf }
 0x92e   : > { %1690 = vmax.xlane.f32.xlu1 %v1689_v63 }
 0x930   : > { %v1850_v0 = vpop.f32.mrb[12].mxu0 }
 0x931   : > { %v2700_v1 = vpop.f32.mrb[13].mxu0  ;;  %v1854_v2 = vsel %vm1523_vm13, %v1850_v0, -inf }
 0x932   : > { %1855 = vmax.xlane.f32.xlu0 %v1854_v2 }
 0x934   : > { %v2015_v4 = vpop.f32.mrb[14].mxu0 }
 0x935   : > { %v2710_v5 = vpop.f32.mrb[15].mxu0  ;;  %v2019_v7 = vsel %vm1523_vm13, %v2015_v4, -inf }
 0x936   : > { %2020 = vmax.xlane.f32.xlu0 %v2019_v7  ;;  %v2127_v7 = vsub.s32 2, %v3121_v16 }
 0x93f   : > { %1535 = vrot.lane.b32.xlu1 %v3113_v13, %s2875_s14 }
 0x948   : > { %v1526_v9 = vpop.xlane.xlu0 %1525 }
 0x949   : > { %v1527_v10 = vsub.f32 %v1519_v58, %v1526_v9  ;;  %v2128_v9 = vrot.slane %v3127_v18, %v2127_v7 }
 0x94b   : > { %v1528_v11 = vmul.f32 1.442695, %v1527_v10 }
 0x94d   : > { %2842 = vpow2.f32 %v1528_v11 }
 0x957   : > { %v2843_v12 = vpop.eup %2842 }
 0x958   : > { %v1530_v14 = vsel %vm1523_vm13, %v2843_v12, 0.0 }
 0x963   : > { %1531 = vadd.xlane.f32.xlu1 %v1530_v14 }
 0x9bb   : > { %v1691_v15 = vpop.xlane.xlu1 %1690 }
 0x9bc   : > { %v1692_v19 = vsub.f32 %v1685_v61, %v1691_v15 }
 0x9be   : > { %v1693_v20 = vmul.f32 1.442695, %v1692_v19 }
 0x9bf   : > { %v1856_v21 = vpop.xlane.xlu0 %1855  ;;  %v1536_v22 = vpop.permute.xlu1 %1535 }
 0x9c0   : > { %2844 = vpow2.f32 %v1693_v20  ;;  %v1857_v23 = vsub.f32 %v1850_v0, %v1856_v21  ;;  %2682 = vmatpush3.msra.mxu1 %v1536_v22 }
 0x9c1   : > { %2691 = vmatprep.subr.mxu1 %v2874_v6 }
 0x9c2   : > { %v1858_v24 = vmul.f32 1.442695, %v1857_v23 }
 0x9c3   : > { %v2021_v25 = vpop.xlane.xlu0 %2020 }
 0x9c4   : > { %2846 = vpow2.f32 %v1858_v24  ;;  %v2022_v26 = vsub.f32 %v2015_v4, %v2021_v25  ;;  %v2227_v24 = vld [vmem:[%s3324_s7 + $0x8] sm:$0xff] }
 0x9c6   : > { %v2023_v27 = vmul.f32 1.442695, %v2022_v26  ;;  %v2229_v26 = vld [vmem:[%s3324_s7 + $0x18] sm:$0xff] }
 0x9c8   : > { %2848 = vpow2.f32 %v2023_v27 }
 0x9ca   : > { %v2845_v28 = vpop.eup %2844 }
 0x9cb   : > { %v1695_v29 = vsel %vm1523_vm13, %v2845_v28, 0.0 }
 0x9cc   : > { %1696 = vadd.xlane.f32.xlu0 %v1695_v29 }
 0x9ce   : > { %v2847_v8 = vpop.eup %2846 }
 0x9cf   : > { %v1860_v30 = vsel %vm1523_vm13, %v2847_v8, 0.0 }
 0x9d0   : > { %1861 = vadd.xlane.f32.xlu1 %v1860_v30  ;;  %v2218_v30 = vsub.s32 6, %v3121_v16 }
 0x9d2   : > { %v2849_v31 = vpop.eup %2848 }
 0x9d3   : > { %v2025_v32 = vsel %vm1523_vm13, %v2849_v31, 0.0 }
 0x9d4   : > { %2026 = vadd.xlane.f32.xlu0 %v2025_v32  ;;  %v2219_v32 = vrot.slane %v3127_v18, %v2218_v30 }
 0x9e1   : > { %1865 = vrot.lane.b32.xlu1 %v3113_v13, %s2878_s18 }
 0x9e5   : > { %2030 = vrot.lane.b32.xlu1 %v3113_v13, %s2880_s20  ;;  %s398_s20 = scalar_lea.vmem %s3328_s11, %s2976_s27 }
 0x9ea   : > { %1700 = vrot.lane.b32.xlu0 %v3113_v13, %s2877_s16 }
 0x9f0   : > { %v1532_v33 = vpop.xlane.xlu1 %1531 }
 0x9f1   : > { %2850 = vrcp.f32 %v1532_v33 }
 0x9fb   : > { %v2851_v34 = vpop.eup %2850 }
 0x9fc   : > { %v1534_v35 = vmul.f32 %v2851_v34, %v2843_v12 }
 0x9fe   : > { %2684 = vmatmul.mubr.msk.f32.vlgmr.msra.gmra.mrb[14].mxu1 %vm492_vm2, %v1534_v35 }
 0x9ff   : > { %2693 = vmatprep.mubr.msk.f32.mxu1 %vm2873_vm0, %v2874_v6 }
 0xa59   : > { %v1697_v36 = vpop.xlane.xlu0 %1696 }
 0xa5a   : > { %2852 = vrcp.f32 %v1697_v36 }
 0xa5d   : > { %v1862_v37 = vpop.xlane.xlu1 %1861 }
 0xa5e   : > { %2854 = vrcp.f32 %v1862_v37 }
 0xa61   : > { %v2027_v38 = vpop.xlane.xlu0 %2026  ;;  %v1866_v39 = vpop.permute.xlu1 %1865 }
 0xa62   : > { %2856 = vrcp.f32 %v2027_v38  ;;  %v2315_v38 = vld [vmem:[%s3326_s9] sm:$0xff] }
 0xa64   : > { %v2853_v40 = vpop.eup %2852 }
 0xa65   : > { %v1699_v41 = vmul.f32 %v2853_v40, %v2845_v28  ;;  %v1701_v42 = vpop.permute.xlu0 %1700  ;;  %v2031_v44 = vpop.permute.xlu1 %2030 }
 0xa66   : > { %2692 = vmatpush3.msra.mxu1 %v1701_v42  ;;  %v2318_v42 = vld [vmem:[%s3326_s9 + $0x18] sm:$0xff] }
 0xa67   : > { %2694 = vmatmul.mubr.msk.f32.vlgmr.msra.gmra.mrb[16].mxu1 %vm492_vm2, %v1699_v41  ;;  %2701 = vmatprep.subr.mxu1 %v2874_v6  ;;  %v2317_v41 = vld [vmem:[%s3326_s9 + $0x10] sm:$0xff] }
 0xa68   : > { %v2855_v13 = vpop.eup %2854  ;;  %2702 = vmatpush3.msra.mxu1 %v1866_v39  ;;  %2703 = vmatprep.mubr.msk.f32.mxu1 %vm2873_vm0, %v2874_v6  ;;  %v2316_v39 = vld [vmem:[%s3326_s9 + $0x8] sm:$0xff] }
 0xa69   : > { %v1864_v43 = vmul.f32 %v2855_v13, %v2847_v8  ;;  %2711 = vmatprep.subr.mxu1 %v2874_v6  ;;  %v2788_v40 = vpack.c.bf16 %v2316_v39, %v2315_v38  ;;  %v2791_v13 = vpack.c.bf16 %v2318_v42, %v2317_v41 }
 0xa6b   : > { %2704 = vmatmul.mubr.msk.f32.vlgmr.msra.gmra.mrb[18].mxu1 %vm492_vm2, %v1864_v43  ;;  %v2319_v43 = vld [vmem:[%s3326_s9 + $0x20] sm:$0xff] }
 0xa6c   : > { %v2857_v47 = vpop.eup %2856  ;;  %2712 = vmatpush3.msra.mxu1 %v2031_v44  ;;  %2713 = vmatprep.mubr.msk.f32.mxu1 %vm2873_vm0, %v2874_v6  ;;  %v2320_v44 = vld [vmem:[%s3326_s9 + $0x28] sm:$0xff] }
 0xa6d   : > { %v2029_v48 = vmul.f32 %v2857_v47, %v2849_v31  ;;  %2781 = vmatprep.subr.bf16.mxu1 %v2872_v3  ;;  %v2223_v31 = vsub.s32 7, %v3121_v16  ;;  %v2794_v47 = vpack.c.bf16 %v2320_v44, %v2319_v43 }
 0xa6f   : > { %2714 = vmatmul.mubr.msk.f32.vlgmr.msra.gmra.mrb[20].mxu1 %vm492_vm2, %v2029_v48  ;;  %v2224_v35 = vrot.slane %v3127_v18, %v2223_v31  ;;  %v2321_v48 = vld [vmem:[%s3326_s9 + $0x30] sm:$0xff] }
 0xa70   : > { %2735 = vmatprep.mubr.msk.f32.mxu1 %vm2873_vm0, %v2874_v6 }
 0xad1   : > { %v1607_v49 = vpop.f32.mrb[14].mxu1 }
 0xad2   : > { %v2685_v50 = vpop.f32.mrb[15].mxu1 }
 0xb3a   : > { %v1772_v57 = vpop.f32.mrb[16].mxu1 }
 0xb3b   : > { %2107 = vrot.lane.b32.xlu0 %v1772_v57, %s2886_s26  ;;  %v2695_v58 = vpop.f32.mrb[17].mxu1 }
 0xb3e   : > { %v1937_v59 = vpop.f32.mrb[18].mxu1 }
 0xb3f   : > { %2111 = vrot.lane.b32.xlu1 %v1937_v59, %s2887_s28  ;;  %v2705_v60 = vpop.f32.mrb[19].mxu1  ;;  %v2325_v59 = vsub.s32 3, %v3121_v16 }
 0xb41   : > { %v2326_v60 = vrot.slane %v3127_v18, %v2325_v59  ;;  %v401_v18 = vld [vmem:[%s3327_s10 + $0x8] sm:$0x3] }
 0xb42   : > { %v2102_v61 = vpop.f32.mrb[20].mxu1 }
 0xb43   : > { %2115 = vrot.lane.b32.xlu0 %v2102_v61, %s3330_s25  ;;  %v2715_v62 = vpop.f32.mrb[21].mxu1 }
 0xbad   : > { %v2108_v63 = vpop.permute.xlu0 %2107 }
 0xbae   : > { %v2118_v1 = vsel %vm492_vm2, %v1607_v49, %v2108_v63  ;;  %v2322_v49 = vld [vmem:[%s3326_s9 + $0x38] sm:$0xff] }
 0xbaf   : > { %v2797_v50 = vpack.c.bf16 %v2322_v49, %v2321_v48 }
 0xbb1   : > { %v2112_v0 = vpop.permute.xlu1 %2111 }
 0xbb2   : > { %v2119_v2 = vsel %vm1171_vm6, %v2118_v1, %v2112_v0 }
 0xbb5   : > { %v2116_v4 = vpop.permute.xlu0 %2115 }
 0xbb6   : > { %v2120_v5 = vsel %vm1173_vm7, %v2119_v2, %v2116_v4 }
 0xbb7   : > { %2725 = vmatmul.mubr.msk.f32.vlgmr.msra.gmra.mrb[16].mxu0 %vm414_vm1, %v2120_v5 }
 0xbb8   : > { %2754 = vmatprep.mubr.msk.f32.mxu0 %vm2873_vm0, %v2874_v6  ;;  %v2226_v6 = vld [vmem:[%s3324_s7] sm:$0xff]  ;;  %2789 = vmatpush3.bf16.msra.mxu0 %v2788_v40 }
 0xbb9   : > { %v2782_v25 = vpack.c.bf16 %v2227_v24, %v2226_v6  ;;  %2790 = vmatprep.subr.bf16.mxu0 %v2872_v3 }
 0xbbb   : > { %2783 = vmatpush3.bf16.msra.mxu1 %v2782_v25 }
 0xbbc   : > { %2784 = vmatprep.subr.bf16.mxu1 %v2872_v3  ;;  %2792 = vmatpush3.bf16.msra.mxu0 %v2791_v13 }
 0xbbd   : > { %2793 = vmatprep.subr.bf16.mxu0 %v2872_v3 }
 0xbc0   : > { %2795 = vmatpush3.bf16.msra.mxu0 %v2794_v47 }
 0xbc1   : > { %2796 = vmatprep.subr.bf16.mxu0 %v2872_v3 }
 0xbc4   : > { %2798 = vmatpush3.bf16.msra.mxu0 %v2797_v50 }
 0xc8a   : > { %v2198_v10 = vpop.f32.mrb[16].mxu0 }
 0xc8b   : > { %v2199_v11 = vadd.f32 %v2198_v10, %v2128_v9  ;;  %v2726_v12 = vpop.f32.mrb[17].mxu0 }
 0xc8d   : > { %v2202_v14 = vadd.f32 %v2199_v11, %v3159_v45  ;;  %v2228_v45 = vld [vmem:[%s3324_s7 + $0x10] sm:$0xff] }
 0xc8e   : > { %v2785_v27 = vpack.c.bf16 %v2229_v26, %v2228_v45 }
 0xc8f   : > { %v2203_v15 = vsel %vm1340_vm12, %v2202_v14, 0.0 }
 0xc90   : > { %2204 = vadd.xlane.f32.xlu1 %v2203_v15  ;;  %2786 = vmatpush3.bf16.msra.mxu1 %v2785_v27 }
 0xd1d   : > { %v2205_v19 = vpop.xlane.xlu1 %2204 }
 0xd1e   : > { %v2206_v20 = vmul.f32 0.03125, %v2205_v19  ;;  %v2423_v19 = vrot.slane %v401_v18, %v1371_v46 }
 0xd20   : > { %v2207_v21 = vsub.f32 %v2202_v14, %v2206_v20  ;;  %v2418_v14 = vrot.slane %v401_v18, %v1264_v17 }
 0xd22   : > { %v2208_v22 = vmul.f32 %v2207_v21, %v2207_v21 }
 0xd24   : > { %v2209_v23 = vsel %vm1340_vm12, %v2208_v22, 0.0 }
 0xd25   : > { %2210 = vadd.xlane.f32.xlu0 %v2209_v23 }
 0xdb2   : > { %v2211_v28 = vpop.xlane.xlu0 %2210 }
 0xdb3   : > { %v2212_v29 = vmul.f32 0.03125, %v2211_v28 }
 0xdb5   : > { %v2213_v8 = vadd.f32 1e-05, %v2212_v29 }
 0xdb7   : > { %2858 = vrsqrt.f32 %v2213_v8 }
 0xdc1   : > { %v2859_v33 = vpop.eup %2858 }
 0xdc2   : > { %v2215_v34 = vmul.f32 %v2859_v33, %v2207_v21 }
 0xdc4   : > { %v2220_v36 = vmul.f32 %v2219_v32, %v2215_v34 }
 0xdc6   : > { %v2225_v37 = vadd.f32 %v2224_v35, %v2220_v36 }
 0xdc8   : > { %2736 = vmatmul.mubr.msk.f32.vlgmr.msra.gmra.mrb[22].mxu1 %vm414_vm1, %v2225_v37 }
 0xe9b   : > { %v2306_v52 = vpop.f32.mrb[22].mxu1 }
 0xe9c   : > { %v2307_v53 = vadd.f32 %v2532_v51, %v2306_v52  ;;  %v2737_v54 = vpop.f32.mrb[23].mxu1 }
 0xe9e   : > { %v2311_v55 = vmul.f32 0.70710677, %v2307_v53  ;;  %v2310_v56 = vmul.f32 0.5, %v2307_v53 }
 0xea0   : > { %2860 = verf.f32 %v2311_v55 }
 0xeaa   : > { %v2861_v3 = vpop.eup %2860 }
 0xeab   : > { %v2313_v57 = vadd.f32 1.0, %v2861_v3 }
 0xead   : > { %v2314_v58 = vmul.f32 %v2313_v57, %v2310_v56 }
 0xeaf   : > { %2755 = vmatmul.mubr.msk.f32.vlgmr.msra.gmra.mrb[18].mxu0 %vm2327_vm14, %v2314_v58 }
 0xf82   : > { %v2397_v61 = vpop.f32.mrb[18].mxu0 }
 0xf83   : > { %v2398_v62 = vadd.f32 %v2397_v61, %v2326_v60  ;;  %v2756_v63 = vpop.f32.mrb[19].mxu0 }
 0xf85   : > { %v2401_v0 = vadd.f32 %v2398_v62, %v2225_v37 }
 0xf87   : > { %v2402_v1 = vsel %vm1340_vm12, %v2401_v0, 0.0 }
 0xf88   : > { %2403 = vadd.xlane.f32.xlu0 %v2402_v1 }
0x1015   : > { %v2404_v2 = vpop.xlane.xlu0 %2403 }
0x1016   : > { %v2405_v4 = vmul.f32 0.03125, %v2404_v2 }
0x1018   : > { %v2406_v5 = vsub.f32 %v2401_v0, %v2405_v4 }
0x101a   : > { %v2407_v7 = vmul.f32 %v2406_v5, %v2406_v5 }
0x101c   : > { %v2408_v9 = vsel %vm1340_vm12, %v2407_v7, 0.0 }
0x101d   : > { %2409 = vadd.xlane.f32.xlu1 %v2408_v9 }
0x10aa   : > { %v2410_v10 = vpop.xlane.xlu1 %2409 }
0x10ab   : > { %v2411_v11 = vmul.f32 0.03125, %v2410_v10 }
0x10ad   : > { %v2412_v12 = vadd.f32 1e-05, %v2411_v11 }
0x10af   : > { %2862 = vrsqrt.f32 %v2412_v12 }
0x10b9   : > { %v2863_v15 = vpop.eup %2862 }
0x10ba   : > { %v2414_v20 = vmul.f32 %v2863_v15, %v2406_v5 }
0x10bc   : > { %v2419_v21 = vmul.f32 %v2418_v14, %v2414_v20 }
0x10be   : > { %v2424_v22 = vadd.f32 %v2423_v19, %v2419_v21 }
0x10c0   : > { %2425 = vst.msk [vmem:[%s398_s20] sm:$0x1f] %vm1340_vm12, %v2424_v22 }
0x10c1 PF: > { %s21_s17 = sadd.s32 1, %s2870_s17  }
0x10c2   : > { %p18_p4 = scmp.ge.s32.totalorder %s21_s17, 4  }
0x10c4   :  { %20 = sbr.rel (!%p18_p4) target bundleno = 1 (0x1), region = 97 }

// kernel: informer_forward.28
= control target key start
LH: loop header
LB: loop body
LE: loop exit
PB: predicated region body
PF: predicated region fallthrough
CT: control target
= control target key end

     0   :  { %s341_s17 = smov 0   ;;  %s371_s0 = inlined_call_operand.vmem [shape: f32[2,6,32], index: 0, kind: input, shape index: {}]   ;;  %s372_s1 = inlined_call_operand.vmem [shape: f32[2,32], index: 1, kind: input, shape index: {}]   ;;  %s373_s2 = inlined_call_operand.vmem [shape: f32[1,32], index: 2, kind: input, shape index: {}]   ;;  %s374_s3 = inlined_call_operand.<no memory space> [shape: f32[1,1], index: 3, kind: input, shape index: {}]   ;;  %s375_s4 = inlined_call_operand.vmem [shape: f32[2,1,1], index: 4, kind: output, shape index: {}]  }
   0x1   :  { %v9_v0 = vstv %s374_s3 }
   0x2   :  { %10 = vst [vmem:[#allocation2] sm:$0x1] %v9_v0 }
   0x3 LB: > { %s285_s18 = sadd.s32 4294967295, %s311_s17   ;;  %p289_p0 = scmp.ge.s32.totalorder %s311_s17, 1  ;;  %s311_s17 = sphi %s341_s17, %s16_s17  }
   0x4   : > { %p163_p1 = scmp.lt.s32.totalorder %s311_s17, 3 }
   0x6   : > { %p164_p2 = pnand %p289_p0, %p163_p1 }
   0x7   : > { %p186_p3 = scmp.lt.s32.totalorder (!%p164_p2), %s285_s18, 1  ;;  %vm195_vm0 = vcmask (!%p164_p2), 259077   ;;  %v194_v11 = vld [vmem:[%s372_s1] sm:$0x3] (!%p164_p2)  ;;  %vm236_vm1 = vcmask (!%p164_p2), 5125  }
   0x8   : > { %167 = sbr.rel (%p164_p2) target bundleno = 480 (0x1e0), region = 36  ;;  %v211_v12 = vrot.slane (!%p164_p2), %v194_v11, 3  ;;  %v214_v15 = vrot.slane (!%p164_p2), %v194_v11, 4  ;;  %v291_v17 = vld [vmem:[%s373_s2] ss:$0 sm:$0xff] (!%p164_p2) }
   0x9   : > { %v292_v21 = vld [vmem:[#allocation2] ss:$0 sm:$0xff] (!%p164_p2) }
   0xf   : > { %s377_s18 = smov (!%p186_p3, %s285_s18), 1 }
  0x10   : > { %s290_s3 = sshll.u32 %s377_s18, 3  ;;  %s192_s28 = scalar_lea.vmem %s375_s4, %s377_s18 }
  0x11   : > { %s189_s21 = scalar_lea.vmem %s371_s0, %s290_s3 }
  0x12   : > { %v193_v1 = vld [vmem:[%s189_s21] sm:$0x3f] }
  0x13   : > { %v196_v2 = vsel %vm195_vm0, %v193_v1, 0.0 }
  0x14   : > { %197 = vadd.xlane.f32.xlu0 %v196_v2 }
  0xa1   : > { %v198_v3 = vpop.xlane.xlu0 %197 }
  0xa2   : > { %v200_v4 = vmul.f32 0.03125, %v198_v3 }
  0xa4   : > { %v201_v5 = vsub.f32 %v193_v1, %v200_v4 }
  0xa6   : > { %v202_v6 = vmul.f32 %v201_v5, %v201_v5 }
  0xa8   : > { %v203_v7 = vsel %vm195_vm0, %v202_v6, 0.0 }
  0xa9   : > { %204 = vadd.xlane.f32.xlu0 %v203_v7 }
 0x136   : > { %v205_v8 = vpop.xlane.xlu0 %204 }
 0x137   : > { %v206_v9 = vmul.f32 0.03125, %v205_v8 }
 0x139   : > { %v207_v10 = vadd.f32 1e-05, %v206_v9 }
 0x13b   : > { %303 = vrsqrt.f32 %v207_v10 }
 0x145   : > { %v304_v13 = vpop.eup %303 }
 0x146   : > { %v209_v14 = vmul.f32 %v304_v13, %v201_v5 }
 0x148   : > { %v213_v16 = vmul.f32 %v211_v12, %v209_v14 }
 0x14a   : > { %v216_v18 = vadd.f32 %v214_v15, %v213_v16 }
 0x14c   : > { %v224_v19 = vmul.f32 %v291_v17, %v216_v18 }
 0x14e   : > { %v225_v20 = vsel %vm195_vm0, %v224_v19, 0.0 }
 0x14f   : > { %226 = vadd.xlane.f32.xlu1 %v225_v20 }
 0x1dc   : > { %v227_v22 = vpop.xlane.xlu1 %226 }
 0x1dd   : > { %v235_v23 = vadd.f32 %v292_v21, %v227_v22 }
 0x1df   : > { %237 = vst.msk [vmem:[%s192_s28 - $0x5] sm:$0x20] %vm236_vm1, %v235_v23 }
 0x1e0 PF: > { %s16_s17 = sadd.s32 1, %s311_s17  }
 0x1e1   : > { %p13_p4 = scmp.ge.s32.totalorder %s16_s17, 4  }
 0x1e3   :  { %15 = sbr.rel (!%p13_p4) target bundleno = 3 (0x3), region = 66 }

// kernel: informer_forward.31
= control target key start
LH: loop header
LB: loop body
LE: loop exit
PB: predicated region body
PF: predicated region fallthrough
CT: control target
= control target key end

     0   :  { %s341_s17 = smov 0   ;;  %s371_s0 = inlined_call_operand.vmem [shape: f32[2,7,32], index: 0, kind: input, shape index: {}]   ;;  %s372_s1 = inlined_call_operand.vmem [shape: f32[2,32], index: 1, kind: input, shape index: {}]   ;;  %s373_s2 = inlined_call_operand.vmem [shape: f32[1,32], index: 2, kind: input, shape index: {}]   ;;  %s374_s3 = inlined_call_operand.<no memory space> [shape: f32[1,1], index: 3, kind: input, shape index: {}]   ;;  %s375_s4 = inlined_call_operand.vmem [shape: f32[2,1,1], index: 4, kind: output, shape index: {}]  }
   0x1   :  { %v9_v0 = vstv %s374_s3 }
   0x2   :  { %10 = vst [vmem:[#allocation2] sm:$0x1] %v9_v0 }
   0x3 LB: > { %s285_s18 = sadd.s32 4294967295, %s311_s17   ;;  %p289_p0 = scmp.ge.s32.totalorder %s311_s17, 1  ;;  %s311_s17 = sphi %s341_s17, %s16_s17  }
   0x4   : > { %p163_p1 = scmp.lt.s32.totalorder %s311_s17, 3 }
   0x6   : > { %p164_p2 = pnand %p289_p0, %p163_p1 }
   0x7   : > { %p186_p3 = scmp.lt.s32.totalorder (!%p164_p2), %s285_s18, 1  ;;  %vm195_vm0 = vcmask (!%p164_p2), 260102   ;;  %v194_v11 = vld [vmem:[%s372_s1] sm:$0x3] (!%p164_p2)  ;;  %vm236_vm1 = vcmask (!%p164_p2), 6150  }
   0x8   : > { %167 = sbr.rel (%p164_p2) target bundleno = 480 (0x1e0), region = 36  ;;  %v211_v12 = vrot.slane (!%p164_p2), %v194_v11, 2  ;;  %v214_v15 = vrot.slane (!%p164_p2), %v194_v11, 3  ;;  %v291_v17 = vld [vmem:[%s373_s2] ss:$0 sm:$0xff] (!%p164_p2) }
   0x9   : > { %v292_v21 = vld [vmem:[#allocation2] ss:$0 sm:$0xff] (!%p164_p2) }
   0xf   : > { %s377_s18 = smov (!%p186_p3, %s285_s18), 1 }
  0x10   : > { %s290_s3 = sshll.u32 %s377_s18, 3  ;;  %s192_s28 = scalar_lea.vmem %s375_s4, %s377_s18 }
  0x11   : > { %s189_s21 = scalar_lea.vmem %s371_s0, %s290_s3 }
  0x12   : > { %v193_v1 = vld [vmem:[%s189_s21] sm:$0x7f] }
  0x13   : > { %v196_v2 = vsel %vm195_vm0, %v193_v1, 0.0 }
  0x14   : > { %197 = vadd.xlane.f32.xlu0 %v196_v2 }
  0xa1   : > { %v198_v3 = vpop.xlane.xlu0 %197 }
  0xa2   : > { %v200_v4 = vmul.f32 0.03125, %v198_v3 }
  0xa4   : > { %v201_v5 = vsub.f32 %v193_v1, %v200_v4 }
  0xa6   : > { %v202_v6 = vmul.f32 %v201_v5, %v201_v5 }
  0xa8   : > { %v203_v7 = vsel %vm195_vm0, %v202_v6, 0.0 }
  0xa9   : > { %204 = vadd.xlane.f32.xlu0 %v203_v7 }
 0x136   : > { %v205_v8 = vpop.xlane.xlu0 %204 }
 0x137   : > { %v206_v9 = vmul.f32 0.03125, %v205_v8 }
 0x139   : > { %v207_v10 = vadd.f32 1e-05, %v206_v9 }
 0x13b   : > { %303 = vrsqrt.f32 %v207_v10 }
 0x145   : > { %v304_v13 = vpop.eup %303 }
 0x146   : > { %v209_v14 = vmul.f32 %v304_v13, %v201_v5 }
 0x148   : > { %v213_v16 = vmul.f32 %v211_v12, %v209_v14 }
 0x14a   : > { %v216_v18 = vadd.f32 %v214_v15, %v213_v16 }
 0x14c   : > { %v224_v19 = vmul.f32 %v291_v17, %v216_v18 }
 0x14e   : > { %v225_v20 = vsel %vm195_vm0, %v224_v19, 0.0 }
 0x14f   : > { %226 = vadd.xlane.f32.xlu1 %v225_v20 }
 0x1dc   : > { %v227_v22 = vpop.xlane.xlu1 %226 }
 0x1dd   : > { %v235_v23 = vadd.f32 %v292_v21, %v227_v22 }
 0x1df   : > { %237 = vst.msk [vmem:[%s192_s28 - $0x6] sm:$0x40] %vm236_vm1, %v235_v23 }
 0x1e0 PF: > { %s16_s17 = sadd.s32 1, %s311_s17  }
 0x1e1   : > { %p13_p4 = scmp.ge.s32.totalorder %s16_s17, 4  }
 0x1e3   :  { %15 = sbr.rel (!%p13_p4) target bundleno = 3 (0x3), region = 66 }

// kernel: informer_forward.29
= control target key start
LH: loop header
LB: loop body
LE: loop exit
PB: predicated region body
PF: predicated region fallthrough
CT: control target
= control target key end

     0   :  { %s549_s12 = smov 0   ;;  %s587_s0 = inlined_call_operand.vmem [shape: f32[2,7,3], index: 0, kind: input, shape index: {}]   ;;  %s588_s1 = inlined_call_operand.vmem [shape: f32[9,32], index: 1, kind: input, shape index: {}]   ;;  %s589_s2 = inlined_call_operand.vmem [shape: f32[64,32], index: 2, kind: input, shape index: {}]   ;;  %s590_s3 = inlined_call_operand.vmem [shape: f32[2,7,32], index: 3, kind: output, shape index: {}]  }
   0x1 LB: > { %s473_s13 = sadd.s32 4294967295, %s525_s12   ;;  %p477_p0 = scmp.ge.s32.totalorder %s525_s12, 1  ;;  %s525_s12 = sphi %s549_s12, %s13_s12  }
   0x2   : > { %p136_p1 = scmp.lt.s32.totalorder %s525_s12, 3 }
   0x4   : > { %p137_p2 = pnand %p477_p0, %p136_p1 }
   0x5   : > { %v167_v0 = vld [vmem:[%s588_s1] sm:$0xff] (!%p137_p2)  ;;  %vm187_vm0 = vcmask (!%p137_p2), 1042432   ;;  %p158_p3 = scmp.lt.s32.totalorder (!%p137_p2), %s473_s13, 1  ;;  %v527_v1 = vmov (!%p137_p2), 0.0   ;;  %vm528_vm1 = vmmov (!%p137_p2), 0   ;;  %vm336_vm2 = vcmask (!%p137_p2), 1041408  }
   0x6   : > { %140 = sbr.rel (%p137_p2) target bundleno = 239 (0xef), region = 32  ;;  %494 = vmatprep.subr.mxu0 (!%p137_p2), %v527_v1  ;;  %v183_v2 = vrot.slane (!%p137_p2), %v167_v0, 3  ;;  %v337_v3 = vrot.slane (!%p137_p2), %v167_v0, 6  ;;  %496 = vmatprep.mubr.msk.f32.mxu0 (!%p137_p2), %vm528_vm1, %v527_v1  ;;  %v168_v4 = vld [vmem:[%s588_s1 + $0x8] sm:$0x1] (!%p137_p2)  ;;  %vm184_vm3 = vcmask (!%p137_p2), 23552  }
   0x7   : > { %499 = vmatprep.subr.mxu1 (!%p137_p2), %v527_v1  ;;  %v338_v5 = vrot.slane (!%p137_p2), %v168_v4, 6  ;;  %501 = vmatprep.mubr.msk.f32.mxu1 (!%p137_p2), %vm528_vm1, %v527_v1  ;;  %vm174_vm4 = vcmask (!%p137_p2), 1040384   ;;  %vm180_vm5 = vcmask (!%p137_p2), 1045504   ;;  %v416_v20 = vld [vmem:[%s589_s2] sm:$0xff] (!%p137_p2)  ;;  %vm418_vm6 = vcmask (!%p137_p2), 260096  }
   0x8   : > { %495 = vmatpush3.msk.msra.mxu0 (!%p137_p2), %vm187_vm0, %v183_v2  ;;  %500 = vmatpush3.msk.msra.mxu1 (!%p137_p2), %vm187_vm0, %v167_v0 }
   0x9   : > { %504 = vmatprep.subr.mxu0 (!%p137_p2), %v527_v1  ;;  %v339_v6 = vsel (!%p137_p2), %vm336_vm2, %v337_v3, %v338_v5 }
   0xd   : > { %s592_s13 = smov (!%p158_p3, %s473_s13), 1 }
   0xe   : > { %s478_s18 = sshll.u32 %s592_s13, 3 }
   0xf   : > { %s161_s21 = scalar_lea.vmem %s587_s0, %s478_s18  ;;  %s165_s26 = scalar_lea.vmem %s590_s3, %s478_s18 }
  0x10   : > { %v166_v7 = vld [vmem:[%s161_s21] sm:$0x7f] }
  0x11   : > { %497 = vmatmul.mubr.msk.f32.vlgmr.msra.gmra.mrb[0].mxu0 %vm184_vm3, %v166_v7  ;;  %v170_v8 = vrot.slane %v166_v7, 6  ;;  %v172_v9 = vrot.slane %v166_v7, 7  ;;  %v176_v10 = vrot.slane %v166_v7, 1  ;;  %v178_v11 = vrot.slane %v166_v7, 2 }
  0x12   : > { %505 = vmatpush3.msk.msra.mxu0 %vm187_vm0, %v339_v6  ;;  %506 = vmatprep.mubr.msk.f32.mxu0 %vm528_vm1, %v527_v1 }
  0x13   : > { %v175_v12 = vsel %vm174_vm4, %v170_v8, %v172_v9  ;;  %v181_v13 = vsel %vm180_vm5, %v176_v10, %v178_v11 }
  0x14   : > { %502 = vmatmul.mubr.msk.f32.vlgmr.msra.gmra.mrb[0].mxu1 %vm184_vm3, %v175_v12 }
  0x15   : > { %507 = vmatmul.mubr.msk.f32.vlgmr.msra.gmra.mrb[2].mxu0 %vm184_vm3, %v181_v13 }
  0xe4   : > { %v256_v14 = vpop.f32.mrb[0].mxu0 }
  0xe5   : > { %v498_v15 = vpop.f32.mrb[1].mxu0 }
  0xe7   : > { %v331_v16 = vpop.f32.mrb[0].mxu1 }
  0xe8   : > { %v332_v17 = vadd.f32 %v331_v16, %v256_v14  ;;  %v503_v18 = vpop.f32.mrb[1].mxu1  ;;  %v411_v19 = vpop.f32.mrb[2].mxu0 }
  0xe9   : > { %v508_v21 = vpop.f32.mrb[3].mxu0 }
  0xea   : > { %v415_v22 = vadd.f32 %v411_v19, %v332_v17 }
  0xec   : > { %v417_v23 = vadd.f32 %v416_v20, %v415_v22 }
  0xee   : > { %419 = vst.msk [vmem:[%s165_s26] sm:$0x7f] %vm418_vm6, %v417_v23 }
  0xef PF: > { %s13_s12 = sadd.s32 1, %s525_s12  }
  0xf0   : > { %p10_p4 = scmp.ge.s32.totalorder %s13_s12, 4  }
  0xf2   :  { %12 = sbr.rel (!%p10_p4) target bundleno = 1 (0x1), region = 62 }

// kernel: informer_forward.27
= control target key start
LH: loop header
LB: loop body
LE: loop exit
PB: predicated region body
PF: predicated region fallthrough
CT: control target
= control target key end

     0   :  { %s2953_s17 = smov 0   ;;  %s3316_s0 = inlined_call_operand.vmem [shape: f32[2,6,32], index: 0, kind: input, shape index: {}]   ;;  %s3317_s1 = inlined_call_operand.vmem [shape: f32[2,8,64], index: 1, kind: input, shape index: {}]   ;;  %s3318_s2 = inlined_call_operand.vmem [shape: f32[32,96], index: 2, kind: input, shape index: {}]   ;;  %s3319_s3 = inlined_call_operand.vmem [shape: f32[1,96], index: 3, kind: input, shape index: {}]   ;;  %s3320_s4 = inlined_call_operand.vmem [shape: f32[32,32], index: 4, kind: input, shape index: {}]   ;;  %s3321_s5 = inlined_call_operand.vmem [shape: f32[32,32], index: 5, kind: input, shape index: {}]   ;;  %s3322_s6 = inlined_call_operand.vmem [shape: f32[32,32], index: 6, kind: input, shape index: {}]   ;;  %s3323_s7 = inlined_call_operand.vmem [shape: f32[32,64], index: 7, kind: input, shape index: {}]   ;;  %s3324_s8 = inlined_call_operand.vmem [shape: f32[1,64], index: 8, kind: input, shape index: {}]   ;;  %s3325_s9 = inlined_call_operand.vmem [shape: f32[64,32], index: 9, kind: input, shape index: {}]   ;;  %s3326_s10 = inlined_call_operand.vmem [shape: f32[10,32], index: 10, kind: input, shape index: {}]   ;;  %s3327_s11 = inlined_call_operand.vmem [shape: f32[2,6,32], index: 11, kind: output, shape index: {}]  }
   0x1 LB: > { %s2495_s18 = sadd.s32 4294967295, %s2874_s17   ;;  %p2499_p0 = scmp.ge.s32.totalorder %s2874_s17, 1  ;;  %s2874_s17 = sphi %s2953_s17, %s21_s17  }
   0x2   : > { %p345_p1 = scmp.lt.s32.totalorder %s2874_s17, 3 }
   0x4   : > { %p346_p2 = pnand %p2499_p0, %p345_p1 }
   0x5   : > { %v403_v0 = vld [vmem:[%s3318_s2] sm:$0xff] (!%p346_p2)  ;;  %v404_v1 = vld [vmem:[%s3318_s2 + $0x8] sm:$0xff] (!%p346_p2)  ;;  %v405_v2 = vld [vmem:[%s3318_s2 + $0x10] sm:$0xff] (!%p346_p2)  ;;  %v2876_v3 = vmov (!%p346_p2), 0.0|0.0   ;;  %vm2877_vm0 = vmmov (!%p346_p2), 0   ;;  %v2878_v6 = vmov (!%p346_p2), 0.0  }
   0x6   : > { %349 = sbr.rel (%p346_p2) target bundleno = 4288 (0x10c0), region = 64  ;;  %2761 = vmatprep.subr.bf16.mxu1 (!%p346_p2), %v2876_v3  ;;  %v2762_v4 = vpack.c.bf16 (!%p346_p2), %v404_v1, %v403_v0  ;;  %v406_v5 = vld [vmem:[%s3318_s2 + $0x18] sm:$0xff] (!%p346_p2)  ;;  %2615 = vmatprep.mubr.msk.f32.mxu1 (!%p346_p2), %vm2877_vm0, %v2878_v6  ;;  %p387_p3 = scmp.lt.s32.totalorder (!%p346_p2), %s2495_s18, 1  ;;  %vm414_vm1 = vcmask (!%p346_p2), 261120   ;;  %v2503_v9 = vld [vmem:[%s3319_s3] ss:$0 sm:$0xff] (!%p346_p2) }
   0x7   : > { %2628 = vmatprep.subr.mxu0 (!%p346_p2), %v2878_v6  ;;  %2630 = vmatprep.mubr.msk.f32.mxu0 (!%p346_p2), %vm2877_vm0, %v2878_v6  ;;  %v2765_v7 = vpack.c.bf16 (!%p346_p2), %v406_v5, %v405_v2  ;;  %s2879_s14 = smov (!%p346_p2), 96   ;;  %s2880_s15 = smov (!%p346_p2), 120   ;;  %vm492_vm2 = vcmask (!%p346_p2), 64512   ;;  %vm568_vm3 = vcmask (!%p346_p2), 46080   ;;  %vm586_vm4 = vcmask (!%p346_p2), 1045504  }
   0x8   : > { %2763 = vmatpush3.bf16.msra.mxu1 (!%p346_p2), %v2762_v4  ;;  %s2881_s16 = smov (!%p346_p2), 88   ;;  %s2883_s19 = smov (!%p346_p2), 112   ;;  %vm582_vm5 = vcmask (!%p346_p2), 48128   ;;  %vm1171_vm6 = vcmask (!%p346_p2), 130048   ;;  %vm1173_vm7 = vcmask (!%p346_p2), 195584   ;;  %vm1252_vm8 = vcmask (!%p346_p2), 1040384  }
   0x9   : > { %2764 = vmatprep.subr.bf16.mxu1 (!%p346_p2), %v2876_v3  ;;  %s3328_s20 = smov (!%p346_p2), 72   ;;  %s2885_s21 = smov (!%p346_p2), 104   ;;  %vm1254_vm9 = vcmask (!%p346_p2), 1041408   ;;  %vm1256_vm10 = vcmask (!%p346_p2), 1042432   ;;  %vm1258_vm11 = vcmask (!%p346_p2), 1043456   ;;  %vm1260_vm12 = vcmask (!%p346_p2), 1044480  }
   0xa   : > { %s2886_s22 = smov (!%p346_p2), 56   ;;  %s2887_s23 = smov (!%p346_p2), 64   ;;  %vm1344_vm13 = vcmask (!%p346_p2), 259072   ;;  %vm1527_vm14 = vcmask (!%p346_p2), 62464   ;;  %vm2331_vm15 = vcmask (!%p346_p2), 523264  }
   0xb   : > { %s2888_s24 = smov (!%p346_p2), 48   ;;  %s2889_s25 = smov (!%p346_p2), 40  }
   0xc   : > { %2766 = vmatpush3.bf16.msra.mxu1 (!%p346_p2), %v2765_v7  ;;  %s2890_s26 = smov (!%p346_p2), 24   ;;  %s2891_s28 = smov (!%p346_p2), 8  }
   0xd   : > { %s3331_s18 = smov (!%p387_p3, %s2495_s18), 1  ;;  %2618 = vmatprep.subr.mxu1 %v2878_v6  ;;  %s2892_s29 = smov 16  }
   0xe   : > { %s2980_s27 = sshll.u32 %s3331_s18, 3  ;;  %s2882_s18 = smov 80  }
   0xf   : > { %s390_s30 = scalar_lea.vmem %s3316_s0, %s2980_s27  ;;  %s394_s12 = scalar_lea.vmem %s3317_s1, %s2980_s27 }
  0x10   : > { %v2986_v8 = vld [vmem:[%s390_s30] sm:$0x3f] }
  0x11   : > { %2616 = vmatmul.mubr.msk.f32.vlgmr.msra.gmra.mrb[0].mxu1 %vm414_vm1, %v2986_v8 }
  0x12   : > { %2620 = vmatprep.mubr.msk.f32.mxu1 %vm2877_vm0, %v2878_v6 }
  0xe4   : > { %v484_v10 = vpop.f32.mrb[0].mxu1 }
  0xe5   : > { %v2996_v11 = vadd.f32 %v2503_v9, %v484_v10  ;;  %v2617_v12 = vpop.f32.mrb[1].mxu1 }
  0xe7   : > { %490 = vrot.lane.b32.xlu0 %v2996_v11, %s2879_s14  ;;  %v488_v13 = vmul.f32 0.35355338, %v2996_v11 }
  0xe9   : > { %659 = vrot.lane.b32.xlu1 %v488_v13, %s2880_s15 }
  0xeb   : > { %661 = vrot.lane.b32.xlu0 %v2996_v11, %s2881_s16 }
  0xed   : > { %827 = vrot.lane.b32.xlu1 %v2996_v11, %s2882_s18 }
  0xef   : > { %825 = vrot.lane.b32.xlu0 %v488_v13, %s2883_s19 }
  0xf1   : > { %993 = vrot.lane.b32.xlu1 %v2996_v11, %s3328_s20 }
  0xf3   : > { %991 = vrot.lane.b32.xlu0 %v488_v13, %s2885_s21 }
 0x159   : > { %v491_v14 = vpop.permute.xlu0 %490 }
 0x15a   : > { %2619 = vmatpush3.xpose.msk.msra.mxu1 %vm492_vm2, %v491_v14 }
 0x15b   : > { %v660_v15 = vpop.permute.xlu1 %659  ;;  %2623 = vmatprep.subr.mxu1 %v2878_v6 }
 0x15d   : > { %v662_v16 = vpop.permute.xlu0 %661  ;;  %2621 = vmatmul.mubr.msk.f32.vlgmr.msra.gmra.mrb[2].mxu1 %vm492_vm2, %v488_v13 }
 0x15e   : > { %2629 = vmatpush3.xpose.msk.msra.mxu0 %vm492_vm2, %v662_v16  ;;  %2625 = vmatprep.mubr.msk.f32.mxu1 %vm2877_vm0, %v2878_v6 }
 0x15f   : > { %v828_v17 = vpop.permute.xlu1 %827  ;;  %2638 = vmatprep.subr.mxu0 %v2878_v6 }
 0x161   : > { %2631 = vmatmul.mubr.msk.f32.vlgmr.msra.gmra.mrb[0].mxu0 %vm492_vm2, %v660_v15  ;;  %v826_v18 = vpop.permute.xlu0 %825 }
 0x162   : > { %2639 = vmatpush3.xpose.msk.msra.mxu0 %vm492_vm2, %v828_v17  ;;  %2640 = vmatprep.mubr.msk.f32.mxu0 %vm2877_vm0, %v2878_v6 }
 0x163   : > { %2648 = vmatprep.subr.mxu0 %v2878_v6  ;;  %v994_v19 = vpop.permute.xlu1 %993 }
 0x165   : > { %2641 = vmatmul.mubr.msk.f32.vlgmr.msra.gmra.mrb[2].mxu0 %vm492_vm2, %v826_v18  ;;  %v992_v20 = vpop.permute.xlu0 %991 }
 0x166   : > { %2649 = vmatpush3.xpose.msk.msra.mxu0 %vm492_vm2, %v994_v19  ;;  %2650 = vmatprep.mubr.msk.f32.mxu0 %vm2877_vm0, %v2878_v6 }
 0x167   : > { %2767 = vmatprep.subr.bf16.mxu0 %v2876_v3 }
 0x169   : > { %2651 = vmatmul.mubr.msk.f32.vlgmr.msra.gmra.mrb[4].mxu0 %vm492_vm2, %v992_v20  ;;  %v1262_v20 = vld [vmem:[%s3320_s4] sm:$0xff] }
 0x16a   : > { %2666 = vmatprep.mubr.msk.f32.mxu0 %vm2877_vm0, %v2878_v6 }
 0x230   : > { %v564_v21 = vpop.f32.mrb[2].mxu1 }
 0x231   : > { %v2622_v22 = vpop.f32.mrb[3].mxu1  ;;  %v569_v23 = vsel %vm568_vm3, %v564_v21, -inf }
 0x232   : > { %570 = vmax.xlane.f32.xlu1 %v569_v23 }
 0x234   : > { %v733_v24 = vpop.f32.mrb[0].mxu0 }
 0x235   : > { %v2632_v25 = vpop.f32.mrb[1].mxu0  ;;  %v737_v26 = vsel %vm568_vm3, %v733_v24, -inf }
 0x236   : > { %738 = vmax.xlane.f32.xlu0 %v737_v26 }
 0x238   : > { %v899_v27 = vpop.f32.mrb[2].mxu0 }
 0x239   : > { %v2642_v28 = vpop.f32.mrb[3].mxu0  ;;  %v903_v29 = vsel %vm568_vm3, %v899_v27, -inf }
 0x23a   : > { %904 = vmax.xlane.f32.xlu0 %v903_v29  ;;  %v1265_v28 = vld [vmem:[%s3320_s4 + $0x18] sm:$0xff] }
 0x23c   : > { %v1065_v30 = vpop.f32.mrb[4].mxu0 }
 0x23d   : > { %v2652_v31 = vpop.f32.mrb[5].mxu0  ;;  %v1069_v32 = vsel %vm568_vm3, %v1065_v30, -inf }
 0x23e   : > { %1070 = vmax.xlane.f32.xlu1 %v1069_v32 }
 0x24f   : > { %748 = vrot.lane.b32.xlu1 %v2996_v11, %s2886_s22 }
 0x2bf   : > { %v571_v33 = vpop.xlane.xlu1 %570 }
 0x2c0   : > { %v572_v34 = vsub.f32 %v564_v21, %v571_v33  ;;  %v1263_v21 = vld [vmem:[%s3320_s4 + $0x8] sm:$0xff] }
 0x2c1   : > { %v2768_v22 = vpack.c.bf16 %v1263_v21, %v1262_v20  ;;  %v3126_v21 = vld [vmem:[%s3326_s10] sm:$0xff] }
 0x2c2   : > { %v573_v35 = vmul.f32 1.442695, %v572_v34 }
 0x2c3   : > { %v739_v36 = vpop.xlane.xlu0 %738  ;;  %2769 = vmatpush3.bf16.msra.mxu0 %v2768_v22 }
 0x2c4   : > { %2828 = vpow2.f32 %v573_v35  ;;  %v740_v37 = vsub.f32 %v733_v24, %v739_v36  ;;  %2770 = vmatprep.subr.bf16.mxu0 %v2876_v3 }
 0x2c6   : > { %v741_v38 = vmul.f32 1.442695, %v740_v37 }
 0x2c7   : > { %v905_v48 = vpop.xlane.xlu0 %904 }
 0x2c8   : > { %2830 = vpow2.f32 %v741_v38  ;;  %v906_v49 = vsub.f32 %v899_v27, %v905_v48  ;;  %v1264_v27 = vld [vmem:[%s3320_s4 + $0x10] sm:$0xff] }
 0x2c9   : > { %v2771_v29 = vpack.c.bf16 %v1265_v28, %v1264_v27 }
 0x2ca   : > { %v907_v50 = vmul.f32 1.442695, %v906_v49 }
 0x2cb   : > { %v1071_v39 = vpop.xlane.xlu1 %1070  ;;  %2772 = vmatpush3.bf16.msra.mxu0 %v2771_v29 }
 0x2cc   : > { %v1072_v40 = vsub.f32 %v1065_v30, %v1071_v39  ;;  %2680 = vmatprep.subr.mxu0 %v2878_v6 }
 0x2ce   : > { %v2829_v41 = vpop.eup %2828  ;;  %v1073_v42 = vmul.f32 1.442695, %v1072_v40 }
 0x2cf   : > { %v575_v43 = vsel %vm568_vm3, %v2829_v41, 0.0  ;;  %v749_v53 = vpop.permute.xlu1 %748 }
 0x2d0   : > { %2832 = vpow2.f32 %v1073_v42  ;;  %576 = vadd.xlane.f32.xlu0 %v575_v43 }
 0x2d1   : > { %2834 = vpow2.f32 %v907_v50 }
 0x2d2   : > { %v2831_v44 = vpop.eup %2830 }
 0x2d3   : > { %v743_v45 = vsel %vm568_vm3, %v2831_v44, 0.0 }
 0x2d4   : > { %744 = vadd.xlane.f32.xlu1 %v743_v45 }
 0x2da   : > { %v2833_v46 = vpop.eup %2832 }
 0x2db   : > { %v1075_v47 = vsel %vm568_vm3, %v2833_v46, 0.0  ;;  %v2835_v51 = vpop.eup %2834 }
 0x2dc   : > { %1076 = vadd.xlane.f32.xlu1 %v1075_v47  ;;  %v909_v52 = vsel %vm568_vm3, %v2835_v51, 0.0 }
 0x2e6   : > { %580 = vrot.lane.b32.xlu0 %v2996_v11, %s2887_s23 }
 0x2ed   : > { %914 = vrot.lane.b32.xlu1 %v2996_v11, %s2888_s24 }
 0x305   : > { %910 = vadd.xlane.f32.xlu0 %v909_v52 }
 0x31b   : > { %1080 = vrot.lane.b32.xlu0 %v2996_v11, %s2889_s25 }
 0x35d   : > { %v577_v54 = vpop.xlane.xlu0 %576 }
 0x35e   : > { %2836 = vrcp.f32 %v577_v54 }
 0x361   : > { %v581_v55 = vpop.permute.xlu0 %580  ;;  %v745_v56 = vpop.xlane.xlu1 %744 }
 0x362   : > { %2838 = vrcp.f32 %v745_v56  ;;  %2624 = vmatpush3.msk.msra.mxu1 %vm586_vm4, %v581_v55 }
 0x363   : > { %2633 = vmatprep.subr.mxu1 %v2878_v6 }
 0x368   : > { %v2837_v57 = vpop.eup %2836 }
 0x369   : > { %v579_v58 = vmul.f32 %v2837_v57, %v2829_v41  ;;  %v1077_v59 = vpop.xlane.xlu1 %1076 }
 0x36b   : > { %2626 = vmatmul.mubr.msk.f32.vlgmr.msra.gmra.mrb[4].mxu1 %vm582_vm5, %v579_v58 }
 0x36c   : > { %v2839_v60 = vpop.eup %2838  ;;  %2634 = vmatpush3.msk.msra.mxu1 %vm586_vm4, %v749_v53  ;;  %2635 = vmatprep.mubr.msk.f32.mxu1 %vm2877_vm0, %v2878_v6 }
 0x36d   : > { %v747_v61 = vmul.f32 %v2839_v60, %v2831_v44  ;;  %v915_v62 = vpop.permute.xlu1 %914  ;;  %2643 = vmatprep.subr.mxu1 %v2878_v6 }
 0x36f   : > { %2636 = vmatmul.mubr.msk.f32.vlgmr.msra.gmra.mrb[6].mxu1 %vm582_vm5, %v747_v61 }
 0x370   : > { %2644 = vmatpush3.msk.msra.mxu1 %vm586_vm4, %v915_v62  ;;  %2645 = vmatprep.mubr.msk.f32.mxu1 %vm2877_vm0, %v2878_v6 }
 0x371   : > { %2653 = vmatprep.subr.mxu1 %v2878_v6 }
 0x392   : > { %v911_v63 = vpop.xlane.xlu0 %910 }
 0x393   : > { %2840 = vrcp.f32 %v911_v63 }
 0x394   : > { %2842 = vrcp.f32 %v1077_v59 }
 0x396   : > { %v1081_v4 = vpop.permute.xlu0 %1080 }
 0x39d   : > { %v2841_v0 = vpop.eup %2840 }
 0x39e   : > { %v913_v1 = vmul.f32 %v2841_v0, %v2835_v51  ;;  %v2843_v2 = vpop.eup %2842 }
 0x39f   : > { %v1079_v5 = vmul.f32 %v2843_v2, %v2833_v46 }
 0x3a0   : > { %2646 = vmatmul.mubr.msk.f32.vlgmr.msra.gmra.mrb[8].mxu1 %vm582_vm5, %v913_v1 }
 0x3a1   : > { %2654 = vmatpush3.msk.msra.mxu1 %vm586_vm4, %v1081_v4  ;;  %2655 = vmatprep.mubr.msk.f32.mxu1 %vm2877_vm0, %v2878_v6 }
 0x3a2   : > { %2773 = vmatprep.subr.bf16.mxu1 %v2876_v3 }
 0x3a4   : > { %2656 = vmatmul.mubr.msk.f32.vlgmr.msra.gmra.mrb[10].mxu1 %vm582_vm5, %v1079_v5 }
 0x3a5   : > { %2677 = vmatprep.mubr.msk.f32.mxu1 %vm2877_vm0, %v2878_v6 }
 0x43e   : > { %v655_v7 = vpop.f32.mrb[4].mxu1 }
 0x43f   : > { %v2627_v9 = vpop.f32.mrb[5].mxu1  ;;  %v1166_v10 = vrot.slane %v655_v7, 3  ;;  %v1158_v11 = vrot.slane %v655_v7, 1  ;;  %v1162_v14 = vrot.slane %v655_v7, 2 }
 0x441   : > { %1167 = vrot.lane.b32.xlu0 %v1166_v10, %s2890_s26  ;;  %1159 = vrot.lane.b32.xlu1 %v1158_v11, %s2891_s28 }
 0x442   : > { %v821_v12 = vpop.f32.mrb[6].mxu1 }
 0x443   : > { %v2637_v13 = vpop.f32.mrb[7].mxu1  ;;  %v1176_v15 = vrot.slane %v821_v12, 4  ;;  %v1180_v16 = vrot.slane %v821_v12, 5  ;;  %v1186_v17 = vrot.slane %v821_v12, 1  ;;  %v1190_v18 = vrot.slane %v821_v12, 2 }
 0x444   : > { %v1194_v19 = vrot.slane %v821_v12, 3 }
 0x445   : > { %1163 = vrot.lane.b32.xlu1 %v1162_v14, %s2892_s29  ;;  %1177 = vrot.lane.b32.xlu0 %v1176_v15, %s2892_s29 }
 0x449   : > { %1181 = vrot.lane.b32.xlu1 %v1180_v16, %s2890_s26  ;;  %1187 = vrot.lane.b32.xlu0 %v1186_v17, %s2891_s28  ;;  %v3112_v16 = vld [vmem:[%s394_s12] sm:$0xff] }
 0x44d   : > { %1191 = vrot.lane.b32.xlu1 %v1190_v18, %s2892_s29  ;;  %1195 = vrot.lane.b32.xlu0 %v1194_v19, %s2890_s26  ;;  %v1266_v18 = vlaneseq }
 0x44f   : > { %v3120_v19 = vshrl.u32 %v1266_v18, 7 }
 0x451   : > { %v1268_v20 = vsub.s32 0, %v3120_v19 }
 0x453   : > { %v1269_v22 = vrot.slane %v3126_v21, %v1268_v20 }
 0x473   : > { %v987_v23 = vpop.f32.mrb[8].mxu1 }
 0x474   : > { %v2647_v24 = vpop.f32.mrb[9].mxu1  ;;  %v1206_v25 = vrot.slane %v987_v23, 2  ;;  %v1202_v26 = vrot.slane %v987_v23, 1  ;;  %v1210_v32 = vrot.slane %v987_v23, 3 }
 0x476   : > { %1207 = vrot.lane.b32.xlu1 %v1206_v25, %s2892_s29  ;;  %1203 = vrot.lane.b32.xlu0 %v1202_v26, %s2891_s28 }
 0x477   : > { %v1153_v30 = vpop.f32.mrb[10].mxu1 }
 0x478   : > { %v2657_v31 = vpop.f32.mrb[11].mxu1  ;;  %v1228_v33 = vrot.slane %v1153_v30, 1  ;;  %v1232_v34 = vrot.slane %v1153_v30, 2  ;;  %v1218_v35 = vrot.slane %v1153_v30, 4  ;;  %v1236_v36 = vrot.slane %v1153_v30, 3 }
 0x479   : > { %v1222_v37 = vrot.slane %v1153_v30, 5 }
 0x47a   : > { %1211 = vrot.lane.b32.xlu0 %v1210_v32, %s2890_s26  ;;  %1229 = vrot.lane.b32.xlu1 %v1228_v33, %s2891_s28  ;;  %v1369_v33 = vld [vmem:[%s3321_s5] sm:$0xff] }
 0x47e   : > { %1233 = vrot.lane.b32.xlu1 %v1232_v34, %s2892_s29  ;;  %1219 = vrot.lane.b32.xlu0 %v1218_v35, %s2892_s29  ;;  %v1371_v35 = vld [vmem:[%s3321_s5 + $0x10] sm:$0xff] }
 0x482   : > { %1237 = vrot.lane.b32.xlu1 %v1236_v36, %s2890_s26  ;;  %1223 = vrot.lane.b32.xlu0 %v1222_v37, %s2890_s26  ;;  %v1372_v36 = vld [vmem:[%s3321_s5 + $0x18] sm:$0xff] }
 0x483   : > { %v2777_v37 = vpack.c.bf16 %v1372_v36, %v1371_v35 }
 0x4b3   : > { %v1168_v38 = vpop.permute.xlu0 %1167  ;;  %v1160_v39 = vpop.permute.xlu1 %1159 }
 0x4b4   : > { %v1170_v42 = vsel %vm492_vm2, %v655_v7, %v1160_v39 }
 0x4b7   : > { %v1164_v40 = vpop.permute.xlu1 %1163  ;;  %v1178_v41 = vpop.permute.xlu0 %1177 }
 0x4b8   : > { %v1184_v43 = vsel %vm1171_vm6, %v1170_v42, %v1178_v41  ;;  %v1172_v47 = vsel %vm1171_vm6, %v1170_v42, %v1164_v40  ;;  %v1361_v41 = vsub.s32 4, %v3120_v19  ;;  %v1366_v42 = vsub.s32 5, %v3120_v19 }
 0x4b9   : > { %v1174_v52 = vsel %vm1173_vm7, %v1172_v47, %v1168_v38 }
 0x4bb   : > { %v1182_v44 = vpop.permute.xlu1 %1181  ;;  %v1188_v45 = vpop.permute.xlu0 %1187 }
 0x4bc   : > { %v1185_v46 = vsel %vm1173_vm7, %v1184_v43, %v1182_v44  ;;  %v1198_v49 = vsel %vm492_vm2, %v821_v12, %v1188_v45  ;;  %v1362_v43 = vrot.slane %v3126_v21, %v1361_v41 }
 0x4bd   : > { %v1244_v48 = vrot.slane %v1185_v46, 3  ;;  %v1367_v46 = vrot.slane %v3126_v21, %v1366_v42 }
 0x4bf   : > { %v1192_v50 = vpop.permute.xlu1 %1191  ;;  %v1196_v51 = vpop.permute.xlu0 %1195  ;;  %v1253_v54 = vsel %vm1252_vm8, %v1174_v52, %v1244_v48 }
 0x4c0   : > { %v1199_v53 = vsel %vm1171_vm6, %v1198_v49, %v1192_v50  ;;  %v1375_v49 = vsub.s32 1, %v3120_v19 }
 0x4c1   : > { %v1200_v55 = vsel %vm1173_vm7, %v1199_v53, %v1196_v51 }
 0x4c2   : > { %v1255_v56 = vsel %vm1254_vm9, %v1253_v54, %v1200_v55  ;;  %v1376_v50 = vrot.slane %v3126_v21, %v1375_v49 }
 0x4e8   : > { %v1208_v57 = vpop.permute.xlu1 %1207  ;;  %v1204_v58 = vpop.permute.xlu0 %1203 }
 0x4e9   : > { %v1214_v59 = vsel %vm492_vm2, %v987_v23, %v1204_v58 }
 0x4ea   : > { %v1215_v60 = vsel %vm1171_vm6, %v1214_v59, %v1208_v57 }
 0x4ec   : > { %v1212_v61 = vpop.permute.xlu0 %1211  ;;  %v1230_v62 = vpop.permute.xlu1 %1229 }
 0x4ed   : > { %v1216_v63 = vsel %vm1173_vm7, %v1215_v60, %v1212_v61  ;;  %v1240_v5 = vsel %vm492_vm2, %v1153_v30, %v1230_v62 }
 0x4ee   : > { %v1247_v0 = vrot.slane %v1216_v63, 5 }
 0x4f0   : > { %v1234_v1 = vpop.permute.xlu1 %1233  ;;  %v1220_v2 = vpop.permute.xlu0 %1219  ;;  %v1257_v4 = vsel %vm1256_vm10, %v1255_v56, %v1247_v0 }
 0x4f1   : > { %v1241_v7 = vsel %vm1171_vm6, %v1240_v5, %v1234_v1  ;;  %v1226_v9 = vsel %vm1171_vm6, %v1214_v59, %v1220_v2 }
 0x4f4   : > { %v1238_v10 = vpop.permute.xlu1 %1237  ;;  %v1224_v11 = vpop.permute.xlu0 %1223 }
 0x4f5   : > { %v1242_v12 = vsel %vm1173_vm7, %v1241_v7, %v1238_v10  ;;  %v1227_v13 = vsel %vm1173_vm7, %v1226_v9, %v1224_v11 }
 0x4f6   : > { %v1250_v14 = vrot.slane %v1242_v12, 5  ;;  %v1259_v15 = vsel %vm1258_vm11, %v1257_v4, %v1227_v13 }
 0x4f8   : > { %v1261_v17 = vsel %vm1260_vm12, %v1259_v15, %v1250_v14 }
 0x4f9   : > { %2667 = vmatmul.mubr.msk.f32.vlgmr.msra.gmra.mrb[6].mxu0 %vm414_vm1, %v1261_v17 }
 0x4fa   : > { %2681 = vmatpush3.xpose.msk.msra.mxu0 %vm492_vm2, %v3112_v16  ;;  %2682 = vmatprep.mubr.msk.f32.mxu0 %vm2877_vm0, %v2878_v6 }
 0x4fb   : > { %2690 = vmatprep.subr.mxu0 %v2878_v6 }
 0x5cc   : > { %v1339_v23 = vpop.f32.mrb[6].mxu0 }
 0x5cd   : > { %v1340_v24 = vadd.f32 %v1339_v23, %v1269_v22  ;;  %v2668_v25 = vpop.f32.mrb[7].mxu0 }
 0x5cf   : > { %v1343_v26 = vadd.f32 %v1340_v24, %v2986_v8  ;;  %v1370_v8 = vld [vmem:[%s3321_s5 + $0x8] sm:$0xff] }
 0x5d0   : > { %v2774_v34 = vpack.c.bf16 %v1370_v8, %v1369_v33 }
 0x5d1   : > { %v1345_v27 = vsel %vm1344_vm13, %v1343_v26, 0.0 }
 0x5d2   : > { %1346 = vadd.xlane.f32.xlu1 %v1345_v27  ;;  %2775 = vmatpush3.bf16.msra.mxu1 %v2774_v34 }
 0x5d3   : > { %2776 = vmatprep.subr.bf16.mxu1 %v2876_v3 }
 0x5d6   : > { %2778 = vmatpush3.bf16.msra.mxu1 %v2777_v37 }
 0x5d7   : > { %2685 = vmatprep.subr.mxu1 %v2878_v6 }
 0x65f   : > { %v1347_v28 = vpop.xlane.xlu1 %1346 }
 0x660   : > { %v1349_v29 = vmul.f32 0.03125, %v1347_v28 }
 0x662   : > { %v1350_v30 = vsub.f32 %v1343_v26, %v1349_v29 }
 0x664   : > { %v1351_v31 = vmul.f32 %v1350_v30, %v1350_v30 }
 0x666   : > { %v1352_v32 = vsel %vm1344_vm13, %v1351_v31, 0.0 }
 0x667   : > { %1353 = vadd.xlane.f32.xlu0 %v1352_v32 }
 0x67d   : > { %1617 = vrot.lane.b32.xlu0 %v3112_v16, %s2880_s15 }
 0x6f4   : > { %v1354_v38 = vpop.xlane.xlu0 %1353 }
 0x6f5   : > { %v1355_v39 = vmul.f32 0.03125, %v1354_v38 }
 0x6f7   : > { %v1356_v40 = vadd.f32 1e-05, %v1355_v39 }
 0x6f8   : > { %v1618_v55 = vpop.permute.xlu0 %1617 }
 0x6f9   : > { %2844 = vrsqrt.f32 %v1356_v40 }
 0x703   : > { %v2845_v44 = vpop.eup %2844 }
 0x704   : > { %v1358_v45 = vmul.f32 %v2845_v44, %v1350_v30 }
 0x706   : > { %v1363_v47 = vmul.f32 %v1362_v43, %v1358_v45 }
 0x708   : > { %v3154_v48 = vadd.f32 %v1367_v46, %v1363_v47 }
 0x70a   : > { %2678 = vmatmul.mubr.msk.f32.vlgmr.msra.gmra.mrb[12].mxu1 %vm414_vm1, %v3154_v48 }
 0x70b   : > { %2687 = vmatprep.mubr.msk.f32.mxu1 %vm2877_vm0, %v2878_v6 }
 0x7dd   : > { %v1446_v51 = vpop.f32.mrb[12].mxu1 }
 0x7de   : > { %v1447_v52 = vadd.f32 %v1446_v51, %v1376_v50  ;;  %v2679_v53 = vpop.f32.mrb[13].mxu1 }
 0x7e0   : > { %v1450_v54 = vmul.f32 0.35355338, %v1447_v52 }
 0x7e2   : > { %1780 = vrot.lane.b32.xlu0 %v1450_v54, %s2883_s19  ;;  %1615 = vrot.lane.b32.xlu1 %v1450_v54, %s2880_s15 }
 0x7e3   : > { %2683 = vmatmul.mubr.msk.f32.vlgmr.msra.gmra.mrb[8].mxu0 %vm492_vm2, %v1450_v54 }
 0x7e4   : > { %2691 = vmatpush3.xpose.msk.msra.mxu0 %vm492_vm2, %v1618_v55  ;;  %2692 = vmatprep.mubr.msk.f32.mxu0 %vm2877_vm0, %v2878_v6  ;;  %v2126_v55 = vld [vmem:[%s3322_s6 + $0x8] sm:$0xff] }
 0x7e5   : > { %2700 = vmatprep.subr.mxu0 %v2878_v6 }
 0x7e6   : > { %1945 = vrot.lane.b32.xlu0 %v1450_v54, %s2885_s21  ;;  %1782 = vrot.lane.b32.xlu1 %v3112_v16, %s2883_s19  ;;  %v2125_v54 = vld [vmem:[%s3322_s6] sm:$0xff] }
 0x7ea   : > { %1947 = vrot.lane.b32.xlu1 %v3112_v16, %s2885_s21  ;;  %s398_s21 = scalar_lea.vmem %s3327_s11, %s2980_s27 }
 0x854   : > { %v1616_v56 = vpop.permute.xlu1 %1615  ;;  %v1781_v58 = vpop.permute.xlu0 %1780 }
 0x855   : > { %2693 = vmatmul.mubr.msk.f32.vlgmr.msra.gmra.mrb[10].mxu0 %vm492_vm2, %v1616_v56  ;;  %v2780_v56 = vpack.c.bf16 %v2126_v55, %v2125_v54  ;;  %v2536_v54 = vld [vmem:[%s3324_s8] ss:$0 sm:$0xff] }
 0x856   : > { %2702 = vmatprep.mubr.msk.f32.mxu0 %vm2877_vm0, %v2878_v6 }
 0x858   : > { %v1783_v57 = vpop.permute.xlu1 %1782  ;;  %v1946_v60 = vpop.permute.xlu0 %1945 }
 0x859   : > { %2701 = vmatpush3.xpose.msk.msra.mxu0 %vm492_vm2, %v1783_v57  ;;  %v2127_v57 = vld [vmem:[%s3322_s6 + $0x10] sm:$0xff] }
 0x85a   : > { %2710 = vmatprep.subr.mxu0 %v2878_v6 }
 0x85c   : > { %v1948_v59 = vpop.permute.xlu1 %1947  ;;  %2703 = vmatmul.mubr.msk.f32.vlgmr.msra.gmra.mrb[12].mxu0 %vm492_vm2, %v1781_v58  ;;  %v2128_v58 = vld [vmem:[%s3322_s6 + $0x18] sm:$0xff] }
 0x85d   : > { %2711 = vmatpush3.xpose.msk.msra.mxu0 %vm492_vm2, %v1948_v59  ;;  %2712 = vmatprep.mubr.msk.f32.mxu0 %vm2877_vm0, %v2878_v6  ;;  %v2783_v59 = vpack.c.bf16 %v2128_v58, %v2127_v57 }
 0x85e   : > { %2779 = vmatprep.subr.bf16.mxu0 %v2876_v3 }
 0x860   : > { %2713 = vmatmul.mubr.msk.f32.vlgmr.msra.gmra.mrb[14].mxu0 %vm492_vm2, %v1946_v60 }
 0x861   : > { %2728 = vmatprep.mubr.msk.f32.mxu0 %vm2877_vm0, %v2878_v6  ;;  %2781 = vmatpush3.bf16.msra.mxu0 %v2780_v56 }
 0x862   : > { %2782 = vmatprep.subr.bf16.mxu0 %v2876_v3 }
 0x865   : > { %2784 = vmatpush3.bf16.msra.mxu0 %v2783_v59 }
 0x866   : > { %2791 = vmatprep.subr.bf16.mxu0 %v2876_v3 }
 0x8b6   : > { %v1523_v61 = vpop.f32.mrb[8].mxu0 }
 0x8b7   : > { %v2684_v62 = vpop.f32.mrb[9].mxu0  ;;  %v1528_v63 = vsel %vm1527_vm14, %v1523_v61, -inf }
 0x8b8   : > { %1529 = vmax.xlane.f32.xlu1 %v1528_v63 }
 0x928   : > { %v1689_v0 = vpop.f32.mrb[10].mxu0 }
 0x929   : > { %v2694_v1 = vpop.f32.mrb[11].mxu0  ;;  %v1693_v2 = vsel %vm1527_vm14, %v1689_v0, -inf }
 0x92a   : > { %1694 = vmax.xlane.f32.xlu0 %v1693_v2 }
 0x92f   : > { %v1854_v4 = vpop.f32.mrb[12].mxu0 }
 0x930   : > { %v2704_v5 = vpop.f32.mrb[13].mxu0  ;;  %v1858_v7 = vsel %vm1527_vm14, %v1854_v4, -inf }
 0x931   : > { %1859 = vmax.xlane.f32.xlu0 %v1858_v7 }
 0x933   : > { %v2019_v9 = vpop.f32.mrb[14].mxu0 }
 0x934   : > { %v2714_v10 = vpop.f32.mrb[15].mxu0  ;;  %v2023_v11 = vsel %vm1527_vm14, %v2019_v9, -inf }
 0x935   : > { %2024 = vmax.xlane.f32.xlu1 %v2023_v11  ;;  %v2131_v11 = vsub.s32 2, %v3120_v19 }
 0x945   : > { %v1530_v12 = vpop.xlane.xlu1 %1529 }
 0x946   : > { %v1531_v13 = vsub.f32 %v1523_v61, %v1530_v12  ;;  %1704 = vrot.lane.b32.xlu1 %v3112_v16, %s2881_s16  ;;  %v2132_v12 = vrot.slane %v3126_v21, %v2131_v11 }
 0x948   : > { %v1532_v14 = vmul.f32 1.442695, %v1531_v13 }
 0x94a   : > { %2846 = vpow2.f32 %v1532_v14 }
 0x954   : > { %v2847_v15 = vpop.eup %2846 }
 0x955   : > { %v1534_v17 = vsel %vm1527_vm14, %v2847_v15, 0.0 }
 0x956   : > { %1535 = vadd.xlane.f32.xlu0 %v1534_v17 }
 0x96c   : > { %1539 = vrot.lane.b32.xlu0 %v3112_v16, %s2879_s14  ;;  %s3329_s14 = smov 72  }
 0x9b7   : > { %v1695_v18 = vpop.xlane.xlu0 %1694 }
 0x9b8   : > { %v1696_v22 = vsub.f32 %v1689_v0, %v1695_v18 }
 0x9ba   : > { %v1697_v23 = vmul.f32 1.442695, %v1696_v22 }
 0x9bc   : > { %2848 = vpow2.f32 %v1697_v23 }
 0x9be   : > { %v1860_v24 = vpop.xlane.xlu0 %1859 }
 0x9bf   : > { %v1861_v25 = vsub.f32 %v1854_v4, %v1860_v24 }
 0x9c1   : > { %v1862_v26 = vmul.f32 1.442695, %v1861_v25 }
 0x9c2   : > { %v2025_v27 = vpop.xlane.xlu1 %2024 }
 0x9c3   : > { %2850 = vpow2.f32 %v1862_v26  ;;  %v2026_v28 = vsub.f32 %v2019_v9, %v2025_v27  ;;  %v2231_v27 = vld [vmem:[%s3323_s7 + $0x8] sm:$0xff] }
 0x9c5   : > { %v2027_v29 = vmul.f32 1.442695, %v2026_v28 }
 0x9c6   : > { %v2849_v30 = vpop.eup %2848  ;;  %v1705_v39 = vpop.permute.xlu1 %1704 }
 0x9c7   : > { %2852 = vpow2.f32 %v2027_v29  ;;  %v1699_v31 = vsel %vm1527_vm14, %v2849_v30, 0.0  ;;  %v2233_v29 = vld [vmem:[%s3323_s7 + $0x18] sm:$0xff] }
 0x9c8   : > { %1700 = vadd.xlane.f32.xlu1 %v1699_v31 }
 0x9cd   : > { %v2851_v32 = vpop.eup %2850 }
 0x9ce   : > { %v1864_v33 = vsel %vm1527_vm14, %v2851_v32, 0.0 }
 0x9cf   : > { %1865 = vadd.xlane.f32.xlu0 %v1864_v33 }
 0x9d1   : > { %v2853_v8 = vpop.eup %2852 }
 0x9d2   : > { %v2029_v34 = vsel %vm1527_vm14, %v2853_v8, 0.0 }
 0x9d3   : > { %2030 = vadd.xlane.f32.xlu1 %v2029_v34  ;;  %v2227_v34 = vsub.s32 7, %v3120_v19 }
 0x9e3   : > { %v1536_v35 = vpop.xlane.xlu0 %1535 }
 0x9e4   : > { %2854 = vrcp.f32 %v1536_v35  ;;  %1869 = vrot.lane.b32.xlu1 %v3112_v16, %s2882_s18 }
 0x9e5   : > { %2034 = vrot.lane.b32.xlu0 %v3112_v16, %s3329_s14 }
 0x9e7   : > { %v1540_v36 = vpop.permute.xlu0 %1539 }
 0x9e8   : > { %2686 = vmatpush3.msra.mxu1 %v1540_v36 }
 0x9e9   : > { %2695 = vmatprep.subr.mxu1 %v2878_v6 }
 0x9ee   : > { %v2855_v37 = vpop.eup %2854 }
 0x9ef   : > { %v1538_v38 = vmul.f32 %v2855_v37, %v2847_v15 }
 0x9f1   : > { %2688 = vmatmul.mubr.msk.f32.vlgmr.msra.gmra.mrb[14].mxu1 %vm492_vm2, %v1538_v38  ;;  %v2228_v38 = vrot.slane %v3126_v21, %v2227_v34 }
 0x9f2   : > { %2696 = vmatpush3.msra.mxu1 %v1705_v39  ;;  %2697 = vmatprep.mubr.msk.f32.mxu1 %vm2877_vm0, %v2878_v6 }
 0x9f3   : > { %2705 = vmatprep.subr.mxu1 %v2878_v6 }
 0xa55   : > { %v1701_v40 = vpop.xlane.xlu1 %1700 }
 0xa56   : > { %2856 = vrcp.f32 %v1701_v40 }
 0xa5c   : > { %v1866_v41 = vpop.xlane.xlu0 %1865 }
 0xa5d   : > { %2858 = vrcp.f32 %v1866_v41  ;;  %v2319_v41 = vld [vmem:[%s3325_s9] sm:$0xff] }
 0xa60   : > { %v2857_v16 = vpop.eup %2856  ;;  %v2031_v42 = vpop.xlane.xlu1 %2030 }
 0xa61   : > { %v1703_v43 = vmul.f32 %v2857_v16, %v2849_v30  ;;  %2860 = vrcp.f32 %v2031_v42  ;;  %v2035_v47 = vpop.permute.xlu0 %2034  ;;  %v2320_v16 = vld [vmem:[%s3325_s9 + $0x8] sm:$0xff] }
 0xa62   : > { %v2792_v42 = vpack.c.bf16 %v2320_v16, %v2319_v41 }
 0xa63   : > { %2698 = vmatmul.mubr.msk.f32.vlgmr.msra.gmra.mrb[16].mxu1 %vm492_vm2, %v1703_v43  ;;  %v2321_v43 = vld [vmem:[%s3325_s9 + $0x10] sm:$0xff] }
 0xa64   : > { %v1870_v44 = vpop.permute.xlu1 %1869  ;;  %2707 = vmatprep.mubr.msk.f32.mxu1 %vm2877_vm0, %v2878_v6 }
 0xa65   : > { %2706 = vmatpush3.msra.mxu1 %v1870_v44  ;;  %v2322_v44 = vld [vmem:[%s3325_s9 + $0x18] sm:$0xff] }
 0xa66   : > { %2715 = vmatprep.subr.mxu1 %v2878_v6 }
 0xa67   : > { %v2859_v45 = vpop.eup %2858 }
 0xa68   : > { %v1868_v46 = vmul.f32 %v2859_v45, %v2851_v32  ;;  %v2795_v45 = vpack.c.bf16 %v2322_v44, %v2321_v43 }
 0xa6a   : > { %2708 = vmatmul.mubr.msk.f32.vlgmr.msra.gmra.mrb[18].mxu1 %vm492_vm2, %v1868_v46  ;;  %v2323_v46 = vld [vmem:[%s3325_s9 + $0x20] sm:$0xff] }
 0xa6b   : > { %v2861_v50 = vpop.eup %2860  ;;  %2716 = vmatpush3.msra.mxu1 %v2035_v47  ;;  %2717 = vmatprep.mubr.msk.f32.mxu1 %vm2877_vm0, %v2878_v6  ;;  %v2324_v47 = vld [vmem:[%s3325_s9 + $0x28] sm:$0xff] }
 0xa6c   : > { %v2033_v51 = vmul.f32 %v2861_v50, %v2853_v8  ;;  %2785 = vmatprep.subr.bf16.mxu1 %v2876_v3  ;;  %v2222_v8 = vsub.s32 6, %v3120_v19  ;;  %v2798_v50 = vpack.c.bf16 %v2324_v47, %v2323_v46 }
 0xa6e   : > { %2718 = vmatmul.mubr.msk.f32.vlgmr.msra.gmra.mrb[20].mxu1 %vm492_vm2, %v2033_v51  ;;  %v2223_v35 = vrot.slane %v3126_v21, %v2222_v8  ;;  %v2325_v51 = vld [vmem:[%s3325_s9 + $0x30] sm:$0xff] }
 0xa6f   : > { %2739 = vmatprep.mubr.msk.f32.mxu1 %vm2877_vm0, %v2878_v6 }
 0xac4   : > { %v1611_v52 = vpop.f32.mrb[14].mxu1 }
 0xac5   : > { %v2689_v53 = vpop.f32.mrb[15].mxu1 }
 0xb36   : > { %v1776_v60 = vpop.f32.mrb[16].mxu1 }
 0xb37   : > { %2111 = vrot.lane.b32.xlu1 %v1776_v60, %s2891_s28  ;;  %v2699_v61 = vpop.f32.mrb[17].mxu1 }
 0xb3d   : > { %v1941_v62 = vpop.f32.mrb[18].mxu1 }
 0xb3e   : > { %2115 = vrot.lane.b32.xlu0 %v1941_v62, %s2892_s29  ;;  %v2709_v63 = vpop.f32.mrb[19].mxu1  ;;  %v2329_v62 = vsub.s32 3, %v3120_v19 }
 0xb40   : > { %v2330_v63 = vrot.slane %v3126_v21, %v2329_v62  ;;  %v401_v21 = vld [vmem:[%s3326_s10 + $0x8] sm:$0x3] }
 0xb41   : > { %v2106_v0 = vpop.f32.mrb[20].mxu1 }
 0xb42   : > { %2119 = vrot.lane.b32.xlu1 %v2106_v0, %s2890_s26  ;;  %v2719_v1 = vpop.f32.mrb[21].mxu1 }
 0xba9   : > { %v2112_v2 = vpop.permute.xlu1 %2111 }
 0xbaa   : > { %v2122_v5 = vsel %vm492_vm2, %v1611_v52, %v2112_v2  ;;  %v2326_v52 = vld [vmem:[%s3325_s9 + $0x38] sm:$0xff] }
 0xbab   : > { %v2801_v53 = vpack.c.bf16 %v2326_v52, %v2325_v51 }
 0xbb0   : > { %v2116_v4 = vpop.permute.xlu0 %2115 }
 0xbb1   : > { %v2123_v7 = vsel %vm1171_vm6, %v2122_v5, %v2116_v4 }
 0xbb4   : > { %v2120_v9 = vpop.permute.xlu1 %2119 }
 0xbb5   : > { %v2124_v10 = vsel %vm1173_vm7, %v2123_v7, %v2120_v9 }
 0xbb6   : > { %2729 = vmatmul.mubr.msk.f32.vlgmr.msra.gmra.mrb[16].mxu0 %vm414_vm1, %v2124_v10 }
 0xbb7   : > { %2758 = vmatprep.mubr.msk.f32.mxu0 %vm2877_vm0, %v2878_v6  ;;  %v2230_v6 = vld [vmem:[%s3323_s7] sm:$0xff]  ;;  %2793 = vmatpush3.bf16.msra.mxu0 %v2792_v42 }
 0xbb8   : > { %v2786_v28 = vpack.c.bf16 %v2231_v27, %v2230_v6  ;;  %2794 = vmatprep.subr.bf16.mxu0 %v2876_v3 }
 0xbba   : > { %2787 = vmatpush3.bf16.msra.mxu1 %v2786_v28 }
 0xbbb   : > { %2788 = vmatprep.subr.bf16.mxu1 %v2876_v3  ;;  %2796 = vmatpush3.bf16.msra.mxu0 %v2795_v45 }
 0xbbc   : > { %2797 = vmatprep.subr.bf16.mxu0 %v2876_v3 }
 0xbbf   : > { %2799 = vmatpush3.bf16.msra.mxu0 %v2798_v50 }
 0xbc0   : > { %2800 = vmatprep.subr.bf16.mxu0 %v2876_v3 }
 0xbc3   : > { %2802 = vmatpush3.bf16.msra.mxu0 %v2801_v53 }
 0xc89   : > { %v2202_v13 = vpop.f32.mrb[16].mxu0 }
 0xc8a   : > { %v2203_v14 = vadd.f32 %v2202_v13, %v2132_v12  ;;  %v2730_v15 = vpop.f32.mrb[17].mxu0 }
 0xc8c   : > { %v2206_v17 = vadd.f32 %v2203_v14, %v3154_v48  ;;  %v2232_v48 = vld [vmem:[%s3323_s7 + $0x10] sm:$0xff] }
 0xc8d   : > { %v2789_v30 = vpack.c.bf16 %v2233_v29, %v2232_v48 }
 0xc8e   : > { %v2207_v18 = vsel %vm1344_vm13, %v2206_v17, 0.0 }
 0xc8f   : > { %2208 = vadd.xlane.f32.xlu0 %v2207_v18  ;;  %2790 = vmatpush3.bf16.msra.mxu1 %v2789_v30 }
 0xd1c   : > { %v2209_v22 = vpop.xlane.xlu0 %2208 }
 0xd1d   : > { %v2210_v23 = vmul.f32 0.03125, %v2209_v22  ;;  %v2427_v22 = vrot.slane %v401_v21, %v1375_v49 }
 0xd1f   : > { %v2211_v24 = vsub.f32 %v2206_v17, %v2210_v23  ;;  %v2422_v17 = vrot.slane %v401_v21, %v1268_v20 }
 0xd21   : > { %v2212_v25 = vmul.f32 %v2211_v24, %v2211_v24 }
 0xd23   : > { %v2213_v26 = vsel %vm1344_vm13, %v2212_v25, 0.0 }
 0xd24   : > { %2214 = vadd.xlane.f32.xlu1 %v2213_v26 }
 0xdb1   : > { %v2215_v31 = vpop.xlane.xlu1 %2214 }
 0xdb2   : > { %v2216_v32 = vmul.f32 0.03125, %v2215_v31 }
 0xdb4   : > { %v2217_v33 = vadd.f32 1e-05, %v2216_v32 }
 0xdb6   : > { %2862 = vrsqrt.f32 %v2217_v33 }
 0xdc0   : > { %v2863_v36 = vpop.eup %2862 }
 0xdc1   : > { %v2219_v37 = vmul.f32 %v2863_v36, %v2211_v24 }
 0xdc3   : > { %v2224_v39 = vmul.f32 %v2223_v35, %v2219_v37 }
 0xdc5   : > { %v2229_v40 = vadd.f32 %v2228_v38, %v2224_v39 }
 0xdc7   : > { %2740 = vmatmul.mubr.msk.f32.vlgmr.msra.gmra.mrb[22].mxu1 %vm414_vm1, %v2229_v40 }
 0xe9a   : > { %v2310_v55 = vpop.f32.mrb[22].mxu1 }
 0xe9b   : > { %v2311_v56 = vadd.f32 %v2536_v54, %v2310_v55  ;;  %v2741_v57 = vpop.f32.mrb[23].mxu1 }
 0xe9d   : > { %v2315_v58 = vmul.f32 0.70710677, %v2311_v56  ;;  %v2314_v59 = vmul.f32 0.5, %v2311_v56 }
 0xe9f   : > { %2864 = verf.f32 %v2315_v58 }
 0xea9   : > { %v2865_v3 = vpop.eup %2864 }
 0xeaa   : > { %v2317_v60 = vadd.f32 1.0, %v2865_v3 }
 0xeac   : > { %v2318_v61 = vmul.f32 %v2317_v60, %v2314_v59 }
 0xeae   : > { %2759 = vmatmul.mubr.msk.f32.vlgmr.msra.gmra.mrb[18].mxu0 %vm2331_vm15, %v2318_v61 }
 0xf81   : > { %v2401_v0 = vpop.f32.mrb[18].mxu0 }
 0xf82   : > { %v2402_v1 = vadd.f32 %v2401_v0, %v2330_v63  ;;  %v2760_v2 = vpop.f32.mrb[19].mxu0 }
 0xf84   : > { %v2405_v4 = vadd.f32 %v2402_v1, %v2229_v40 }
 0xf86   : > { %v2406_v5 = vsel %vm1344_vm13, %v2405_v4, 0.0 }
 0xf87   : > { %2407 = vadd.xlane.f32.xlu0 %v2406_v5 }
0x1014   : > { %v2408_v7 = vpop.xlane.xlu0 %2407 }
0x1015   : > { %v2409_v9 = vmul.f32 0.03125, %v2408_v7 }
0x1017   : > { %v2410_v10 = vsub.f32 %v2405_v4, %v2409_v9 }
0x1019   : > { %v2411_v11 = vmul.f32 %v2410_v10, %v2410_v10 }
0x101b   : > { %v2412_v12 = vsel %vm1344_vm13, %v2411_v11, 0.0 }
0x101c   : > { %2413 = vadd.xlane.f32.xlu0 %v2412_v12 }
0x10a9   : > { %v2414_v13 = vpop.xlane.xlu0 %2413 }
0x10aa   : > { %v2415_v14 = vmul.f32 0.03125, %v2414_v13 }
0x10ac   : > { %v2416_v15 = vadd.f32 1e-05, %v2415_v14 }
0x10ae   : > { %2866 = vrsqrt.f32 %v2416_v15 }
0x10b8   : > { %v2867_v18 = vpop.eup %2866 }
0x10b9   : > { %v2418_v23 = vmul.f32 %v2867_v18, %v2410_v10 }
0x10bb   : > { %v2423_v24 = vmul.f32 %v2422_v17, %v2418_v23 }
0x10bd   : > { %v2428_v25 = vadd.f32 %v2427_v22, %v2423_v24 }
0x10bf   : > { %2429 = vst.msk [vmem:[%s398_s21] sm:$0x3f] %vm1344_vm13, %v2428_v25 }
0x10c0 PF: > { %s21_s17 = sadd.s32 1, %s2874_s17  }
0x10c1   : > { %p18_p4 = scmp.ge.s32.totalorder %s21_s17, 4  }
0x10c3   :  { %20 = sbr.rel (!%p18_p4) target bundleno = 1 (0x1), region = 97 }

// kernel: informer_forward.30
= control target key start
LH: loop header
LB: loop body
LE: loop exit
PB: predicated region body
PF: predicated region fallthrough
CT: control target
= control target key end

     0   :  { %s2971_s17 = smov 0   ;;  %s3353_s0 = inlined_call_operand.vmem [shape: f32[2,7,32], index: 0, kind: input, shape index: {}]   ;;  %s3354_s1 = inlined_call_operand.vmem [shape: f32[2,8,64], index: 1, kind: input, shape index: {}]   ;;  %s3355_s2 = inlined_call_operand.vmem [shape: f32[32,96], index: 2, kind: input, shape index: {}]   ;;  %s3356_s3 = inlined_call_operand.vmem [shape: f32[1,96], index: 3, kind: input, shape index: {}]   ;;  %s3357_s4 = inlined_call_operand.vmem [shape: f32[32,32], index: 4, kind: input, shape index: {}]   ;;  %s3358_s5 = inlined_call_operand.vmem [shape: f32[32,32], index: 5, kind: input, shape index: {}]   ;;  %s3359_s6 = inlined_call_operand.vmem [shape: f32[32,32], index: 6, kind: input, shape index: {}]   ;;  %s3360_s7 = inlined_call_operand.vmem [shape: f32[32,64], index: 7, kind: input, shape index: {}]   ;;  %s3361_s8 = inlined_call_operand.vmem [shape: f32[1,64], index: 8, kind: input, shape index: {}]   ;;  %s3362_s9 = inlined_call_operand.vmem [shape: f32[64,32], index: 9, kind: input, shape index: {}]   ;;  %s3363_s10 = inlined_call_operand.vmem [shape: f32[10,32], index: 10, kind: input, shape index: {}]   ;;  %s3364_s11 = inlined_call_operand.vmem [shape: f32[2,7,32], index: 11, kind: output, shape index: {}]  }
   0x1 LB: > { %s2513_s18 = sadd.s32 4294967295, %s2892_s17   ;;  %p2517_p0 = scmp.ge.s32.totalorder %s2892_s17, 1  ;;  %s2892_s17 = sphi %s2971_s17, %s21_s17  }
   0x2   : > { %p345_p1 = scmp.lt.s32.totalorder %s2892_s17, 3 }
   0x4   : > { %p346_p2 = pnand %p2517_p0, %p345_p1 }
   0x5   : > { %v403_v0 = vld [vmem:[%s3355_s2] sm:$0xff] (!%p346_p2)  ;;  %v404_v1 = vld [vmem:[%s3355_s2 + $0x8] sm:$0xff] (!%p346_p2)  ;;  %v405_v2 = vld [vmem:[%s3355_s2 + $0x10] sm:$0xff] (!%p346_p2)  ;;  %v2894_v3 = vmov (!%p346_p2), 0.0|0.0   ;;  %vm2895_vm0 = vmmov (!%p346_p2), 0   ;;  %v2896_v6 = vmov (!%p346_p2), 0.0  }
   0x6   : > { %349 = sbr.rel (%p346_p2) target bundleno = 4296 (0x10c8), region = 64  ;;  %2779 = vmatprep.subr.bf16.mxu1 (!%p346_p2), %v2894_v3  ;;  %v2780_v4 = vpack.c.bf16 (!%p346_p2), %v404_v1, %v403_v0  ;;  %v406_v5 = vld [vmem:[%s3355_s2 + $0x18] sm:$0xff] (!%p346_p2)  ;;  %2633 = vmatprep.mubr.msk.f32.mxu1 (!%p346_p2), %vm2895_vm0, %v2896_v6  ;;  %p387_p3 = scmp.lt.s32.totalorder (!%p346_p2), %s2513_s18, 1  ;;  %vm414_vm1 = vcmask (!%p346_p2), 261120   ;;  %v2521_v9 = vld [vmem:[%s3356_s3] ss:$0 sm:$0xff] (!%p346_p2) }
   0x7   : > { %2646 = vmatprep.subr.mxu0 (!%p346_p2), %v2896_v6  ;;  %2648 = vmatprep.mubr.msk.f32.mxu0 (!%p346_p2), %vm2895_vm0, %v2896_v6  ;;  %v2783_v7 = vpack.c.bf16 (!%p346_p2), %v406_v5, %v405_v2  ;;  %s2897_s14 = smov (!%p346_p2), 96   ;;  %s2898_s15 = smov (!%p346_p2), 120   ;;  %vm492_vm2 = vcmask (!%p346_p2), 64512   ;;  %vm568_vm3 = vcmask (!%p346_p2), 55296   ;;  %vm586_vm4 = vcmask (!%p346_p2), 1046528  }
   0x8   : > { %2781 = vmatpush3.bf16.msra.mxu1 (!%p346_p2), %v2780_v4  ;;  %s2899_s16 = smov (!%p346_p2), 88   ;;  %s2901_s19 = smov (!%p346_p2), 112   ;;  %vm582_vm5 = vcmask (!%p346_p2), 56320   ;;  %vm1171_vm6 = vcmask (!%p346_p2), 130048   ;;  %vm1173_vm7 = vcmask (!%p346_p2), 195584   ;;  %vm1268_vm8 = vcmask (!%p346_p2), 1040384  }
   0x9   : > { %2782 = vmatprep.subr.bf16.mxu1 (!%p346_p2), %v2894_v3  ;;  %s3365_s20 = smov (!%p346_p2), 72   ;;  %s2903_s21 = smov (!%p346_p2), 104   ;;  %vm1270_vm9 = vcmask (!%p346_p2), 1041408   ;;  %vm1272_vm10 = vcmask (!%p346_p2), 1042432   ;;  %vm1274_vm11 = vcmask (!%p346_p2), 1043456   ;;  %vm1276_vm12 = vcmask (!%p346_p2), 1044480  }
   0xa   : > { %s2904_s22 = smov (!%p346_p2), 56   ;;  %s2905_s23 = smov (!%p346_p2), 64   ;;  %vm1278_vm13 = vcmask (!%p346_p2), 1045504   ;;  %vm1362_vm14 = vcmask (!%p346_p2), 260096   ;;  %vm1545_vm15 = vcmask (!%p346_p2), 63488  }
   0xb   : > { %s2906_s24 = smov (!%p346_p2), 48   ;;  %s2907_s25 = smov (!%p346_p2), 40  }
   0xc   : > { %2784 = vmatpush3.bf16.msra.mxu1 (!%p346_p2), %v2783_v7  ;;  %s2908_s26 = smov (!%p346_p2), 16   ;;  %s2909_s28 = smov (!%p346_p2), 8  }
   0xd   : > { %s3368_s18 = smov (!%p387_p3, %s2513_s18), 1  ;;  %2636 = vmatprep.subr.mxu1 %v2896_v6  ;;  %s2910_s29 = smov 24  }
   0xe   : > { %s2998_s27 = sshll.u32 %s3368_s18, 3  ;;  %s2900_s18 = smov 80  }
   0xf   : > { %s390_s30 = scalar_lea.vmem %s3353_s0, %s2998_s27  ;;  %s394_s12 = scalar_lea.vmem %s3354_s1, %s2998_s27 }
  0x10   : > { %v3004_v8 = vld [vmem:[%s390_s30] sm:$0x7f] }
  0x11   : > { %2634 = vmatmul.mubr.msk.f32.vlgmr.msra.gmra.mrb[0].mxu1 %vm414_vm1, %v3004_v8 }
  0x12   : > { %2638 = vmatprep.mubr.msk.f32.mxu1 %vm2895_vm0, %v2896_v6 }
  0xe4   : > { %v484_v10 = vpop.f32.mrb[0].mxu1 }
  0xe5   : > { %v3014_v11 = vadd.f32 %v2521_v9, %v484_v10  ;;  %v2635_v12 = vpop.f32.mrb[1].mxu1 }
  0xe7   : > { %490 = vrot.lane.b32.xlu0 %v3014_v11, %s2897_s14  ;;  %v488_v13 = vmul.f32 0.35355338, %v3014_v11 }
  0xe9   : > { %659 = vrot.lane.b32.xlu1 %v488_v13, %s2898_s15 }
  0xeb   : > { %661 = vrot.lane.b32.xlu0 %v3014_v11, %s2899_s16 }
  0xed   : > { %827 = vrot.lane.b32.xlu1 %v3014_v11, %s2900_s18 }
  0xef   : > { %825 = vrot.lane.b32.xlu0 %v488_v13, %s2901_s19 }
  0xf1   : > { %993 = vrot.lane.b32.xlu1 %v3014_v11, %s3365_s20 }
  0xf3   : > { %991 = vrot.lane.b32.xlu0 %v488_v13, %s2903_s21 }
 0x159   : > { %v491_v14 = vpop.permute.xlu0 %490 }
 0x15a   : > { %2637 = vmatpush3.xpose.msk.msra.mxu1 %vm492_vm2, %v491_v14 }
 0x15b   : > { %v660_v15 = vpop.permute.xlu1 %659  ;;  %2641 = vmatprep.subr.mxu1 %v2896_v6 }
 0x15d   : > { %v662_v16 = vpop.permute.xlu0 %661  ;;  %2639 = vmatmul.mubr.msk.f32.vlgmr.msra.gmra.mrb[2].mxu1 %vm492_vm2, %v488_v13 }
 0x15e   : > { %2647 = vmatpush3.xpose.msk.msra.mxu0 %vm492_vm2, %v662_v16  ;;  %2643 = vmatprep.mubr.msk.f32.mxu1 %vm2895_vm0, %v2896_v6 }
 0x15f   : > { %v828_v17 = vpop.permute.xlu1 %827  ;;  %2656 = vmatprep.subr.mxu0 %v2896_v6 }
 0x161   : > { %2649 = vmatmul.mubr.msk.f32.vlgmr.msra.gmra.mrb[0].mxu0 %vm492_vm2, %v660_v15  ;;  %v826_v18 = vpop.permute.xlu0 %825 }
 0x162   : > { %2657 = vmatpush3.xpose.msk.msra.mxu0 %vm492_vm2, %v828_v17  ;;  %2658 = vmatprep.mubr.msk.f32.mxu0 %vm2895_vm0, %v2896_v6 }
 0x163   : > { %2666 = vmatprep.subr.mxu0 %v2896_v6  ;;  %v994_v19 = vpop.permute.xlu1 %993 }
 0x165   : > { %2659 = vmatmul.mubr.msk.f32.vlgmr.msra.gmra.mrb[2].mxu0 %vm492_vm2, %v826_v18  ;;  %v992_v20 = vpop.permute.xlu0 %991 }
 0x166   : > { %2667 = vmatpush3.xpose.msk.msra.mxu0 %vm492_vm2, %v994_v19  ;;  %2668 = vmatprep.mubr.msk.f32.mxu0 %vm2895_vm0, %v2896_v6 }
 0x167   : > { %2785 = vmatprep.subr.bf16.mxu0 %v2894_v3 }
 0x169   : > { %2669 = vmatmul.mubr.msk.f32.vlgmr.msra.gmra.mrb[4].mxu0 %vm492_vm2, %v992_v20 }
 0x16a   : > { %2684 = vmatprep.mubr.msk.f32.mxu0 %vm2895_vm0, %v2896_v6 }
 0x230   : > { %v564_v21 = vpop.f32.mrb[2].mxu1 }
 0x231   : > { %v2640_v22 = vpop.f32.mrb[3].mxu1  ;;  %v569_v23 = vsel %vm568_vm3, %v564_v21, -inf }
 0x232   : > { %570 = vmax.xlane.f32.xlu1 %v569_v23 }
 0x234   : > { %v733_v24 = vpop.f32.mrb[0].mxu0 }
 0x235   : > { %v2650_v25 = vpop.f32.mrb[1].mxu0  ;;  %v737_v26 = vsel %vm568_vm3, %v733_v24, -inf }
 0x236   : > { %738 = vmax.xlane.f32.xlu0 %v737_v26 }
 0x238   : > { %v899_v27 = vpop.f32.mrb[2].mxu0 }
 0x239   : > { %v2660_v28 = vpop.f32.mrb[3].mxu0  ;;  %v903_v29 = vsel %vm568_vm3, %v899_v27, -inf }
 0x23a   : > { %904 = vmax.xlane.f32.xlu0 %v903_v29  ;;  %v1281_v28 = vld [vmem:[%s3357_s4 + $0x8] sm:$0xff] }
 0x23c   : > { %v1065_v30 = vpop.f32.mrb[4].mxu0 }
 0x23d   : > { %v2670_v31 = vpop.f32.mrb[5].mxu0  ;;  %v1069_v32 = vsel %vm568_vm3, %v1065_v30, -inf }
 0x23e   : > { %1070 = vmax.xlane.f32.xlu1 %v1069_v32  ;;  %v1282_v31 = vld [vmem:[%s3357_s4 + $0x10] sm:$0xff]  ;;  %v1283_v32 = vld [vmem:[%s3357_s4 + $0x18] sm:$0xff] }
 0x24f   : > { %748 = vrot.lane.b32.xlu1 %v3014_v11, %s2904_s22 }
 0x2bf   : > { %v571_v33 = vpop.xlane.xlu1 %570 }
 0x2c0   : > { %v572_v34 = vsub.f32 %v564_v21, %v571_v33  ;;  %v2789_v33 = vpack.c.bf16 %v1283_v32, %v1282_v31 }
 0x2c2   : > { %v573_v35 = vmul.f32 1.442695, %v572_v34 }
 0x2c3   : > { %v739_v36 = vpop.xlane.xlu0 %738 }
 0x2c4   : > { %2846 = vpow2.f32 %v573_v35  ;;  %v740_v37 = vsub.f32 %v733_v24, %v739_v36 }
 0x2c6   : > { %v741_v38 = vmul.f32 1.442695, %v740_v37 }
 0x2c7   : > { %v905_v48 = vpop.xlane.xlu0 %904 }
 0x2c8   : > { %2848 = vpow2.f32 %v741_v38  ;;  %v906_v49 = vsub.f32 %v899_v27, %v905_v48  ;;  %v1280_v27 = vld [vmem:[%s3357_s4] sm:$0xff] }
 0x2c9   : > { %v2786_v29 = vpack.c.bf16 %v1281_v28, %v1280_v27  ;;  %v3163_v28 = vld [vmem:[%s3363_s10] sm:$0xff] }
 0x2ca   : > { %v907_v50 = vmul.f32 1.442695, %v906_v49 }
 0x2cb   : > { %v1071_v39 = vpop.xlane.xlu1 %1070  ;;  %2787 = vmatpush3.bf16.msra.mxu0 %v2786_v29 }
 0x2cc   : > { %v1072_v40 = vsub.f32 %v1065_v30, %v1071_v39  ;;  %2788 = vmatprep.subr.bf16.mxu0 %v2894_v3 }
 0x2ce   : > { %v2847_v41 = vpop.eup %2846  ;;  %v1073_v42 = vmul.f32 1.442695, %v1072_v40 }
 0x2cf   : > { %v575_v43 = vsel %vm568_vm3, %v2847_v41, 0.0  ;;  %v749_v53 = vpop.permute.xlu1 %748  ;;  %2790 = vmatpush3.bf16.msra.mxu0 %v2789_v33 }
 0x2d0   : > { %2850 = vpow2.f32 %v1073_v42  ;;  %576 = vadd.xlane.f32.xlu0 %v575_v43  ;;  %2698 = vmatprep.subr.mxu0 %v2896_v6 }
 0x2d1   : > { %2852 = vpow2.f32 %v907_v50 }
 0x2d2   : > { %v2849_v44 = vpop.eup %2848 }
 0x2d3   : > { %v743_v45 = vsel %vm568_vm3, %v2849_v44, 0.0 }
 0x2d4   : > { %744 = vadd.xlane.f32.xlu1 %v743_v45 }
 0x2da   : > { %v2851_v46 = vpop.eup %2850 }
 0x2db   : > { %v1075_v47 = vsel %vm568_vm3, %v2851_v46, 0.0  ;;  %v2853_v51 = vpop.eup %2852 }
 0x2dc   : > { %1076 = vadd.xlane.f32.xlu1 %v1075_v47  ;;  %v909_v52 = vsel %vm568_vm3, %v2853_v51, 0.0 }
 0x2e6   : > { %580 = vrot.lane.b32.xlu0 %v3014_v11, %s2905_s23 }
 0x2ed   : > { %914 = vrot.lane.b32.xlu1 %v3014_v11, %s2906_s24 }
 0x305   : > { %910 = vadd.xlane.f32.xlu0 %v909_v52 }
 0x31b   : > { %1080 = vrot.lane.b32.xlu0 %v3014_v11, %s2907_s25 }
 0x35d   : > { %v577_v54 = vpop.xlane.xlu0 %576 }
 0x35e   : > { %2854 = vrcp.f32 %v577_v54 }
 0x361   : > { %v581_v55 = vpop.permute.xlu0 %580  ;;  %v745_v56 = vpop.xlane.xlu1 %744 }
 0x362   : > { %2856 = vrcp.f32 %v745_v56  ;;  %2642 = vmatpush3.msk.msra.mxu1 %vm586_vm4, %v581_v55 }
 0x363   : > { %2651 = vmatprep.subr.mxu1 %v2896_v6 }
 0x368   : > { %v2855_v57 = vpop.eup %2854 }
 0x369   : > { %v579_v58 = vmul.f32 %v2855_v57, %v2847_v41  ;;  %v1077_v59 = vpop.xlane.xlu1 %1076 }
 0x36b   : > { %2644 = vmatmul.mubr.msk.f32.vlgmr.msra.gmra.mrb[4].mxu1 %vm582_vm5, %v579_v58 }
 0x36c   : > { %v2857_v60 = vpop.eup %2856  ;;  %2652 = vmatpush3.msk.msra.mxu1 %vm586_vm4, %v749_v53  ;;  %2653 = vmatprep.mubr.msk.f32.mxu1 %vm2895_vm0, %v2896_v6 }
 0x36d   : > { %v747_v61 = vmul.f32 %v2857_v60, %v2849_v44  ;;  %v915_v62 = vpop.permute.xlu1 %914  ;;  %2661 = vmatprep.subr.mxu1 %v2896_v6 }
 0x36f   : > { %2654 = vmatmul.mubr.msk.f32.vlgmr.msra.gmra.mrb[6].mxu1 %vm582_vm5, %v747_v61 }
 0x370   : > { %2662 = vmatpush3.msk.msra.mxu1 %vm586_vm4, %v915_v62  ;;  %2663 = vmatprep.mubr.msk.f32.mxu1 %vm2895_vm0, %v2896_v6 }
 0x371   : > { %2671 = vmatprep.subr.mxu1 %v2896_v6 }
 0x392   : > { %v911_v63 = vpop.xlane.xlu0 %910 }
 0x393   : > { %2858 = vrcp.f32 %v911_v63 }
 0x394   : > { %2860 = vrcp.f32 %v1077_v59 }
 0x396   : > { %v1081_v4 = vpop.permute.xlu0 %1080 }
 0x39d   : > { %v2859_v0 = vpop.eup %2858 }
 0x39e   : > { %v913_v1 = vmul.f32 %v2859_v0, %v2853_v51  ;;  %v2861_v2 = vpop.eup %2860 }
 0x39f   : > { %v1079_v5 = vmul.f32 %v2861_v2, %v2851_v46 }
 0x3a0   : > { %2664 = vmatmul.mubr.msk.f32.vlgmr.msra.gmra.mrb[8].mxu1 %vm582_vm5, %v913_v1 }
 0x3a1   : > { %2672 = vmatpush3.msk.msra.mxu1 %vm586_vm4, %v1081_v4  ;;  %2673 = vmatprep.mubr.msk.f32.mxu1 %vm2895_vm0, %v2896_v6 }
 0x3a2   : > { %2791 = vmatprep.subr.bf16.mxu1 %v2894_v3 }
 0x3a4   : > { %2674 = vmatmul.mubr.msk.f32.vlgmr.msra.gmra.mrb[10].mxu1 %vm582_vm5, %v1079_v5 }
 0x3a5   : > { %2695 = vmatprep.mubr.msk.f32.mxu1 %vm2895_vm0, %v2896_v6 }
 0x43e   : > { %v655_v7 = vpop.f32.mrb[4].mxu1 }
 0x43f   : > { %v2645_v9 = vpop.f32.mrb[5].mxu1  ;;  %v1162_v10 = vrot.slane %v655_v7, 2  ;;  %v1158_v11 = vrot.slane %v655_v7, 1  ;;  %v1166_v14 = vrot.slane %v655_v7, 3 }
 0x441   : > { %1163 = vrot.lane.b32.xlu0 %v1162_v10, %s2908_s26  ;;  %1159 = vrot.lane.b32.xlu1 %v1158_v11, %s2909_s28 }
 0x442   : > { %v821_v12 = vpop.f32.mrb[6].mxu1 }
 0x443   : > { %v2655_v13 = vpop.f32.mrb[7].mxu1  ;;  %v1176_v15 = vrot.slane %v821_v12, 4  ;;  %v1181_v16 = vrot.slane %v821_v12, 1  ;;  %v1189_v17 = vrot.slane %v821_v12, 3  ;;  %v1185_v18 = vrot.slane %v821_v12, 2 }
 0x445   : > { %1167 = vrot.lane.b32.xlu1 %v1166_v14, %s2910_s29  ;;  %1177 = vrot.lane.b32.xlu0 %v1176_v15, %s2910_s29 }
 0x449   : > { %1182 = vrot.lane.b32.xlu1 %v1181_v16, %s2909_s28  ;;  %1190 = vrot.lane.b32.xlu0 %v1189_v17, %s2910_s29 }
 0x44d   : > { %1186 = vrot.lane.b32.xlu1 %v1185_v18, %s2908_s26 }
 0x473   : > { %v3087_v19 = vpop.f32.mrb[8].mxu1 }
 0x474   : > { %v2665_v20 = vpop.f32.mrb[9].mxu1  ;;  %v1207_v21 = vrot.slane %v3087_v19, 1  ;;  %v1197_v22 = vrot.slane %v3087_v19, 3  ;;  %v1201_v25 = vrot.slane %v3087_v19, 4  ;;  %v1211_v26 = vrot.slane %v3087_v19, 2 }
 0x476   : > { %1208 = vrot.lane.b32.xlu0 %v1207_v21, %s2909_s28  ;;  %1198 = vrot.lane.b32.xlu1 %v1197_v22, %s2908_s26 }
 0x477   : > { %v3093_v23 = vpop.f32.mrb[10].mxu1 }
 0x478   : > { %v2675_v24 = vpop.f32.mrb[11].mxu1  ;;  %v1222_v30 = vrot.slane %v3093_v23, 2  ;;  %v1237_v34 = vrot.slane %v3093_v23, 1  ;;  %v1226_v35 = vrot.slane %v3093_v23, 3  ;;  %v1230_v36 = vrot.slane %v3093_v23, 4 }
 0x479   : > { %v3149_v24 = vld [vmem:[%s394_s12] sm:$0xff] }
 0x47a   : > { %1202 = vrot.lane.b32.xlu0 %v1201_v25, %s2910_s29  ;;  %1212 = vrot.lane.b32.xlu1 %v1211_v26, %s2908_s26 }
 0x47e   : > { %1215 = vrot.lane.b32.xlu1 %v1197_v22, %s2910_s29  ;;  %1223 = vrot.lane.b32.xlu0 %v1222_v30, %s2909_s28 }
 0x482   : > { %1238 = vrot.lane.b32.xlu1 %v1237_v34, %s2909_s28  ;;  %1227 = vrot.lane.b32.xlu0 %v1226_v35, %s2908_s26 }
 0x486   : > { %1241 = vrot.lane.b32.xlu1 %v1222_v30, %s2908_s26  ;;  %1231 = vrot.lane.b32.xlu0 %v1230_v36, %s2910_s29 }
 0x48a   : > { %1244 = vrot.lane.b32.xlu0 %v1226_v35, %s2910_s29 }
 0x4b3   : > { %v1164_v37 = vpop.permute.xlu0 %1163  ;;  %v1160_v38 = vpop.permute.xlu1 %1159 }
 0x4b4   : > { %v1170_v40 = vsel %vm492_vm2, %v655_v7, %v1160_v38 }
 0x4b5   : > { %v1172_v42 = vsel %vm1171_vm6, %v1170_v40, %v1164_v37  ;;  %v1387_v40 = vld [vmem:[%s3358_s5] sm:$0xff] }
 0x4b7   : > { %v1168_v39 = vpop.permute.xlu1 %1167  ;;  %v1178_v41 = vpop.permute.xlu0 %1177 }
 0x4b8   : > { %v1180_v44 = vsel %vm1173_vm7, %v1172_v42, %v1178_v41  ;;  %v1174_v51 = vsel %vm1173_vm7, %v1172_v42, %v1168_v39  ;;  %v1389_v42 = vld [vmem:[%s3358_s5 + $0x10] sm:$0xff] }
 0x4b9   : > { %v1251_v45 = vrot.slane %v1180_v44, 3 }
 0x4bb   : > { %v1183_v43 = vpop.permute.xlu1 %1182  ;;  %v1191_v48 = vpop.permute.xlu0 %1190  ;;  %v1269_v53 = vsel %vm1268_vm8, %v1174_v51, %v1251_v45 }
 0x4bc   : > { %v1193_v46 = vsel %vm492_vm2, %v821_v12, %v1183_v43  ;;  %v1390_v43 = vld [vmem:[%s3358_s5 + $0x18] sm:$0xff] }
 0x4bd   : > { %v2795_v44 = vpack.c.bf16 %v1390_v43, %v1389_v42 }
 0x4bf   : > { %v1187_v47 = vpop.permute.xlu1 %1186 }
 0x4c0   : > { %v1194_v49 = vsel %vm1171_vm6, %v1193_v46, %v1187_v47 }
 0x4c1   : > { %v1195_v50 = vsel %vm1173_vm7, %v1194_v49, %v1191_v48 }
 0x4c2   : > { %v1254_v52 = vrot.slane %v1195_v50, 7 }
 0x4c4   : > { %v1271_v54 = vsel %vm1270_vm9, %v1269_v53, %v1254_v52 }
 0x4e8   : > { %v1209_v55 = vpop.permute.xlu0 %1208  ;;  %v1199_v56 = vpop.permute.xlu1 %1198 }
 0x4e9   : > { %v1205_v57 = vsel %vm1171_vm6, %v1193_v46, %v1199_v56  ;;  %v1218_v62 = vsel %vm492_vm2, %v3087_v19, %v1209_v55 }
 0x4ec   : > { %v1203_v58 = vpop.permute.xlu0 %1202  ;;  %v1213_v59 = vpop.permute.xlu1 %1212 }
 0x4ed   : > { %v1206_v60 = vsel %vm1173_vm7, %v1205_v57, %v1203_v58  ;;  %v1219_v0 = vsel %vm1171_vm6, %v1218_v62, %v1213_v59 }
 0x4ee   : > { %v1257_v61 = vrot.slane %v1206_v60, 2 }
 0x4f0   : > { %v1273_v63 = vsel %vm1272_vm10, %v1271_v54, %v1257_v61  ;;  %v1216_v1 = vpop.permute.xlu1 %1215  ;;  %v1224_v2 = vpop.permute.xlu0 %1223 }
 0x4f1   : > { %v1220_v4 = vsel %vm1173_vm7, %v1219_v0, %v1216_v1  ;;  %v1234_v11 = vsel %vm492_vm2, %v3087_v19, %v1224_v2 }
 0x4f2   : > { %v1260_v5 = vrot.slane %v1220_v4, 6 }
 0x4f4   : > { %v1275_v7 = vsel %vm1274_vm11, %v1273_v63, %v1260_v5  ;;  %v1239_v9 = vpop.permute.xlu1 %1238  ;;  %v1228_v10 = vpop.permute.xlu0 %1227 }
 0x4f5   : > { %v1235_v12 = vsel %vm1171_vm6, %v1234_v11, %v1228_v10  ;;  %v1247_v17 = vsel %vm492_vm2, %v3093_v23, %v1239_v9  ;;  %v1284_v23 = vlaneseq }
 0x4f7   : > { %v3157_v26 = vshrl.u32 %v1284_v23, 7 }
 0x4f8   : > { %v1232_v13 = vpop.permute.xlu0 %1231  ;;  %v1242_v14 = vpop.permute.xlu1 %1241 }
 0x4f9   : > { %v1236_v15 = vsel %vm1173_vm7, %v1235_v12, %v1232_v13  ;;  %v1248_v18 = vsel %vm1171_vm6, %v1247_v17, %v1242_v14  ;;  %v1286_v27 = vsub.s32 0, %v3157_v26  ;;  %v1379_v48 = vsub.s32 4, %v3157_v26 }
 0x4fa   : > { %v1263_v16 = vrot.slane %v1236_v15, 1  ;;  %v1384_v49 = vsub.s32 5, %v3157_v26  ;;  %v1393_v56 = vsub.s32 1, %v3157_v26 }
 0x4fb   : > { %v1287_v29 = vrot.slane %v3163_v28, %v1286_v27  ;;  %v1380_v50 = vrot.slane %v3163_v28, %v1379_v48 }
 0x4fc   : > { %v1277_v20 = vsel %vm1276_vm12, %v1275_v7, %v1263_v16  ;;  %v1245_v21 = vpop.permute.xlu0 %1244  ;;  %v1385_v53 = vrot.slane %v3163_v28, %v1384_v49  ;;  %v1394_v57 = vrot.slane %v3163_v28, %v1393_v56 }
 0x4fd   : > { %v1249_v19 = vsel %vm1173_vm7, %v1248_v18, %v1245_v21 }
 0x4fe   : > { %v1266_v22 = vrot.slane %v1249_v19, 5 }
 0x500   : > { %v1279_v25 = vsel %vm1278_vm13, %v1277_v20, %v1266_v22 }
 0x501   : > { %2685 = vmatmul.mubr.msk.f32.vlgmr.msra.gmra.mrb[6].mxu0 %vm414_vm1, %v1279_v25 }
 0x502   : > { %2699 = vmatpush3.xpose.msk.msra.mxu0 %vm492_vm2, %v3149_v24  ;;  %2700 = vmatprep.mubr.msk.f32.mxu0 %vm2895_vm0, %v2896_v6 }
 0x503   : > { %2708 = vmatprep.subr.mxu0 %v2896_v6 }
 0x5d4   : > { %v1357_v30 = vpop.f32.mrb[6].mxu0 }
 0x5d5   : > { %v1358_v31 = vadd.f32 %v1357_v30, %v1287_v29  ;;  %v2686_v32 = vpop.f32.mrb[7].mxu0 }
 0x5d7   : > { %v1361_v33 = vadd.f32 %v1358_v31, %v3004_v8  ;;  %v1388_v8 = vld [vmem:[%s3358_s5 + $0x8] sm:$0xff] }
 0x5d8   : > { %v2792_v41 = vpack.c.bf16 %v1388_v8, %v1387_v40 }
 0x5d9   : > { %v1363_v34 = vsel %vm1362_vm14, %v1361_v33, 0.0 }
 0x5da   : > { %1364 = vadd.xlane.f32.xlu1 %v1363_v34  ;;  %2793 = vmatpush3.bf16.msra.mxu1 %v2792_v41 }
 0x5db   : > { %2794 = vmatprep.subr.bf16.mxu1 %v2894_v3 }
 0x5de   : > { %2796 = vmatpush3.bf16.msra.mxu1 %v2795_v44 }
 0x5df   : > { %2703 = vmatprep.subr.mxu1 %v2896_v6 }
 0x667   : > { %v1365_v35 = vpop.xlane.xlu1 %1364 }
 0x668   : > { %v1367_v36 = vmul.f32 0.03125, %v1365_v35 }
 0x66a   : > { %v1368_v37 = vsub.f32 %v1361_v33, %v1367_v36 }
 0x66c   : > { %v1369_v38 = vmul.f32 %v1368_v37, %v1368_v37 }
 0x66e   : > { %v1370_v39 = vsel %vm1362_vm14, %v1369_v38, 0.0 }
 0x66f   : > { %1371 = vadd.xlane.f32.xlu0 %v1370_v39 }
 0x685   : > { %1635 = vrot.lane.b32.xlu0 %v3149_v24, %s2898_s15 }
 0x6fc   : > { %v1372_v45 = vpop.xlane.xlu0 %1371 }
 0x6fd   : > { %v1373_v46 = vmul.f32 0.03125, %v1372_v45 }
 0x6ff   : > { %v1374_v47 = vadd.f32 1e-05, %v1373_v46 }
 0x700   : > { %v1636_v62 = vpop.permute.xlu0 %1635 }
 0x701   : > { %2862 = vrsqrt.f32 %v1374_v47 }
 0x70b   : > { %v2863_v51 = vpop.eup %2862 }
 0x70c   : > { %v1376_v52 = vmul.f32 %v2863_v51, %v1368_v37 }
 0x70e   : > { %v1381_v54 = vmul.f32 %v1380_v50, %v1376_v52 }
 0x710   : > { %v3191_v55 = vadd.f32 %v1385_v53, %v1381_v54 }
 0x712   : > { %2696 = vmatmul.mubr.msk.f32.vlgmr.msra.gmra.mrb[12].mxu1 %vm414_vm1, %v3191_v55 }
 0x713   : > { %2705 = vmatprep.mubr.msk.f32.mxu1 %vm2895_vm0, %v2896_v6 }
 0x7e5   : > { %v1464_v58 = vpop.f32.mrb[12].mxu1 }
 0x7e6   : > { %v1465_v59 = vadd.f32 %v1464_v58, %v1394_v57  ;;  %v2697_v60 = vpop.f32.mrb[13].mxu1 }
 0x7e8   : > { %v1468_v61 = vmul.f32 0.35355338, %v1465_v59 }
 0x7ea   : > { %1798 = vrot.lane.b32.xlu0 %v1468_v61, %s2901_s19  ;;  %1633 = vrot.lane.b32.xlu1 %v1468_v61, %s2898_s15 }
 0x7eb   : > { %2701 = vmatmul.mubr.msk.f32.vlgmr.msra.gmra.mrb[8].mxu0 %vm492_vm2, %v1468_v61 }
 0x7ec   : > { %2709 = vmatpush3.xpose.msk.msra.mxu0 %vm492_vm2, %v1636_v62  ;;  %2710 = vmatprep.mubr.msk.f32.mxu0 %vm2895_vm0, %v2896_v6  ;;  %v2144_v62 = vld [vmem:[%s3359_s6 + $0x8] sm:$0xff] }
 0x7ed   : > { %2718 = vmatprep.subr.mxu0 %v2896_v6 }
 0x7ee   : > { %1963 = vrot.lane.b32.xlu0 %v1468_v61, %s2903_s21  ;;  %1800 = vrot.lane.b32.xlu1 %v3149_v24, %s2901_s19  ;;  %v2143_v61 = vld [vmem:[%s3359_s6] sm:$0xff] }
 0x7f2   : > { %1965 = vrot.lane.b32.xlu1 %v3149_v24, %s2903_s21  ;;  %s398_s21 = scalar_lea.vmem %s3364_s11, %s2998_s27 }
 0x85c   : > { %v1634_v63 = vpop.permute.xlu1 %1633  ;;  %v1799_v1 = vpop.permute.xlu0 %1798 }
 0x85d   : > { %2711 = vmatmul.mubr.msk.f32.vlgmr.msra.gmra.mrb[10].mxu0 %vm492_vm2, %v1634_v63  ;;  %v2798_v63 = vpack.c.bf16 %v2144_v62, %v2143_v61  ;;  %v2554_v61 = vld [vmem:[%s3361_s8] ss:$0 sm:$0xff] }
 0x85e   : > { %2720 = vmatprep.mubr.msk.f32.mxu0 %vm2895_vm0, %v2896_v6 }
 0x860   : > { %v1801_v0 = vpop.permute.xlu1 %1800  ;;  %v1964_v4 = vpop.permute.xlu0 %1963 }
 0x861   : > { %2719 = vmatpush3.xpose.msk.msra.mxu0 %vm492_vm2, %v1801_v0  ;;  %v2145_v0 = vld [vmem:[%s3359_s6 + $0x10] sm:$0xff] }
 0x862   : > { %2728 = vmatprep.subr.mxu0 %v2896_v6 }
 0x864   : > { %v1966_v2 = vpop.permute.xlu1 %1965  ;;  %2721 = vmatmul.mubr.msk.f32.vlgmr.msra.gmra.mrb[12].mxu0 %vm492_vm2, %v1799_v1  ;;  %v2146_v1 = vld [vmem:[%s3359_s6 + $0x18] sm:$0xff] }
 0x865   : > { %2729 = vmatpush3.xpose.msk.msra.mxu0 %vm492_vm2, %v1966_v2  ;;  %2730 = vmatprep.mubr.msk.f32.mxu0 %vm2895_vm0, %v2896_v6  ;;  %v2801_v2 = vpack.c.bf16 %v2146_v1, %v2145_v0 }
 0x866   : > { %2797 = vmatprep.subr.bf16.mxu0 %v2894_v3 }
 0x868   : > { %2731 = vmatmul.mubr.msk.f32.vlgmr.msra.gmra.mrb[14].mxu0 %vm492_vm2, %v1964_v4 }
 0x869   : > { %2746 = vmatprep.mubr.msk.f32.mxu0 %vm2895_vm0, %v2896_v6  ;;  %2799 = vmatpush3.bf16.msra.mxu0 %v2798_v63 }
 0x86a   : > { %2800 = vmatprep.subr.bf16.mxu0 %v2894_v3 }
 0x86d   : > { %2802 = vmatpush3.bf16.msra.mxu0 %v2801_v2 }
 0x86e   : > { %2809 = vmatprep.subr.bf16.mxu0 %v2894_v3 }
 0x8be   : > { %v1541_v5 = vpop.f32.mrb[8].mxu0 }
 0x8bf   : > { %v2702_v7 = vpop.f32.mrb[9].mxu0  ;;  %v1546_v9 = vsel %vm1545_vm15, %v1541_v5, -inf }
 0x8c0   : > { %1547 = vmax.xlane.f32.xlu1 %v1546_v9 }
 0x930   : > { %v1707_v10 = vpop.f32.mrb[10].mxu0 }
 0x931   : > { %v2712_v11 = vpop.f32.mrb[11].mxu0  ;;  %v1711_v12 = vsel %vm1545_vm15, %v1707_v10, -inf }
 0x932   : > { %1712 = vmax.xlane.f32.xlu0 %v1711_v12 }
 0x937   : > { %v1872_v13 = vpop.f32.mrb[12].mxu0 }
 0x938   : > { %v2722_v14 = vpop.f32.mrb[13].mxu0  ;;  %v1876_v15 = vsel %vm1545_vm15, %v1872_v13, -inf }
 0x939   : > { %1877 = vmax.xlane.f32.xlu0 %v1876_v15 }
 0x93b   : > { %v2037_v16 = vpop.f32.mrb[14].mxu0 }
 0x93c   : > { %v2732_v17 = vpop.f32.mrb[15].mxu0  ;;  %v2041_v18 = vsel %vm1545_vm15, %v2037_v16, -inf }
 0x93d   : > { %2042 = vmax.xlane.f32.xlu1 %v2041_v18  ;;  %v2149_v18 = vsub.s32 2, %v3157_v26 }
 0x94d   : > { %v1548_v20 = vpop.xlane.xlu1 %1547 }
 0x94e   : > { %v1549_v21 = vsub.f32 %v1541_v5, %v1548_v20  ;;  %1722 = vrot.lane.b32.xlu1 %v3149_v24, %s2899_s16  ;;  %v2150_v20 = vrot.slane %v3163_v28, %v2149_v18 }
 0x950   : > { %v1550_v19 = vmul.f32 1.442695, %v1549_v21 }
 0x952   : > { %2864 = vpow2.f32 %v1550_v19 }
 0x95c   : > { %v2865_v22 = vpop.eup %2864 }
 0x95d   : > { %v1552_v25 = vsel %vm1545_vm15, %v2865_v22, 0.0 }
 0x95e   : > { %1553 = vadd.xlane.f32.xlu0 %v1552_v25 }
 0x974   : > { %1557 = vrot.lane.b32.xlu0 %v3149_v24, %s2897_s14  ;;  %s3366_s14 = smov 72  }
 0x9bf   : > { %v1713_v23 = vpop.xlane.xlu0 %1712 }
 0x9c0   : > { %v1714_v29 = vsub.f32 %v1707_v10, %v1713_v23 }
 0x9c2   : > { %v1715_v30 = vmul.f32 1.442695, %v1714_v29 }
 0x9c4   : > { %2866 = vpow2.f32 %v1715_v30 }
 0x9c6   : > { %v1878_v31 = vpop.xlane.xlu0 %1877 }
 0x9c7   : > { %v1879_v32 = vsub.f32 %v1872_v13, %v1878_v31 }
 0x9c9   : > { %v1880_v33 = vmul.f32 1.442695, %v1879_v32 }
 0x9ca   : > { %v2043_v34 = vpop.xlane.xlu1 %2042 }
 0x9cb   : > { %2868 = vpow2.f32 %v1880_v33  ;;  %v2044_v35 = vsub.f32 %v2037_v16, %v2043_v34  ;;  %v2249_v34 = vld [vmem:[%s3360_s7 + $0x8] sm:$0xff] }
 0x9cd   : > { %v2045_v36 = vmul.f32 1.442695, %v2044_v35 }
 0x9ce   : > { %v2867_v37 = vpop.eup %2866  ;;  %v1723_v46 = vpop.permute.xlu1 %1722 }
 0x9cf   : > { %2870 = vpow2.f32 %v2045_v36  ;;  %v1717_v38 = vsel %vm1545_vm15, %v2867_v37, 0.0  ;;  %v2251_v36 = vld [vmem:[%s3360_s7 + $0x18] sm:$0xff] }
 0x9d0   : > { %1718 = vadd.xlane.f32.xlu1 %v1717_v38 }
 0x9d5   : > { %v2869_v39 = vpop.eup %2868 }
 0x9d6   : > { %v1882_v40 = vsel %vm1545_vm15, %v2869_v39, 0.0 }
 0x9d7   : > { %1883 = vadd.xlane.f32.xlu0 %v1882_v40 }
 0x9d9   : > { %v2871_v8 = vpop.eup %2870 }
 0x9da   : > { %v2047_v41 = vsel %vm1545_vm15, %v2871_v8, 0.0 }
 0x9db   : > { %2048 = vadd.xlane.f32.xlu1 %v2047_v41  ;;  %v2245_v41 = vsub.s32 7, %v3157_v26 }
 0x9eb   : > { %v1554_v42 = vpop.xlane.xlu0 %1553 }
 0x9ec   : > { %2872 = vrcp.f32 %v1554_v42  ;;  %1887 = vrot.lane.b32.xlu1 %v3149_v24, %s2900_s18 }
 0x9ed   : > { %2052 = vrot.lane.b32.xlu0 %v3149_v24, %s3366_s14 }
 0x9ef   : > { %v1558_v43 = vpop.permute.xlu0 %1557 }
 0x9f0   : > { %2704 = vmatpush3.msra.mxu1 %v1558_v43 }
 0x9f1   : > { %2713 = vmatprep.subr.mxu1 %v2896_v6 }
 0x9f6   : > { %v2873_v44 = vpop.eup %2872 }
 0x9f7   : > { %v1556_v45 = vmul.f32 %v2873_v44, %v2865_v22 }
 0x9f9   : > { %2706 = vmatmul.mubr.msk.f32.vlgmr.msra.gmra.mrb[14].mxu1 %vm492_vm2, %v1556_v45  ;;  %v2246_v45 = vrot.slane %v3163_v28, %v2245_v41 }
 0x9fa   : > { %2714 = vmatpush3.msra.mxu1 %v1723_v46  ;;  %2715 = vmatprep.mubr.msk.f32.mxu1 %vm2895_vm0, %v2896_v6 }
 0x9fb   : > { %2723 = vmatprep.subr.mxu1 %v2896_v6 }
 0xa5d   : > { %v1719_v47 = vpop.xlane.xlu1 %1718 }
 0xa5e   : > { %2874 = vrcp.f32 %v1719_v47 }
 0xa64   : > { %v1884_v48 = vpop.xlane.xlu0 %1883 }
 0xa65   : > { %2876 = vrcp.f32 %v1884_v48  ;;  %v2337_v48 = vld [vmem:[%s3362_s9] sm:$0xff] }
 0xa68   : > { %v2875_v24 = vpop.eup %2874  ;;  %v2049_v49 = vpop.xlane.xlu1 %2048 }
 0xa69   : > { %v1721_v50 = vmul.f32 %v2875_v24, %v2867_v37  ;;  %2878 = vrcp.f32 %v2049_v49  ;;  %v2053_v54 = vpop.permute.xlu0 %2052  ;;  %v2338_v24 = vld [vmem:[%s3362_s9 + $0x8] sm:$0xff] }
 0xa6a   : > { %v2810_v49 = vpack.c.bf16 %v2338_v24, %v2337_v48 }
 0xa6b   : > { %2716 = vmatmul.mubr.msk.f32.vlgmr.msra.gmra.mrb[16].mxu1 %vm492_vm2, %v1721_v50  ;;  %v2339_v50 = vld [vmem:[%s3362_s9 + $0x10] sm:$0xff] }
 0xa6c   : > { %v1888_v51 = vpop.permute.xlu1 %1887  ;;  %2725 = vmatprep.mubr.msk.f32.mxu1 %vm2895_vm0, %v2896_v6 }
 0xa6d   : > { %2724 = vmatpush3.msra.mxu1 %v1888_v51  ;;  %v2340_v51 = vld [vmem:[%s3362_s9 + $0x18] sm:$0xff] }
 0xa6e   : > { %2733 = vmatprep.subr.mxu1 %v2896_v6 }
 0xa6f   : > { %v2877_v52 = vpop.eup %2876 }
 0xa70   : > { %v1886_v53 = vmul.f32 %v2877_v52, %v2869_v39  ;;  %v2813_v52 = vpack.c.bf16 %v2340_v51, %v2339_v50 }
 0xa72   : > { %2726 = vmatmul.mubr.msk.f32.vlgmr.msra.gmra.mrb[18].mxu1 %vm492_vm2, %v1886_v53  ;;  %v2341_v53 = vld [vmem:[%s3362_s9 + $0x20] sm:$0xff] }
 0xa73   : > { %v2879_v57 = vpop.eup %2878  ;;  %2734 = vmatpush3.msra.mxu1 %v2053_v54  ;;  %2735 = vmatprep.mubr.msk.f32.mxu1 %vm2895_vm0, %v2896_v6  ;;  %v2342_v54 = vld [vmem:[%s3362_s9 + $0x28] sm:$0xff] }
 0xa74   : > { %v2051_v58 = vmul.f32 %v2879_v57, %v2871_v8  ;;  %2803 = vmatprep.subr.bf16.mxu1 %v2894_v3  ;;  %v2240_v8 = vsub.s32 6, %v3157_v26  ;;  %v2816_v57 = vpack.c.bf16 %v2342_v54, %v2341_v53 }
 0xa76   : > { %2736 = vmatmul.mubr.msk.f32.vlgmr.msra.gmra.mrb[20].mxu1 %vm492_vm2, %v2051_v58  ;;  %v2241_v42 = vrot.slane %v3163_v28, %v2240_v8  ;;  %v2343_v58 = vld [vmem:[%s3362_s9 + $0x30] sm:$0xff] }
 0xa77   : > { %2757 = vmatprep.mubr.msk.f32.mxu1 %vm2895_vm0, %v2896_v6 }
 0xacc   : > { %v1629_v59 = vpop.f32.mrb[14].mxu1 }
 0xacd   : > { %v2707_v60 = vpop.f32.mrb[15].mxu1 }
 0xb3e   : > { %v1794_v4 = vpop.f32.mrb[16].mxu1 }
 0xb3f   : > { %2129 = vrot.lane.b32.xlu1 %v1794_v4, %s2909_s28  ;;  %v2717_v5 = vpop.f32.mrb[17].mxu1 }
 0xb45   : > { %v1959_v7 = vpop.f32.mrb[18].mxu1 }
 0xb46   : > { %2133 = vrot.lane.b32.xlu0 %v1959_v7, %s2908_s26  ;;  %v2727_v9 = vpop.f32.mrb[19].mxu1  ;;  %v2347_v7 = vsub.s32 3, %v3157_v26 }
 0xb48   : > { %v2348_v9 = vrot.slane %v3163_v28, %v2347_v7  ;;  %v401_v28 = vld [vmem:[%s3363_s10 + $0x8] sm:$0x3] }
 0xb49   : > { %v2124_v10 = vpop.f32.mrb[20].mxu1 }
 0xb4a   : > { %2137 = vrot.lane.b32.xlu1 %v2124_v10, %s2910_s29  ;;  %v2737_v11 = vpop.f32.mrb[21].mxu1 }
 0xbb1   : > { %v2130_v12 = vpop.permute.xlu1 %2129 }
 0xbb2   : > { %v2140_v14 = vsel %vm492_vm2, %v1629_v59, %v2130_v12  ;;  %v2344_v59 = vld [vmem:[%s3362_s9 + $0x38] sm:$0xff] }
 0xbb3   : > { %v2819_v60 = vpack.c.bf16 %v2344_v59, %v2343_v58 }
 0xbb8   : > { %v2134_v13 = vpop.permute.xlu0 %2133 }
 0xbb9   : > { %v2141_v15 = vsel %vm1171_vm6, %v2140_v14, %v2134_v13 }
 0xbbc   : > { %v2138_v16 = vpop.permute.xlu1 %2137 }
 0xbbd   : > { %v2142_v17 = vsel %vm1173_vm7, %v2141_v15, %v2138_v16 }
 0xbbe   : > { %2747 = vmatmul.mubr.msk.f32.vlgmr.msra.gmra.mrb[16].mxu0 %vm414_vm1, %v2142_v17 }
 0xbbf   : > { %2776 = vmatprep.mubr.msk.f32.mxu0 %vm2895_vm0, %v2896_v6  ;;  %v2248_v6 = vld [vmem:[%s3360_s7] sm:$0xff]  ;;  %2811 = vmatpush3.bf16.msra.mxu0 %v2810_v49  ;;  %vm2349_vm0 = vcmask 523264  }
 0xbc0   : > { %v2804_v35 = vpack.c.bf16 %v2249_v34, %v2248_v6  ;;  %2812 = vmatprep.subr.bf16.mxu0 %v2894_v3 }
 0xbc2   : > { %2805 = vmatpush3.bf16.msra.mxu1 %v2804_v35 }
 0xbc3   : > { %2806 = vmatprep.subr.bf16.mxu1 %v2894_v3  ;;  %2814 = vmatpush3.bf16.msra.mxu0 %v2813_v52 }
 0xbc4   : > { %2815 = vmatprep.subr.bf16.mxu0 %v2894_v3 }
 0xbc7   : > { %2817 = vmatpush3.bf16.msra.mxu0 %v2816_v57 }
 0xbc8   : > { %2818 = vmatprep.subr.bf16.mxu0 %v2894_v3 }
 0xbcb   : > { %2820 = vmatpush3.bf16.msra.mxu0 %v2819_v60 }
 0xc91   : > { %v2220_v21 = vpop.f32.mrb[16].mxu0 }
 0xc92   : > { %v2221_v19 = vadd.f32 %v2220_v21, %v2150_v20  ;;  %v2748_v22 = vpop.f32.mrb[17].mxu0 }
 0xc94   : > { %v2224_v25 = vadd.f32 %v2221_v19, %v3191_v55  ;;  %v2250_v55 = vld [vmem:[%s3360_s7 + $0x10] sm:$0xff] }
 0xc95   : > { %v2807_v37 = vpack.c.bf16 %v2251_v36, %v2250_v55 }
 0xc96   : > { %v2225_v23 = vsel %vm1362_vm14, %v2224_v25, 0.0 }
 0xc97   : > { %2226 = vadd.xlane.f32.xlu0 %v2225_v23  ;;  %2808 = vmatpush3.bf16.msra.mxu1 %v2807_v37 }
 0xd24   : > { %v2227_v29 = vpop.xlane.xlu0 %2226 }
 0xd25   : > { %v2228_v30 = vmul.f32 0.03125, %v2227_v29  ;;  %v2445_v29 = vrot.slane %v401_v28, %v1393_v56 }
 0xd27   : > { %v2229_v31 = vsub.f32 %v2224_v25, %v2228_v30  ;;  %v2440_v25 = vrot.slane %v401_v28, %v1286_v27 }
 0xd29   : > { %v2230_v32 = vmul.f32 %v2229_v31, %v2229_v31 }
 0xd2b   : > { %v2231_v33 = vsel %vm1362_vm14, %v2230_v32, 0.0 }
 0xd2c   : > { %2232 = vadd.xlane.f32.xlu1 %v2231_v33 }
 0xdb9   : > { %v2233_v38 = vpop.xlane.xlu1 %2232 }
 0xdba   : > { %v2234_v39 = vmul.f32 0.03125, %v2233_v38 }
 0xdbc   : > { %v2235_v40 = vadd.f32 1e-05, %v2234_v39 }
 0xdbe   : > { %2880 = vrsqrt.f32 %v2235_v40 }
 0xdc8   : > { %v2881_v43 = vpop.eup %2880 }
 0xdc9   : > { %v2237_v44 = vmul.f32 %v2881_v43, %v2229_v31 }
 0xdcb   : > { %v2242_v46 = vmul.f32 %v2241_v42, %v2237_v44 }
 0xdcd   : > { %v2247_v47 = vadd.f32 %v2246_v45, %v2242_v46 }
 0xdcf   : > { %2758 = vmatmul.mubr.msk.f32.vlgmr.msra.gmra.mrb[22].mxu1 %vm414_vm1, %v2247_v47 }
 0xea2   : > { %v2328_v62 = vpop.f32.mrb[22].mxu1 }
 0xea3   : > { %v2329_v63 = vadd.f32 %v2554_v61, %v2328_v62  ;;  %v2759_v0 = vpop.f32.mrb[23].mxu1 }
 0xea5   : > { %v2333_v1 = vmul.f32 0.70710677, %v2329_v63  ;;  %v2332_v2 = vmul.f32 0.5, %v2329_v63 }
 0xea7   : > { %2882 = verf.f32 %v2333_v1 }
 0xeb1   : > { %v2883_v3 = vpop.eup %2882 }
 0xeb2   : > { %v2335_v4 = vadd.f32 1.0, %v2883_v3 }
 0xeb4   : > { %v2336_v5 = vmul.f32 %v2335_v4, %v2332_v2 }
 0xeb6   : > { %2777 = vmatmul.mubr.msk.f32.vlgmr.msra.gmra.mrb[18].mxu0 %vm2349_vm0, %v2336_v5 }
 0xf89   : > { %v2419_v10 = vpop.f32.mrb[18].mxu0 }
 0xf8a   : > { %v2420_v11 = vadd.f32 %v2419_v10, %v2348_v9  ;;  %v2778_v12 = vpop.f32.mrb[19].mxu0 }
 0xf8c   : > { %v2423_v13 = vadd.f32 %v2420_v11, %v2247_v47 }
 0xf8e   : > { %v2424_v14 = vsel %vm1362_vm14, %v2423_v13, 0.0 }
 0xf8f   : > { %2425 = vadd.xlane.f32.xlu0 %v2424_v14 }
0x101c   : > { %v2426_v15 = vpop.xlane.xlu0 %2425 }
0x101d   : > { %v2427_v16 = vmul.f32 0.03125, %v2426_v15 }
0x101f   : > { %v2428_v17 = vsub.f32 %v2423_v13, %v2427_v16 }
0x1021   : > { %v2429_v18 = vmul.f32 %v2428_v17, %v2428_v17 }
0x1023   : > { %v2430_v20 = vsel %vm1362_vm14, %v2429_v18, 0.0 }
0x1024   : > { %2431 = vadd.xlane.f32.xlu0 %v2430_v20 }
0x10b1   : > { %v2432_v21 = vpop.xlane.xlu0 %2431 }
0x10b2   : > { %v2433_v19 = vmul.f32 0.03125, %v2432_v21 }
0x10b4   : > { %v2434_v22 = vadd.f32 1e-05, %v2433_v19 }
0x10b6   : > { %2884 = vrsqrt.f32 %v2434_v22 }
0x10c0   : > { %v2885_v23 = vpop.eup %2884 }
0x10c1   : > { %v2436_v30 = vmul.f32 %v2885_v23, %v2428_v17 }
0x10c3   : > { %v2441_v31 = vmul.f32 %v2440_v25, %v2436_v30 }
0x10c5   : > { %v2446_v32 = vadd.f32 %v2445_v29, %v2441_v31 }
0x10c7   : > { %2447 = vst.msk [vmem:[%s398_s21] sm:$0x7f] %vm1362_vm14, %v2446_v32 }
0x10c8 PF: > { %s21_s17 = sadd.s32 1, %s2892_s17  }
0x10c9   : > { %p18_p4 = scmp.ge.s32.totalorder %s21_s17, 4  }
0x10cb   :  { %20 = sbr.rel (!%p18_p4) target bundleno = 1 (0x1), region = 97 }

</bundles_post_ra>
